<compile_context>
chip_gen: v7x
topology: tpu7x:2x2x1
jax: 0.10.0
libtpu: 0.0.40
codegen_flags: <defaults>
</compile_context>

<pallas_src>
import math
from functools import partial

import numpy as np
import jax
import jax.numpy as jnp
from jax.experimental import pallas as pl
from jax.experimental.pallas import tpu as pltpu

SQRT2_INV = 0.7071067811865476
_GELU_C = 0.7978845608028654            # sqrt(2/pi)

_VMEM_LIMIT_CACHE = None


# ----------------------------- small helpers -------------------------------

def _vmem_limit():
    """Device-aware scoped-VMEM budget: ~half of physical VMEM, in [32, 96] MiB."""
    global _VMEM_LIMIT_CACHE
    if _VMEM_LIMIT_CACHE is None:
        cap = 64 * 1024 * 1024
        try:
            cap = int(getattr(pltpu.get_tpu_info(), "vmem_capacity_bytes", cap))
        except Exception:
            pass
        _VMEM_LIMIT_CACHE = max(32 * 1024 * 1024,
                                min(cap // 2, 96 * 1024 * 1024))
    return _VMEM_LIMIT_CACHE


def _cparams(semantics):
    return pltpu.CompilerParams(dimension_semantics=semantics,
                                vmem_limit_bytes=_vmem_limit())


def _tile(dim, cap, aligns=(8,)):
    """Largest tile <= cap that exactly divides dim, preferring coarser aligns."""
    if dim <= cap:
        return dim
    for align in aligns:
        t = (cap // align) * align
        while t >= align:
            if dim % t == 0:
                return t
            t -= align
    # TODO(synk): pad + mask instead of a full-dim (potentially VMEM-busting)
    # fallback when no aligned divisor exists.
    return dim


def _split_for_megacore(dim, tile, align):
    """v7x has 2 TensorCores: give 'parallel' grids >=2 points when possible."""
    if dim // tile < 2 and dim % (2 * align) == 0:
        return dim // 2
    return tile


def _bf16(x):
    return x.astype(jnp.bfloat16)


def _gelu_tanh(x):
    # tanh-approx GELU: the transcendental goes to the EUP slot, VALU stays free.
    return 0.5 * x * (1.0 + jnp.tanh(_GELU_C * (x + 0.044715 * x * x * x)))


def _gelu_exact(x):
    # exact (erf-based) GELU for the pure-JAX reference path (matches nn.GELU).
    return 0.5 * x * (1.0 + jax.lax.erf(x * SQRT2_INV))


def _ln(x, g, b, eps):
    mu = jnp.mean(x, axis=-1, keepdims=True)
    var = jnp.mean((x - mu) ** 2, axis=-1, keepdims=True)
    return (x - mu) * jax.lax.rsqrt(var + eps) * g + b


# ----------------------------- Pallas kernels ------------------------------

def _linear_kernel(x_ref, w_ref, b_ref, o_ref, acc_ref, *, act):
    """Tiled bf16 matmul with fp32 VMEM accumulator, fused bias(+GELU) epilogue."""
    @pl.when(pl.program_id(2) == 0)
    def _():
        acc_ref[...] = jnp.zeros_like(acc_ref)

    acc_ref[...] += jnp.dot(x_ref[...], w_ref[...],
                            preferred_element_type=jnp.float32)

    @pl.when(pl.program_id(2) == pl.num_programs(2) - 1)
    def _():
        y = acc_ref[...] + b_ref[...]
        if act == "gelu":
            y = _gelu_tanh(y)
        o_ref[...] = y.astype(o_ref.dtype)


def _token_mix_kernel(x_ref, g_ref, b_ref, w1_ref, b1_ref, w2_ref, b2_ref,
                      o_ref, *, eps):
    """Fused token-mixing PreNormResidual: x + W2 @ GELU(W1 @ LN(x) + b1) + b2.

    Token mixing (Conv1d k=1 over the L axis) is a left matmul over L, so the
    channel axis stays on lanes and no layout transposes are needed.
    TODO(synk): K-tile w1/w2 via a reduction grid axis for large L/C."""
    x = x_ref[0]                                          # (L, C) fp32
    xn = _bf16(_ln(x, g_ref[...], b_ref[...], eps))
    h = jnp.dot(w1_ref[...], xn, preferred_element_type=jnp.float32) + b1_ref[...]
    h = _bf16(_gelu_tanh(h))
    y = jnp.dot(w2_ref[...], h, preferred_element_type=jnp.float32) + b2_ref[...]
    o_ref[0] = x + y


def _channel_mix_kernel(x_ref, g_ref, b_ref, w1_ref, b1_ref, w2_ref, b2_ref,
                        o_ref, *, eps):
    """Fused channel-mixing PreNormResidual: x + GELU(LN(x)@W1 + b1)@W2 + b2.
    TODO(synk): K-tile ch_w1/ch_w2 via a reduction grid axis for large C."""
    x = x_ref[...]                                        # (tm, C) fp32
    xn = _bf16(_ln(x, g_ref[...], b_ref[...], eps))
    h = jnp.dot(xn, w1_ref[...], preferred_element_type=jnp.float32) + b1_ref[...]
    h = _bf16(_gelu_tanh(h))
    o_ref[...] = x + jnp.dot(h, w2_ref[...],
                             preferred_element_type=jnp.float32) + b2_ref[...]


def _attn_block_kernel(qkv_ref, x_ref, wo_ref, g_ref, b_ref, y_ref,
                       *, num_heads, eps):
    """Fused DiffAttention + W_o + AddNorm(0.5*attn, 0.5*x) on a tile of L.

    Lane-dense layout: inputs (B, tl, 3C) / (B, tl, C), output (B, tl, C),
    all with C on lanes; no HBM transposes around attention.

    Matches the PyTorch reference exactly: attention is across the flattened
    batch*head axis, batched over sequence positions (that is what the
    original einsums compute).  Since the contraction dim Dh is tiny, scores
    are computed with VPU elementwise ops + lane reductions (the MXU would be
    nearly empty at Dh-wide contractions); the unroll is over H * B*H pairs.
    TODO(synk): switch to a batched-matmul formulation for large B*num_heads."""
    B, tl, C3 = qkv_ref.shape
    C = C3 // 3
    H = num_heads
    Dh = C // H

    qkv = qkv_ref[...]                                    # (B, tl, 3C) fp32

    head_out = []                                         # H x (B, tl, Dh)
    for h1 in range(H):
        q = qkv[:, :, h1 * Dh:(h1 + 1) * Dh]              # (B, tl, Dh)
        num = jnp.zeros_like(q)
        den = jnp.zeros((B, tl, 1), jnp.float32)
        for b2 in range(B):
            for h2 in range(H):
                k = qkv[b2:b2 + 1, :, C + h2 * Dh:C + (h2 + 1) * Dh]
                v = qkv[b2:b2 + 1, :, 2 * C + h2 * Dh:2 * C + (h2 + 1) * Dh]
                s = jnp.sum(q * k, axis=-1, keepdims=True)        # (B, tl, 1)
                a = jax.nn.sigmoid(s)
                den = den + a
                num = num + a * v
        head_out.append(num * pl.reciprocal(den, approx=True))

    x = x_ref[...]                                        # (B, tl, C) fp32
    g = g_ref[...]
    bb = b_ref[...]
    for b1 in range(B):
        proj = jnp.zeros((tl, C), jnp.float32)
        for h1 in range(H):
            proj = proj + jnp.dot(_bf16(head_out[h1][b1]), wo_ref[h1],
                                  preferred_element_type=jnp.float32)
        z = 0.5 * proj + 0.5 * x[b1]
        y_ref[b1] = _ln(z, g, bb, eps)


# ----------------------------- Pallas wrappers -----------------------------

def pallas_linear(x, w, b=None, act=None):
    M, K = x.shape
    _, N = w.shape
    if b is None:
        b = jnp.zeros((N,), jnp.float32)
    b2 = b.reshape(1, N).astype(jnp.float32)

    tm = _tile(M, 512, (8,))
    tn = _tile(N, 512, (256, 128))
    tk = _tile(K, 1024, (256, 128))
    if (M // tm) * (N // tn) < 2:
        tn = _split_for_megacore(N, tn, 128)
    if (M // tm) * (N // tn) < 2:
        tm = _split_for_megacore(M, tm, 8)

    grid = (M // tm, N // tn, K // tk)
    return pl.pallas_call(
        partial(_linear_kernel, act=act),
        out_shape=jax.ShapeDtypeStruct((M, N), jnp.float32),
        grid=grid,
        in_specs=[
            pl.BlockSpec((tm, tk), lambda i, j, k: (i, k)),
            pl.BlockSpec((tk, tn), lambda i, j, k: (k, j)),
            pl.BlockSpec((1, tn), lambda i, j, k: (0, j)),
        ],
        out_specs=pl.BlockSpec((tm, tn), lambda i, j, k: (i, j)),
        scratch_shapes=[pltpu.VMEM((tm, tn), jnp.float32)],
        compiler_params=_cparams(("parallel", "parallel", "arbitrary")),
    )(_bf16(x), _bf16(w), b2)


def pallas_token_mix(x, p, eps=1e-5):
    B, L, C = x.shape
    Lt = p["tok_w1"].shape[0]
    return pl.pallas_call(
        partial(_token_mix_kernel, eps=eps),
        out_shape=jax.ShapeDtypeStruct((B, L, C), jnp.float32),
        grid=(B,),
        in_specs=[
            pl.BlockSpec((1, L, C), lambda b: (b, 0, 0)),
            pl.BlockSpec((1, C), lambda b: (0, 0)),
            pl.BlockSpec((1, C), lambda b: (0, 0)),
            pl.BlockSpec((Lt, L), lambda b: (0, 0)),
            pl.BlockSpec((Lt, 1), lambda b: (0, 0)),
            pl.BlockSpec((L, Lt), lambda b: (0, 0)),
            pl.BlockSpec((L, 1), lambda b: (0, 0)),
        ],
        out_specs=pl.BlockSpec((1, L, C), lambda b: (b, 0, 0)),
        compiler_params=_cparams(("parallel",)),
    )(x, p["ln1_g"], p["ln1_b"], _bf16(p["tok_w1"]), p["tok_b1"],
      _bf16(p["tok_w2"]), p["tok_b2"])


def pallas_channel_mix(x, p, eps=1e-5):
    B, L, C = x.shape
    Ci = p["ch_w1"].shape[1]
    M = B * L
    tm = _tile(M, 512, (8,))
    tm = _split_for_megacore(M, tm, 8)
    y = pl.pallas_call(
        partial(_channel_mix_kernel, eps=eps),
        out_shape=jax.ShapeDtypeStruct((M, C), jnp.float32),
        grid=(M // tm,),
        in_specs=[
            pl.BlockSpec((tm, C), lambda i: (i, 0)),
            pl.BlockSpec((1, C), lambda i: (0, 0)),
            pl.BlockSpec((1, C), lambda i: (0, 0)),
            pl.BlockSpec((C, Ci), lambda i: (0, 0)),
            pl.BlockSpec((1, Ci), lambda i: (0, 0)),
            pl.BlockSpec((Ci, C), lambda i: (0, 0)),
            pl.BlockSpec((1, C), lambda i: (0, 0)),
        ],
        out_specs=pl.BlockSpec((tm, C), lambda i: (i, 0)),
        compiler_params=_cparams(("parallel",)),
    )(x.reshape(M, C), p["ln2_g"], p["ln2_b"],
      _bf16(p["ch_w1"]), p["ch_b1"], _bf16(p["ch_w2"]), p["ch_b2"])
    return y.reshape(B, L, C)


def pallas_attn_block(qkv, x, wo, g, b, num_heads, eps=1e-5):
    B, L, C3 = qkv.shape
    C = C3 // 3
    Dh = C // num_heads
    woh = _bf16(wo.reshape(num_heads, Dh, C))     # per-head rows of W_o
    tl = _tile(L, 256, (8,))
    tl = _split_for_megacore(L, tl, 8)
    return pl.pallas_call(
        partial(_attn_block_kernel, num_heads=num_heads, eps=eps),
        out_shape=jax.ShapeDtypeStruct((B, L, C), jnp.float32),
        grid=(L // tl,),
        in_specs=[
            pl.BlockSpec((B, tl, C3), lambda i: (0, i, 0)),
            pl.BlockSpec((B, tl, C), lambda i: (0, i, 0)),
            pl.BlockSpec((num_heads, Dh, C), lambda i: (0, 0, 0)),
            pl.BlockSpec((1, C), lambda i: (0, 0)),
            pl.BlockSpec((1, C), lambda i: (0, 0)),
        ],
        out_specs=pl.BlockSpec((B, tl, C), lambda i: (0, i, 0)),
        compiler_params=_cparams(("parallel",)),
    )(qkv, x, woh, g, b)


# ----------------------------- reference ops (pure JAX, fp32) ---------------

_HI = jax.lax.Precision.HIGHEST


def ref_linear(x, w, b=None, act=None):
    y = jnp.dot(x, w, precision=_HI)
    if b is not None:
        y = y + b.reshape(1, -1)
    if act == "gelu":
        y = _gelu_exact(y)
    return y


def ref_token_mix(x, p, eps=1e-5):
    xn = _ln(x, p["ln1_g"], p["ln1_b"], eps)
    h = jnp.einsum("tl,blc->btc", p["tok_w1"], xn, precision=_HI) + p["tok_b1"]
    h = _gelu_exact(h)
    y = jnp.einsum("lt,btc->blc", p["tok_w2"], h, precision=_HI) + p["tok_b2"]
    return x + y


def ref_channel_mix(x, p, eps=1e-5):
    xn = _ln(x, p["ln2_g"], p["ln2_b"], eps)
    h = _gelu_exact(jnp.dot(xn, p["ch_w1"], precision=_HI) + p["ch_b1"])
    return x + jnp.dot(h, p["ch_w2"], precision=_HI) + p["ch_b2"]


def ref_attn_block(qkv, x, wo, g, b, num_heads, eps=1e-5):
    B, L, C3 = qkv.shape
    C = C3 // 3
    H, Dh = num_heads, C3 // 3 // num_heads

    def t_qkv(t):                                   # transpose_qkv
        t = jnp.transpose(t.reshape(B, L, H, Dh), (0, 2, 1, 3))
        return t.reshape(B * H, L, Dh)

    q = t_qkv(qkv[..., :C])
    k = t_qkv(qkv[..., C:2 * C])
    v = t_qkv(qkv[..., 2 * C:])
    a = jax.nn.sigmoid(jnp.einsum("nhm,lhm->nlh", q, k, precision=_HI))
    attn = a / jnp.sum(a, axis=1, keepdims=True)
    o = jnp.einsum("nlh,lhd->nhd", attn, v, precision=_HI)
    o = jnp.transpose(o.reshape(B, H, L, Dh), (0, 2, 1, 3)).reshape(B, L, C)
    z = 0.5 * jnp.einsum("blc,cd->bld", o, wo, precision=_HI) + 0.5 * x
    return _ln(z, g, b, eps)


# ----------------------------- model forward -------------------------------

def conv1d(x, W, b, stride, pad, ops):
    """x: (B, Cin, L) NCL; W: (Cout, Cin, k) torch layout.
    Returns (B, Lout, Cout) (== torch conv output already permuted (0,2,1))."""
    B, Cin, L = x.shape
    Cout, _, k = W.shape
    Lout = (L + 2 * pad - k) // stride + 1
    xp = jnp.pad(x, ((0, 0), (0, 0), (pad, pad)))
    idx = jnp.arange(Lout)[:, None] * stride + jnp.arange(k)[None, :]
    patches = xp[:, :, idx]                                  # (B, Cin, Lout, k)
    patches = jnp.transpose(patches, (0, 2, 1, 3)).reshape(B * Lout, Cin * k)
    Wf = W.reshape(Cout, Cin * k).T                          # (Cin*k, Cout)
    # TODO(synk): for large L, fuse the im2col patch extraction into the conv
    # matmul (k shifted accumulating matmuls with pl.ds windows) instead of
    # materializing patches in HBM.
    y = ops["linear"](patches, Wf, b)                        # tiled Pallas matmul
    return y.reshape(B, Lout, Cout)


def mlp_mixer(x, p, ops):
    x = ops["token_mix"](x, p)      # PreNormResidual #1 (token mixing)
    x = ops["channel_mix"](x, p)    # PreNormResidual #2 (channel mixing)
    return x


def encoder_block(x, p, num_heads, ops):
    B, L, C = x.shape
    # fused QKV projection: one (C, 3C) matmul instead of three calls
    wqkv = jnp.concatenate([p["wq"], p["wk"], p["wv"]], axis=1)
    qkv = ops["linear"](x.reshape(-1, C), wqkv).reshape(B, L, 3 * C)
    # fused DiffAttention + W_o + AddNorm(0.5*attn, 0.5*x); dropout p=0 -> id
    return ops["attn_block"](qkv, x, p["wo"], p["ln_g"], p["ln_b"], num_heads)


def forward(X, params, *, cfg, ops):
    B = X.shape[0]
    H = cfg["num_heads"]
    X1 = conv1d(X, params["cv1_w"], params["cv1_b"], 1, 0, ops)
    X3 = conv1d(X, params["cv3_w"], params["cv3_b"], 2, 1, ops)
    X5 = conv1d(X, params["cv5_w"], params["cv5_b"], 3, 2, ops)
    X1 = mlp_mixer(X1, params["mixer1"], ops)
    X3 = mlp_mixer(X3, params["mixer3"], ops)
    X5 = mlp_mixer(X5, params["mixer5"], ops)
    for p in params["enc1"]:
        X1 = encoder_block(X1, p, H, ops)
    for p in params["enc3"]:
        X3 = encoder_block(X3, p, H, ops)
    for p in params["enc5"]:
        X5 = encoder_block(X5, p, H, ops)
    Y1 = ops["linear"](X1.reshape(B, -1), params["lin1_w"], params["lin1_b"])
    Y3 = ops["linear"](X3.reshape(B, -1), params["lin3_w"], params["lin3_b"])
    Y5 = ops["linear"](X5.reshape(B, -1), params["lin5_w"], params["lin5_b"])
    out = Y1 + Y3 + Y5
    return ops["linear"](out, params["fc_w"], params["fc_b"])


# ----------------------------- parameters ----------------------------------

def init_params(cfg, key):
    in_ch = cfg["in_channel"]
    C1, C3, C5 = cfg["cv_kernel"]
    L = cfg["length"]
    L1, L3, L5 = L, math.ceil(L / 2), math.ceil(L / 3)
    keys = iter(jax.random.split(key, 256))

    def w(shape, scale=0.1):
        return scale * jax.random.normal(next(keys), shape, jnp.float32)

    def ln(C):
        return jnp.ones((1, C), jnp.float32), jnp.zeros((1, C), jnp.float32)

    def mixer(Lx, C, tok_e, ch_e):
        Lt, Ci = int(Lx * tok_e), int(C * ch_e)
        g1, b1 = ln(C)
        g2, b2 = ln(C)
        return dict(ln1_g=g1, ln1_b=b1,
                    tok_w1=w((Lt, Lx)), tok_b1=w((Lt, 1)),
                    tok_w2=w((Lx, Lt)), tok_b2=w((Lx, 1)),
                    ln2_g=g2, ln2_b=b2,
                    ch_w1=w((C, Ci)), ch_b1=w((1, Ci)),
                    ch_w2=w((Ci, C)), ch_b2=w((1, C)))

    def block(C):
        g, b = ln(C)
        return dict(wq=w((C, C)), wk=w((C, C)), wv=w((C, C)), wo=w((C, C)),
                    ln_g=g, ln_b=b)

    nl = cfg["num_layers"]
    return dict(
        cv1_w=w((C1, in_ch, 1)), cv1_b=w((C1,)),
        cv3_w=w((C3, in_ch, 3)), cv3_b=w((C3,)),
        cv5_w=w((C5, in_ch, 5)), cv5_b=w((C5,)),
        mixer1=mixer(L1, C1, 2, 2),
        mixer3=mixer(L3, C3, 2, 2),
        mixer5=mixer(L5, C5, cfg["token_e"], cfg["channl_e"]),
        enc1=[block(C1) for _ in range(nl)],
        enc3=[block(C3) for _ in range(nl)],
        enc5=[block(C5) for _ in range(nl)],
        lin1_w=w((C1 * L1, 128)), lin1_b=w((128,)),
        lin3_w=w((C3 * L3, 128)), lin3_b=w((128,)),
        lin5_w=w((C5 * L5, 128)), lin5_b=w((128,)),
        fc_w=w((128, 2)), fc_b=w((2,)),
    )


# ----------------------------- main -----------------------------------------

if __name__ == "__main__":
    cfg = dict(in_channel=4, cv_kernel=(8, 8, 8), num_heads=2, num_layers=1,
               length=16, token_e=2, channl_e=2, dropout=0.0)

    key = jax.random.PRNGKey(0)
    kx, kp = jax.random.split(key)
    params = init_params(cfg, kp)
    X = jax.random.normal(kx, (2, cfg["in_channel"], cfg["length"]), jnp.float32)

    pallas_ops = dict(linear=pallas_linear,
                      token_mix=pallas_token_mix,
                      channel_mix=pallas_channel_mix,
                      attn_block=pallas_attn_block)
    ref_ops = dict(linear=ref_linear,
                   token_mix=ref_token_mix,
                   channel_mix=ref_channel_mix,
                   attn_block=ref_attn_block)

    fwd_pallas = jax.jit(partial(forward, cfg=cfg, ops=pallas_ops))
    out = jax.block_until_ready(fwd_pallas(X, params))

    fwd_ref = jax.jit(partial(forward, cfg=cfg, ops=ref_ops))
    ref = jax.block_until_ready(fwd_ref(X, params))

    assert out.shape == (2, 2), out.shape
    assert bool(jnp.all(jnp.isfinite(out)))
    # bf16 MXU inputs + tanh GELU + approx reciprocal vs exact fp32 reference
    np.testing.assert_allclose(np.asarray(out), np.asarray(ref),
                               rtol=4e-2, atol=4e-2)
    print("KERNEL_OK")
</pallas_src>

<mosaic_0001>
module attributes {stable_mosaic.version = 11 : i64} {
  func.func @_linear_kernel(%arg0: i32, %arg1: i32, %arg2: i32, %arg3: memref<16x4xbf16, #tpu.memory_space<vmem>>, %arg4: memref<4x8xbf16, #tpu.memory_space<vmem>>, %arg5: memref<1x8xf32, #tpu.memory_space<vmem>>, %arg6: memref<16x8xf32, #tpu.memory_space<vmem>>, %arg7: memref<16x8xf32, #tpu.memory_space<vmem>>) attributes {dimension_semantics = [#tpu.dimension_semantics<parallel>, #tpu.dimension_semantics<parallel>, #tpu.dimension_semantics<arbitrary>], iteration_bounds = array<i64: 2, 1, 1>, scalar_prefetch = 0 : i64, scratch_operands = 1 : i64, tpu.core_type = #tpu.core_type<tc>, window_params = [{transform_indices = @transform_0, window_bounds = array<i64: 16, 4>}, {transform_indices = @transform_1, window_bounds = array<i64: 4, 8>}, {transform_indices = @transform_2, window_bounds = array<i64: 1, 8>}, {transform_indices = @transform_3, window_bounds = array<i64: 16, 8>}]} {
    %c0_i32 = arith.constant 0 : i32
    %0 = arith.cmpi eq, %arg2, %c0_i32 : i32
    %1 = arith.extui %0 : i1 to i32
    %c0_i32_0 = arith.constant 0 : i32
    %2 = arith.cmpi ne, %1, %c0_i32_0 : i32
    scf.if %2 {
      %cst_10 = arith.constant 0.000000e+00 : f32
      %12 = vector.broadcast %cst_10 : f32 to vector<16x8xf32>
      %c0_11 = arith.constant 0 : index
      %c0_12 = arith.constant 0 : index
      %13 = vector.load %arg7[%c0_11, %c0_12] : memref<16x8xf32, #tpu.memory_space<vmem>>, vector<16x8xf32>
      tpu.vector_store %arg7[%c0_11, %c0_12], %12 {strides = array<i32>} : memref<16x8xf32, #tpu.memory_space<vmem>>, vector<16x8xf32>,
    } else {
    }
    %c0 = arith.constant 0 : index
    %c0_1 = arith.constant 0 : index
    %3 = vector.load %arg7[%c0, %c0_1] : memref<16x8xf32, #tpu.memory_space<vmem>>, vector<16x8xf32>
    %c0_2 = arith.constant 0 : index
    %c0_3 = arith.constant 0 : index
    %4 = vector.load %arg3[%c0_2, %c0_3] : memref<16x4xbf16, #tpu.memory_space<vmem>>, vector<16x4xbf16>
    %c0_4 = arith.constant 0 : index
    %c0_5 = arith.constant 0 : index
    %5 = vector.load %arg4[%c0_4, %c0_5] : memref<4x8xbf16, #tpu.memory_space<vmem>>, vector<4x8xbf16>
    %cst = arith.constant dense<0.000000e+00> : vector<16x8xf32>
    %6 = tpu.matmul %4, %5, %cst {dimension_numbers = #tpu.dot_dimension_numbers<[1], [0], [0], [1], [0, 0, 1, 1], [], []>} : vector<16x4xbf16>, vector<4x8xbf16>, vector<16x8xf32> -> vector<16x8xf32>
    %7 = arith.addf %3, %6 : vector<16x8xf32>
    %c0_6 = arith.constant 0 : index
    %c0_7 = arith.constant 0 : index
    %8 = vector.load %arg7[%c0_6, %c0_7] : memref<16x8xf32, #tpu.memory_space<vmem>>, vector<16x8xf32>
    tpu.vector_store %arg7[%c0_6, %c0_7], %7 {strides = array<i32>} : memref<16x8xf32, #tpu.memory_space<vmem>>, vector<16x8xf32>,
    %c0_i32_8 = arith.constant 0 : i32
    %9 = arith.cmpi eq, %arg2, %c0_i32_8 : i32
    %10 = arith.extui %9 : i1 to i32
    %c0_i32_9 = arith.constant 0 : i32
    %11 = arith.cmpi ne, %10, %c0_i32_9 : i32
    scf.if %11 {
      %c0_10 = arith.constant 0 : index
      %c0_11 = arith.constant 0 : index
      %12 = vector.load %arg7[%c0_10, %c0_11] : memref<16x8xf32, #tpu.memory_space<vmem>>, vector<16x8xf32>
      %c0_12 = arith.constant 0 : index
      %c0_13 = arith.constant 0 : index
      %13 = vector.load %arg5[%c0_12, %c0_13] : memref<1x8xf32, #tpu.memory_space<vmem>>, vector<1x8xf32>
      %14 = vector.broadcast %13 : vector<1x8xf32> to vector<16x8xf32>
      %15 = arith.addf %12, %14 : vector<16x8xf32>
      %c0_14 = arith.constant 0 : index
      %c0_15 = arith.constant 0 : index
      %16 = vector.load %arg6[%c0_14, %c0_15] : memref<16x8xf32, #tpu.memory_space<vmem>>, vector<16x8xf32>
      tpu.vector_store %arg6[%c0_14, %c0_15], %15 {strides = array<i32>} : memref<16x8xf32, #tpu.memory_space<vmem>>, vector<16x8xf32>,
    } else {
    }
    return
  }
  func.func @transform_0(%arg0: i32, %arg1: i32, %arg2: i32) -> (i32, i32) {
    %c0_i32 = arith.constant 0 : i32
    return %arg0, %arg2 : i32, i32
  }
  func.func @transform_1(%arg0: i32, %arg1: i32, %arg2: i32) -> (i32, i32) {
    %c0_i32 = arith.constant 0 : i32
    return %arg2, %arg1 : i32, i32
  }
  func.func @transform_2(%arg0: i32, %arg1: i32, %arg2: i32) -> (i32, i32) {
    %c0_i32 = arith.constant 0 : i32
    %c0_i32_0 = arith.constant 0 : i32
    return %c0_i32, %arg1 : i32, i32
  }
  func.func @transform_3(%arg0: i32, %arg1: i32, %arg2: i32) -> (i32, i32) {
    %c0_i32 = arith.constant 0 : i32
    return %arg0, %arg1 : i32, i32
  }
}

module attributes {stable_mosaic.version = 11 : i64} {
  func.func @_token_mix_kernel(%arg0: i32, %arg1: memref<1x16x8xf32, #tpu.memory_space<vmem>>, %arg2: memref<1x8xf32, #tpu.memory_space<vmem>>, %arg3: memref<1x8xf32, #tpu.memory_space<vmem>>, %arg4: memref<32x16xbf16, #tpu.memory_space<vmem>>, %arg5: memref<32x1xf32, #tpu.memory_space<vmem>>, %arg6: memref<16x32xbf16, #tpu.memory_space<vmem>>, %arg7: memref<16x1xf32, #tpu.memory_space<vmem>>, %arg8: memref<1x16x8xf32, #tpu.memory_space<vmem>>) attributes {dimension_semantics = [#tpu.dimension_semantics<parallel>], iteration_bounds = array<i64: 2>, scalar_prefetch = 0 : i64, scratch_operands = 0 : i64, tpu.core_type = #tpu.core_type<tc>, window_params = [{transform_indices = @transform_0, window_bounds = array<i64: 1, 16, 8>}, {pipeline_mode = #tpu.pipeline_mode<synchronous>, transform_indices = @transform_1, window_bounds = array<i64: 1, 8>}, {pipeline_mode = #tpu.pipeline_mode<synchronous>, transform_indices = @transform_2, window_bounds = array<i64: 1, 8>}, {pipeline_mode = #tpu.pipeline_mode<synchronous>, transform_indices = @transform_3, window_bounds = array<i64: 32, 16>}, {pipeline_mode = #tpu.pipeline_mode<synchronous>, transform_indices = @transform_4, window_bounds = array<i64: 32, 1>}, {pipeline_mode = #tpu.pipeline_mode<synchronous>, transform_indices = @transform_5, window_bounds = array<i64: 16, 32>}, {pipeline_mode = #tpu.pipeline_mode<synchronous>, transform_indices = @transform_6, window_bounds = array<i64: 16, 1>}, {transform_indices = @transform_7, window_bounds = array<i64: 1, 16, 8>}]} {
    %c0 = arith.constant 0 : index
    %c0_0 = arith.constant 0 : index
    %c0_1 = arith.constant 0 : index
    %0 = vector.load %arg1[%c0, %c0_0, %c0_1] : memref<1x16x8xf32, #tpu.memory_space<vmem>>, vector<1x16x8xf32>
    %1 = vector.shape_cast %0 : vector<1x16x8xf32> to vector<16x8xf32>
    %c0_2 = arith.constant 0 : index
    %c0_3 = arith.constant 0 : index
    %2 = vector.load %arg2[%c0_2, %c0_3] : memref<1x8xf32, #tpu.memory_space<vmem>>, vector<1x8xf32>
    %c0_4 = arith.constant 0 : index
    %c0_5 = arith.constant 0 : index
    %3 = vector.load %arg3[%c0_4, %c0_5] : memref<1x8xf32, #tpu.memory_space<vmem>>, vector<1x8xf32>
    %cst = arith.constant dense<0.000000e+00> : vector<16xf32>
    %4 = vector.multi_reduction <add>, %1, %cst [1] : vector<16x8xf32> to vector<16xf32>
    %5 = vector.shape_cast %4 : vector<16xf32> to vector<16x1xf32>
    %cst_6 = arith.constant 8.000000e+00 : f32
    %6 = vector.broadcast %cst_6 : f32 to vector<16x1xf32>
    %7 = arith.divf %5, %6 : vector<16x1xf32>
    %8 = vector.broadcast %7 : vector<16x1xf32> to vector<16x8xf32>
    %9 = arith.subf %1, %8 : vector<16x8xf32>
    %10 = arith.mulf %9, %9 : vector<16x8xf32>
    %cst_7 = arith.constant dense<0.000000e+00> : vector<16xf32>
    %11 = vector.multi_reduction <add>, %10, %cst_7 [1] : vector<16x8xf32> to vector<16xf32>
    %12 = vector.shape_cast %11 : vector<16xf32> to vector<16x1xf32>
    %cst_8 = arith.constant 8.000000e+00 : f32
    %13 = vector.broadcast %cst_8 : f32 to vector<16x1xf32>
    %14 = arith.divf %12, %13 : vector<16x1xf32>
    %15 = vector.broadcast %7 : vector<16x1xf32> to vector<16x8xf32>
    %16 = arith.subf %1, %15 : vector<16x8xf32>
    %cst_9 = arith.constant 9.99999974E-6 : f32
    %17 = vector.broadcast %cst_9 : f32 to vector<16x1xf32>
    %18 = arith.addf %14, %17 : vector<16x1xf32>
    %19 = math.rsqrt %18 : vector<16x1xf32>
    %20 = vector.broadcast %19 : vector<16x1xf32> to vector<16x8xf32>
    %21 = arith.mulf %16, %20 : vector<16x8xf32>
    %22 = vector.broadcast %2 : vector<1x8xf32> to vector<16x8xf32>
    %23 = arith.mulf %21, %22 : vector<16x8xf32>
    %24 = vector.broadcast %3 : vector<1x8xf32> to vector<16x8xf32>
    %25 = arith.addf %23, %24 : vector<16x8xf32>
    %26 = arith.truncf %25 : vector<16x8xf32> to vector<16x8xbf16>
    %c0_10 = arith.constant 0 : index
    %c0_11 = arith.constant 0 : index
    %27 = vector.load %arg4[%c0_10, %c0_11] : memref<32x16xbf16, #tpu.memory_space<vmem>>, vector<32x16xbf16>
    %cst_12 = arith.constant dense<0.000000e+00> : vector<32x8xf32>
    %28 = tpu.matmul %27, %26, %cst_12 {dimension_numbers = #tpu.dot_dimension_numbers<[1], [0], [0], [1], [0, 0, 1, 1], [], []>} : vector<32x16xbf16>, vector<16x8xbf16>, vector<32x8xf32> -> vector<32x8xf32>
    %c0_13 = arith.constant 0 : index
    %c0_14 = arith.constant 0 : index
    %29 = vector.load %arg5[%c0_13, %c0_14] : memref<32x1xf32, #tpu.memory_space<vmem>>, vector<32x1xf32>
    %30 = vector.broadcast %29 : vector<32x1xf32> to vector<32x8xf32>
    %31 = arith.addf %28, %30 : vector<32x8xf32>
    %cst_15 = arith.constant 5.000000e-01 : f32
    %32 = vector.broadcast %cst_15 : f32 to vector<32x8xf32>
    %33 = arith.mulf %32, %31 : vector<32x8xf32>
    %cst_16 = arith.constant 4.471500e-02 : f32
    %34 = vector.broadcast %cst_16 : f32 to vector<32x8xf32>
    %35 = arith.mulf %34, %31 : vector<32x8xf32>
    %36 = arith.mulf %35, %31 : vector<32x8xf32>
    %37 = arith.mulf %36, %31 : vector<32x8xf32>
    %38 = arith.addf %31, %37 : vector<32x8xf32>
    %cst_17 = arith.constant 0.797884583 : f32
    %39 = vector.broadcast %cst_17 : f32 to vector<32x8xf32>
    %40 = arith.mulf %39, %38 : vector<32x8xf32>
    %41 = math.tanh %40 : vector<32x8xf32>
    %cst_18 = arith.constant 1.000000e+00 : f32
    %42 = vector.broadcast %cst_18 : f32 to vector<32x8xf32>
    %43 = arith.addf %42, %41 : vector<32x8xf32>
    %44 = arith.mulf %33, %43 : vector<32x8xf32>
    %45 = arith.truncf %44 : vector<32x8xf32> to vector<32x8xbf16>
    %c0_19 = arith.constant 0 : index
    %c0_20 = arith.constant 0 : index
    %46 = vector.load %arg6[%c0_19, %c0_20] : memref<16x32xbf16, #tpu.memory_space<vmem>>, vector<16x32xbf16>
    %cst_21 = arith.constant dense<0.000000e+00> : vector<16x8xf32>
    %47 = tpu.matmul %46, %45, %cst_21 {dimension_numbers = #tpu.dot_dimension_numbers<[1], [0], [0], [1], [0, 0, 1, 1], [], []>} : vector<16x32xbf16>, vector<32x8xbf16>, vector<16x8xf32> -> vector<16x8xf32>
    %c0_22 = arith.constant 0 : index
    %c0_23 = arith.constant 0 : index
    %48 = vector.load %arg7[%c0_22, %c0_23] : memref<16x1xf32, #tpu.memory_space<vmem>>, vector<16x1xf32>
    %49 = vector.broadcast %48 : vector<16x1xf32> to vector<16x8xf32>
    %50 = arith.addf %47, %49 : vector<16x8xf32>
    %51 = arith.addf %1, %50 : vector<16x8xf32>
    %c0_24 = arith.constant 0 : index
    %c0_25 = arith.constant 0 : index
    %c0_26 = arith.constant 0 : index
    %52 = vector.load %arg8[%c0_24, %c0_25, %c0_26] : memref<1x16x8xf32, #tpu.memory_space<vmem>>, vector<1x16x8xf32>
    %53 = vector.shape_cast %52 : vector<1x16x8xf32> to vector<16x8xf32>
    %54 = vector.shape_cast %51 : vector<16x8xf32> to vector<1x16x8xf32>
    tpu.vector_store %arg8[%c0_24, %c0_25, %c0_26], %54 {strides = array<i32>} : memref<1x16x8xf32, #tpu.memory_space<vmem>>, vector<1x16x8xf32>,
    return
  }
  func.func @transform_0(%arg0: i32) -> (i32, i32, i32) {
    %c0_i32 = arith.constant 0 : i32
    %c0_i32_0 = arith.constant 0 : i32
    %c0_i32_1 = arith.constant 0 : i32
    return %arg0, %c0_i32, %c0_i32_0 : i32, i32, i32
  }
  func.func @transform_1(%arg0: i32) -> (i32, i32) {
    %c0_i32 = arith.constant 0 : i32
    %c0_i32_0 = arith.constant 0 : i32
    %c0_i32_1 = arith.constant 0 : i32
    return %c0_i32, %c0_i32_0 : i32, i32
  }
  func.func @transform_2(%arg0: i32) -> (i32, i32) {
    %c0_i32 = arith.constant 0 : i32
    %c0_i32_0 = arith.constant 0 : i32
    %c0_i32_1 = arith.constant 0 : i32
    return %c0_i32, %c0_i32_0 : i32, i32
  }
  func.func @transform_3(%arg0: i32) -> (i32, i32) {
    %c0_i32 = arith.constant 0 : i32
    %c0_i32_0 = arith.constant 0 : i32
    %c0_i32_1 = arith.constant 0 : i32
    return %c0_i32, %c0_i32_0 : i32, i32
  }
  func.func @transform_4(%arg0: i32) -> (i32, i32) {
    %c0_i32 = arith.constant 0 : i32
    %c0_i32_0 = arith.constant 0 : i32
    %c0_i32_1 = arith.constant 0 : i32
    return %c0_i32, %c0_i32_0 : i32, i32
  }
  func.func @transform_5(%arg0: i32) -> (i32, i32) {
    %c0_i32 = arith.constant 0 : i32
    %c0_i32_0 = arith.constant 0 : i32
    %c0_i32_1 = arith.constant 0 : i32
    return %c0_i32, %c0_i32_0 : i32, i32
  }
  func.func @transform_6(%arg0: i32) -> (i32, i32) {
    %c0_i32 = arith.constant 0 : i32
    %c0_i32_0 = arith.constant 0 : i32
    %c0_i32_1 = arith.constant 0 : i32
    return %c0_i32, %c0_i32_0 : i32, i32
  }
  func.func @transform_7(%arg0: i32) -> (i32, i32, i32) {
    %c0_i32 = arith.constant 0 : i32
    %c0_i32_0 = arith.constant 0 : i32
    %c0_i32_1 = arith.constant 0 : i32
    return %arg0, %c0_i32, %c0_i32_0 : i32, i32, i32
  }
}

module attributes {stable_mosaic.version = 11 : i64} {
  func.func @_channel_mix_kernel(%arg0: i32, %arg1: memref<16x8xf32, #tpu.memory_space<vmem>>, %arg2: memref<1x8xf32, #tpu.memory_space<vmem>>, %arg3: memref<1x8xf32, #tpu.memory_space<vmem>>, %arg4: memref<8x16xbf16, #tpu.memory_space<vmem>>, %arg5: memref<1x16xf32, #tpu.memory_space<vmem>>, %arg6: memref<16x8xbf16, #tpu.memory_space<vmem>>, %arg7: memref<1x8xf32, #tpu.memory_space<vmem>>, %arg8: memref<16x8xf32, #tpu.memory_space<vmem>>) attributes {dimension_semantics = [#tpu.dimension_semantics<parallel>], iteration_bounds = array<i64: 2>, scalar_prefetch = 0 : i64, scratch_operands = 0 : i64, tpu.core_type = #tpu.core_type<tc>, window_params = [{transform_indices = @transform_0, window_bounds = array<i64: 16, 8>}, {pipeline_mode = #tpu.pipeline_mode<synchronous>, transform_indices = @transform_1, window_bounds = array<i64: 1, 8>}, {pipeline_mode = #tpu.pipeline_mode<synchronous>, transform_indices = @transform_2, window_bounds = array<i64: 1, 8>}, {pipeline_mode = #tpu.pipeline_mode<synchronous>, transform_indices = @transform_3, window_bounds = array<i64: 8, 16>}, {pipeline_mode = #tpu.pipeline_mode<synchronous>, transform_indices = @transform_4, window_bounds = array<i64: 1, 16>}, {pipeline_mode = #tpu.pipeline_mode<synchronous>, transform_indices = @transform_5, window_bounds = array<i64: 16, 8>}, {pipeline_mode = #tpu.pipeline_mode<synchronous>, transform_indices = @transform_6, window_bounds = array<i64: 1, 8>}, {transform_indices = @transform_7, window_bounds = array<i64: 16, 8>}]} {
    %c0 = arith.constant 0 : index
    %c0_0 = arith.constant 0 : index
    %0 = vector.load %arg1[%c0, %c0_0] : memref<16x8xf32, #tpu.memory_space<vmem>>, vector<16x8xf32>
    %c0_1 = arith.constant 0 : index
    %c0_2 = arith.constant 0 : index
    %1 = vector.load %arg2[%c0_1, %c0_2] : memref<1x8xf32, #tpu.memory_space<vmem>>, vector<1x8xf32>
    %c0_3 = arith.constant 0 : index
    %c0_4 = arith.constant 0 : index
    %2 = vector.load %arg3[%c0_3, %c0_4] : memref<1x8xf32, #tpu.memory_space<vmem>>, vector<1x8xf32>
    %cst = arith.constant dense<0.000000e+00> : vector<16xf32>
    %3 = vector.multi_reduction <add>, %0, %cst [1] : vector<16x8xf32> to vector<16xf32>
    %4 = vector.shape_cast %3 : vector<16xf32> to vector<16x1xf32>
    %cst_5 = arith.constant 8.000000e+00 : f32
    %5 = vector.broadcast %cst_5 : f32 to vector<16x1xf32>
    %6 = arith.divf %4, %5 : vector<16x1xf32>
    %7 = vector.broadcast %6 : vector<16x1xf32> to vector<16x8xf32>
    %8 = arith.subf %0, %7 : vector<16x8xf32>
    %9 = arith.mulf %8, %8 : vector<16x8xf32>
    %cst_6 = arith.constant dense<0.000000e+00> : vector<16xf32>
    %10 = vector.multi_reduction <add>, %9, %cst_6 [1] : vector<16x8xf32> to vector<16xf32>
    %11 = vector.shape_cast %10 : vector<16xf32> to vector<16x1xf32>
    %cst_7 = arith.constant 8.000000e+00 : f32
    %12 = vector.broadcast %cst_7 : f32 to vector<16x1xf32>
    %13 = arith.divf %11, %12 : vector<16x1xf32>
    %14 = vector.broadcast %6 : vector<16x1xf32> to vector<16x8xf32>
    %15 = arith.subf %0, %14 : vector<16x8xf32>
    %cst_8 = arith.constant 9.99999974E-6 : f32
    %16 = vector.broadcast %cst_8 : f32 to vector<16x1xf32>
    %17 = arith.addf %13, %16 : vector<16x1xf32>
    %18 = math.rsqrt %17 : vector<16x1xf32>
    %19 = vector.broadcast %18 : vector<16x1xf32> to vector<16x8xf32>
    %20 = arith.mulf %15, %19 : vector<16x8xf32>
    %21 = vector.broadcast %1 : vector<1x8xf32> to vector<16x8xf32>
    %22 = arith.mulf %20, %21 : vector<16x8xf32>
    %23 = vector.broadcast %2 : vector<1x8xf32> to vector<16x8xf32>
    %24 = arith.addf %22, %23 : vector<16x8xf32>
    %25 = arith.truncf %24 : vector<16x8xf32> to vector<16x8xbf16>
    %c0_9 = arith.constant 0 : index
    %c0_10 = arith.constant 0 : index
    %26 = vector.load %arg4[%c0_9, %c0_10] : memref<8x16xbf16, #tpu.memory_space<vmem>>, vector<8x16xbf16>
    %cst_11 = arith.constant dense<0.000000e+00> : vector<16x16xf32>
    %27 = tpu.matmul %25, %26, %cst_11 {dimension_numbers = #tpu.dot_dimension_numbers<[1], [0], [0], [1], [0, 0, 1, 1], [], []>} : vector<16x8xbf16>, vector<8x16xbf16>, vector<16x16xf32> -> vector<16x16xf32>
    %c0_12 = arith.constant 0 : index
    %c0_13 = arith.constant 0 : index
    %28 = vector.load %arg5[%c0_12, %c0_13] : memref<1x16xf32, #tpu.memory_space<vmem>>, vector<1x16xf32>
    %29 = vector.broadcast %28 : vector<1x16xf32> to vector<16x16xf32>
    %30 = arith.addf %27, %29 : vector<16x16xf32>
    %cst_14 = arith.constant 5.000000e-01 : f32
    %31 = vector.broadcast %cst_14 : f32 to vector<16x16xf32>
    %32 = arith.mulf %31, %30 : vector<16x16xf32>
    %cst_15 = arith.constant 4.471500e-02 : f32
    %33 = vector.broadcast %cst_15 : f32 to vector<16x16xf32>
    %34 = arith.mulf %33, %30 : vector<16x16xf32>
    %35 = arith.mulf %34, %30 : vector<16x16xf32>
    %36 = arith.mulf %35, %30 : vector<16x16xf32>
    %37 = arith.addf %30, %36 : vector<16x16xf32>
    %cst_16 = arith.constant 0.797884583 : f32
    %38 = vector.broadcast %cst_16 : f32 to vector<16x16xf32>
    %39 = arith.mulf %38, %37 : vector<16x16xf32>
    %40 = math.tanh %39 : vector<16x16xf32>
    %cst_17 = arith.constant 1.000000e+00 : f32
    %41 = vector.broadcast %cst_17 : f32 to vector<16x16xf32>
    %42 = arith.addf %41, %40 : vector<16x16xf32>
    %43 = arith.mulf %32, %42 : vector<16x16xf32>
    %44 = arith.truncf %43 : vector<16x16xf32> to vector<16x16xbf16>
    %c0_18 = arith.constant 0 : index
    %c0_19 = arith.constant 0 : index
    %45 = vector.load %arg6[%c0_18, %c0_19] : memref<16x8xbf16, #tpu.memory_space<vmem>>, vector<16x8xbf16>
    %cst_20 = arith.constant dense<0.000000e+00> : vector<16x8xf32>
    %46 = tpu.matmul %44, %45, %cst_20 {dimension_numbers = #tpu.dot_dimension_numbers<[1], [0], [0], [1], [0, 0, 1, 1], [], []>} : vector<16x16xbf16>, vector<16x8xbf16>, vector<16x8xf32> -> vector<16x8xf32>
    %47 = arith.addf %0, %46 : vector<16x8xf32>
    %c0_21 = arith.constant 0 : index
    %c0_22 = arith.constant 0 : index
    %48 = vector.load %arg7[%c0_21, %c0_22] : memref<1x8xf32, #tpu.memory_space<vmem>>, vector<1x8xf32>
    %49 = vector.broadcast %48 : vector<1x8xf32> to vector<16x8xf32>
    %50 = arith.addf %47, %49 : vector<16x8xf32>
    %c0_23 = arith.constant 0 : index
    %c0_24 = arith.constant 0 : index
    %51 = vector.load %arg8[%c0_23, %c0_24] : memref<16x8xf32, #tpu.memory_space<vmem>>, vector<16x8xf32>
    tpu.vector_store %arg8[%c0_23, %c0_24], %50 {strides = array<i32>} : memref<16x8xf32, #tpu.memory_space<vmem>>, vector<16x8xf32>,
    return
  }
  func.func @transform_0(%arg0: i32) -> (i32, i32) {
    %c0_i32 = arith.constant 0 : i32
    %c0_i32_0 = arith.constant 0 : i32
    return %arg0, %c0_i32 : i32, i32
  }
  func.func @transform_1(%arg0: i32) -> (i32, i32) {
    %c0_i32 = arith.constant 0 : i32
    %c0_i32_0 = arith.constant 0 : i32
    %c0_i32_1 = arith.constant 0 : i32
    return %c0_i32, %c0_i32_0 : i32, i32
  }
  func.func @transform_2(%arg0: i32) -> (i32, i32) {
    %c0_i32 = arith.constant 0 : i32
    %c0_i32_0 = arith.constant 0 : i32
    %c0_i32_1 = arith.constant 0 : i32
    return %c0_i32, %c0_i32_0 : i32, i32
  }
  func.func @transform_3(%arg0: i32) -> (i32, i32) {
    %c0_i32 = arith.constant 0 : i32
    %c0_i32_0 = arith.constant 0 : i32
    %c0_i32_1 = arith.constant 0 : i32
    return %c0_i32, %c0_i32_0 : i32, i32
  }
  func.func @transform_4(%arg0: i32) -> (i32, i32) {
    %c0_i32 = arith.constant 0 : i32
    %c0_i32_0 = arith.constant 0 : i32
    %c0_i32_1 = arith.constant 0 : i32
    return %c0_i32, %c0_i32_0 : i32, i32
  }
  func.func @transform_5(%arg0: i32) -> (i32, i32) {
    %c0_i32 = arith.constant 0 : i32
    %c0_i32_0 = arith.constant 0 : i32
    %c0_i32_1 = arith.constant 0 : i32
    return %c0_i32, %c0_i32_0 : i32, i32
  }
  func.func @transform_6(%arg0: i32) -> (i32, i32) {
    %c0_i32 = arith.constant 0 : i32
    %c0_i32_0 = arith.constant 0 : i32
    %c0_i32_1 = arith.constant 0 : i32
    return %c0_i32, %c0_i32_0 : i32, i32
  }
  func.func @transform_7(%arg0: i32) -> (i32, i32) {
    %c0_i32 = arith.constant 0 : i32
    %c0_i32_0 = arith.constant 0 : i32
    return %arg0, %c0_i32 : i32, i32
  }
}

module attributes {stable_mosaic.version = 11 : i64} {
  func.func @_linear_kernel(%arg0: i32, %arg1: i32, %arg2: i32, %arg3: memref<16x8xbf16, #tpu.memory_space<vmem>>, %arg4: memref<8x24xbf16, #tpu.memory_space<vmem>>, %arg5: memref<1x24xf32, #tpu.memory_space<vmem>>, %arg6: memref<16x24xf32, #tpu.memory_space<vmem>>, %arg7: memref<16x24xf32, #tpu.memory_space<vmem>>) attributes {dimension_semantics = [#tpu.dimension_semantics<parallel>, #tpu.dimension_semantics<parallel>, #tpu.dimension_semantics<arbitrary>], iteration_bounds = array<i64: 2, 1, 1>, scalar_prefetch = 0 : i64, scratch_operands = 1 : i64, tpu.core_type = #tpu.core_type<tc>, window_params = [{transform_indices = @transform_0, window_bounds = array<i64: 16, 8>}, {transform_indices = @transform_1, window_bounds = array<i64: 8, 24>}, {transform_indices = @transform_2, window_bounds = array<i64: 1, 24>}, {transform_indices = @transform_3, window_bounds = array<i64: 16, 24>}]} {
    %c0_i32 = arith.constant 0 : i32
    %0 = arith.cmpi eq, %arg2, %c0_i32 : i32
    %1 = arith.extui %0 : i1 to i32
    %c0_i32_0 = arith.constant 0 : i32
    %2 = arith.cmpi ne, %1, %c0_i32_0 : i32
    scf.if %2 {
      %cst_10 = arith.constant 0.000000e+00 : f32
      %12 = vector.broadcast %cst_10 : f32 to vector<16x24xf32>
      %c0_11 = arith.constant 0 : index
      %c0_12 = arith.constant 0 : index
      %13 = vector.load %arg7[%c0_11, %c0_12] : memref<16x24xf32, #tpu.memory_space<vmem>>, vector<16x24xf32>
      tpu.vector_store %arg7[%c0_11, %c0_12], %12 {strides = array<i32>} : memref<16x24xf32, #tpu.memory_space<vmem>>, vector<16x24xf32>,
    } else {
    }
    %c0 = arith.constant 0 : index
    %c0_1 = arith.constant 0 : index
    %3 = vector.load %arg7[%c0, %c0_1] : memref<16x24xf32, #tpu.memory_space<vmem>>, vector<16x24xf32>
    %c0_2 = arith.constant 0 : index
    %c0_3 = arith.constant 0 : index
    %4 = vector.load %arg3[%c0_2, %c0_3] : memref<16x8xbf16, #tpu.memory_space<vmem>>, vector<16x8xbf16>
    %c0_4 = arith.constant 0 : index
    %c0_5 = arith.constant 0 : index
    %5 = vector.load %arg4[%c0_4, %c0_5] : memref<8x24xbf16, #tpu.memory_space<vmem>>, vector<8x24xbf16>
    %cst = arith.constant dense<0.000000e+00> : vector<16x24xf32>
    %6 = tpu.matmul %4, %5, %cst {dimension_numbers = #tpu.dot_dimension_numbers<[1], [0], [0], [1], [0, 0, 1, 1], [], []>} : vector<16x8xbf16>, vector<8x24xbf16>, vector<16x24xf32> -> vector<16x24xf32>
    %7 = arith.addf %3, %6 : vector<16x24xf32>
    %c0_6 = arith.constant 0 : index
    %c0_7 = arith.constant 0 : index
    %8 = vector.load %arg7[%c0_6, %c0_7] : memref<16x24xf32, #tpu.memory_space<vmem>>, vector<16x24xf32>
    tpu.vector_store %arg7[%c0_6, %c0_7], %7 {strides = array<i32>} : memref<16x24xf32, #tpu.memory_space<vmem>>, vector<16x24xf32>,
    %c0_i32_8 = arith.constant 0 : i32
    %9 = arith.cmpi eq, %arg2, %c0_i32_8 : i32
    %10 = arith.extui %9 : i1 to i32
    %c0_i32_9 = arith.constant 0 : i32
    %11 = arith.cmpi ne, %10, %c0_i32_9 : i32
    scf.if %11 {
      %c0_10 = arith.constant 0 : index
      %c0_11 = arith.constant 0 : index
      %12 = vector.load %arg7[%c0_10, %c0_11] : memref<16x24xf32, #tpu.memory_space<vmem>>, vector<16x24xf32>
      %c0_12 = arith.constant 0 : index
      %c0_13 = arith.constant 0 : index
      %13 = vector.load %arg5[%c0_12, %c0_13] : memref<1x24xf32, #tpu.memory_space<vmem>>, vector<1x24xf32>
      %14 = vector.broadcast %13 : vector<1x24xf32> to vector<16x24xf32>
      %15 = arith.addf %12, %14 : vector<16x24xf32>
      %c0_14 = arith.constant 0 : index
      %c0_15 = arith.constant 0 : index
      %16 = vector.load %arg6[%c0_14, %c0_15] : memref<16x24xf32, #tpu.memory_space<vmem>>, vector<16x24xf32>
      tpu.vector_store %arg6[%c0_14, %c0_15], %15 {strides = array<i32>} : memref<16x24xf32, #tpu.memory_space<vmem>>, vector<16x24xf32>,
    } else {
    }
    return
  }
  func.func @transform_0(%arg0: i32, %arg1: i32, %arg2: i32) -> (i32, i32) {
    %c0_i32 = arith.constant 0 : i32
    return %arg0, %arg2 : i32, i32
  }
  func.func @transform_1(%arg0: i32, %arg1: i32, %arg2: i32) -> (i32, i32) {
    %c0_i32 = arith.constant 0 : i32
    return %arg2, %arg1 : i32, i32
  }
  func.func @transform_2(%arg0: i32, %arg1: i32, %arg2: i32) -> (i32, i32) {
    %c0_i32 = arith.constant 0 : i32
    %c0_i32_0 = arith.constant 0 : i32
    return %c0_i32, %arg1 : i32, i32
  }
  func.func @transform_3(%arg0: i32, %arg1: i32, %arg2: i32) -> (i32, i32) {
    %c0_i32 = arith.constant 0 : i32
    return %arg0, %arg1 : i32, i32
  }
}

module attributes {stable_mosaic.version = 11 : i64} {
  func.func @_attn_block_kernel(%arg0: i32, %arg1: memref<2x8x24xf32, #tpu.memory_space<vmem>>, %arg2: memref<2x8x8xf32, #tpu.memory_space<vmem>>, %arg3: memref<2x4x8xbf16, #tpu.memory_space<vmem>>, %arg4: memref<1x8xf32, #tpu.memory_space<vmem>>, %arg5: memref<1x8xf32, #tpu.memory_space<vmem>>, %arg6: memref<2x8x8xf32, #tpu.memory_space<vmem>>) attributes {dimension_semantics = [#tpu.dimension_semantics<parallel>], iteration_bounds = array<i64: 2>, scalar_prefetch = 0 : i64, scratch_operands = 0 : i64, tpu.core_type = #tpu.core_type<tc>, window_params = [{transform_indices = @transform_0, window_bounds = array<i64: 2, 8, 24>}, {transform_indices = @transform_1, window_bounds = array<i64: 2, 8, 8>}, {pipeline_mode = #tpu.pipeline_mode<synchronous>, transform_indices = @transform_2, window_bounds = array<i64: 2, 4, 8>}, {pipeline_mode = #tpu.pipeline_mode<synchronous>, transform_indices = @transform_3, window_bounds = array<i64: 1, 8>}, {pipeline_mode = #tpu.pipeline_mode<synchronous>, transform_indices = @transform_4, window_bounds = array<i64: 1, 8>}, {transform_indices = @transform_5, window_bounds = array<i64: 2, 8, 8>}]} {
    %c0 = arith.constant 0 : index
    %c0_0 = arith.constant 0 : index
    %c0_1 = arith.constant 0 : index
    %0 = vector.load %arg1[%c0, %c0_0, %c0_1] : memref<2x8x24xf32, #tpu.memory_space<vmem>>, vector<2x8x24xf32>
    %1 = vector.extract_strided_slice %0 {offsets = [0, 0, 0], sizes = [2, 8, 4], strides = [1, 1, 1]} : vector<2x8x24xf32> to vector<2x8x4xf32>
    %cst = arith.constant 0.000000e+00 : f32
    %2 = vector.broadcast %cst : f32 to vector<2x8x4xf32>
    %cst_2 = arith.constant 0.000000e+00 : f32
    %3 = vector.broadcast %cst_2 : f32 to vector<2x8x1xf32>
    %4 = vector.extract_strided_slice %0 {offsets = [0, 0, 8], sizes = [1, 8, 4], strides = [1, 1, 1]} : vector<2x8x24xf32> to vector<1x8x4xf32>
    %5 = vector.extract_strided_slice %0 {offsets = [0, 0, 16], sizes = [1, 8, 4], strides = [1, 1, 1]} : vector<2x8x24xf32> to vector<1x8x4xf32>
    %6 = vector.broadcast %4 : vector<1x8x4xf32> to vector<2x8x4xf32>
    %7 = arith.mulf %1, %6 : vector<2x8x4xf32>
    %cst_3 = arith.constant dense<0.000000e+00> : vector<2x8xf32>
    %8 = vector.multi_reduction <add>, %7, %cst_3 [2] : vector<2x8x4xf32> to vector<2x8xf32>
    %9 = vector.shape_cast %8 : vector<2x8xf32> to vector<2x8x1xf32>
    %10 = arith.negf %9 : vector<2x8x1xf32>
    %11 = math.exp %10 : vector<2x8x1xf32>
    %cst_4 = arith.constant 1.000000e+00 : f32
    %12 = vector.broadcast %cst_4 : f32 to vector<2x8x1xf32>
    %13 = arith.addf %12, %11 : vector<2x8x1xf32>
    %14 = arith.divf %12, %13 : vector<2x8x1xf32>
    %15 = arith.addf %3, %14 : vector<2x8x1xf32>
    %16 = vector.broadcast %14 : vector<2x8x1xf32> to vector<2x8x4xf32>
    %17 = vector.broadcast %5 : vector<1x8x4xf32> to vector<2x8x4xf32>
    %18 = arith.mulf %16, %17 : vector<2x8x4xf32>
    %19 = arith.addf %2, %18 : vector<2x8x4xf32>
    %20 = vector.extract_strided_slice %0 {offsets = [0, 0, 12], sizes = [1, 8, 4], strides = [1, 1, 1]} : vector<2x8x24xf32> to vector<1x8x4xf32>
    %21 = vector.extract_strided_slice %0 {offsets = [0, 0, 20], sizes = [1, 8, 4], strides = [1, 1, 1]} : vector<2x8x24xf32> to vector<1x8x4xf32>
    %22 = vector.broadcast %20 : vector<1x8x4xf32> to vector<2x8x4xf32>
    %23 = arith.mulf %1, %22 : vector<2x8x4xf32>
    %cst_5 = arith.constant dense<0.000000e+00> : vector<2x8xf32>
    %24 = vector.multi_reduction <add>, %23, %cst_5 [2] : vector<2x8x4xf32> to vector<2x8xf32>
    %25 = vector.shape_cast %24 : vector<2x8xf32> to vector<2x8x1xf32>
    %26 = arith.negf %25 : vector<2x8x1xf32>
    %27 = math.exp %26 : vector<2x8x1xf32>
    %cst_6 = arith.constant 1.000000e+00 : f32
    %28 = vector.broadcast %cst_6 : f32 to vector<2x8x1xf32>
    %29 = arith.addf %28, %27 : vector<2x8x1xf32>
    %30 = arith.divf %28, %29 : vector<2x8x1xf32>
    %31 = arith.addf %15, %30 : vector<2x8x1xf32>
    %32 = vector.broadcast %30 : vector<2x8x1xf32> to vector<2x8x4xf32>
    %33 = vector.broadcast %21 : vector<1x8x4xf32> to vector<2x8x4xf32>
    %34 = arith.mulf %32, %33 : vector<2x8x4xf32>
    %35 = arith.addf %19, %34 : vector<2x8x4xf32>
    %36 = vector.extract_strided_slice %0 {offsets = [1, 0, 8], sizes = [1, 8, 4], strides = [1, 1, 1]} : vector<2x8x24xf32> to vector<1x8x4xf32>
    %37 = vector.extract_strided_slice %0 {offsets = [1, 0, 16], sizes = [1, 8, 4], strides = [1, 1, 1]} : vector<2x8x24xf32> to vector<1x8x4xf32>
    %38 = vector.broadcast %36 : vector<1x8x4xf32> to vector<2x8x4xf32>
    %39 = arith.mulf %1, %38 : vector<2x8x4xf32>
    %cst_7 = arith.constant dense<0.000000e+00> : vector<2x8xf32>
    %40 = vector.multi_reduction <add>, %39, %cst_7 [2] : vector<2x8x4xf32> to vector<2x8xf32>
    %41 = vector.shape_cast %40 : vector<2x8xf32> to vector<2x8x1xf32>
    %42 = arith.negf %41 : vector<2x8x1xf32>
    %43 = math.exp %42 : vector<2x8x1xf32>
    %cst_8 = arith.constant 1.000000e+00 : f32
    %44 = vector.broadcast %cst_8 : f32 to vector<2x8x1xf32>
    %45 = arith.addf %44, %43 : vector<2x8x1xf32>
    %46 = arith.divf %44, %45 : vector<2x8x1xf32>
    %47 = arith.addf %31, %46 : vector<2x8x1xf32>
    %48 = vector.broadcast %46 : vector<2x8x1xf32> to vector<2x8x4xf32>
    %49 = vector.broadcast %37 : vector<1x8x4xf32> to vector<2x8x4xf32>
    %50 = arith.mulf %48, %49 : vector<2x8x4xf32>
    %51 = arith.addf %35, %50 : vector<2x8x4xf32>
    %52 = vector.extract_strided_slice %0 {offsets = [1, 0, 12], sizes = [1, 8, 4], strides = [1, 1, 1]} : vector<2x8x24xf32> to vector<1x8x4xf32>
    %53 = vector.extract_strided_slice %0 {offsets = [1, 0, 20], sizes = [1, 8, 4], strides = [1, 1, 1]} : vector<2x8x24xf32> to vector<1x8x4xf32>
    %54 = vector.broadcast %52 : vector<1x8x4xf32> to vector<2x8x4xf32>
    %55 = arith.mulf %1, %54 : vector<2x8x4xf32>
    %cst_9 = arith.constant dense<0.000000e+00> : vector<2x8xf32>
    %56 = vector.multi_reduction <add>, %55, %cst_9 [2] : vector<2x8x4xf32> to vector<2x8xf32>
    %57 = vector.shape_cast %56 : vector<2x8xf32> to vector<2x8x1xf32>
    %58 = arith.negf %57 : vector<2x8x1xf32>
    %59 = math.exp %58 : vector<2x8x1xf32>
    %cst_10 = arith.constant 1.000000e+00 : f32
    %60 = vector.broadcast %cst_10 : f32 to vector<2x8x1xf32>
    %61 = arith.addf %60, %59 : vector<2x8x1xf32>
    %62 = arith.divf %60, %61 : vector<2x8x1xf32>
    %63 = arith.addf %47, %62 : vector<2x8x1xf32>
    %64 = vector.broadcast %62 : vector<2x8x1xf32> to vector<2x8x4xf32>
    %65 = vector.broadcast %53 : vector<1x8x4xf32> to vector<2x8x4xf32>
    %66 = arith.mulf %64, %65 : vector<2x8x4xf32>
    %67 = arith.addf %51, %66 : vector<2x8x4xf32>
    %68 = tpu.reciprocal %63 {approx = true} : vector<2x8x1xf32> -> vector<2x8x1xf32>
    %69 = vector.broadcast %68 : vector<2x8x1xf32> to vector<2x8x4xf32>
    %70 = arith.mulf %67, %69 : vector<2x8x4xf32>
    %71 = vector.extract_strided_slice %0 {offsets = [0, 0, 4], sizes = [2, 8, 4], strides = [1, 1, 1]} : vector<2x8x24xf32> to vector<2x8x4xf32>
    %cst_11 = arith.constant 0.000000e+00 : f32
    %72 = vector.broadcast %cst_11 : f32 to vector<2x8x4xf32>
    %cst_12 = arith.constant 0.000000e+00 : f32
    %73 = vector.broadcast %cst_12 : f32 to vector<2x8x1xf32>
    %74 = vector.extract_strided_slice %0 {offsets = [0, 0, 8], sizes = [1, 8, 4], strides = [1, 1, 1]} : vector<2x8x24xf32> to vector<1x8x4xf32>
    %75 = vector.extract_strided_slice %0 {offsets = [0, 0, 16], sizes = [1, 8, 4], strides = [1, 1, 1]} : vector<2x8x24xf32> to vector<1x8x4xf32>
    %76 = vector.broadcast %74 : vector<1x8x4xf32> to vector<2x8x4xf32>
    %77 = arith.mulf %71, %76 : vector<2x8x4xf32>
    %cst_13 = arith.constant dense<0.000000e+00> : vector<2x8xf32>
    %78 = vector.multi_reduction <add>, %77, %cst_13 [2] : vector<2x8x4xf32> to vector<2x8xf32>
    %79 = vector.shape_cast %78 : vector<2x8xf32> to vector<2x8x1xf32>
    %80 = arith.negf %79 : vector<2x8x1xf32>
    %81 = math.exp %80 : vector<2x8x1xf32>
    %cst_14 = arith.constant 1.000000e+00 : f32
    %82 = vector.broadcast %cst_14 : f32 to vector<2x8x1xf32>
    %83 = arith.addf %82, %81 : vector<2x8x1xf32>
    %84 = arith.divf %82, %83 : vector<2x8x1xf32>
    %85 = arith.addf %73, %84 : vector<2x8x1xf32>
    %86 = vector.broadcast %84 : vector<2x8x1xf32> to vector<2x8x4xf32>
    %87 = vector.broadcast %75 : vector<1x8x4xf32> to vector<2x8x4xf32>
    %88 = arith.mulf %86, %87 : vector<2x8x4xf32>
    %89 = arith.addf %72, %88 : vector<2x8x4xf32>
    %90 = vector.extract_strided_slice %0 {offsets = [0, 0, 12], sizes = [1, 8, 4], strides = [1, 1, 1]} : vector<2x8x24xf32> to vector<1x8x4xf32>
    %91 = vector.extract_strided_slice %0 {offsets = [0, 0, 20], sizes = [1, 8, 4], strides = [1, 1, 1]} : vector<2x8x24xf32> to vector<1x8x4xf32>
    %92 = vector.broadcast %90 : vector<1x8x4xf32> to vector<2x8x4xf32>
    %93 = arith.mulf %71, %92 : vector<2x8x4xf32>
    %cst_15 = arith.constant dense<0.000000e+00> : vector<2x8xf32>
    %94 = vector.multi_reduction <add>, %93, %cst_15 [2] : vector<2x8x4xf32> to vector<2x8xf32>
    %95 = vector.shape_cast %94 : vector<2x8xf32> to vector<2x8x1xf32>
    %96 = arith.negf %95 : vector<2x8x1xf32>
    %97 = math.exp %96 : vector<2x8x1xf32>
    %cst_16 = arith.constant 1.000000e+00 : f32
    %98 = vector.broadcast %cst_16 : f32 to vector<2x8x1xf32>
    %99 = arith.addf %98, %97 : vector<2x8x1xf32>
    %100 = arith.divf %98, %99 : vector<2x8x1xf32>
    %101 = arith.addf %85, %100 : vector<2x8x1xf32>
    %102 = vector.broadcast %100 : vector<2x8x1xf32> to vector<2x8x4xf32>
    %103 = vector.broadcast %91 : vector<1x8x4xf32> to vector<2x8x4xf32>
    %104 = arith.mulf %102, %103 : vector<2x8x4xf32>
    %105 = arith.addf %89, %104 : vector<2x8x4xf32>
    %106 = vector.extract_strided_slice %0 {offsets = [1, 0, 8], sizes = [1, 8, 4], strides = [1, 1, 1]} : vector<2x8x24xf32> to vector<1x8x4xf32>
    %107 = vector.extract_strided_slice %0 {offsets = [1, 0, 16], sizes = [1, 8, 4], strides = [1, 1, 1]} : vector<2x8x24xf32> to vector<1x8x4xf32>
    %108 = vector.broadcast %106 : vector<1x8x4xf32> to vector<2x8x4xf32>
    %109 = arith.mulf %71, %108 : vector<2x8x4xf32>
    %cst_17 = arith.constant dense<0.000000e+00> : vector<2x8xf32>
    %110 = vector.multi_reduction <add>, %109, %cst_17 [2] : vector<2x8x4xf32> to vector<2x8xf32>
    %111 = vector.shape_cast %110 : vector<2x8xf32> to vector<2x8x1xf32>
    %112 = arith.negf %111 : vector<2x8x1xf32>
    %113 = math.exp %112 : vector<2x8x1xf32>
    %cst_18 = arith.constant 1.000000e+00 : f32
    %114 = vector.broadcast %cst_18 : f32 to vector<2x8x1xf32>
    %115 = arith.addf %114, %113 : vector<2x8x1xf32>
    %116 = arith.divf %114, %115 : vector<2x8x1xf32>
    %117 = arith.addf %101, %116 : vector<2x8x1xf32>
    %118 = vector.broadcast %116 : vector<2x8x1xf32> to vector<2x8x4xf32>
    %119 = vector.broadcast %107 : vector<1x8x4xf32> to vector<2x8x4xf32>
    %120 = arith.mulf %118, %119 : vector<2x8x4xf32>
    %121 = arith.addf %105, %120 : vector<2x8x4xf32>
    %122 = vector.extract_strided_slice %0 {offsets = [1, 0, 12], sizes = [1, 8, 4], strides = [1, 1, 1]} : vector<2x8x24xf32> to vector<1x8x4xf32>
    %123 = vector.extract_strided_slice %0 {offsets = [1, 0, 20], sizes = [1, 8, 4], strides = [1, 1, 1]} : vector<2x8x24xf32> to vector<1x8x4xf32>
    %124 = vector.broadcast %122 : vector<1x8x4xf32> to vector<2x8x4xf32>
    %125 = arith.mulf %71, %124 : vector<2x8x4xf32>
    %cst_19 = arith.constant dense<0.000000e+00> : vector<2x8xf32>
    %126 = vector.multi_reduction <add>, %125, %cst_19 [2] : vector<2x8x4xf32> to vector<2x8xf32>
    %127 = vector.shape_cast %126 : vector<2x8xf32> to vector<2x8x1xf32>
    %128 = arith.negf %127 : vector<2x8x1xf32>
    %129 = math.exp %128 : vector<2x8x1xf32>
    %cst_20 = arith.constant 1.000000e+00 : f32
    %130 = vector.broadcast %cst_20 : f32 to vector<2x8x1xf32>
    %131 = arith.addf %130, %129 : vector<2x8x1xf32>
    %132 = arith.divf %130, %131 : vector<2x8x1xf32>
    %133 = arith.addf %117, %132 : vector<2x8x1xf32>
    %134 = vector.broadcast %132 : vector<2x8x1xf32> to vector<2x8x4xf32>
    %135 = vector.broadcast %123 : vector<1x8x4xf32> to vector<2x8x4xf32>
    %136 = arith.mulf %134, %135 : vector<2x8x4xf32>
    %137 = arith.addf %121, %136 : vector<2x8x4xf32>
    %138 = tpu.reciprocal %133 {approx = true} : vector<2x8x1xf32> -> vector<2x8x1xf32>
    %139 = vector.broadcast %138 : vector<2x8x1xf32> to vector<2x8x4xf32>
    %140 = arith.mulf %137, %139 : vector<2x8x4xf32>
    %c0_21 = arith.constant 0 : index
    %c0_22 = arith.constant 0 : index
    %c0_23 = arith.constant 0 : index
    %141 = vector.load %arg2[%c0_21, %c0_22, %c0_23] : memref<2x8x8xf32, #tpu.memory_space<vmem>>, vector<2x8x8xf32>
    %c0_24 = arith.constant 0 : index
    %c0_25 = arith.constant 0 : index
    %142 = vector.load %arg4[%c0_24, %c0_25] : memref<1x8xf32, #tpu.memory_space<vmem>>, vector<1x8xf32>
    %c0_26 = arith.constant 0 : index
    %c0_27 = arith.constant 0 : index
    %143 = vector.load %arg5[%c0_26, %c0_27] : memref<1x8xf32, #tpu.memory_space<vmem>>, vector<1x8xf32>
    %cst_28 = arith.constant 0.000000e+00 : f32
    %144 = vector.broadcast %cst_28 : f32 to vector<8x8xf32>
    %145 = vector.extract_strided_slice %70 {offsets = [0, 0, 0], sizes = [1, 8, 4], strides = [1, 1, 1]} : vector<2x8x4xf32> to vector<1x8x4xf32>
    %146 = vector.shape_cast %145 : vector<1x8x4xf32> to vector<8x4xf32>
    %147 = arith.truncf %146 : vector<8x4xf32> to vector<8x4xbf16>
    %c0_29 = arith.constant 0 : index
    %c0_30 = arith.constant 0 : index
    %c0_31 = arith.constant 0 : index
    %148 = vector.load %arg3[%c0_29, %c0_30, %c0_31] : memref<2x4x8xbf16, #tpu.memory_space<vmem>>, vector<1x4x8xbf16>
    %149 = vector.shape_cast %148 : vector<1x4x8xbf16> to vector<4x8xbf16>
    %cst_32 = arith.constant dense<0.000000e+00> : vector<8x8xf32>
    %150 = tpu.matmul %147, %149, %cst_32 {dimension_numbers = #tpu.dot_dimension_numbers<[1], [0], [0], [1], [0, 0, 1, 1], [], []>} : vector<8x4xbf16>, vector<4x8xbf16>, vector<8x8xf32> -> vector<8x8xf32>
    %151 = arith.addf %144, %150 : vector<8x8xf32>
    %152 = vector.extract_strided_slice %140 {offsets = [0, 0, 0], sizes = [1, 8, 4], strides = [1, 1, 1]} : vector<2x8x4xf32> to vector<1x8x4xf32>
    %153 = vector.shape_cast %152 : vector<1x8x4xf32> to vector<8x4xf32>
    %154 = arith.truncf %153 : vector<8x4xf32> to vector<8x4xbf16>
    %c1 = arith.constant 1 : index
    %c0_33 = arith.constant 0 : index
    %c0_34 = arith.constant 0 : index
    %155 = vector.load %arg3[%c1, %c0_33, %c0_34] : memref<2x4x8xbf16, #tpu.memory_space<vmem>>, vector<1x4x8xbf16>
    %156 = vector.shape_cast %155 : vector<1x4x8xbf16> to vector<4x8xbf16>
    %cst_35 = arith.constant dense<0.000000e+00> : vector<8x8xf32>
    %157 = tpu.matmul %154, %156, %cst_35 {dimension_numbers = #tpu.dot_dimension_numbers<[1], [0], [0], [1], [0, 0, 1, 1], [], []>} : vector<8x4xbf16>, vector<4x8xbf16>, vector<8x8xf32> -> vector<8x8xf32>
    %158 = arith.addf %151, %157 : vector<8x8xf32>
    %cst_36 = arith.constant 5.000000e-01 : f32
    %159 = vector.broadcast %cst_36 : f32 to vector<8x8xf32>
    %160 = arith.mulf %159, %158 : vector<8x8xf32>
    %161 = vector.extract_strided_slice %141 {offsets = [0, 0, 0], sizes = [1, 8, 8], strides = [1, 1, 1]} : vector<2x8x8xf32> to vector<1x8x8xf32>
    %162 = vector.shape_cast %161 : vector<1x8x8xf32> to vector<8x8xf32>
    %cst_37 = arith.constant 5.000000e-01 : f32
    %163 = vector.broadcast %cst_37 : f32 to vector<8x8xf32>
    %164 = arith.mulf %163, %162 : vector<8x8xf32>
    %165 = arith.addf %160, %164 : vector<8x8xf32>
    %cst_38 = arith.constant dense<0.000000e+00> : vector<8xf32>
    %166 = vector.multi_reduction <add>, %165, %cst_38 [1] : vector<8x8xf32> to vector<8xf32>
    %167 = vector.shape_cast %166 : vector<8xf32> to vector<8x1xf32>
    %cst_39 = arith.constant 8.000000e+00 : f32
    %168 = vector.broadcast %cst_39 : f32 to vector<8x1xf32>
    %169 = arith.divf %167, %168 : vector<8x1xf32>
    %170 = vector.broadcast %169 : vector<8x1xf32> to vector<8x8xf32>
    %171 = arith.subf %165, %170 : vector<8x8xf32>
    %172 = arith.mulf %171, %171 : vector<8x8xf32>
    %cst_40 = arith.constant dense<0.000000e+00> : vector<8xf32>
    %173 = vector.multi_reduction <add>, %172, %cst_40 [1] : vector<8x8xf32> to vector<8xf32>
    %174 = vector.shape_cast %173 : vector<8xf32> to vector<8x1xf32>
    %cst_41 = arith.constant 8.000000e+00 : f32
    %175 = vector.broadcast %cst_41 : f32 to vector<8x1xf32>
    %176 = arith.divf %174, %175 : vector<8x1xf32>
    %177 = vector.broadcast %169 : vector<8x1xf32> to vector<8x8xf32>
    %178 = arith.subf %165, %177 : vector<8x8xf32>
    %cst_42 = arith.constant 9.99999974E-6 : f32
    %179 = vector.broadcast %cst_42 : f32 to vector<8x1xf32>
    %180 = arith.addf %176, %179 : vector<8x1xf32>
    %181 = math.rsqrt %180 : vector<8x1xf32>
    %182 = vector.broadcast %181 : vector<8x1xf32> to vector<8x8xf32>
    %183 = arith.mulf %178, %182 : vector<8x8xf32>
    %184 = vector.broadcast %142 : vector<1x8xf32> to vector<8x8xf32>
    %185 = arith.mulf %183, %184 : vector<8x8xf32>
    %186 = vector.broadcast %143 : vector<1x8xf32> to vector<8x8xf32>
    %187 = arith.addf %185, %186 : vector<8x8xf32>
    %c0_43 = arith.constant 0 : index
    %c0_44 = arith.constant 0 : index
    %c0_45 = arith.constant 0 : index
    %188 = vector.load %arg6[%c0_43, %c0_44, %c0_45] : memref<2x8x8xf32, #tpu.memory_space<vmem>>, vector<1x8x8xf32>
    %189 = vector.shape_cast %188 : vector<1x8x8xf32> to vector<8x8xf32>
    %190 = vector.shape_cast %187 : vector<8x8xf32> to vector<1x8x8xf32>
    tpu.vector_store %arg6[%c0_43, %c0_44, %c0_45], %190 {strides = array<i32>} : memref<2x8x8xf32, #tpu.memory_space<vmem>>, vector<1x8x8xf32>,
    %cst_46 = arith.constant 0.000000e+00 : f32
    %191 = vector.broadcast %cst_46 : f32 to vector<8x8xf32>
    %192 = vector.extract_strided_slice %70 {offsets = [1, 0, 0], sizes = [1, 8, 4], strides = [1, 1, 1]} : vector<2x8x4xf32> to vector<1x8x4xf32>
    %193 = vector.shape_cast %192 : vector<1x8x4xf32> to vector<8x4xf32>
    %194 = arith.truncf %193 : vector<8x4xf32> to vector<8x4xbf16>
    %c0_47 = arith.constant 0 : index
    %c0_48 = arith.constant 0 : index
    %c0_49 = arith.constant 0 : index
    %195 = vector.load %arg3[%c0_47, %c0_48, %c0_49] : memref<2x4x8xbf16, #tpu.memory_space<vmem>>, vector<1x4x8xbf16>
    %196 = vector.shape_cast %195 : vector<1x4x8xbf16> to vector<4x8xbf16>
    %cst_50 = arith.constant dense<0.000000e+00> : vector<8x8xf32>
    %197 = tpu.matmul %194, %196, %cst_50 {dimension_numbers = #tpu.dot_dimension_numbers<[1], [0], [0], [1], [0, 0, 1, 1], [], []>} : vector<8x4xbf16>, vector<4x8xbf16>, vector<8x8xf32> -> vector<8x8xf32>
    %198 = arith.addf %191, %197 : vector<8x8xf32>
    %199 = vector.extract_strided_slice %140 {offsets = [1, 0, 0], sizes = [1, 8, 4], strides = [1, 1, 1]} : vector<2x8x4xf32> to vector<1x8x4xf32>
    %200 = vector.shape_cast %199 : vector<1x8x4xf32> to vector<8x4xf32>
    %201 = arith.truncf %200 : vector<8x4xf32> to vector<8x4xbf16>
    %c1_51 = arith.constant 1 : index
    %c0_52 = arith.constant 0 : index
    %c0_53 = arith.constant 0 : index
    %202 = vector.load %arg3[%c1_51, %c0_52, %c0_53] : memref<2x4x8xbf16, #tpu.memory_space<vmem>>, vector<1x4x8xbf16>
    %203 = vector.shape_cast %202 : vector<1x4x8xbf16> to vector<4x8xbf16>
    %cst_54 = arith.constant dense<0.000000e+00> : vector<8x8xf32>
    %204 = tpu.matmul %201, %203, %cst_54 {dimension_numbers = #tpu.dot_dimension_numbers<[1], [0], [0], [1], [0, 0, 1, 1], [], []>} : vector<8x4xbf16>, vector<4x8xbf16>, vector<8x8xf32> -> vector<8x8xf32>
    %205 = arith.addf %198, %204 : vector<8x8xf32>
    %cst_55 = arith.constant 5.000000e-01 : f32
    %206 = vector.broadcast %cst_55 : f32 to vector<8x8xf32>
    %207 = arith.mulf %206, %205 : vector<8x8xf32>
    %208 = vector.extract_strided_slice %141 {offsets = [1, 0, 0], sizes = [1, 8, 8], strides = [1, 1, 1]} : vector<2x8x8xf32> to vector<1x8x8xf32>
    %209 = vector.shape_cast %208 : vector<1x8x8xf32> to vector<8x8xf32>
    %cst_56 = arith.constant 5.000000e-01 : f32
    %210 = vector.broadcast %cst_56 : f32 to vector<8x8xf32>
    %211 = arith.mulf %210, %209 : vector<8x8xf32>
    %212 = arith.addf %207, %211 : vector<8x8xf32>
    %cst_57 = arith.constant dense<0.000000e+00> : vector<8xf32>
    %213 = vector.multi_reduction <add>, %212, %cst_57 [1] : vector<8x8xf32> to vector<8xf32>
    %214 = vector.shape_cast %213 : vector<8xf32> to vector<8x1xf32>
    %cst_58 = arith.constant 8.000000e+00 : f32
    %215 = vector.broadcast %cst_58 : f32 to vector<8x1xf32>
    %216 = arith.divf %214, %215 : vector<8x1xf32>
    %217 = vector.broadcast %216 : vector<8x1xf32> to vector<8x8xf32>
    %218 = arith.subf %212, %217 : vector<8x8xf32>
    %219 = arith.mulf %218, %218 : vector<8x8xf32>
    %cst_59 = arith.constant dense<0.000000e+00> : vector<8xf32>
    %220 = vector.multi_reduction <add>, %219, %cst_59 [1] : vector<8x8xf32> to vector<8xf32>
    %221 = vector.shape_cast %220 : vector<8xf32> to vector<8x1xf32>
    %cst_60 = arith.constant 8.000000e+00 : f32
    %222 = vector.broadcast %cst_60 : f32 to vector<8x1xf32>
    %223 = arith.divf %221, %222 : vector<8x1xf32>
    %224 = vector.broadcast %216 : vector<8x1xf32> to vector<8x8xf32>
    %225 = arith.subf %212, %224 : vector<8x8xf32>
    %cst_61 = arith.constant 9.99999974E-6 : f32
    %226 = vector.broadcast %cst_61 : f32 to vector<8x1xf32>
    %227 = arith.addf %223, %226 : vector<8x1xf32>
    %228 = math.rsqrt %227 : vector<8x1xf32>
    %229 = vector.broadcast %228 : vector<8x1xf32> to vector<8x8xf32>
    %230 = arith.mulf %225, %229 : vector<8x8xf32>
    %231 = vector.broadcast %142 : vector<1x8xf32> to vector<8x8xf32>
    %232 = arith.mulf %230, %231 : vector<8x8xf32>
    %233 = vector.broadcast %143 : vector<1x8xf32> to vector<8x8xf32>
    %234 = arith.addf %232, %233 : vector<8x8xf32>
    %c1_62 = arith.constant 1 : index
    %c0_63 = arith.constant 0 : index
    %c0_64 = arith.constant 0 : index
    %235 = vector.load %arg6[%c1_62, %c0_63, %c0_64] : memref<2x8x8xf32, #tpu.memory_space<vmem>>, vector<1x8x8xf32>
    %236 = vector.shape_cast %235 : vector<1x8x8xf32> to vector<8x8xf32>
    %237 = vector.shape_cast %234 : vector<8x8xf32> to vector<1x8x8xf32>
    tpu.vector_store %arg6[%c1_62, %c0_63, %c0_64], %237 {strides = array<i32>} : memref<2x8x8xf32, #tpu.memory_space<vmem>>, vector<1x8x8xf32>,
    return
  }
  func.func @transform_0(%arg0: i32) -> (i32, i32, i32) {
    %c0_i32 = arith.constant 0 : i32
    %c0_i32_0 = arith.constant 0 : i32
    %c0_i32_1 = arith.constant 0 : i32
    return %c0_i32, %arg0, %c0_i32_0 : i32, i32, i32
  }
  func.func @transform_1(%arg0: i32) -> (i32, i32, i32) {
    %c0_i32 = arith.constant 0 : i32
    %c0_i32_0 = arith.constant 0 : i32
    %c0_i32_1 = arith.constant 0 : i32
    return %c0_i32, %arg0, %c0_i32_0 : i32, i32, i32
  }
  func.func @transform_2(%arg0: i32) -> (i32, i32, i32) {
    %c0_i32 = arith.constant 0 : i32
    %c0_i32_0 = arith.constant 0 : i32
    %c0_i32_1 = arith.constant 0 : i32
    %c0_i32_2 = arith.constant 0 : i32
    return %c0_i32, %c0_i32_0, %c0_i32_1 : i32, i32, i32
  }
  func.func @transform_3(%arg0: i32) -> (i32, i32) {
    %c0_i32 = arith.constant 0 : i32
    %c0_i32_0 = arith.constant 0 : i32
    %c0_i32_1 = arith.constant 0 : i32
    return %c0_i32, %c0_i32_0 : i32, i32
  }
  func.func @transform_4(%arg0: i32) -> (i32, i32) {
    %c0_i32 = arith.constant 0 : i32
    %c0_i32_0 = arith.constant 0 : i32
    %c0_i32_1 = arith.constant 0 : i32
    return %c0_i32, %c0_i32_0 : i32, i32
  }
  func.func @transform_5(%arg0: i32) -> (i32, i32, i32) {
    %c0_i32 = arith.constant 0 : i32
    %c0_i32_0 = arith.constant 0 : i32
    %c0_i32_1 = arith.constant 0 : i32
    return %c0_i32, %arg0, %c0_i32_0 : i32, i32, i32
  }
}

module attributes {stable_mosaic.version = 11 : i64} {
  func.func @_linear_kernel(%arg0: i32, %arg1: i32, %arg2: i32, %arg3: memref<2x128xbf16, #tpu.memory_space<vmem>>, %arg4: memref<128x128xbf16, #tpu.memory_space<vmem>>, %arg5: memref<1x128xf32, #tpu.memory_space<vmem>>, %arg6: memref<2x128xf32, #tpu.memory_space<vmem>>, %arg7: memref<2x128xf32, #tpu.memory_space<vmem>>) attributes {dimension_semantics = [#tpu.dimension_semantics<parallel>, #tpu.dimension_semantics<parallel>, #tpu.dimension_semantics<arbitrary>], iteration_bounds = array<i64: 1, 1, 1>, scalar_prefetch = 0 : i64, scratch_operands = 1 : i64, tpu.core_type = #tpu.core_type<tc>, window_params = [{transform_indices = @transform_0, window_bounds = array<i64: 2, 128>}, {transform_indices = @transform_1, window_bounds = array<i64: 128, 128>}, {transform_indices = @transform_2, window_bounds = array<i64: 1, 128>}, {transform_indices = @transform_3, window_bounds = array<i64: 2, 128>}]} {
    %c0_i32 = arith.constant 0 : i32
    %0 = arith.cmpi eq, %arg2, %c0_i32 : i32
    %1 = arith.extui %0 : i1 to i32
    %c0_i32_0 = arith.constant 0 : i32
    %2 = arith.cmpi ne, %1, %c0_i32_0 : i32
    scf.if %2 {
      %cst_10 = arith.constant 0.000000e+00 : f32
      %12 = vector.broadcast %cst_10 : f32 to vector<2x128xf32>
      %c0_11 = arith.constant 0 : index
      %c0_12 = arith.constant 0 : index
      %13 = vector.load %arg7[%c0_11, %c0_12] : memref<2x128xf32, #tpu.memory_space<vmem>>, vector<2x128xf32>
      tpu.vector_store %arg7[%c0_11, %c0_12], %12 {strides = array<i32>} : memref<2x128xf32, #tpu.memory_space<vmem>>, vector<2x128xf32>,
    } else {
    }
    %c0 = arith.constant 0 : index
    %c0_1 = arith.constant 0 : index
    %3 = vector.load %arg7[%c0, %c0_1] : memref<2x128xf32, #tpu.memory_space<vmem>>, vector<2x128xf32>
    %c0_2 = arith.constant 0 : index
    %c0_3 = arith.constant 0 : index
    %4 = vector.load %arg3[%c0_2, %c0_3] : memref<2x128xbf16, #tpu.memory_space<vmem>>, vector<2x128xbf16>
    %c0_4 = arith.constant 0 : index
    %c0_5 = arith.constant 0 : index
    %5 = vector.load %arg4[%c0_4, %c0_5] : memref<128x128xbf16, #tpu.memory_space<vmem>>, vector<128x128xbf16>
    %cst = arith.constant dense<0.000000e+00> : vector<2x128xf32>
    %6 = tpu.matmul %4, %5, %cst {dimension_numbers = #tpu.dot_dimension_numbers<[1], [0], [0], [1], [0, 0, 1, 1], [], []>} : vector<2x128xbf16>, vector<128x128xbf16>, vector<2x128xf32> -> vector<2x128xf32>
    %7 = arith.addf %3, %6 : vector<2x128xf32>
    %c0_6 = arith.constant 0 : index
    %c0_7 = arith.constant 0 : index
    %8 = vector.load %arg7[%c0_6, %c0_7] : memref<2x128xf32, #tpu.memory_space<vmem>>, vector<2x128xf32>
    tpu.vector_store %arg7[%c0_6, %c0_7], %7 {strides = array<i32>} : memref<2x128xf32, #tpu.memory_space<vmem>>, vector<2x128xf32>,
    %c0_i32_8 = arith.constant 0 : i32
    %9 = arith.cmpi eq, %arg2, %c0_i32_8 : i32
    %10 = arith.extui %9 : i1 to i32
    %c0_i32_9 = arith.constant 0 : i32
    %11 = arith.cmpi ne, %10, %c0_i32_9 : i32
    scf.if %11 {
      %c0_10 = arith.constant 0 : index
      %c0_11 = arith.constant 0 : index
      %12 = vector.load %arg7[%c0_10, %c0_11] : memref<2x128xf32, #tpu.memory_space<vmem>>, vector<2x128xf32>
      %c0_12 = arith.constant 0 : index
      %c0_13 = arith.constant 0 : index
      %13 = vector.load %arg5[%c0_12, %c0_13] : memref<1x128xf32, #tpu.memory_space<vmem>>, vector<1x128xf32>
      %14 = vector.broadcast %13 : vector<1x128xf32> to vector<2x128xf32>
      %15 = arith.addf %12, %14 : vector<2x128xf32>
      %c0_14 = arith.constant 0 : index
      %c0_15 = arith.constant 0 : index
      %16 = vector.load %arg6[%c0_14, %c0_15] : memref<2x128xf32, #tpu.memory_space<vmem>>, vector<2x128xf32>
      tpu.vector_store %arg6[%c0_14, %c0_15], %15 {strides = array<i32>} : memref<2x128xf32, #tpu.memory_space<vmem>>, vector<2x128xf32>,
    } else {
    }
    return
  }
  func.func @transform_0(%arg0: i32, %arg1: i32, %arg2: i32) -> (i32, i32) {
    %c0_i32 = arith.constant 0 : i32
    return %arg0, %arg2 : i32, i32
  }
  func.func @transform_1(%arg0: i32, %arg1: i32, %arg2: i32) -> (i32, i32) {
    %c0_i32 = arith.constant 0 : i32
    return %arg2, %arg1 : i32, i32
  }
  func.func @transform_2(%arg0: i32, %arg1: i32, %arg2: i32) -> (i32, i32) {
    %c0_i32 = arith.constant 0 : i32
    %c0_i32_0 = arith.constant 0 : i32
    return %c0_i32, %arg1 : i32, i32
  }
  func.func @transform_3(%arg0: i32, %arg1: i32, %arg2: i32) -> (i32, i32) {
    %c0_i32 = arith.constant 0 : i32
    return %arg0, %arg1 : i32, i32
  }
}

module attributes {stable_mosaic.version = 11 : i64} {
  func.func @_linear_kernel(%arg0: i32, %arg1: i32, %arg2: i32, %arg3: memref<8x12xbf16, #tpu.memory_space<vmem>>, %arg4: memref<12x8xbf16, #tpu.memory_space<vmem>>, %arg5: memref<1x8xf32, #tpu.memory_space<vmem>>, %arg6: memref<8x8xf32, #tpu.memory_space<vmem>>, %arg7: memref<8x8xf32, #tpu.memory_space<vmem>>) attributes {dimension_semantics = [#tpu.dimension_semantics<parallel>, #tpu.dimension_semantics<parallel>, #tpu.dimension_semantics<arbitrary>], iteration_bounds = array<i64: 2, 1, 1>, scalar_prefetch = 0 : i64, scratch_operands = 1 : i64, tpu.core_type = #tpu.core_type<tc>, window_params = [{transform_indices = @transform_0, window_bounds = array<i64: 8, 12>}, {transform_indices = @transform_1, window_bounds = array<i64: 12, 8>}, {transform_indices = @transform_2, window_bounds = array<i64: 1, 8>}, {transform_indices = @transform_3, window_bounds = array<i64: 8, 8>}]} {
    %c0_i32 = arith.constant 0 : i32
    %0 = arith.cmpi eq, %arg2, %c0_i32 : i32
    %1 = arith.extui %0 : i1 to i32
    %c0_i32_0 = arith.constant 0 : i32
    %2 = arith.cmpi ne, %1, %c0_i32_0 : i32
    scf.if %2 {
      %cst_10 = arith.constant 0.000000e+00 : f32
      %12 = vector.broadcast %cst_10 : f32 to vector<8x8xf32>
      %c0_11 = arith.constant 0 : index
      %c0_12 = arith.constant 0 : index
      %13 = vector.load %arg7[%c0_11, %c0_12] : memref<8x8xf32, #tpu.memory_space<vmem>>, vector<8x8xf32>
      tpu.vector_store %arg7[%c0_11, %c0_12], %12 {strides = array<i32>} : memref<8x8xf32, #tpu.memory_space<vmem>>, vector<8x8xf32>,
    } else {
    }
    %c0 = arith.constant 0 : index
    %c0_1 = arith.constant 0 : index
    %3 = vector.load %arg7[%c0, %c0_1] : memref<8x8xf32, #tpu.memory_space<vmem>>, vector<8x8xf32>
    %c0_2 = arith.constant 0 : index
    %c0_3 = arith.constant 0 : index
    %4 = vector.load %arg3[%c0_2, %c0_3] : memref<8x12xbf16, #tpu.memory_space<vmem>>, vector<8x12xbf16>
    %c0_4 = arith.constant 0 : index
    %c0_5 = arith.constant 0 : index
    %5 = vector.load %arg4[%c0_4, %c0_5] : memref<12x8xbf16, #tpu.memory_space<vmem>>, vector<12x8xbf16>
    %cst = arith.constant dense<0.000000e+00> : vector<8x8xf32>
    %6 = tpu.matmul %4, %5, %cst {dimension_numbers = #tpu.dot_dimension_numbers<[1], [0], [0], [1], [0, 0, 1, 1], [], []>} : vector<8x12xbf16>, vector<12x8xbf16>, vector<8x8xf32> -> vector<8x8xf32>
    %7 = arith.addf %3, %6 : vector<8x8xf32>
    %c0_6 = arith.constant 0 : index
    %c0_7 = arith.constant 0 : index
    %8 = vector.load %arg7[%c0_6, %c0_7] : memref<8x8xf32, #tpu.memory_space<vmem>>, vector<8x8xf32>
    tpu.vector_store %arg7[%c0_6, %c0_7], %7 {strides = array<i32>} : memref<8x8xf32, #tpu.memory_space<vmem>>, vector<8x8xf32>,
    %c0_i32_8 = arith.constant 0 : i32
    %9 = arith.cmpi eq, %arg2, %c0_i32_8 : i32
    %10 = arith.extui %9 : i1 to i32
    %c0_i32_9 = arith.constant 0 : i32
    %11 = arith.cmpi ne, %10, %c0_i32_9 : i32
    scf.if %11 {
      %c0_10 = arith.constant 0 : index
      %c0_11 = arith.constant 0 : index
      %12 = vector.load %arg7[%c0_10, %c0_11] : memref<8x8xf32, #tpu.memory_space<vmem>>, vector<8x8xf32>
      %c0_12 = arith.constant 0 : index
      %c0_13 = arith.constant 0 : index
      %13 = vector.load %arg5[%c0_12, %c0_13] : memref<1x8xf32, #tpu.memory_space<vmem>>, vector<1x8xf32>
      %14 = vector.broadcast %13 : vector<1x8xf32> to vector<8x8xf32>
      %15 = arith.addf %12, %14 : vector<8x8xf32>
      %c0_14 = arith.constant 0 : index
      %c0_15 = arith.constant 0 : index
      %16 = vector.load %arg6[%c0_14, %c0_15] : memref<8x8xf32, #tpu.memory_space<vmem>>, vector<8x8xf32>
      tpu.vector_store %arg6[%c0_14, %c0_15], %15 {strides = array<i32>} : memref<8x8xf32, #tpu.memory_space<vmem>>, vector<8x8xf32>,
    } else {
    }
    return
  }
  func.func @transform_0(%arg0: i32, %arg1: i32, %arg2: i32) -> (i32, i32) {
    %c0_i32 = arith.constant 0 : i32
    return %arg0, %arg2 : i32, i32
  }
  func.func @transform_1(%arg0: i32, %arg1: i32, %arg2: i32) -> (i32, i32) {
    %c0_i32 = arith.constant 0 : i32
    return %arg2, %arg1 : i32, i32
  }
  func.func @transform_2(%arg0: i32, %arg1: i32, %arg2: i32) -> (i32, i32) {
    %c0_i32 = arith.constant 0 : i32
    %c0_i32_0 = arith.constant 0 : i32
    return %c0_i32, %arg1 : i32, i32
  }
  func.func @transform_3(%arg0: i32, %arg1: i32, %arg2: i32) -> (i32, i32) {
    %c0_i32 = arith.constant 0 : i32
    return %arg0, %arg1 : i32, i32
  }
}

module attributes {stable_mosaic.version = 11 : i64} {
  func.func @_token_mix_kernel(%arg0: i32, %arg1: memref<1x8x8xf32, #tpu.memory_space<vmem>>, %arg2: memref<1x8xf32, #tpu.memory_space<vmem>>, %arg3: memref<1x8xf32, #tpu.memory_space<vmem>>, %arg4: memref<16x8xbf16, #tpu.memory_space<vmem>>, %arg5: memref<16x1xf32, #tpu.memory_space<vmem>>, %arg6: memref<8x16xbf16, #tpu.memory_space<vmem>>, %arg7: memref<8x1xf32, #tpu.memory_space<vmem>>, %arg8: memref<1x8x8xf32, #tpu.memory_space<vmem>>) attributes {dimension_semantics = [#tpu.dimension_semantics<parallel>], iteration_bounds = array<i64: 2>, scalar_prefetch = 0 : i64, scratch_operands = 0 : i64, tpu.core_type = #tpu.core_type<tc>, window_params = [{transform_indices = @transform_0, window_bounds = array<i64: 1, 8, 8>}, {pipeline_mode = #tpu.pipeline_mode<synchronous>, transform_indices = @transform_1, window_bounds = array<i64: 1, 8>}, {pipeline_mode = #tpu.pipeline_mode<synchronous>, transform_indices = @transform_2, window_bounds = array<i64: 1, 8>}, {pipeline_mode = #tpu.pipeline_mode<synchronous>, transform_indices = @transform_3, window_bounds = array<i64: 16, 8>}, {pipeline_mode = #tpu.pipeline_mode<synchronous>, transform_indices = @transform_4, window_bounds = array<i64: 16, 1>}, {pipeline_mode = #tpu.pipeline_mode<synchronous>, transform_indices = @transform_5, window_bounds = array<i64: 8, 16>}, {pipeline_mode = #tpu.pipeline_mode<synchronous>, transform_indices = @transform_6, window_bounds = array<i64: 8, 1>}, {transform_indices = @transform_7, window_bounds = array<i64: 1, 8, 8>}]} {
    %c0 = arith.constant 0 : index
    %c0_0 = arith.constant 0 : index
    %c0_1 = arith.constant 0 : index
    %0 = vector.load %arg1[%c0, %c0_0, %c0_1] : memref<1x8x8xf32, #tpu.memory_space<vmem>>, vector<1x8x8xf32>
    %1 = vector.shape_cast %0 : vector<1x8x8xf32> to vector<8x8xf32>
    %c0_2 = arith.constant 0 : index
    %c0_3 = arith.constant 0 : index
    %2 = vector.load %arg2[%c0_2, %c0_3] : memref<1x8xf32, #tpu.memory_space<vmem>>, vector<1x8xf32>
    %c0_4 = arith.constant 0 : index
    %c0_5 = arith.constant 0 : index
    %3 = vector.load %arg3[%c0_4, %c0_5] : memref<1x8xf32, #tpu.memory_space<vmem>>, vector<1x8xf32>
    %cst = arith.constant dense<0.000000e+00> : vector<8xf32>
    %4 = vector.multi_reduction <add>, %1, %cst [1] : vector<8x8xf32> to vector<8xf32>
    %5 = vector.shape_cast %4 : vector<8xf32> to vector<8x1xf32>
    %cst_6 = arith.constant 8.000000e+00 : f32
    %6 = vector.broadcast %cst_6 : f32 to vector<8x1xf32>
    %7 = arith.divf %5, %6 : vector<8x1xf32>
    %8 = vector.broadcast %7 : vector<8x1xf32> to vector<8x8xf32>
    %9 = arith.subf %1, %8 : vector<8x8xf32>
    %10 = arith.mulf %9, %9 : vector<8x8xf32>
    %cst_7 = arith.constant dense<0.000000e+00> : vector<8xf32>
    %11 = vector.multi_reduction <add>, %10, %cst_7 [1] : vector<8x8xf32> to vector<8xf32>
    %12 = vector.shape_cast %11 : vector<8xf32> to vector<8x1xf32>
    %cst_8 = arith.constant 8.000000e+00 : f32
    %13 = vector.broadcast %cst_8 : f32 to vector<8x1xf32>
    %14 = arith.divf %12, %13 : vector<8x1xf32>
    %15 = vector.broadcast %7 : vector<8x1xf32> to vector<8x8xf32>
    %16 = arith.subf %1, %15 : vector<8x8xf32>
    %cst_9 = arith.constant 9.99999974E-6 : f32
    %17 = vector.broadcast %cst_9 : f32 to vector<8x1xf32>
    %18 = arith.addf %14, %17 : vector<8x1xf32>
    %19 = math.rsqrt %18 : vector<8x1xf32>
    %20 = vector.broadcast %19 : vector<8x1xf32> to vector<8x8xf32>
    %21 = arith.mulf %16, %20 : vector<8x8xf32>
    %22 = vector.broadcast %2 : vector<1x8xf32> to vector<8x8xf32>
    %23 = arith.mulf %21, %22 : vector<8x8xf32>
    %24 = vector.broadcast %3 : vector<1x8xf32> to vector<8x8xf32>
    %25 = arith.addf %23, %24 : vector<8x8xf32>
    %26 = arith.truncf %25 : vector<8x8xf32> to vector<8x8xbf16>
    %c0_10 = arith.constant 0 : index
    %c0_11 = arith.constant 0 : index
    %27 = vector.load %arg4[%c0_10, %c0_11] : memref<16x8xbf16, #tpu.memory_space<vmem>>, vector<16x8xbf16>
    %cst_12 = arith.constant dense<0.000000e+00> : vector<16x8xf32>
    %28 = tpu.matmul %27, %26, %cst_12 {dimension_numbers = #tpu.dot_dimension_numbers<[1], [0], [0], [1], [0, 0, 1, 1], [], []>} : vector<16x8xbf16>, vector<8x8xbf16>, vector<16x8xf32> -> vector<16x8xf32>
    %c0_13 = arith.constant 0 : index
    %c0_14 = arith.constant 0 : index
    %29 = vector.load %arg5[%c0_13, %c0_14] : memref<16x1xf32, #tpu.memory_space<vmem>>, vector<16x1xf32>
    %30 = vector.broadcast %29 : vector<16x1xf32> to vector<16x8xf32>
    %31 = arith.addf %28, %30 : vector<16x8xf32>
    %cst_15 = arith.constant 5.000000e-01 : f32
    %32 = vector.broadcast %cst_15 : f32 to vector<16x8xf32>
    %33 = arith.mulf %32, %31 : vector<16x8xf32>
    %cst_16 = arith.constant 4.471500e-02 : f32
    %34 = vector.broadcast %cst_16 : f32 to vector<16x8xf32>
    %35 = arith.mulf %34, %31 : vector<16x8xf32>
    %36 = arith.mulf %35, %31 : vector<16x8xf32>
    %37 = arith.mulf %36, %31 : vector<16x8xf32>
    %38 = arith.addf %31, %37 : vector<16x8xf32>
    %cst_17 = arith.constant 0.797884583 : f32
    %39 = vector.broadcast %cst_17 : f32 to vector<16x8xf32>
    %40 = arith.mulf %39, %38 : vector<16x8xf32>
    %41 = math.tanh %40 : vector<16x8xf32>
    %cst_18 = arith.constant 1.000000e+00 : f32
    %42 = vector.broadcast %cst_18 : f32 to vector<16x8xf32>
    %43 = arith.addf %42, %41 : vector<16x8xf32>
    %44 = arith.mulf %33, %43 : vector<16x8xf32>
    %45 = arith.truncf %44 : vector<16x8xf32> to vector<16x8xbf16>
    %c0_19 = arith.constant 0 : index
    %c0_20 = arith.constant 0 : index
    %46 = vector.load %arg6[%c0_19, %c0_20] : memref<8x16xbf16, #tpu.memory_space<vmem>>, vector<8x16xbf16>
    %cst_21 = arith.constant dense<0.000000e+00> : vector<8x8xf32>
    %47 = tpu.matmul %46, %45, %cst_21 {dimension_numbers = #tpu.dot_dimension_numbers<[1], [0], [0], [1], [0, 0, 1, 1], [], []>} : vector<8x16xbf16>, vector<16x8xbf16>, vector<8x8xf32> -> vector<8x8xf32>
    %c0_22 = arith.constant 0 : index
    %c0_23 = arith.constant 0 : index
    %48 = vector.load %arg7[%c0_22, %c0_23] : memref<8x1xf32, #tpu.memory_space<vmem>>, vector<8x1xf32>
    %49 = vector.broadcast %48 : vector<8x1xf32> to vector<8x8xf32>
    %50 = arith.addf %47, %49 : vector<8x8xf32>
    %51 = arith.addf %1, %50 : vector<8x8xf32>
    %c0_24 = arith.constant 0 : index
    %c0_25 = arith.constant 0 : index
    %c0_26 = arith.constant 0 : index
    %52 = vector.load %arg8[%c0_24, %c0_25, %c0_26] : memref<1x8x8xf32, #tpu.memory_space<vmem>>, vector<1x8x8xf32>
    %53 = vector.shape_cast %52 : vector<1x8x8xf32> to vector<8x8xf32>
    %54 = vector.shape_cast %51 : vector<8x8xf32> to vector<1x8x8xf32>
    tpu.vector_store %arg8[%c0_24, %c0_25, %c0_26], %54 {strides = array<i32>} : memref<1x8x8xf32, #tpu.memory_space<vmem>>, vector<1x8x8xf32>,
    return
  }
  func.func @transform_0(%arg0: i32) -> (i32, i32, i32) {
    %c0_i32 = arith.constant 0 : i32
    %c0_i32_0 = arith.constant 0 : i32
    %c0_i32_1 = arith.constant 0 : i32
    return %arg0, %c0_i32, %c0_i32_0 : i32, i32, i32
  }
  func.func @transform_1(%arg0: i32) -> (i32, i32) {
    %c0_i32 = arith.constant 0 : i32
    %c0_i32_0 = arith.constant 0 : i32
    %c0_i32_1 = arith.constant 0 : i32
    return %c0_i32, %c0_i32_0 : i32, i32
  }
  func.func @transform_2(%arg0: i32) -> (i32, i32) {
    %c0_i32 = arith.constant 0 : i32
    %c0_i32_0 = arith.constant 0 : i32
    %c0_i32_1 = arith.constant 0 : i32
    return %c0_i32, %c0_i32_0 : i32, i32
  }
  func.func @transform_3(%arg0: i32) -> (i32, i32) {
    %c0_i32 = arith.constant 0 : i32
    %c0_i32_0 = arith.constant 0 : i32
    %c0_i32_1 = arith.constant 0 : i32
    return %c0_i32, %c0_i32_0 : i32, i32
  }
  func.func @transform_4(%arg0: i32) -> (i32, i32) {
    %c0_i32 = arith.constant 0 : i32
    %c0_i32_0 = arith.constant 0 : i32
    %c0_i32_1 = arith.constant 0 : i32
    return %c0_i32, %c0_i32_0 : i32, i32
  }
  func.func @transform_5(%arg0: i32) -> (i32, i32) {
    %c0_i32 = arith.constant 0 : i32
    %c0_i32_0 = arith.constant 0 : i32
    %c0_i32_1 = arith.constant 0 : i32
    return %c0_i32, %c0_i32_0 : i32, i32
  }
  func.func @transform_6(%arg0: i32) -> (i32, i32) {
    %c0_i32 = arith.constant 0 : i32
    %c0_i32_0 = arith.constant 0 : i32
    %c0_i32_1 = arith.constant 0 : i32
    return %c0_i32, %c0_i32_0 : i32, i32
  }
  func.func @transform_7(%arg0: i32) -> (i32, i32, i32) {
    %c0_i32 = arith.constant 0 : i32
    %c0_i32_0 = arith.constant 0 : i32
    %c0_i32_1 = arith.constant 0 : i32
    return %arg0, %c0_i32, %c0_i32_0 : i32, i32, i32
  }
}

module attributes {stable_mosaic.version = 11 : i64} {
  func.func @_channel_mix_kernel(%arg0: i32, %arg1: memref<8x8xf32, #tpu.memory_space<vmem>>, %arg2: memref<1x8xf32, #tpu.memory_space<vmem>>, %arg3: memref<1x8xf32, #tpu.memory_space<vmem>>, %arg4: memref<8x16xbf16, #tpu.memory_space<vmem>>, %arg5: memref<1x16xf32, #tpu.memory_space<vmem>>, %arg6: memref<16x8xbf16, #tpu.memory_space<vmem>>, %arg7: memref<1x8xf32, #tpu.memory_space<vmem>>, %arg8: memref<8x8xf32, #tpu.memory_space<vmem>>) attributes {dimension_semantics = [#tpu.dimension_semantics<parallel>], iteration_bounds = array<i64: 2>, scalar_prefetch = 0 : i64, scratch_operands = 0 : i64, tpu.core_type = #tpu.core_type<tc>, window_params = [{transform_indices = @transform_0, window_bounds = array<i64: 8, 8>}, {pipeline_mode = #tpu.pipeline_mode<synchronous>, transform_indices = @transform_1, window_bounds = array<i64: 1, 8>}, {pipeline_mode = #tpu.pipeline_mode<synchronous>, transform_indices = @transform_2, window_bounds = array<i64: 1, 8>}, {pipeline_mode = #tpu.pipeline_mode<synchronous>, transform_indices = @transform_3, window_bounds = array<i64: 8, 16>}, {pipeline_mode = #tpu.pipeline_mode<synchronous>, transform_indices = @transform_4, window_bounds = array<i64: 1, 16>}, {pipeline_mode = #tpu.pipeline_mode<synchronous>, transform_indices = @transform_5, window_bounds = array<i64: 16, 8>}, {pipeline_mode = #tpu.pipeline_mode<synchronous>, transform_indices = @transform_6, window_bounds = array<i64: 1, 8>}, {transform_indices = @transform_7, window_bounds = array<i64: 8, 8>}]} {
    %c0 = arith.constant 0 : index
    %c0_0 = arith.constant 0 : index
    %0 = vector.load %arg1[%c0, %c0_0] : memref<8x8xf32, #tpu.memory_space<vmem>>, vector<8x8xf32>
    %c0_1 = arith.constant 0 : index
    %c0_2 = arith.constant 0 : index
    %1 = vector.load %arg2[%c0_1, %c0_2] : memref<1x8xf32, #tpu.memory_space<vmem>>, vector<1x8xf32>
    %c0_3 = arith.constant 0 : index
    %c0_4 = arith.constant 0 : index
    %2 = vector.load %arg3[%c0_3, %c0_4] : memref<1x8xf32, #tpu.memory_space<vmem>>, vector<1x8xf32>
    %cst = arith.constant dense<0.000000e+00> : vector<8xf32>
    %3 = vector.multi_reduction <add>, %0, %cst [1] : vector<8x8xf32> to vector<8xf32>
    %4 = vector.shape_cast %3 : vector<8xf32> to vector<8x1xf32>
    %cst_5 = arith.constant 8.000000e+00 : f32
    %5 = vector.broadcast %cst_5 : f32 to vector<8x1xf32>
    %6 = arith.divf %4, %5 : vector<8x1xf32>
    %7 = vector.broadcast %6 : vector<8x1xf32> to vector<8x8xf32>
    %8 = arith.subf %0, %7 : vector<8x8xf32>
    %9 = arith.mulf %8, %8 : vector<8x8xf32>
    %cst_6 = arith.constant dense<0.000000e+00> : vector<8xf32>
    %10 = vector.multi_reduction <add>, %9, %cst_6 [1] : vector<8x8xf32> to vector<8xf32>
    %11 = vector.shape_cast %10 : vector<8xf32> to vector<8x1xf32>
    %cst_7 = arith.constant 8.000000e+00 : f32
    %12 = vector.broadcast %cst_7 : f32 to vector<8x1xf32>
    %13 = arith.divf %11, %12 : vector<8x1xf32>
    %14 = vector.broadcast %6 : vector<8x1xf32> to vector<8x8xf32>
    %15 = arith.subf %0, %14 : vector<8x8xf32>
    %cst_8 = arith.constant 9.99999974E-6 : f32
    %16 = vector.broadcast %cst_8 : f32 to vector<8x1xf32>
    %17 = arith.addf %13, %16 : vector<8x1xf32>
    %18 = math.rsqrt %17 : vector<8x1xf32>
    %19 = vector.broadcast %18 : vector<8x1xf32> to vector<8x8xf32>
    %20 = arith.mulf %15, %19 : vector<8x8xf32>
    %21 = vector.broadcast %1 : vector<1x8xf32> to vector<8x8xf32>
    %22 = arith.mulf %20, %21 : vector<8x8xf32>
    %23 = vector.broadcast %2 : vector<1x8xf32> to vector<8x8xf32>
    %24 = arith.addf %22, %23 : vector<8x8xf32>
    %25 = arith.truncf %24 : vector<8x8xf32> to vector<8x8xbf16>
    %c0_9 = arith.constant 0 : index
    %c0_10 = arith.constant 0 : index
    %26 = vector.load %arg4[%c0_9, %c0_10] : memref<8x16xbf16, #tpu.memory_space<vmem>>, vector<8x16xbf16>
    %cst_11 = arith.constant dense<0.000000e+00> : vector<8x16xf32>
    %27 = tpu.matmul %25, %26, %cst_11 {dimension_numbers = #tpu.dot_dimension_numbers<[1], [0], [0], [1], [0, 0, 1, 1], [], []>} : vector<8x8xbf16>, vector<8x16xbf16>, vector<8x16xf32> -> vector<8x16xf32>
    %c0_12 = arith.constant 0 : index
    %c0_13 = arith.constant 0 : index
    %28 = vector.load %arg5[%c0_12, %c0_13] : memref<1x16xf32, #tpu.memory_space<vmem>>, vector<1x16xf32>
    %29 = vector.broadcast %28 : vector<1x16xf32> to vector<8x16xf32>
    %30 = arith.addf %27, %29 : vector<8x16xf32>
    %cst_14 = arith.constant 5.000000e-01 : f32
    %31 = vector.broadcast %cst_14 : f32 to vector<8x16xf32>
    %32 = arith.mulf %31, %30 : vector<8x16xf32>
    %cst_15 = arith.constant 4.471500e-02 : f32
    %33 = vector.broadcast %cst_15 : f32 to vector<8x16xf32>
    %34 = arith.mulf %33, %30 : vector<8x16xf32>
    %35 = arith.mulf %34, %30 : vector<8x16xf32>
    %36 = arith.mulf %35, %30 : vector<8x16xf32>
    %37 = arith.addf %30, %36 : vector<8x16xf32>
    %cst_16 = arith.constant 0.797884583 : f32
    %38 = vector.broadcast %cst_16 : f32 to vector<8x16xf32>
    %39 = arith.mulf %38, %37 : vector<8x16xf32>
    %40 = math.tanh %39 : vector<8x16xf32>
    %cst_17 = arith.constant 1.000000e+00 : f32
    %41 = vector.broadcast %cst_17 : f32 to vector<8x16xf32>
    %42 = arith.addf %41, %40 : vector<8x16xf32>
    %43 = arith.mulf %32, %42 : vector<8x16xf32>
    %44 = arith.truncf %43 : vector<8x16xf32> to vector<8x16xbf16>
    %c0_18 = arith.constant 0 : index
    %c0_19 = arith.constant 0 : index
    %45 = vector.load %arg6[%c0_18, %c0_19] : memref<16x8xbf16, #tpu.memory_space<vmem>>, vector<16x8xbf16>
    %cst_20 = arith.constant dense<0.000000e+00> : vector<8x8xf32>
    %46 = tpu.matmul %44, %45, %cst_20 {dimension_numbers = #tpu.dot_dimension_numbers<[1], [0], [0], [1], [0, 0, 1, 1], [], []>} : vector<8x16xbf16>, vector<16x8xbf16>, vector<8x8xf32> -> vector<8x8xf32>
    %47 = arith.addf %0, %46 : vector<8x8xf32>
    %c0_21 = arith.constant 0 : index
    %c0_22 = arith.constant 0 : index
    %48 = vector.load %arg7[%c0_21, %c0_22] : memref<1x8xf32, #tpu.memory_space<vmem>>, vector<1x8xf32>
    %49 = vector.broadcast %48 : vector<1x8xf32> to vector<8x8xf32>
    %50 = arith.addf %47, %49 : vector<8x8xf32>
    %c0_23 = arith.constant 0 : index
    %c0_24 = arith.constant 0 : index
    %51 = vector.load %arg8[%c0_23, %c0_24] : memref<8x8xf32, #tpu.memory_space<vmem>>, vector<8x8xf32>
    tpu.vector_store %arg8[%c0_23, %c0_24], %50 {strides = array<i32>} : memref<8x8xf32, #tpu.memory_space<vmem>>, vector<8x8xf32>,
    return
  }
  func.func @transform_0(%arg0: i32) -> (i32, i32) {
    %c0_i32 = arith.constant 0 : i32
    %c0_i32_0 = arith.constant 0 : i32
    return %arg0, %c0_i32 : i32, i32
  }
  func.func @transform_1(%arg0: i32) -> (i32, i32) {
    %c0_i32 = arith.constant 0 : i32
    %c0_i32_0 = arith.constant 0 : i32
    %c0_i32_1 = arith.constant 0 : i32
    return %c0_i32, %c0_i32_0 : i32, i32
  }
  func.func @transform_2(%arg0: i32) -> (i32, i32) {
    %c0_i32 = arith.constant 0 : i32
    %c0_i32_0 = arith.constant 0 : i32
    %c0_i32_1 = arith.constant 0 : i32
    return %c0_i32, %c0_i32_0 : i32, i32
  }
  func.func @transform_3(%arg0: i32) -> (i32, i32) {
    %c0_i32 = arith.constant 0 : i32
    %c0_i32_0 = arith.constant 0 : i32
    %c0_i32_1 = arith.constant 0 : i32
    return %c0_i32, %c0_i32_0 : i32, i32
  }
  func.func @transform_4(%arg0: i32) -> (i32, i32) {
    %c0_i32 = arith.constant 0 : i32
    %c0_i32_0 = arith.constant 0 : i32
    %c0_i32_1 = arith.constant 0 : i32
    return %c0_i32, %c0_i32_0 : i32, i32
  }
  func.func @transform_5(%arg0: i32) -> (i32, i32) {
    %c0_i32 = arith.constant 0 : i32
    %c0_i32_0 = arith.constant 0 : i32
    %c0_i32_1 = arith.constant 0 : i32
    return %c0_i32, %c0_i32_0 : i32, i32
  }
  func.func @transform_6(%arg0: i32) -> (i32, i32) {
    %c0_i32 = arith.constant 0 : i32
    %c0_i32_0 = arith.constant 0 : i32
    %c0_i32_1 = arith.constant 0 : i32
    return %c0_i32, %c0_i32_0 : i32, i32
  }
  func.func @transform_7(%arg0: i32) -> (i32, i32) {
    %c0_i32 = arith.constant 0 : i32
    %c0_i32_0 = arith.constant 0 : i32
    return %arg0, %c0_i32 : i32, i32
  }
}

module attributes {stable_mosaic.version = 11 : i64} {
  func.func @_linear_kernel(%arg0: i32, %arg1: i32, %arg2: i32, %arg3: memref<8x8xbf16, #tpu.memory_space<vmem>>, %arg4: memref<8x24xbf16, #tpu.memory_space<vmem>>, %arg5: memref<1x24xf32, #tpu.memory_space<vmem>>, %arg6: memref<8x24xf32, #tpu.memory_space<vmem>>, %arg7: memref<8x24xf32, #tpu.memory_space<vmem>>) attributes {dimension_semantics = [#tpu.dimension_semantics<parallel>, #tpu.dimension_semantics<parallel>, #tpu.dimension_semantics<arbitrary>], iteration_bounds = array<i64: 2, 1, 1>, scalar_prefetch = 0 : i64, scratch_operands = 1 : i64, tpu.core_type = #tpu.core_type<tc>, window_params = [{transform_indices = @transform_0, window_bounds = array<i64: 8, 8>}, {transform_indices = @transform_1, window_bounds = array<i64: 8, 24>}, {transform_indices = @transform_2, window_bounds = array<i64: 1, 24>}, {transform_indices = @transform_3, window_bounds = array<i64: 8, 24>}]} {
    %c0_i32 = arith.constant 0 : i32
    %0 = arith.cmpi eq, %arg2, %c0_i32 : i32
    %1 = arith.extui %0 : i1 to i32
    %c0_i32_0 = arith.constant 0 : i32
    %2 = arith.cmpi ne, %1, %c0_i32_0 : i32
    scf.if %2 {
      %cst_10 = arith.constant 0.000000e+00 : f32
      %12 = vector.broadcast %cst_10 : f32 to vector<8x24xf32>
      %c0_11 = arith.constant 0 : index
      %c0_12 = arith.constant 0 : index
      %13 = vector.load %arg7[%c0_11, %c0_12] : memref<8x24xf32, #tpu.memory_space<vmem>>, vector<8x24xf32>
      tpu.vector_store %arg7[%c0_11, %c0_12], %12 {strides = array<i32>} : memref<8x24xf32, #tpu.memory_space<vmem>>, vector<8x24xf32>,
    } else {
    }
    %c0 = arith.constant 0 : index
    %c0_1 = arith.constant 0 : index
    %3 = vector.load %arg7[%c0, %c0_1] : memref<8x24xf32, #tpu.memory_space<vmem>>, vector<8x24xf32>
    %c0_2 = arith.constant 0 : index
    %c0_3 = arith.constant 0 : index
    %4 = vector.load %arg3[%c0_2, %c0_3] : memref<8x8xbf16, #tpu.memory_space<vmem>>, vector<8x8xbf16>
    %c0_4 = arith.constant 0 : index
    %c0_5 = arith.constant 0 : index
    %5 = vector.load %arg4[%c0_4, %c0_5] : memref<8x24xbf16, #tpu.memory_space<vmem>>, vector<8x24xbf16>
    %cst = arith.constant dense<0.000000e+00> : vector<8x24xf32>
    %6 = tpu.matmul %4, %5, %cst {dimension_numbers = #tpu.dot_dimension_numbers<[1], [0], [0], [1], [0, 0, 1, 1], [], []>} : vector<8x8xbf16>, vector<8x24xbf16>, vector<8x24xf32> -> vector<8x24xf32>
    %7 = arith.addf %3, %6 : vector<8x24xf32>
    %c0_6 = arith.constant 0 : index
    %c0_7 = arith.constant 0 : index
    %8 = vector.load %arg7[%c0_6, %c0_7] : memref<8x24xf32, #tpu.memory_space<vmem>>, vector<8x24xf32>
    tpu.vector_store %arg7[%c0_6, %c0_7], %7 {strides = array<i32>} : memref<8x24xf32, #tpu.memory_space<vmem>>, vector<8x24xf32>,
    %c0_i32_8 = arith.constant 0 : i32
    %9 = arith.cmpi eq, %arg2, %c0_i32_8 : i32
    %10 = arith.extui %9 : i1 to i32
    %c0_i32_9 = arith.constant 0 : i32
    %11 = arith.cmpi ne, %10, %c0_i32_9 : i32
    scf.if %11 {
      %c0_10 = arith.constant 0 : index
      %c0_11 = arith.constant 0 : index
      %12 = vector.load %arg7[%c0_10, %c0_11] : memref<8x24xf32, #tpu.memory_space<vmem>>, vector<8x24xf32>
      %c0_12 = arith.constant 0 : index
      %c0_13 = arith.constant 0 : index
      %13 = vector.load %arg5[%c0_12, %c0_13] : memref<1x24xf32, #tpu.memory_space<vmem>>, vector<1x24xf32>
      %14 = vector.broadcast %13 : vector<1x24xf32> to vector<8x24xf32>
      %15 = arith.addf %12, %14 : vector<8x24xf32>
      %c0_14 = arith.constant 0 : index
      %c0_15 = arith.constant 0 : index
      %16 = vector.load %arg6[%c0_14, %c0_15] : memref<8x24xf32, #tpu.memory_space<vmem>>, vector<8x24xf32>
      tpu.vector_store %arg6[%c0_14, %c0_15], %15 {strides = array<i32>} : memref<8x24xf32, #tpu.memory_space<vmem>>, vector<8x24xf32>,
    } else {
    }
    return
  }
  func.func @transform_0(%arg0: i32, %arg1: i32, %arg2: i32) -> (i32, i32) {
    %c0_i32 = arith.constant 0 : i32
    return %arg0, %arg2 : i32, i32
  }
  func.func @transform_1(%arg0: i32, %arg1: i32, %arg2: i32) -> (i32, i32) {
    %c0_i32 = arith.constant 0 : i32
    return %arg2, %arg1 : i32, i32
  }
  func.func @transform_2(%arg0: i32, %arg1: i32, %arg2: i32) -> (i32, i32) {
    %c0_i32 = arith.constant 0 : i32
    %c0_i32_0 = arith.constant 0 : i32
    return %c0_i32, %arg1 : i32, i32
  }
  func.func @transform_3(%arg0: i32, %arg1: i32, %arg2: i32) -> (i32, i32) {
    %c0_i32 = arith.constant 0 : i32
    return %arg0, %arg1 : i32, i32
  }
}

module attributes {stable_mosaic.version = 11 : i64} {
  func.func @_attn_block_kernel(%arg0: i32, %arg1: memref<2x8x24xf32, #tpu.memory_space<vmem>>, %arg2: memref<2x8x8xf32, #tpu.memory_space<vmem>>, %arg3: memref<2x4x8xbf16, #tpu.memory_space<vmem>>, %arg4: memref<1x8xf32, #tpu.memory_space<vmem>>, %arg5: memref<1x8xf32, #tpu.memory_space<vmem>>, %arg6: memref<2x8x8xf32, #tpu.memory_space<vmem>>) attributes {dimension_semantics = [#tpu.dimension_semantics<parallel>], iteration_bounds = array<i64: 1>, scalar_prefetch = 0 : i64, scratch_operands = 0 : i64, tpu.core_type = #tpu.core_type<tc>, window_params = [{transform_indices = @transform_0, window_bounds = array<i64: 2, 8, 24>}, {transform_indices = @transform_1, window_bounds = array<i64: 2, 8, 8>}, {pipeline_mode = #tpu.pipeline_mode<synchronous>, transform_indices = @transform_2, window_bounds = array<i64: 2, 4, 8>}, {pipeline_mode = #tpu.pipeline_mode<synchronous>, transform_indices = @transform_3, window_bounds = array<i64: 1, 8>}, {pipeline_mode = #tpu.pipeline_mode<synchronous>, transform_indices = @transform_4, window_bounds = array<i64: 1, 8>}, {transform_indices = @transform_5, window_bounds = array<i64: 2, 8, 8>}]} {
    %c0 = arith.constant 0 : index
    %c0_0 = arith.constant 0 : index
    %c0_1 = arith.constant 0 : index
    %0 = vector.load %arg1[%c0, %c0_0, %c0_1] : memref<2x8x24xf32, #tpu.memory_space<vmem>>, vector<2x8x24xf32>
    %1 = vector.extract_strided_slice %0 {offsets = [0, 0, 0], sizes = [2, 8, 4], strides = [1, 1, 1]} : vector<2x8x24xf32> to vector<2x8x4xf32>
    %cst = arith.constant 0.000000e+00 : f32
    %2 = vector.broadcast %cst : f32 to vector<2x8x4xf32>
    %cst_2 = arith.constant 0.000000e+00 : f32
    %3 = vector.broadcast %cst_2 : f32 to vector<2x8x1xf32>
    %4 = vector.extract_strided_slice %0 {offsets = [0, 0, 8], sizes = [1, 8, 4], strides = [1, 1, 1]} : vector<2x8x24xf32> to vector<1x8x4xf32>
    %5 = vector.extract_strided_slice %0 {offsets = [0, 0, 16], sizes = [1, 8, 4], strides = [1, 1, 1]} : vector<2x8x24xf32> to vector<1x8x4xf32>
    %6 = vector.broadcast %4 : vector<1x8x4xf32> to vector<2x8x4xf32>
    %7 = arith.mulf %1, %6 : vector<2x8x4xf32>
    %cst_3 = arith.constant dense<0.000000e+00> : vector<2x8xf32>
    %8 = vector.multi_reduction <add>, %7, %cst_3 [2] : vector<2x8x4xf32> to vector<2x8xf32>
    %9 = vector.shape_cast %8 : vector<2x8xf32> to vector<2x8x1xf32>
    %10 = arith.negf %9 : vector<2x8x1xf32>
    %11 = math.exp %10 : vector<2x8x1xf32>
    %cst_4 = arith.constant 1.000000e+00 : f32
    %12 = vector.broadcast %cst_4 : f32 to vector<2x8x1xf32>
    %13 = arith.addf %12, %11 : vector<2x8x1xf32>
    %14 = arith.divf %12, %13 : vector<2x8x1xf32>
    %15 = arith.addf %3, %14 : vector<2x8x1xf32>
    %16 = vector.broadcast %14 : vector<2x8x1xf32> to vector<2x8x4xf32>
    %17 = vector.broadcast %5 : vector<1x8x4xf32> to vector<2x8x4xf32>
    %18 = arith.mulf %16, %17 : vector<2x8x4xf32>
    %19 = arith.addf %2, %18 : vector<2x8x4xf32>
    %20 = vector.extract_strided_slice %0 {offsets = [0, 0, 12], sizes = [1, 8, 4], strides = [1, 1, 1]} : vector<2x8x24xf32> to vector<1x8x4xf32>
    %21 = vector.extract_strided_slice %0 {offsets = [0, 0, 20], sizes = [1, 8, 4], strides = [1, 1, 1]} : vector<2x8x24xf32> to vector<1x8x4xf32>
    %22 = vector.broadcast %20 : vector<1x8x4xf32> to vector<2x8x4xf32>
    %23 = arith.mulf %1, %22 : vector<2x8x4xf32>
    %cst_5 = arith.constant dense<0.000000e+00> : vector<2x8xf32>
    %24 = vector.multi_reduction <add>, %23, %cst_5 [2] : vector<2x8x4xf32> to vector<2x8xf32>
    %25 = vector.shape_cast %24 : vector<2x8xf32> to vector<2x8x1xf32>
    %26 = arith.negf %25 : vector<2x8x1xf32>
    %27 = math.exp %26 : vector<2x8x1xf32>
    %cst_6 = arith.constant 1.000000e+00 : f32
    %28 = vector.broadcast %cst_6 : f32 to vector<2x8x1xf32>
    %29 = arith.addf %28, %27 : vector<2x8x1xf32>
    %30 = arith.divf %28, %29 : vector<2x8x1xf32>
    %31 = arith.addf %15, %30 : vector<2x8x1xf32>
    %32 = vector.broadcast %30 : vector<2x8x1xf32> to vector<2x8x4xf32>
    %33 = vector.broadcast %21 : vector<1x8x4xf32> to vector<2x8x4xf32>
    %34 = arith.mulf %32, %33 : vector<2x8x4xf32>
    %35 = arith.addf %19, %34 : vector<2x8x4xf32>
    %36 = vector.extract_strided_slice %0 {offsets = [1, 0, 8], sizes = [1, 8, 4], strides = [1, 1, 1]} : vector<2x8x24xf32> to vector<1x8x4xf32>
    %37 = vector.extract_strided_slice %0 {offsets = [1, 0, 16], sizes = [1, 8, 4], strides = [1, 1, 1]} : vector<2x8x24xf32> to vector<1x8x4xf32>
    %38 = vector.broadcast %36 : vector<1x8x4xf32> to vector<2x8x4xf32>
    %39 = arith.mulf %1, %38 : vector<2x8x4xf32>
    %cst_7 = arith.constant dense<0.000000e+00> : vector<2x8xf32>
    %40 = vector.multi_reduction <add>, %39, %cst_7 [2] : vector<2x8x4xf32> to vector<2x8xf32>
    %41 = vector.shape_cast %40 : vector<2x8xf32> to vector<2x8x1xf32>
    %42 = arith.negf %41 : vector<2x8x1xf32>
    %43 = math.exp %42 : vector<2x8x1xf32>
    %cst_8 = arith.constant 1.000000e+00 : f32
    %44 = vector.broadcast %cst_8 : f32 to vector<2x8x1xf32>
    %45 = arith.addf %44, %43 : vector<2x8x1xf32>
    %46 = arith.divf %44, %45 : vector<2x8x1xf32>
    %47 = arith.addf %31, %46 : vector<2x8x1xf32>
    %48 = vector.broadcast %46 : vector<2x8x1xf32> to vector<2x8x4xf32>
    %49 = vector.broadcast %37 : vector<1x8x4xf32> to vector<2x8x4xf32>
    %50 = arith.mulf %48, %49 : vector<2x8x4xf32>
    %51 = arith.addf %35, %50 : vector<2x8x4xf32>
    %52 = vector.extract_strided_slice %0 {offsets = [1, 0, 12], sizes = [1, 8, 4], strides = [1, 1, 1]} : vector<2x8x24xf32> to vector<1x8x4xf32>
    %53 = vector.extract_strided_slice %0 {offsets = [1, 0, 20], sizes = [1, 8, 4], strides = [1, 1, 1]} : vector<2x8x24xf32> to vector<1x8x4xf32>
    %54 = vector.broadcast %52 : vector<1x8x4xf32> to vector<2x8x4xf32>
    %55 = arith.mulf %1, %54 : vector<2x8x4xf32>
    %cst_9 = arith.constant dense<0.000000e+00> : vector<2x8xf32>
    %56 = vector.multi_reduction <add>, %55, %cst_9 [2] : vector<2x8x4xf32> to vector<2x8xf32>
    %57 = vector.shape_cast %56 : vector<2x8xf32> to vector<2x8x1xf32>
    %58 = arith.negf %57 : vector<2x8x1xf32>
    %59 = math.exp %58 : vector<2x8x1xf32>
    %cst_10 = arith.constant 1.000000e+00 : f32
    %60 = vector.broadcast %cst_10 : f32 to vector<2x8x1xf32>
    %61 = arith.addf %60, %59 : vector<2x8x1xf32>
    %62 = arith.divf %60, %61 : vector<2x8x1xf32>
    %63 = arith.addf %47, %62 : vector<2x8x1xf32>
    %64 = vector.broadcast %62 : vector<2x8x1xf32> to vector<2x8x4xf32>
    %65 = vector.broadcast %53 : vector<1x8x4xf32> to vector<2x8x4xf32>
    %66 = arith.mulf %64, %65 : vector<2x8x4xf32>
    %67 = arith.addf %51, %66 : vector<2x8x4xf32>
    %68 = tpu.reciprocal %63 {approx = true} : vector<2x8x1xf32> -> vector<2x8x1xf32>
    %69 = vector.broadcast %68 : vector<2x8x1xf32> to vector<2x8x4xf32>
    %70 = arith.mulf %67, %69 : vector<2x8x4xf32>
    %71 = vector.extract_strided_slice %0 {offsets = [0, 0, 4], sizes = [2, 8, 4], strides = [1, 1, 1]} : vector<2x8x24xf32> to vector<2x8x4xf32>
    %cst_11 = arith.constant 0.000000e+00 : f32
    %72 = vector.broadcast %cst_11 : f32 to vector<2x8x4xf32>
    %cst_12 = arith.constant 0.000000e+00 : f32
    %73 = vector.broadcast %cst_12 : f32 to vector<2x8x1xf32>
    %74 = vector.extract_strided_slice %0 {offsets = [0, 0, 8], sizes = [1, 8, 4], strides = [1, 1, 1]} : vector<2x8x24xf32> to vector<1x8x4xf32>
    %75 = vector.extract_strided_slice %0 {offsets = [0, 0, 16], sizes = [1, 8, 4], strides = [1, 1, 1]} : vector<2x8x24xf32> to vector<1x8x4xf32>
    %76 = vector.broadcast %74 : vector<1x8x4xf32> to vector<2x8x4xf32>
    %77 = arith.mulf %71, %76 : vector<2x8x4xf32>
    %cst_13 = arith.constant dense<0.000000e+00> : vector<2x8xf32>
    %78 = vector.multi_reduction <add>, %77, %cst_13 [2] : vector<2x8x4xf32> to vector<2x8xf32>
    %79 = vector.shape_cast %78 : vector<2x8xf32> to vector<2x8x1xf32>
    %80 = arith.negf %79 : vector<2x8x1xf32>
    %81 = math.exp %80 : vector<2x8x1xf32>
    %cst_14 = arith.constant 1.000000e+00 : f32
    %82 = vector.broadcast %cst_14 : f32 to vector<2x8x1xf32>
    %83 = arith.addf %82, %81 : vector<2x8x1xf32>
    %84 = arith.divf %82, %83 : vector<2x8x1xf32>
    %85 = arith.addf %73, %84 : vector<2x8x1xf32>
    %86 = vector.broadcast %84 : vector<2x8x1xf32> to vector<2x8x4xf32>
    %87 = vector.broadcast %75 : vector<1x8x4xf32> to vector<2x8x4xf32>
    %88 = arith.mulf %86, %87 : vector<2x8x4xf32>
    %89 = arith.addf %72, %88 : vector<2x8x4xf32>
    %90 = vector.extract_strided_slice %0 {offsets = [0, 0, 12], sizes = [1, 8, 4], strides = [1, 1, 1]} : vector<2x8x24xf32> to vector<1x8x4xf32>
    %91 = vector.extract_strided_slice %0 {offsets = [0, 0, 20], sizes = [1, 8, 4], strides = [1, 1, 1]} : vector<2x8x24xf32> to vector<1x8x4xf32>
    %92 = vector.broadcast %90 : vector<1x8x4xf32> to vector<2x8x4xf32>
    %93 = arith.mulf %71, %92 : vector<2x8x4xf32>
    %cst_15 = arith.constant dense<0.000000e+00> : vector<2x8xf32>
    %94 = vector.multi_reduction <add>, %93, %cst_15 [2] : vector<2x8x4xf32> to vector<2x8xf32>
    %95 = vector.shape_cast %94 : vector<2x8xf32> to vector<2x8x1xf32>
    %96 = arith.negf %95 : vector<2x8x1xf32>
    %97 = math.exp %96 : vector<2x8x1xf32>
    %cst_16 = arith.constant 1.000000e+00 : f32
    %98 = vector.broadcast %cst_16 : f32 to vector<2x8x1xf32>
    %99 = arith.addf %98, %97 : vector<2x8x1xf32>
    %100 = arith.divf %98, %99 : vector<2x8x1xf32>
    %101 = arith.addf %85, %100 : vector<2x8x1xf32>
    %102 = vector.broadcast %100 : vector<2x8x1xf32> to vector<2x8x4xf32>
    %103 = vector.broadcast %91 : vector<1x8x4xf32> to vector<2x8x4xf32>
    %104 = arith.mulf %102, %103 : vector<2x8x4xf32>
    %105 = arith.addf %89, %104 : vector<2x8x4xf32>
    %106 = vector.extract_strided_slice %0 {offsets = [1, 0, 8], sizes = [1, 8, 4], strides = [1, 1, 1]} : vector<2x8x24xf32> to vector<1x8x4xf32>
    %107 = vector.extract_strided_slice %0 {offsets = [1, 0, 16], sizes = [1, 8, 4], strides = [1, 1, 1]} : vector<2x8x24xf32> to vector<1x8x4xf32>
    %108 = vector.broadcast %106 : vector<1x8x4xf32> to vector<2x8x4xf32>
    %109 = arith.mulf %71, %108 : vector<2x8x4xf32>
    %cst_17 = arith.constant dense<0.000000e+00> : vector<2x8xf32>
    %110 = vector.multi_reduction <add>, %109, %cst_17 [2] : vector<2x8x4xf32> to vector<2x8xf32>
    %111 = vector.shape_cast %110 : vector<2x8xf32> to vector<2x8x1xf32>
    %112 = arith.negf %111 : vector<2x8x1xf32>
    %113 = math.exp %112 : vector<2x8x1xf32>
    %cst_18 = arith.constant 1.000000e+00 : f32
    %114 = vector.broadcast %cst_18 : f32 to vector<2x8x1xf32>
    %115 = arith.addf %114, %113 : vector<2x8x1xf32>
    %116 = arith.divf %114, %115 : vector<2x8x1xf32>
    %117 = arith.addf %101, %116 : vector<2x8x1xf32>
    %118 = vector.broadcast %116 : vector<2x8x1xf32> to vector<2x8x4xf32>
    %119 = vector.broadcast %107 : vector<1x8x4xf32> to vector<2x8x4xf32>
    %120 = arith.mulf %118, %119 : vector<2x8x4xf32>
    %121 = arith.addf %105, %120 : vector<2x8x4xf32>
    %122 = vector.extract_strided_slice %0 {offsets = [1, 0, 12], sizes = [1, 8, 4], strides = [1, 1, 1]} : vector<2x8x24xf32> to vector<1x8x4xf32>
    %123 = vector.extract_strided_slice %0 {offsets = [1, 0, 20], sizes = [1, 8, 4], strides = [1, 1, 1]} : vector<2x8x24xf32> to vector<1x8x4xf32>
    %124 = vector.broadcast %122 : vector<1x8x4xf32> to vector<2x8x4xf32>
    %125 = arith.mulf %71, %124 : vector<2x8x4xf32>
    %cst_19 = arith.constant dense<0.000000e+00> : vector<2x8xf32>
    %126 = vector.multi_reduction <add>, %125, %cst_19 [2] : vector<2x8x4xf32> to vector<2x8xf32>
    %127 = vector.shape_cast %126 : vector<2x8xf32> to vector<2x8x1xf32>
    %128 = arith.negf %127 : vector<2x8x1xf32>
    %129 = math.exp %128 : vector<2x8x1xf32>
    %cst_20 = arith.constant 1.000000e+00 : f32
    %130 = vector.broadcast %cst_20 : f32 to vector<2x8x1xf32>
    %131 = arith.addf %130, %129 : vector<2x8x1xf32>
    %132 = arith.divf %130, %131 : vector<2x8x1xf32>
    %133 = arith.addf %117, %132 : vector<2x8x1xf32>
    %134 = vector.broadcast %132 : vector<2x8x1xf32> to vector<2x8x4xf32>
    %135 = vector.broadcast %123 : vector<1x8x4xf32> to vector<2x8x4xf32>
    %136 = arith.mulf %134, %135 : vector<2x8x4xf32>
    %137 = arith.addf %121, %136 : vector<2x8x4xf32>
    %138 = tpu.reciprocal %133 {approx = true} : vector<2x8x1xf32> -> vector<2x8x1xf32>
    %139 = vector.broadcast %138 : vector<2x8x1xf32> to vector<2x8x4xf32>
    %140 = arith.mulf %137, %139 : vector<2x8x4xf32>
    %c0_21 = arith.constant 0 : index
    %c0_22 = arith.constant 0 : index
    %c0_23 = arith.constant 0 : index
    %141 = vector.load %arg2[%c0_21, %c0_22, %c0_23] : memref<2x8x8xf32, #tpu.memory_space<vmem>>, vector<2x8x8xf32>
    %c0_24 = arith.constant 0 : index
    %c0_25 = arith.constant 0 : index
    %142 = vector.load %arg4[%c0_24, %c0_25] : memref<1x8xf32, #tpu.memory_space<vmem>>, vector<1x8xf32>
    %c0_26 = arith.constant 0 : index
    %c0_27 = arith.constant 0 : index
    %143 = vector.load %arg5[%c0_26, %c0_27] : memref<1x8xf32, #tpu.memory_space<vmem>>, vector<1x8xf32>
    %cst_28 = arith.constant 0.000000e+00 : f32
    %144 = vector.broadcast %cst_28 : f32 to vector<8x8xf32>
    %145 = vector.extract_strided_slice %70 {offsets = [0, 0, 0], sizes = [1, 8, 4], strides = [1, 1, 1]} : vector<2x8x4xf32> to vector<1x8x4xf32>
    %146 = vector.shape_cast %145 : vector<1x8x4xf32> to vector<8x4xf32>
    %147 = arith.truncf %146 : vector<8x4xf32> to vector<8x4xbf16>
    %c0_29 = arith.constant 0 : index
    %c0_30 = arith.constant 0 : index
    %c0_31 = arith.constant 0 : index
    %148 = vector.load %arg3[%c0_29, %c0_30, %c0_31] : memref<2x4x8xbf16, #tpu.memory_space<vmem>>, vector<1x4x8xbf16>
    %149 = vector.shape_cast %148 : vector<1x4x8xbf16> to vector<4x8xbf16>
    %cst_32 = arith.constant dense<0.000000e+00> : vector<8x8xf32>
    %150 = tpu.matmul %147, %149, %cst_32 {dimension_numbers = #tpu.dot_dimension_numbers<[1], [0], [0], [1], [0, 0, 1, 1], [], []>} : vector<8x4xbf16>, vector<4x8xbf16>, vector<8x8xf32> -> vector<8x8xf32>
    %151 = arith.addf %144, %150 : vector<8x8xf32>
    %152 = vector.extract_strided_slice %140 {offsets = [0, 0, 0], sizes = [1, 8, 4], strides = [1, 1, 1]} : vector<2x8x4xf32> to vector<1x8x4xf32>
    %153 = vector.shape_cast %152 : vector<1x8x4xf32> to vector<8x4xf32>
    %154 = arith.truncf %153 : vector<8x4xf32> to vector<8x4xbf16>
    %c1 = arith.constant 1 : index
    %c0_33 = arith.constant 0 : index
    %c0_34 = arith.constant 0 : index
    %155 = vector.load %arg3[%c1, %c0_33, %c0_34] : memref<2x4x8xbf16, #tpu.memory_space<vmem>>, vector<1x4x8xbf16>
    %156 = vector.shape_cast %155 : vector<1x4x8xbf16> to vector<4x8xbf16>
    %cst_35 = arith.constant dense<0.000000e+00> : vector<8x8xf32>
    %157 = tpu.matmul %154, %156, %cst_35 {dimension_numbers = #tpu.dot_dimension_numbers<[1], [0], [0], [1], [0, 0, 1, 1], [], []>} : vector<8x4xbf16>, vector<4x8xbf16>, vector<8x8xf32> -> vector<8x8xf32>
    %158 = arith.addf %151, %157 : vector<8x8xf32>
    %cst_36 = arith.constant 5.000000e-01 : f32
    %159 = vector.broadcast %cst_36 : f32 to vector<8x8xf32>
    %160 = arith.mulf %159, %158 : vector<8x8xf32>
    %161 = vector.extract_strided_slice %141 {offsets = [0, 0, 0], sizes = [1, 8, 8], strides = [1, 1, 1]} : vector<2x8x8xf32> to vector<1x8x8xf32>
    %162 = vector.shape_cast %161 : vector<1x8x8xf32> to vector<8x8xf32>
    %cst_37 = arith.constant 5.000000e-01 : f32
    %163 = vector.broadcast %cst_37 : f32 to vector<8x8xf32>
    %164 = arith.mulf %163, %162 : vector<8x8xf32>
    %165 = arith.addf %160, %164 : vector<8x8xf32>
    %cst_38 = arith.constant dense<0.000000e+00> : vector<8xf32>
    %166 = vector.multi_reduction <add>, %165, %cst_38 [1] : vector<8x8xf32> to vector<8xf32>
    %167 = vector.shape_cast %166 : vector<8xf32> to vector<8x1xf32>
    %cst_39 = arith.constant 8.000000e+00 : f32
    %168 = vector.broadcast %cst_39 : f32 to vector<8x1xf32>
    %169 = arith.divf %167, %168 : vector<8x1xf32>
    %170 = vector.broadcast %169 : vector<8x1xf32> to vector<8x8xf32>
    %171 = arith.subf %165, %170 : vector<8x8xf32>
    %172 = arith.mulf %171, %171 : vector<8x8xf32>
    %cst_40 = arith.constant dense<0.000000e+00> : vector<8xf32>
    %173 = vector.multi_reduction <add>, %172, %cst_40 [1] : vector<8x8xf32> to vector<8xf32>
    %174 = vector.shape_cast %173 : vector<8xf32> to vector<8x1xf32>
    %cst_41 = arith.constant 8.000000e+00 : f32
    %175 = vector.broadcast %cst_41 : f32 to vector<8x1xf32>
    %176 = arith.divf %174, %175 : vector<8x1xf32>
    %177 = vector.broadcast %169 : vector<8x1xf32> to vector<8x8xf32>
    %178 = arith.subf %165, %177 : vector<8x8xf32>
    %cst_42 = arith.constant 9.99999974E-6 : f32
    %179 = vector.broadcast %cst_42 : f32 to vector<8x1xf32>
    %180 = arith.addf %176, %179 : vector<8x1xf32>
    %181 = math.rsqrt %180 : vector<8x1xf32>
    %182 = vector.broadcast %181 : vector<8x1xf32> to vector<8x8xf32>
    %183 = arith.mulf %178, %182 : vector<8x8xf32>
    %184 = vector.broadcast %142 : vector<1x8xf32> to vector<8x8xf32>
    %185 = arith.mulf %183, %184 : vector<8x8xf32>
    %186 = vector.broadcast %143 : vector<1x8xf32> to vector<8x8xf32>
    %187 = arith.addf %185, %186 : vector<8x8xf32>
    %c0_43 = arith.constant 0 : index
    %c0_44 = arith.constant 0 : index
    %c0_45 = arith.constant 0 : index
    %188 = vector.load %arg6[%c0_43, %c0_44, %c0_45] : memref<2x8x8xf32, #tpu.memory_space<vmem>>, vector<1x8x8xf32>
    %189 = vector.shape_cast %188 : vector<1x8x8xf32> to vector<8x8xf32>
    %190 = vector.shape_cast %187 : vector<8x8xf32> to vector<1x8x8xf32>
    tpu.vector_store %arg6[%c0_43, %c0_44, %c0_45], %190 {strides = array<i32>} : memref<2x8x8xf32, #tpu.memory_space<vmem>>, vector<1x8x8xf32>,
    %cst_46 = arith.constant 0.000000e+00 : f32
    %191 = vector.broadcast %cst_46 : f32 to vector<8x8xf32>
    %192 = vector.extract_strided_slice %70 {offsets = [1, 0, 0], sizes = [1, 8, 4], strides = [1, 1, 1]} : vector<2x8x4xf32> to vector<1x8x4xf32>
    %193 = vector.shape_cast %192 : vector<1x8x4xf32> to vector<8x4xf32>
    %194 = arith.truncf %193 : vector<8x4xf32> to vector<8x4xbf16>
    %c0_47 = arith.constant 0 : index
    %c0_48 = arith.constant 0 : index
    %c0_49 = arith.constant 0 : index
    %195 = vector.load %arg3[%c0_47, %c0_48, %c0_49] : memref<2x4x8xbf16, #tpu.memory_space<vmem>>, vector<1x4x8xbf16>
    %196 = vector.shape_cast %195 : vector<1x4x8xbf16> to vector<4x8xbf16>
    %cst_50 = arith.constant dense<0.000000e+00> : vector<8x8xf32>
    %197 = tpu.matmul %194, %196, %cst_50 {dimension_numbers = #tpu.dot_dimension_numbers<[1], [0], [0], [1], [0, 0, 1, 1], [], []>} : vector<8x4xbf16>, vector<4x8xbf16>, vector<8x8xf32> -> vector<8x8xf32>
    %198 = arith.addf %191, %197 : vector<8x8xf32>
    %199 = vector.extract_strided_slice %140 {offsets = [1, 0, 0], sizes = [1, 8, 4], strides = [1, 1, 1]} : vector<2x8x4xf32> to vector<1x8x4xf32>
    %200 = vector.shape_cast %199 : vector<1x8x4xf32> to vector<8x4xf32>
    %201 = arith.truncf %200 : vector<8x4xf32> to vector<8x4xbf16>
    %c1_51 = arith.constant 1 : index
    %c0_52 = arith.constant 0 : index
    %c0_53 = arith.constant 0 : index
    %202 = vector.load %arg3[%c1_51, %c0_52, %c0_53] : memref<2x4x8xbf16, #tpu.memory_space<vmem>>, vector<1x4x8xbf16>
    %203 = vector.shape_cast %202 : vector<1x4x8xbf16> to vector<4x8xbf16>
    %cst_54 = arith.constant dense<0.000000e+00> : vector<8x8xf32>
    %204 = tpu.matmul %201, %203, %cst_54 {dimension_numbers = #tpu.dot_dimension_numbers<[1], [0], [0], [1], [0, 0, 1, 1], [], []>} : vector<8x4xbf16>, vector<4x8xbf16>, vector<8x8xf32> -> vector<8x8xf32>
    %205 = arith.addf %198, %204 : vector<8x8xf32>
    %cst_55 = arith.constant 5.000000e-01 : f32
    %206 = vector.broadcast %cst_55 : f32 to vector<8x8xf32>
    %207 = arith.mulf %206, %205 : vector<8x8xf32>
    %208 = vector.extract_strided_slice %141 {offsets = [1, 0, 0], sizes = [1, 8, 8], strides = [1, 1, 1]} : vector<2x8x8xf32> to vector<1x8x8xf32>
    %209 = vector.shape_cast %208 : vector<1x8x8xf32> to vector<8x8xf32>
    %cst_56 = arith.constant 5.000000e-01 : f32
    %210 = vector.broadcast %cst_56 : f32 to vector<8x8xf32>
    %211 = arith.mulf %210, %209 : vector<8x8xf32>
    %212 = arith.addf %207, %211 : vector<8x8xf32>
    %cst_57 = arith.constant dense<0.000000e+00> : vector<8xf32>
    %213 = vector.multi_reduction <add>, %212, %cst_57 [1] : vector<8x8xf32> to vector<8xf32>
    %214 = vector.shape_cast %213 : vector<8xf32> to vector<8x1xf32>
    %cst_58 = arith.constant 8.000000e+00 : f32
    %215 = vector.broadcast %cst_58 : f32 to vector<8x1xf32>
    %216 = arith.divf %214, %215 : vector<8x1xf32>
    %217 = vector.broadcast %216 : vector<8x1xf32> to vector<8x8xf32>
    %218 = arith.subf %212, %217 : vector<8x8xf32>
    %219 = arith.mulf %218, %218 : vector<8x8xf32>
    %cst_59 = arith.constant dense<0.000000e+00> : vector<8xf32>
    %220 = vector.multi_reduction <add>, %219, %cst_59 [1] : vector<8x8xf32> to vector<8xf32>
    %221 = vector.shape_cast %220 : vector<8xf32> to vector<8x1xf32>
    %cst_60 = arith.constant 8.000000e+00 : f32
    %222 = vector.broadcast %cst_60 : f32 to vector<8x1xf32>
    %223 = arith.divf %221, %222 : vector<8x1xf32>
    %224 = vector.broadcast %216 : vector<8x1xf32> to vector<8x8xf32>
    %225 = arith.subf %212, %224 : vector<8x8xf32>
    %cst_61 = arith.constant 9.99999974E-6 : f32
    %226 = vector.broadcast %cst_61 : f32 to vector<8x1xf32>
    %227 = arith.addf %223, %226 : vector<8x1xf32>
    %228 = math.rsqrt %227 : vector<8x1xf32>
    %229 = vector.broadcast %228 : vector<8x1xf32> to vector<8x8xf32>
    %230 = arith.mulf %225, %229 : vector<8x8xf32>
    %231 = vector.broadcast %142 : vector<1x8xf32> to vector<8x8xf32>
    %232 = arith.mulf %230, %231 : vector<8x8xf32>
    %233 = vector.broadcast %143 : vector<1x8xf32> to vector<8x8xf32>
    %234 = arith.addf %232, %233 : vector<8x8xf32>
    %c1_62 = arith.constant 1 : index
    %c0_63 = arith.constant 0 : index
    %c0_64 = arith.constant 0 : index
    %235 = vector.load %arg6[%c1_62, %c0_63, %c0_64] : memref<2x8x8xf32, #tpu.memory_space<vmem>>, vector<1x8x8xf32>
    %236 = vector.shape_cast %235 : vector<1x8x8xf32> to vector<8x8xf32>
    %237 = vector.shape_cast %234 : vector<8x8xf32> to vector<1x8x8xf32>
    tpu.vector_store %arg6[%c1_62, %c0_63, %c0_64], %237 {strides = array<i32>} : memref<2x8x8xf32, #tpu.memory_space<vmem>>, vector<1x8x8xf32>,
    return
  }
  func.func @transform_0(%arg0: i32) -> (i32, i32, i32) {
    %c0_i32 = arith.constant 0 : i32
    %c0_i32_0 = arith.constant 0 : i32
    %c0_i32_1 = arith.constant 0 : i32
    return %c0_i32, %arg0, %c0_i32_0 : i32, i32, i32
  }
  func.func @transform_1(%arg0: i32) -> (i32, i32, i32) {
    %c0_i32 = arith.constant 0 : i32
    %c0_i32_0 = arith.constant 0 : i32
    %c0_i32_1 = arith.constant 0 : i32
    return %c0_i32, %arg0, %c0_i32_0 : i32, i32, i32
  }
  func.func @transform_2(%arg0: i32) -> (i32, i32, i32) {
    %c0_i32 = arith.constant 0 : i32
    %c0_i32_0 = arith.constant 0 : i32
    %c0_i32_1 = arith.constant 0 : i32
    %c0_i32_2 = arith.constant 0 : i32
    return %c0_i32, %c0_i32_0, %c0_i32_1 : i32, i32, i32
  }
  func.func @transform_3(%arg0: i32) -> (i32, i32) {
    %c0_i32 = arith.constant 0 : i32
    %c0_i32_0 = arith.constant 0 : i32
    %c0_i32_1 = arith.constant 0 : i32
    return %c0_i32, %c0_i32_0 : i32, i32
  }
  func.func @transform_4(%arg0: i32) -> (i32, i32) {
    %c0_i32 = arith.constant 0 : i32
    %c0_i32_0 = arith.constant 0 : i32
    %c0_i32_1 = arith.constant 0 : i32
    return %c0_i32, %c0_i32_0 : i32, i32
  }
  func.func @transform_5(%arg0: i32) -> (i32, i32, i32) {
    %c0_i32 = arith.constant 0 : i32
    %c0_i32_0 = arith.constant 0 : i32
    %c0_i32_1 = arith.constant 0 : i32
    return %c0_i32, %arg0, %c0_i32_0 : i32, i32, i32
  }
}

module attributes {stable_mosaic.version = 11 : i64} {
  func.func @_linear_kernel(%arg0: i32, %arg1: i32, %arg2: i32, %arg3: memref<2x64xbf16, #tpu.memory_space<vmem>>, %arg4: memref<64x128xbf16, #tpu.memory_space<vmem>>, %arg5: memref<1x128xf32, #tpu.memory_space<vmem>>, %arg6: memref<2x128xf32, #tpu.memory_space<vmem>>, %arg7: memref<2x128xf32, #tpu.memory_space<vmem>>) attributes {dimension_semantics = [#tpu.dimension_semantics<parallel>, #tpu.dimension_semantics<parallel>, #tpu.dimension_semantics<arbitrary>], iteration_bounds = array<i64: 1, 1, 1>, scalar_prefetch = 0 : i64, scratch_operands = 1 : i64, tpu.core_type = #tpu.core_type<tc>, window_params = [{transform_indices = @transform_0, window_bounds = array<i64: 2, 64>}, {transform_indices = @transform_1, window_bounds = array<i64: 64, 128>}, {transform_indices = @transform_2, window_bounds = array<i64: 1, 128>}, {transform_indices = @transform_3, window_bounds = array<i64: 2, 128>}]} {
    %c0_i32 = arith.constant 0 : i32
    %0 = arith.cmpi eq, %arg2, %c0_i32 : i32
    %1 = arith.extui %0 : i1 to i32
    %c0_i32_0 = arith.constant 0 : i32
    %2 = arith.cmpi ne, %1, %c0_i32_0 : i32
    scf.if %2 {
      %cst_10 = arith.constant 0.000000e+00 : f32
      %12 = vector.broadcast %cst_10 : f32 to vector<2x128xf32>
      %c0_11 = arith.constant 0 : index
      %c0_12 = arith.constant 0 : index
      %13 = vector.load %arg7[%c0_11, %c0_12] : memref<2x128xf32, #tpu.memory_space<vmem>>, vector<2x128xf32>
      tpu.vector_store %arg7[%c0_11, %c0_12], %12 {strides = array<i32>} : memref<2x128xf32, #tpu.memory_space<vmem>>, vector<2x128xf32>,
    } else {
    }
    %c0 = arith.constant 0 : index
    %c0_1 = arith.constant 0 : index
    %3 = vector.load %arg7[%c0, %c0_1] : memref<2x128xf32, #tpu.memory_space<vmem>>, vector<2x128xf32>
    %c0_2 = arith.constant 0 : index
    %c0_3 = arith.constant 0 : index
    %4 = vector.load %arg3[%c0_2, %c0_3] : memref<2x64xbf16, #tpu.memory_space<vmem>>, vector<2x64xbf16>
    %c0_4 = arith.constant 0 : index
    %c0_5 = arith.constant 0 : index
    %5 = vector.load %arg4[%c0_4, %c0_5] : memref<64x128xbf16, #tpu.memory_space<vmem>>, vector<64x128xbf16>
    %cst = arith.constant dense<0.000000e+00> : vector<2x128xf32>
    %6 = tpu.matmul %4, %5, %cst {dimension_numbers = #tpu.dot_dimension_numbers<[1], [0], [0], [1], [0, 0, 1, 1], [], []>} : vector<2x64xbf16>, vector<64x128xbf16>, vector<2x128xf32> -> vector<2x128xf32>
    %7 = arith.addf %3, %6 : vector<2x128xf32>
    %c0_6 = arith.constant 0 : index
    %c0_7 = arith.constant 0 : index
    %8 = vector.load %arg7[%c0_6, %c0_7] : memref<2x128xf32, #tpu.memory_space<vmem>>, vector<2x128xf32>
    tpu.vector_store %arg7[%c0_6, %c0_7], %7 {strides = array<i32>} : memref<2x128xf32, #tpu.memory_space<vmem>>, vector<2x128xf32>,
    %c0_i32_8 = arith.constant 0 : i32
    %9 = arith.cmpi eq, %arg2, %c0_i32_8 : i32
    %10 = arith.extui %9 : i1 to i32
    %c0_i32_9 = arith.constant 0 : i32
    %11 = arith.cmpi ne, %10, %c0_i32_9 : i32
    scf.if %11 {
      %c0_10 = arith.constant 0 : index
      %c0_11 = arith.constant 0 : index
      %12 = vector.load %arg7[%c0_10, %c0_11] : memref<2x128xf32, #tpu.memory_space<vmem>>, vector<2x128xf32>
      %c0_12 = arith.constant 0 : index
      %c0_13 = arith.constant 0 : index
      %13 = vector.load %arg5[%c0_12, %c0_13] : memref<1x128xf32, #tpu.memory_space<vmem>>, vector<1x128xf32>
      %14 = vector.broadcast %13 : vector<1x128xf32> to vector<2x128xf32>
      %15 = arith.addf %12, %14 : vector<2x128xf32>
      %c0_14 = arith.constant 0 : index
      %c0_15 = arith.constant 0 : index
      %16 = vector.load %arg6[%c0_14, %c0_15] : memref<2x128xf32, #tpu.memory_space<vmem>>, vector<2x128xf32>
      tpu.vector_store %arg6[%c0_14, %c0_15], %15 {strides = array<i32>} : memref<2x128xf32, #tpu.memory_space<vmem>>, vector<2x128xf32>,
    } else {
    }
    return
  }
  func.func @transform_0(%arg0: i32, %arg1: i32, %arg2: i32) -> (i32, i32) {
    %c0_i32 = arith.constant 0 : i32
    return %arg0, %arg2 : i32, i32
  }
  func.func @transform_1(%arg0: i32, %arg1: i32, %arg2: i32) -> (i32, i32) {
    %c0_i32 = arith.constant 0 : i32
    return %arg2, %arg1 : i32, i32
  }
  func.func @transform_2(%arg0: i32, %arg1: i32, %arg2: i32) -> (i32, i32) {
    %c0_i32 = arith.constant 0 : i32
    %c0_i32_0 = arith.constant 0 : i32
    return %c0_i32, %arg1 : i32, i32
  }
  func.func @transform_3(%arg0: i32, %arg1: i32, %arg2: i32) -> (i32, i32) {
    %c0_i32 = arith.constant 0 : i32
    return %arg0, %arg1 : i32, i32
  }
}

module attributes {stable_mosaic.version = 11 : i64} {
  func.func @_linear_kernel(%arg0: i32, %arg1: i32, %arg2: i32, %arg3: memref<12x20xbf16, #tpu.memory_space<vmem>>, %arg4: memref<20x8xbf16, #tpu.memory_space<vmem>>, %arg5: memref<1x8xf32, #tpu.memory_space<vmem>>, %arg6: memref<12x8xf32, #tpu.memory_space<vmem>>, %arg7: memref<12x8xf32, #tpu.memory_space<vmem>>) attributes {dimension_semantics = [#tpu.dimension_semantics<parallel>, #tpu.dimension_semantics<parallel>, #tpu.dimension_semantics<arbitrary>], iteration_bounds = array<i64: 1, 1, 1>, scalar_prefetch = 0 : i64, scratch_operands = 1 : i64, tpu.core_type = #tpu.core_type<tc>, window_params = [{transform_indices = @transform_0, window_bounds = array<i64: 12, 20>}, {transform_indices = @transform_1, window_bounds = array<i64: 20, 8>}, {transform_indices = @transform_2, window_bounds = array<i64: 1, 8>}, {transform_indices = @transform_3, window_bounds = array<i64: 12, 8>}]} {
    %c0_i32 = arith.constant 0 : i32
    %0 = arith.cmpi eq, %arg2, %c0_i32 : i32
    %1 = arith.extui %0 : i1 to i32
    %c0_i32_0 = arith.constant 0 : i32
    %2 = arith.cmpi ne, %1, %c0_i32_0 : i32
    scf.if %2 {
      %cst_10 = arith.constant 0.000000e+00 : f32
      %12 = vector.broadcast %cst_10 : f32 to vector<12x8xf32>
      %c0_11 = arith.constant 0 : index
      %c0_12 = arith.constant 0 : index
      %13 = vector.load %arg7[%c0_11, %c0_12] : memref<12x8xf32, #tpu.memory_space<vmem>>, vector<12x8xf32>
      tpu.vector_store %arg7[%c0_11, %c0_12], %12 {strides = array<i32>} : memref<12x8xf32, #tpu.memory_space<vmem>>, vector<12x8xf32>,
    } else {
    }
    %c0 = arith.constant 0 : index
    %c0_1 = arith.constant 0 : index
    %3 = vector.load %arg7[%c0, %c0_1] : memref<12x8xf32, #tpu.memory_space<vmem>>, vector<12x8xf32>
    %c0_2 = arith.constant 0 : index
    %c0_3 = arith.constant 0 : index
    %4 = vector.load %arg3[%c0_2, %c0_3] : memref<12x20xbf16, #tpu.memory_space<vmem>>, vector<12x20xbf16>
    %c0_4 = arith.constant 0 : index
    %c0_5 = arith.constant 0 : index
    %5 = vector.load %arg4[%c0_4, %c0_5] : memref<20x8xbf16, #tpu.memory_space<vmem>>, vector<20x8xbf16>
    %cst = arith.constant dense<0.000000e+00> : vector<12x8xf32>
    %6 = tpu.matmul %4, %5, %cst {dimension_numbers = #tpu.dot_dimension_numbers<[1], [0], [0], [1], [0, 0, 1, 1], [], []>} : vector<12x20xbf16>, vector<20x8xbf16>, vector<12x8xf32> -> vector<12x8xf32>
    %7 = arith.addf %3, %6 : vector<12x8xf32>
    %c0_6 = arith.constant 0 : index
    %c0_7 = arith.constant 0 : index
    %8 = vector.load %arg7[%c0_6, %c0_7] : memref<12x8xf32, #tpu.memory_space<vmem>>, vector<12x8xf32>
    tpu.vector_store %arg7[%c0_6, %c0_7], %7 {strides = array<i32>} : memref<12x8xf32, #tpu.memory_space<vmem>>, vector<12x8xf32>,
    %c0_i32_8 = arith.constant 0 : i32
    %9 = arith.cmpi eq, %arg2, %c0_i32_8 : i32
    %10 = arith.extui %9 : i1 to i32
    %c0_i32_9 = arith.constant 0 : i32
    %11 = arith.cmpi ne, %10, %c0_i32_9 : i32
    scf.if %11 {
      %c0_10 = arith.constant 0 : index
      %c0_11 = arith.constant 0 : index
      %12 = vector.load %arg7[%c0_10, %c0_11] : memref<12x8xf32, #tpu.memory_space<vmem>>, vector<12x8xf32>
      %c0_12 = arith.constant 0 : index
      %c0_13 = arith.constant 0 : index
      %13 = vector.load %arg5[%c0_12, %c0_13] : memref<1x8xf32, #tpu.memory_space<vmem>>, vector<1x8xf32>
      %14 = vector.broadcast %13 : vector<1x8xf32> to vector<12x8xf32>
      %15 = arith.addf %12, %14 : vector<12x8xf32>
      %c0_14 = arith.constant 0 : index
      %c0_15 = arith.constant 0 : index
      %16 = vector.load %arg6[%c0_14, %c0_15] : memref<12x8xf32, #tpu.memory_space<vmem>>, vector<12x8xf32>
      tpu.vector_store %arg6[%c0_14, %c0_15], %15 {strides = array<i32>} : memref<12x8xf32, #tpu.memory_space<vmem>>, vector<12x8xf32>,
    } else {
    }
    return
  }
  func.func @transform_0(%arg0: i32, %arg1: i32, %arg2: i32) -> (i32, i32) {
    %c0_i32 = arith.constant 0 : i32
    return %arg0, %arg2 : i32, i32
  }
  func.func @transform_1(%arg0: i32, %arg1: i32, %arg2: i32) -> (i32, i32) {
    %c0_i32 = arith.constant 0 : i32
    return %arg2, %arg1 : i32, i32
  }
  func.func @transform_2(%arg0: i32, %arg1: i32, %arg2: i32) -> (i32, i32) {
    %c0_i32 = arith.constant 0 : i32
    %c0_i32_0 = arith.constant 0 : i32
    return %c0_i32, %arg1 : i32, i32
  }
  func.func @transform_3(%arg0: i32, %arg1: i32, %arg2: i32) -> (i32, i32) {
    %c0_i32 = arith.constant 0 : i32
    return %arg0, %arg1 : i32, i32
  }
}

module attributes {stable_mosaic.version = 11 : i64} {
  func.func @_token_mix_kernel(%arg0: i32, %arg1: memref<1x6x8xf32, #tpu.memory_space<vmem>>, %arg2: memref<1x8xf32, #tpu.memory_space<vmem>>, %arg3: memref<1x8xf32, #tpu.memory_space<vmem>>, %arg4: memref<12x6xbf16, #tpu.memory_space<vmem>>, %arg5: memref<12x1xf32, #tpu.memory_space<vmem>>, %arg6: memref<6x12xbf16, #tpu.memory_space<vmem>>, %arg7: memref<6x1xf32, #tpu.memory_space<vmem>>, %arg8: memref<1x6x8xf32, #tpu.memory_space<vmem>>) attributes {dimension_semantics = [#tpu.dimension_semantics<parallel>], iteration_bounds = array<i64: 2>, scalar_prefetch = 0 : i64, scratch_operands = 0 : i64, tpu.core_type = #tpu.core_type<tc>, window_params = [{transform_indices = @transform_0, window_bounds = array<i64: 1, 6, 8>}, {pipeline_mode = #tpu.pipeline_mode<synchronous>, transform_indices = @transform_1, window_bounds = array<i64: 1, 8>}, {pipeline_mode = #tpu.pipeline_mode<synchronous>, transform_indices = @transform_2, window_bounds = array<i64: 1, 8>}, {pipeline_mode = #tpu.pipeline_mode<synchronous>, transform_indices = @transform_3, window_bounds = array<i64: 12, 6>}, {pipeline_mode = #tpu.pipeline_mode<synchronous>, transform_indices = @transform_4, window_bounds = array<i64: 12, 1>}, {pipeline_mode = #tpu.pipeline_mode<synchronous>, transform_indices = @transform_5, window_bounds = array<i64: 6, 12>}, {pipeline_mode = #tpu.pipeline_mode<synchronous>, transform_indices = @transform_6, window_bounds = array<i64: 6, 1>}, {transform_indices = @transform_7, window_bounds = array<i64: 1, 6, 8>}]} {
    %c0 = arith.constant 0 : index
    %c0_0 = arith.constant 0 : index
    %c0_1 = arith.constant 0 : index
    %0 = vector.load %arg1[%c0, %c0_0, %c0_1] : memref<1x6x8xf32, #tpu.memory_space<vmem>>, vector<1x6x8xf32>
    %1 = vector.shape_cast %0 : vector<1x6x8xf32> to vector<6x8xf32>
    %c0_2 = arith.constant 0 : index
    %c0_3 = arith.constant 0 : index
    %2 = vector.load %arg2[%c0_2, %c0_3] : memref<1x8xf32, #tpu.memory_space<vmem>>, vector<1x8xf32>
    %c0_4 = arith.constant 0 : index
    %c0_5 = arith.constant 0 : index
    %3 = vector.load %arg3[%c0_4, %c0_5] : memref<1x8xf32, #tpu.memory_space<vmem>>, vector<1x8xf32>
    %cst = arith.constant dense<0.000000e+00> : vector<6xf32>
    %4 = vector.multi_reduction <add>, %1, %cst [1] : vector<6x8xf32> to vector<6xf32>
    %5 = vector.shape_cast %4 : vector<6xf32> to vector<6x1xf32>
    %cst_6 = arith.constant 8.000000e+00 : f32
    %6 = vector.broadcast %cst_6 : f32 to vector<6x1xf32>
    %7 = arith.divf %5, %6 : vector<6x1xf32>
    %8 = vector.broadcast %7 : vector<6x1xf32> to vector<6x8xf32>
    %9 = arith.subf %1, %8 : vector<6x8xf32>
    %10 = arith.mulf %9, %9 : vector<6x8xf32>
    %cst_7 = arith.constant dense<0.000000e+00> : vector<6xf32>
    %11 = vector.multi_reduction <add>, %10, %cst_7 [1] : vector<6x8xf32> to vector<6xf32>
    %12 = vector.shape_cast %11 : vector<6xf32> to vector<6x1xf32>
    %cst_8 = arith.constant 8.000000e+00 : f32
    %13 = vector.broadcast %cst_8 : f32 to vector<6x1xf32>
    %14 = arith.divf %12, %13 : vector<6x1xf32>
    %15 = vector.broadcast %7 : vector<6x1xf32> to vector<6x8xf32>
    %16 = arith.subf %1, %15 : vector<6x8xf32>
    %cst_9 = arith.constant 9.99999974E-6 : f32
    %17 = vector.broadcast %cst_9 : f32 to vector<6x1xf32>
    %18 = arith.addf %14, %17 : vector<6x1xf32>
    %19 = math.rsqrt %18 : vector<6x1xf32>
    %20 = vector.broadcast %19 : vector<6x1xf32> to vector<6x8xf32>
    %21 = arith.mulf %16, %20 : vector<6x8xf32>
    %22 = vector.broadcast %2 : vector<1x8xf32> to vector<6x8xf32>
    %23 = arith.mulf %21, %22 : vector<6x8xf32>
    %24 = vector.broadcast %3 : vector<1x8xf32> to vector<6x8xf32>
    %25 = arith.addf %23, %24 : vector<6x8xf32>
    %26 = arith.truncf %25 : vector<6x8xf32> to vector<6x8xbf16>
    %c0_10 = arith.constant 0 : index
    %c0_11 = arith.constant 0 : index
    %27 = vector.load %arg4[%c0_10, %c0_11] : memref<12x6xbf16, #tpu.memory_space<vmem>>, vector<12x6xbf16>
    %cst_12 = arith.constant dense<0.000000e+00> : vector<12x8xf32>
    %28 = tpu.matmul %27, %26, %cst_12 {dimension_numbers = #tpu.dot_dimension_numbers<[1], [0], [0], [1], [0, 0, 1, 1], [], []>} : vector<12x6xbf16>, vector<6x8xbf16>, vector<12x8xf32> -> vector<12x8xf32>
    %c0_13 = arith.constant 0 : index
    %c0_14 = arith.constant 0 : index
    %29 = vector.load %arg5[%c0_13, %c0_14] : memref<12x1xf32, #tpu.memory_space<vmem>>, vector<12x1xf32>
    %30 = vector.broadcast %29 : vector<12x1xf32> to vector<12x8xf32>
    %31 = arith.addf %28, %30 : vector<12x8xf32>
    %cst_15 = arith.constant 5.000000e-01 : f32
    %32 = vector.broadcast %cst_15 : f32 to vector<12x8xf32>
    %33 = arith.mulf %32, %31 : vector<12x8xf32>
    %cst_16 = arith.constant 4.471500e-02 : f32
    %34 = vector.broadcast %cst_16 : f32 to vector<12x8xf32>
    %35 = arith.mulf %34, %31 : vector<12x8xf32>
    %36 = arith.mulf %35, %31 : vector<12x8xf32>
    %37 = arith.mulf %36, %31 : vector<12x8xf32>
    %38 = arith.addf %31, %37 : vector<12x8xf32>
    %cst_17 = arith.constant 0.797884583 : f32
    %39 = vector.broadcast %cst_17 : f32 to vector<12x8xf32>
    %40 = arith.mulf %39, %38 : vector<12x8xf32>
    %41 = math.tanh %40 : vector<12x8xf32>
    %cst_18 = arith.constant 1.000000e+00 : f32
    %42 = vector.broadcast %cst_18 : f32 to vector<12x8xf32>
    %43 = arith.addf %42, %41 : vector<12x8xf32>
    %44 = arith.mulf %33, %43 : vector<12x8xf32>
    %45 = arith.truncf %44 : vector<12x8xf32> to vector<12x8xbf16>
    %c0_19 = arith.constant 0 : index
    %c0_20 = arith.constant 0 : index
    %46 = vector.load %arg6[%c0_19, %c0_20] : memref<6x12xbf16, #tpu.memory_space<vmem>>, vector<6x12xbf16>
    %cst_21 = arith.constant dense<0.000000e+00> : vector<6x8xf32>
    %47 = tpu.matmul %46, %45, %cst_21 {dimension_numbers = #tpu.dot_dimension_numbers<[1], [0], [0], [1], [0, 0, 1, 1], [], []>} : vector<6x12xbf16>, vector<12x8xbf16>, vector<6x8xf32> -> vector<6x8xf32>
    %c0_22 = arith.constant 0 : index
    %c0_23 = arith.constant 0 : index
    %48 = vector.load %arg7[%c0_22, %c0_23] : memref<6x1xf32, #tpu.memory_space<vmem>>, vector<6x1xf32>
    %49 = vector.broadcast %48 : vector<6x1xf32> to vector<6x8xf32>
    %50 = arith.addf %47, %49 : vector<6x8xf32>
    %51 = arith.addf %1, %50 : vector<6x8xf32>
    %c0_24 = arith.constant 0 : index
    %c0_25 = arith.constant 0 : index
    %c0_26 = arith.constant 0 : index
    %52 = vector.load %arg8[%c0_24, %c0_25, %c0_26] : memref<1x6x8xf32, #tpu.memory_space<vmem>>, vector<1x6x8xf32>
    %53 = vector.shape_cast %52 : vector<1x6x8xf32> to vector<6x8xf32>
    %54 = vector.shape_cast %51 : vector<6x8xf32> to vector<1x6x8xf32>
    tpu.vector_store %arg8[%c0_24, %c0_25, %c0_26], %54 {strides = array<i32>} : memref<1x6x8xf32, #tpu.memory_space<vmem>>, vector<1x6x8xf32>,
    return
  }
  func.func @transform_0(%arg0: i32) -> (i32, i32, i32) {
    %c0_i32 = arith.constant 0 : i32
    %c0_i32_0 = arith.constant 0 : i32
    %c0_i32_1 = arith.constant 0 : i32
    return %arg0, %c0_i32, %c0_i32_0 : i32, i32, i32
  }
  func.func @transform_1(%arg0: i32) -> (i32, i32) {
    %c0_i32 = arith.constant 0 : i32
    %c0_i32_0 = arith.constant 0 : i32
    %c0_i32_1 = arith.constant 0 : i32
    return %c0_i32, %c0_i32_0 : i32, i32
  }
  func.func @transform_2(%arg0: i32) -> (i32, i32) {
    %c0_i32 = arith.constant 0 : i32
    %c0_i32_0 = arith.constant 0 : i32
    %c0_i32_1 = arith.constant 0 : i32
    return %c0_i32, %c0_i32_0 : i32, i32
  }
  func.func @transform_3(%arg0: i32) -> (i32, i32) {
    %c0_i32 = arith.constant 0 : i32
    %c0_i32_0 = arith.constant 0 : i32
    %c0_i32_1 = arith.constant 0 : i32
    return %c0_i32, %c0_i32_0 : i32, i32
  }
  func.func @transform_4(%arg0: i32) -> (i32, i32) {
    %c0_i32 = arith.constant 0 : i32
    %c0_i32_0 = arith.constant 0 : i32
    %c0_i32_1 = arith.constant 0 : i32
    return %c0_i32, %c0_i32_0 : i32, i32
  }
  func.func @transform_5(%arg0: i32) -> (i32, i32) {
    %c0_i32 = arith.constant 0 : i32
    %c0_i32_0 = arith.constant 0 : i32
    %c0_i32_1 = arith.constant 0 : i32
    return %c0_i32, %c0_i32_0 : i32, i32
  }
  func.func @transform_6(%arg0: i32) -> (i32, i32) {
    %c0_i32 = arith.constant 0 : i32
    %c0_i32_0 = arith.constant 0 : i32
    %c0_i32_1 = arith.constant 0 : i32
    return %c0_i32, %c0_i32_0 : i32, i32
  }
  func.func @transform_7(%arg0: i32) -> (i32, i32, i32) {
    %c0_i32 = arith.constant 0 : i32
    %c0_i32_0 = arith.constant 0 : i32
    %c0_i32_1 = arith.constant 0 : i32
    return %arg0, %c0_i32, %c0_i32_0 : i32, i32, i32
  }
}

module attributes {stable_mosaic.version = 11 : i64} {
  func.func @_channel_mix_kernel(%arg0: i32, %arg1: memref<12x8xf32, #tpu.memory_space<vmem>>, %arg2: memref<1x8xf32, #tpu.memory_space<vmem>>, %arg3: memref<1x8xf32, #tpu.memory_space<vmem>>, %arg4: memref<8x16xbf16, #tpu.memory_space<vmem>>, %arg5: memref<1x16xf32, #tpu.memory_space<vmem>>, %arg6: memref<16x8xbf16, #tpu.memory_space<vmem>>, %arg7: memref<1x8xf32, #tpu.memory_space<vmem>>, %arg8: memref<12x8xf32, #tpu.memory_space<vmem>>) attributes {dimension_semantics = [#tpu.dimension_semantics<parallel>], iteration_bounds = array<i64: 1>, scalar_prefetch = 0 : i64, scratch_operands = 0 : i64, tpu.core_type = #tpu.core_type<tc>, window_params = [{transform_indices = @transform_0, window_bounds = array<i64: 12, 8>}, {pipeline_mode = #tpu.pipeline_mode<synchronous>, transform_indices = @transform_1, window_bounds = array<i64: 1, 8>}, {pipeline_mode = #tpu.pipeline_mode<synchronous>, transform_indices = @transform_2, window_bounds = array<i64: 1, 8>}, {pipeline_mode = #tpu.pipeline_mode<synchronous>, transform_indices = @transform_3, window_bounds = array<i64: 8, 16>}, {pipeline_mode = #tpu.pipeline_mode<synchronous>, transform_indices = @transform_4, window_bounds = array<i64: 1, 16>}, {pipeline_mode = #tpu.pipeline_mode<synchronous>, transform_indices = @transform_5, window_bounds = array<i64: 16, 8>}, {pipeline_mode = #tpu.pipeline_mode<synchronous>, transform_indices = @transform_6, window_bounds = array<i64: 1, 8>}, {transform_indices = @transform_7, window_bounds = array<i64: 12, 8>}]} {
    %c0 = arith.constant 0 : index
    %c0_0 = arith.constant 0 : index
    %0 = vector.load %arg1[%c0, %c0_0] : memref<12x8xf32, #tpu.memory_space<vmem>>, vector<12x8xf32>
    %c0_1 = arith.constant 0 : index
    %c0_2 = arith.constant 0 : index
    %1 = vector.load %arg2[%c0_1, %c0_2] : memref<1x8xf32, #tpu.memory_space<vmem>>, vector<1x8xf32>
    %c0_3 = arith.constant 0 : index
    %c0_4 = arith.constant 0 : index
    %2 = vector.load %arg3[%c0_3, %c0_4] : memref<1x8xf32, #tpu.memory_space<vmem>>, vector<1x8xf32>
    %cst = arith.constant dense<0.000000e+00> : vector<12xf32>
    %3 = vector.multi_reduction <add>, %0, %cst [1] : vector<12x8xf32> to vector<12xf32>
    %4 = vector.shape_cast %3 : vector<12xf32> to vector<12x1xf32>
    %cst_5 = arith.constant 8.000000e+00 : f32
    %5 = vector.broadcast %cst_5 : f32 to vector<12x1xf32>
    %6 = arith.divf %4, %5 : vector<12x1xf32>
    %7 = vector.broadcast %6 : vector<12x1xf32> to vector<12x8xf32>
    %8 = arith.subf %0, %7 : vector<12x8xf32>
    %9 = arith.mulf %8, %8 : vector<12x8xf32>
    %cst_6 = arith.constant dense<0.000000e+00> : vector<12xf32>
    %10 = vector.multi_reduction <add>, %9, %cst_6 [1] : vector<12x8xf32> to vector<12xf32>
    %11 = vector.shape_cast %10 : vector<12xf32> to vector<12x1xf32>
    %cst_7 = arith.constant 8.000000e+00 : f32
    %12 = vector.broadcast %cst_7 : f32 to vector<12x1xf32>
    %13 = arith.divf %11, %12 : vector<12x1xf32>
    %14 = vector.broadcast %6 : vector<12x1xf32> to vector<12x8xf32>
    %15 = arith.subf %0, %14 : vector<12x8xf32>
    %cst_8 = arith.constant 9.99999974E-6 : f32
    %16 = vector.broadcast %cst_8 : f32 to vector<12x1xf32>
    %17 = arith.addf %13, %16 : vector<12x1xf32>
    %18 = math.rsqrt %17 : vector<12x1xf32>
    %19 = vector.broadcast %18 : vector<12x1xf32> to vector<12x8xf32>
    %20 = arith.mulf %15, %19 : vector<12x8xf32>
    %21 = vector.broadcast %1 : vector<1x8xf32> to vector<12x8xf32>
    %22 = arith.mulf %20, %21 : vector<12x8xf32>
    %23 = vector.broadcast %2 : vector<1x8xf32> to vector<12x8xf32>
    %24 = arith.addf %22, %23 : vector<12x8xf32>
    %25 = arith.truncf %24 : vector<12x8xf32> to vector<12x8xbf16>
    %c0_9 = arith.constant 0 : index
    %c0_10 = arith.constant 0 : index
    %26 = vector.load %arg4[%c0_9, %c0_10] : memref<8x16xbf16, #tpu.memory_space<vmem>>, vector<8x16xbf16>
    %cst_11 = arith.constant dense<0.000000e+00> : vector<12x16xf32>
    %27 = tpu.matmul %25, %26, %cst_11 {dimension_numbers = #tpu.dot_dimension_numbers<[1], [0], [0], [1], [0, 0, 1, 1], [], []>} : vector<12x8xbf16>, vector<8x16xbf16>, vector<12x16xf32> -> vector<12x16xf32>
    %c0_12 = arith.constant 0 : index
    %c0_13 = arith.constant 0 : index
    %28 = vector.load %arg5[%c0_12, %c0_13] : memref<1x16xf32, #tpu.memory_space<vmem>>, vector<1x16xf32>
    %29 = vector.broadcast %28 : vector<1x16xf32> to vector<12x16xf32>
    %30 = arith.addf %27, %29 : vector<12x16xf32>
    %cst_14 = arith.constant 5.000000e-01 : f32
    %31 = vector.broadcast %cst_14 : f32 to vector<12x16xf32>
    %32 = arith.mulf %31, %30 : vector<12x16xf32>
    %cst_15 = arith.constant 4.471500e-02 : f32
    %33 = vector.broadcast %cst_15 : f32 to vector<12x16xf32>
    %34 = arith.mulf %33, %30 : vector<12x16xf32>
    %35 = arith.mulf %34, %30 : vector<12x16xf32>
    %36 = arith.mulf %35, %30 : vector<12x16xf32>
    %37 = arith.addf %30, %36 : vector<12x16xf32>
    %cst_16 = arith.constant 0.797884583 : f32
    %38 = vector.broadcast %cst_16 : f32 to vector<12x16xf32>
    %39 = arith.mulf %38, %37 : vector<12x16xf32>
    %40 = math.tanh %39 : vector<12x16xf32>
    %cst_17 = arith.constant 1.000000e+00 : f32
    %41 = vector.broadcast %cst_17 : f32 to vector<12x16xf32>
    %42 = arith.addf %41, %40 : vector<12x16xf32>
    %43 = arith.mulf %32, %42 : vector<12x16xf32>
    %44 = arith.truncf %43 : vector<12x16xf32> to vector<12x16xbf16>
    %c0_18 = arith.constant 0 : index
    %c0_19 = arith.constant 0 : index
    %45 = vector.load %arg6[%c0_18, %c0_19] : memref<16x8xbf16, #tpu.memory_space<vmem>>, vector<16x8xbf16>
    %cst_20 = arith.constant dense<0.000000e+00> : vector<12x8xf32>
    %46 = tpu.matmul %44, %45, %cst_20 {dimension_numbers = #tpu.dot_dimension_numbers<[1], [0], [0], [1], [0, 0, 1, 1], [], []>} : vector<12x16xbf16>, vector<16x8xbf16>, vector<12x8xf32> -> vector<12x8xf32>
    %47 = arith.addf %0, %46 : vector<12x8xf32>
    %c0_21 = arith.constant 0 : index
    %c0_22 = arith.constant 0 : index
    %48 = vector.load %arg7[%c0_21, %c0_22] : memref<1x8xf32, #tpu.memory_space<vmem>>, vector<1x8xf32>
    %49 = vector.broadcast %48 : vector<1x8xf32> to vector<12x8xf32>
    %50 = arith.addf %47, %49 : vector<12x8xf32>
    %c0_23 = arith.constant 0 : index
    %c0_24 = arith.constant 0 : index
    %51 = vector.load %arg8[%c0_23, %c0_24] : memref<12x8xf32, #tpu.memory_space<vmem>>, vector<12x8xf32>
    tpu.vector_store %arg8[%c0_23, %c0_24], %50 {strides = array<i32>} : memref<12x8xf32, #tpu.memory_space<vmem>>, vector<12x8xf32>,
    return
  }
  func.func @transform_0(%arg0: i32) -> (i32, i32) {
    %c0_i32 = arith.constant 0 : i32
    %c0_i32_0 = arith.constant 0 : i32
    return %arg0, %c0_i32 : i32, i32
  }
  func.func @transform_1(%arg0: i32) -> (i32, i32) {
    %c0_i32 = arith.constant 0 : i32
    %c0_i32_0 = arith.constant 0 : i32
    %c0_i32_1 = arith.constant 0 : i32
    return %c0_i32, %c0_i32_0 : i32, i32
  }
  func.func @transform_2(%arg0: i32) -> (i32, i32) {
    %c0_i32 = arith.constant 0 : i32
    %c0_i32_0 = arith.constant 0 : i32
    %c0_i32_1 = arith.constant 0 : i32
    return %c0_i32, %c0_i32_0 : i32, i32
  }
  func.func @transform_3(%arg0: i32) -> (i32, i32) {
    %c0_i32 = arith.constant 0 : i32
    %c0_i32_0 = arith.constant 0 : i32
    %c0_i32_1 = arith.constant 0 : i32
    return %c0_i32, %c0_i32_0 : i32, i32
  }
  func.func @transform_4(%arg0: i32) -> (i32, i32) {
    %c0_i32 = arith.constant 0 : i32
    %c0_i32_0 = arith.constant 0 : i32
    %c0_i32_1 = arith.constant 0 : i32
    return %c0_i32, %c0_i32_0 : i32, i32
  }
  func.func @transform_5(%arg0: i32) -> (i32, i32) {
    %c0_i32 = arith.constant 0 : i32
    %c0_i32_0 = arith.constant 0 : i32
    %c0_i32_1 = arith.constant 0 : i32
    return %c0_i32, %c0_i32_0 : i32, i32
  }
  func.func @transform_6(%arg0: i32) -> (i32, i32) {
    %c0_i32 = arith.constant 0 : i32
    %c0_i32_0 = arith.constant 0 : i32
    %c0_i32_1 = arith.constant 0 : i32
    return %c0_i32, %c0_i32_0 : i32, i32
  }
  func.func @transform_7(%arg0: i32) -> (i32, i32) {
    %c0_i32 = arith.constant 0 : i32
    %c0_i32_0 = arith.constant 0 : i32
    return %arg0, %c0_i32 : i32, i32
  }
}

module attributes {stable_mosaic.version = 11 : i64} {
  func.func @_linear_kernel(%arg0: i32, %arg1: i32, %arg2: i32, %arg3: memref<12x8xbf16, #tpu.memory_space<vmem>>, %arg4: memref<8x24xbf16, #tpu.memory_space<vmem>>, %arg5: memref<1x24xf32, #tpu.memory_space<vmem>>, %arg6: memref<12x24xf32, #tpu.memory_space<vmem>>, %arg7: memref<12x24xf32, #tpu.memory_space<vmem>>) attributes {dimension_semantics = [#tpu.dimension_semantics<parallel>, #tpu.dimension_semantics<parallel>, #tpu.dimension_semantics<arbitrary>], iteration_bounds = array<i64: 1, 1, 1>, scalar_prefetch = 0 : i64, scratch_operands = 1 : i64, tpu.core_type = #tpu.core_type<tc>, window_params = [{transform_indices = @transform_0, window_bounds = array<i64: 12, 8>}, {transform_indices = @transform_1, window_bounds = array<i64: 8, 24>}, {transform_indices = @transform_2, window_bounds = array<i64: 1, 24>}, {transform_indices = @transform_3, window_bounds = array<i64: 12, 24>}]} {
    %c0_i32 = arith.constant 0 : i32
    %0 = arith.cmpi eq, %arg2, %c0_i32 : i32
    %1 = arith.extui %0 : i1 to i32
    %c0_i32_0 = arith.constant 0 : i32
    %2 = arith.cmpi ne, %1, %c0_i32_0 : i32
    scf.if %2 {
      %cst_10 = arith.constant 0.000000e+00 : f32
      %12 = vector.broadcast %cst_10 : f32 to vector<12x24xf32>
      %c0_11 = arith.constant 0 : index
      %c0_12 = arith.constant 0 : index
      %13 = vector.load %arg7[%c0_11, %c0_12] : memref<12x24xf32, #tpu.memory_space<vmem>>, vector<12x24xf32>
      tpu.vector_store %arg7[%c0_11, %c0_12], %12 {strides = array<i32>} : memref<12x24xf32, #tpu.memory_space<vmem>>, vector<12x24xf32>,
    } else {
    }
    %c0 = arith.constant 0 : index
    %c0_1 = arith.constant 0 : index
    %3 = vector.load %arg7[%c0, %c0_1] : memref<12x24xf32, #tpu.memory_space<vmem>>, vector<12x24xf32>
    %c0_2 = arith.constant 0 : index
    %c0_3 = arith.constant 0 : index
    %4 = vector.load %arg3[%c0_2, %c0_3] : memref<12x8xbf16, #tpu.memory_space<vmem>>, vector<12x8xbf16>
    %c0_4 = arith.constant 0 : index
    %c0_5 = arith.constant 0 : index
    %5 = vector.load %arg4[%c0_4, %c0_5] : memref<8x24xbf16, #tpu.memory_space<vmem>>, vector<8x24xbf16>
    %cst = arith.constant dense<0.000000e+00> : vector<12x24xf32>
    %6 = tpu.matmul %4, %5, %cst {dimension_numbers = #tpu.dot_dimension_numbers<[1], [0], [0], [1], [0, 0, 1, 1], [], []>} : vector<12x8xbf16>, vector<8x24xbf16>, vector<12x24xf32> -> vector<12x24xf32>
    %7 = arith.addf %3, %6 : vector<12x24xf32>
    %c0_6 = arith.constant 0 : index
    %c0_7 = arith.constant 0 : index
    %8 = vector.load %arg7[%c0_6, %c0_7] : memref<12x24xf32, #tpu.memory_space<vmem>>, vector<12x24xf32>
    tpu.vector_store %arg7[%c0_6, %c0_7], %7 {strides = array<i32>} : memref<12x24xf32, #tpu.memory_space<vmem>>, vector<12x24xf32>,
    %c0_i32_8 = arith.constant 0 : i32
    %9 = arith.cmpi eq, %arg2, %c0_i32_8 : i32
    %10 = arith.extui %9 : i1 to i32
    %c0_i32_9 = arith.constant 0 : i32
    %11 = arith.cmpi ne, %10, %c0_i32_9 : i32
    scf.if %11 {
      %c0_10 = arith.constant 0 : index
      %c0_11 = arith.constant 0 : index
      %12 = vector.load %arg7[%c0_10, %c0_11] : memref<12x24xf32, #tpu.memory_space<vmem>>, vector<12x24xf32>
      %c0_12 = arith.constant 0 : index
      %c0_13 = arith.constant 0 : index
      %13 = vector.load %arg5[%c0_12, %c0_13] : memref<1x24xf32, #tpu.memory_space<vmem>>, vector<1x24xf32>
      %14 = vector.broadcast %13 : vector<1x24xf32> to vector<12x24xf32>
      %15 = arith.addf %12, %14 : vector<12x24xf32>
      %c0_14 = arith.constant 0 : index
      %c0_15 = arith.constant 0 : index
      %16 = vector.load %arg6[%c0_14, %c0_15] : memref<12x24xf32, #tpu.memory_space<vmem>>, vector<12x24xf32>
      tpu.vector_store %arg6[%c0_14, %c0_15], %15 {strides = array<i32>} : memref<12x24xf32, #tpu.memory_space<vmem>>, vector<12x24xf32>,
    } else {
    }
    return
  }
  func.func @transform_0(%arg0: i32, %arg1: i32, %arg2: i32) -> (i32, i32) {
    %c0_i32 = arith.constant 0 : i32
    return %arg0, %arg2 : i32, i32
  }
  func.func @transform_1(%arg0: i32, %arg1: i32, %arg2: i32) -> (i32, i32) {
    %c0_i32 = arith.constant 0 : i32
    return %arg2, %arg1 : i32, i32
  }
  func.func @transform_2(%arg0: i32, %arg1: i32, %arg2: i32) -> (i32, i32) {
    %c0_i32 = arith.constant 0 : i32
    %c0_i32_0 = arith.constant 0 : i32
    return %c0_i32, %arg1 : i32, i32
  }
  func.func @transform_3(%arg0: i32, %arg1: i32, %arg2: i32) -> (i32, i32) {
    %c0_i32 = arith.constant 0 : i32
    return %arg0, %arg1 : i32, i32
  }
}

module attributes {stable_mosaic.version = 11 : i64} {
  func.func @_attn_block_kernel(%arg0: i32, %arg1: memref<2x6x24xf32, #tpu.memory_space<vmem>>, %arg2: memref<2x6x8xf32, #tpu.memory_space<vmem>>, %arg3: memref<2x4x8xbf16, #tpu.memory_space<vmem>>, %arg4: memref<1x8xf32, #tpu.memory_space<vmem>>, %arg5: memref<1x8xf32, #tpu.memory_space<vmem>>, %arg6: memref<2x6x8xf32, #tpu.memory_space<vmem>>) attributes {dimension_semantics = [#tpu.dimension_semantics<parallel>], iteration_bounds = array<i64: 1>, scalar_prefetch = 0 : i64, scratch_operands = 0 : i64, tpu.core_type = #tpu.core_type<tc>, window_params = [{transform_indices = @transform_0, window_bounds = array<i64: 2, 6, 24>}, {transform_indices = @transform_1, window_bounds = array<i64: 2, 6, 8>}, {pipeline_mode = #tpu.pipeline_mode<synchronous>, transform_indices = @transform_2, window_bounds = array<i64: 2, 4, 8>}, {pipeline_mode = #tpu.pipeline_mode<synchronous>, transform_indices = @transform_3, window_bounds = array<i64: 1, 8>}, {pipeline_mode = #tpu.pipeline_mode<synchronous>, transform_indices = @transform_4, window_bounds = array<i64: 1, 8>}, {transform_indices = @transform_5, window_bounds = array<i64: 2, 6, 8>}]} {
    %c0 = arith.constant 0 : index
    %c0_0 = arith.constant 0 : index
    %c0_1 = arith.constant 0 : index
    %0 = vector.load %arg1[%c0, %c0_0, %c0_1] : memref<2x6x24xf32, #tpu.memory_space<vmem>>, vector<2x6x24xf32>
    %1 = vector.extract_strided_slice %0 {offsets = [0, 0, 0], sizes = [2, 6, 4], strides = [1, 1, 1]} : vector<2x6x24xf32> to vector<2x6x4xf32>
    %cst = arith.constant 0.000000e+00 : f32
    %2 = vector.broadcast %cst : f32 to vector<2x6x4xf32>
    %cst_2 = arith.constant 0.000000e+00 : f32
    %3 = vector.broadcast %cst_2 : f32 to vector<2x6x1xf32>
    %4 = vector.extract_strided_slice %0 {offsets = [0, 0, 8], sizes = [1, 6, 4], strides = [1, 1, 1]} : vector<2x6x24xf32> to vector<1x6x4xf32>
    %5 = vector.extract_strided_slice %0 {offsets = [0, 0, 16], sizes = [1, 6, 4], strides = [1, 1, 1]} : vector<2x6x24xf32> to vector<1x6x4xf32>
    %6 = vector.broadcast %4 : vector<1x6x4xf32> to vector<2x6x4xf32>
    %7 = arith.mulf %1, %6 : vector<2x6x4xf32>
    %cst_3 = arith.constant dense<0.000000e+00> : vector<2x6xf32>
    %8 = vector.multi_reduction <add>, %7, %cst_3 [2] : vector<2x6x4xf32> to vector<2x6xf32>
    %9 = vector.shape_cast %8 : vector<2x6xf32> to vector<2x6x1xf32>
    %10 = arith.negf %9 : vector<2x6x1xf32>
    %11 = math.exp %10 : vector<2x6x1xf32>
    %cst_4 = arith.constant 1.000000e+00 : f32
    %12 = vector.broadcast %cst_4 : f32 to vector<2x6x1xf32>
    %13 = arith.addf %12, %11 : vector<2x6x1xf32>
    %14 = arith.divf %12, %13 : vector<2x6x1xf32>
    %15 = arith.addf %3, %14 : vector<2x6x1xf32>
    %16 = vector.broadcast %14 : vector<2x6x1xf32> to vector<2x6x4xf32>
    %17 = vector.broadcast %5 : vector<1x6x4xf32> to vector<2x6x4xf32>
    %18 = arith.mulf %16, %17 : vector<2x6x4xf32>
    %19 = arith.addf %2, %18 : vector<2x6x4xf32>
    %20 = vector.extract_strided_slice %0 {offsets = [0, 0, 12], sizes = [1, 6, 4], strides = [1, 1, 1]} : vector<2x6x24xf32> to vector<1x6x4xf32>
    %21 = vector.extract_strided_slice %0 {offsets = [0, 0, 20], sizes = [1, 6, 4], strides = [1, 1, 1]} : vector<2x6x24xf32> to vector<1x6x4xf32>
    %22 = vector.broadcast %20 : vector<1x6x4xf32> to vector<2x6x4xf32>
    %23 = arith.mulf %1, %22 : vector<2x6x4xf32>
    %cst_5 = arith.constant dense<0.000000e+00> : vector<2x6xf32>
    %24 = vector.multi_reduction <add>, %23, %cst_5 [2] : vector<2x6x4xf32> to vector<2x6xf32>
    %25 = vector.shape_cast %24 : vector<2x6xf32> to vector<2x6x1xf32>
    %26 = arith.negf %25 : vector<2x6x1xf32>
    %27 = math.exp %26 : vector<2x6x1xf32>
    %cst_6 = arith.constant 1.000000e+00 : f32
    %28 = vector.broadcast %cst_6 : f32 to vector<2x6x1xf32>
    %29 = arith.addf %28, %27 : vector<2x6x1xf32>
    %30 = arith.divf %28, %29 : vector<2x6x1xf32>
    %31 = arith.addf %15, %30 : vector<2x6x1xf32>
    %32 = vector.broadcast %30 : vector<2x6x1xf32> to vector<2x6x4xf32>
    %33 = vector.broadcast %21 : vector<1x6x4xf32> to vector<2x6x4xf32>
    %34 = arith.mulf %32, %33 : vector<2x6x4xf32>
    %35 = arith.addf %19, %34 : vector<2x6x4xf32>
    %36 = vector.extract_strided_slice %0 {offsets = [1, 0, 8], sizes = [1, 6, 4], strides = [1, 1, 1]} : vector<2x6x24xf32> to vector<1x6x4xf32>
    %37 = vector.extract_strided_slice %0 {offsets = [1, 0, 16], sizes = [1, 6, 4], strides = [1, 1, 1]} : vector<2x6x24xf32> to vector<1x6x4xf32>
    %38 = vector.broadcast %36 : vector<1x6x4xf32> to vector<2x6x4xf32>
    %39 = arith.mulf %1, %38 : vector<2x6x4xf32>
    %cst_7 = arith.constant dense<0.000000e+00> : vector<2x6xf32>
    %40 = vector.multi_reduction <add>, %39, %cst_7 [2] : vector<2x6x4xf32> to vector<2x6xf32>
    %41 = vector.shape_cast %40 : vector<2x6xf32> to vector<2x6x1xf32>
    %42 = arith.negf %41 : vector<2x6x1xf32>
    %43 = math.exp %42 : vector<2x6x1xf32>
    %cst_8 = arith.constant 1.000000e+00 : f32
    %44 = vector.broadcast %cst_8 : f32 to vector<2x6x1xf32>
    %45 = arith.addf %44, %43 : vector<2x6x1xf32>
    %46 = arith.divf %44, %45 : vector<2x6x1xf32>
    %47 = arith.addf %31, %46 : vector<2x6x1xf32>
    %48 = vector.broadcast %46 : vector<2x6x1xf32> to vector<2x6x4xf32>
    %49 = vector.broadcast %37 : vector<1x6x4xf32> to vector<2x6x4xf32>
    %50 = arith.mulf %48, %49 : vector<2x6x4xf32>
    %51 = arith.addf %35, %50 : vector<2x6x4xf32>
    %52 = vector.extract_strided_slice %0 {offsets = [1, 0, 12], sizes = [1, 6, 4], strides = [1, 1, 1]} : vector<2x6x24xf32> to vector<1x6x4xf32>
    %53 = vector.extract_strided_slice %0 {offsets = [1, 0, 20], sizes = [1, 6, 4], strides = [1, 1, 1]} : vector<2x6x24xf32> to vector<1x6x4xf32>
    %54 = vector.broadcast %52 : vector<1x6x4xf32> to vector<2x6x4xf32>
    %55 = arith.mulf %1, %54 : vector<2x6x4xf32>
    %cst_9 = arith.constant dense<0.000000e+00> : vector<2x6xf32>
    %56 = vector.multi_reduction <add>, %55, %cst_9 [2] : vector<2x6x4xf32> to vector<2x6xf32>
    %57 = vector.shape_cast %56 : vector<2x6xf32> to vector<2x6x1xf32>
    %58 = arith.negf %57 : vector<2x6x1xf32>
    %59 = math.exp %58 : vector<2x6x1xf32>
    %cst_10 = arith.constant 1.000000e+00 : f32
    %60 = vector.broadcast %cst_10 : f32 to vector<2x6x1xf32>
    %61 = arith.addf %60, %59 : vector<2x6x1xf32>
    %62 = arith.divf %60, %61 : vector<2x6x1xf32>
    %63 = arith.addf %47, %62 : vector<2x6x1xf32>
    %64 = vector.broadcast %62 : vector<2x6x1xf32> to vector<2x6x4xf32>
    %65 = vector.broadcast %53 : vector<1x6x4xf32> to vector<2x6x4xf32>
    %66 = arith.mulf %64, %65 : vector<2x6x4xf32>
    %67 = arith.addf %51, %66 : vector<2x6x4xf32>
    %68 = tpu.reciprocal %63 {approx = true} : vector<2x6x1xf32> -> vector<2x6x1xf32>
    %69 = vector.broadcast %68 : vector<2x6x1xf32> to vector<2x6x4xf32>
    %70 = arith.mulf %67, %69 : vector<2x6x4xf32>
    %71 = vector.extract_strided_slice %0 {offsets = [0, 0, 4], sizes = [2, 6, 4], strides = [1, 1, 1]} : vector<2x6x24xf32> to vector<2x6x4xf32>
    %cst_11 = arith.constant 0.000000e+00 : f32
    %72 = vector.broadcast %cst_11 : f32 to vector<2x6x4xf32>
    %cst_12 = arith.constant 0.000000e+00 : f32
    %73 = vector.broadcast %cst_12 : f32 to vector<2x6x1xf32>
    %74 = vector.extract_strided_slice %0 {offsets = [0, 0, 8], sizes = [1, 6, 4], strides = [1, 1, 1]} : vector<2x6x24xf32> to vector<1x6x4xf32>
    %75 = vector.extract_strided_slice %0 {offsets = [0, 0, 16], sizes = [1, 6, 4], strides = [1, 1, 1]} : vector<2x6x24xf32> to vector<1x6x4xf32>
    %76 = vector.broadcast %74 : vector<1x6x4xf32> to vector<2x6x4xf32>
    %77 = arith.mulf %71, %76 : vector<2x6x4xf32>
    %cst_13 = arith.constant dense<0.000000e+00> : vector<2x6xf32>
    %78 = vector.multi_reduction <add>, %77, %cst_13 [2] : vector<2x6x4xf32> to vector<2x6xf32>
    %79 = vector.shape_cast %78 : vector<2x6xf32> to vector<2x6x1xf32>
    %80 = arith.negf %79 : vector<2x6x1xf32>
    %81 = math.exp %80 : vector<2x6x1xf32>
    %cst_14 = arith.constant 1.000000e+00 : f32
    %82 = vector.broadcast %cst_14 : f32 to vector<2x6x1xf32>
    %83 = arith.addf %82, %81 : vector<2x6x1xf32>
    %84 = arith.divf %82, %83 : vector<2x6x1xf32>
    %85 = arith.addf %73, %84 : vector<2x6x1xf32>
    %86 = vector.broadcast %84 : vector<2x6x1xf32> to vector<2x6x4xf32>
    %87 = vector.broadcast %75 : vector<1x6x4xf32> to vector<2x6x4xf32>
    %88 = arith.mulf %86, %87 : vector<2x6x4xf32>
    %89 = arith.addf %72, %88 : vector<2x6x4xf32>
    %90 = vector.extract_strided_slice %0 {offsets = [0, 0, 12], sizes = [1, 6, 4], strides = [1, 1, 1]} : vector<2x6x24xf32> to vector<1x6x4xf32>
    %91 = vector.extract_strided_slice %0 {offsets = [0, 0, 20], sizes = [1, 6, 4], strides = [1, 1, 1]} : vector<2x6x24xf32> to vector<1x6x4xf32>
    %92 = vector.broadcast %90 : vector<1x6x4xf32> to vector<2x6x4xf32>
    %93 = arith.mulf %71, %92 : vector<2x6x4xf32>
    %cst_15 = arith.constant dense<0.000000e+00> : vector<2x6xf32>
    %94 = vector.multi_reduction <add>, %93, %cst_15 [2] : vector<2x6x4xf32> to vector<2x6xf32>
    %95 = vector.shape_cast %94 : vector<2x6xf32> to vector<2x6x1xf32>
    %96 = arith.negf %95 : vector<2x6x1xf32>
    %97 = math.exp %96 : vector<2x6x1xf32>
    %cst_16 = arith.constant 1.000000e+00 : f32
    %98 = vector.broadcast %cst_16 : f32 to vector<2x6x1xf32>
    %99 = arith.addf %98, %97 : vector<2x6x1xf32>
    %100 = arith.divf %98, %99 : vector<2x6x1xf32>
    %101 = arith.addf %85, %100 : vector<2x6x1xf32>
    %102 = vector.broadcast %100 : vector<2x6x1xf32> to vector<2x6x4xf32>
    %103 = vector.broadcast %91 : vector<1x6x4xf32> to vector<2x6x4xf32>
    %104 = arith.mulf %102, %103 : vector<2x6x4xf32>
    %105 = arith.addf %89, %104 : vector<2x6x4xf32>
    %106 = vector.extract_strided_slice %0 {offsets = [1, 0, 8], sizes = [1, 6, 4], strides = [1, 1, 1]} : vector<2x6x24xf32> to vector<1x6x4xf32>
    %107 = vector.extract_strided_slice %0 {offsets = [1, 0, 16], sizes = [1, 6, 4], strides = [1, 1, 1]} : vector<2x6x24xf32> to vector<1x6x4xf32>
    %108 = vector.broadcast %106 : vector<1x6x4xf32> to vector<2x6x4xf32>
    %109 = arith.mulf %71, %108 : vector<2x6x4xf32>
    %cst_17 = arith.constant dense<0.000000e+00> : vector<2x6xf32>
    %110 = vector.multi_reduction <add>, %109, %cst_17 [2] : vector<2x6x4xf32> to vector<2x6xf32>
    %111 = vector.shape_cast %110 : vector<2x6xf32> to vector<2x6x1xf32>
    %112 = arith.negf %111 : vector<2x6x1xf32>
    %113 = math.exp %112 : vector<2x6x1xf32>
    %cst_18 = arith.constant 1.000000e+00 : f32
    %114 = vector.broadcast %cst_18 : f32 to vector<2x6x1xf32>
    %115 = arith.addf %114, %113 : vector<2x6x1xf32>
    %116 = arith.divf %114, %115 : vector<2x6x1xf32>
    %117 = arith.addf %101, %116 : vector<2x6x1xf32>
    %118 = vector.broadcast %116 : vector<2x6x1xf32> to vector<2x6x4xf32>
    %119 = vector.broadcast %107 : vector<1x6x4xf32> to vector<2x6x4xf32>
    %120 = arith.mulf %118, %119 : vector<2x6x4xf32>
    %121 = arith.addf %105, %120 : vector<2x6x4xf32>
    %122 = vector.extract_strided_slice %0 {offsets = [1, 0, 12], sizes = [1, 6, 4], strides = [1, 1, 1]} : vector<2x6x24xf32> to vector<1x6x4xf32>
    %123 = vector.extract_strided_slice %0 {offsets = [1, 0, 20], sizes = [1, 6, 4], strides = [1, 1, 1]} : vector<2x6x24xf32> to vector<1x6x4xf32>
    %124 = vector.broadcast %122 : vector<1x6x4xf32> to vector<2x6x4xf32>
    %125 = arith.mulf %71, %124 : vector<2x6x4xf32>
    %cst_19 = arith.constant dense<0.000000e+00> : vector<2x6xf32>
    %126 = vector.multi_reduction <add>, %125, %cst_19 [2] : vector<2x6x4xf32> to vector<2x6xf32>
    %127 = vector.shape_cast %126 : vector<2x6xf32> to vector<2x6x1xf32>
    %128 = arith.negf %127 : vector<2x6x1xf32>
    %129 = math.exp %128 : vector<2x6x1xf32>
    %cst_20 = arith.constant 1.000000e+00 : f32
    %130 = vector.broadcast %cst_20 : f32 to vector<2x6x1xf32>
    %131 = arith.addf %130, %129 : vector<2x6x1xf32>
    %132 = arith.divf %130, %131 : vector<2x6x1xf32>
    %133 = arith.addf %117, %132 : vector<2x6x1xf32>
    %134 = vector.broadcast %132 : vector<2x6x1xf32> to vector<2x6x4xf32>
    %135 = vector.broadcast %123 : vector<1x6x4xf32> to vector<2x6x4xf32>
    %136 = arith.mulf %134, %135 : vector<2x6x4xf32>
    %137 = arith.addf %121, %136 : vector<2x6x4xf32>
    %138 = tpu.reciprocal %133 {approx = true} : vector<2x6x1xf32> -> vector<2x6x1xf32>
    %139 = vector.broadcast %138 : vector<2x6x1xf32> to vector<2x6x4xf32>
    %140 = arith.mulf %137, %139 : vector<2x6x4xf32>
    %c0_21 = arith.constant 0 : index
    %c0_22 = arith.constant 0 : index
    %c0_23 = arith.constant 0 : index
    %141 = vector.load %arg2[%c0_21, %c0_22, %c0_23] : memref<2x6x8xf32, #tpu.memory_space<vmem>>, vector<2x6x8xf32>
    %c0_24 = arith.constant 0 : index
    %c0_25 = arith.constant 0 : index
    %142 = vector.load %arg4[%c0_24, %c0_25] : memref<1x8xf32, #tpu.memory_space<vmem>>, vector<1x8xf32>
    %c0_26 = arith.constant 0 : index
    %c0_27 = arith.constant 0 : index
    %143 = vector.load %arg5[%c0_26, %c0_27] : memref<1x8xf32, #tpu.memory_space<vmem>>, vector<1x8xf32>
    %cst_28 = arith.constant 0.000000e+00 : f32
    %144 = vector.broadcast %cst_28 : f32 to vector<6x8xf32>
    %145 = vector.extract_strided_slice %70 {offsets = [0, 0, 0], sizes = [1, 6, 4], strides = [1, 1, 1]} : vector<2x6x4xf32> to vector<1x6x4xf32>
    %146 = vector.shape_cast %145 : vector<1x6x4xf32> to vector<6x4xf32>
    %147 = arith.truncf %146 : vector<6x4xf32> to vector<6x4xbf16>
    %c0_29 = arith.constant 0 : index
    %c0_30 = arith.constant 0 : index
    %c0_31 = arith.constant 0 : index
    %148 = vector.load %arg3[%c0_29, %c0_30, %c0_31] : memref<2x4x8xbf16, #tpu.memory_space<vmem>>, vector<1x4x8xbf16>
    %149 = vector.shape_cast %148 : vector<1x4x8xbf16> to vector<4x8xbf16>
    %cst_32 = arith.constant dense<0.000000e+00> : vector<6x8xf32>
    %150 = tpu.matmul %147, %149, %cst_32 {dimension_numbers = #tpu.dot_dimension_numbers<[1], [0], [0], [1], [0, 0, 1, 1], [], []>} : vector<6x4xbf16>, vector<4x8xbf16>, vector<6x8xf32> -> vector<6x8xf32>
    %151 = arith.addf %144, %150 : vector<6x8xf32>
    %152 = vector.extract_strided_slice %140 {offsets = [0, 0, 0], sizes = [1, 6, 4], strides = [1, 1, 1]} : vector<2x6x4xf32> to vector<1x6x4xf32>
    %153 = vector.shape_cast %152 : vector<1x6x4xf32> to vector<6x4xf32>
    %154 = arith.truncf %153 : vector<6x4xf32> to vector<6x4xbf16>
    %c1 = arith.constant 1 : index
    %c0_33 = arith.constant 0 : index
    %c0_34 = arith.constant 0 : index
    %155 = vector.load %arg3[%c1, %c0_33, %c0_34] : memref<2x4x8xbf16, #tpu.memory_space<vmem>>, vector<1x4x8xbf16>
    %156 = vector.shape_cast %155 : vector<1x4x8xbf16> to vector<4x8xbf16>
    %cst_35 = arith.constant dense<0.000000e+00> : vector<6x8xf32>
    %157 = tpu.matmul %154, %156, %cst_35 {dimension_numbers = #tpu.dot_dimension_numbers<[1], [0], [0], [1], [0, 0, 1, 1], [], []>} : vector<6x4xbf16>, vector<4x8xbf16>, vector<6x8xf32> -> vector<6x8xf32>
    %158 = arith.addf %151, %157 : vector<6x8xf32>
    %cst_36 = arith.constant 5.000000e-01 : f32
    %159 = vector.broadcast %cst_36 : f32 to vector<6x8xf32>
    %160 = arith.mulf %159, %158 : vector<6x8xf32>
    %161 = vector.extract_strided_slice %141 {offsets = [0, 0, 0], sizes = [1, 6, 8], strides = [1, 1, 1]} : vector<2x6x8xf32> to vector<1x6x8xf32>
    %162 = vector.shape_cast %161 : vector<1x6x8xf32> to vector<6x8xf32>
    %cst_37 = arith.constant 5.000000e-01 : f32
    %163 = vector.broadcast %cst_37 : f32 to vector<6x8xf32>
    %164 = arith.mulf %163, %162 : vector<6x8xf32>
    %165 = arith.addf %160, %164 : vector<6x8xf32>
    %cst_38 = arith.constant dense<0.000000e+00> : vector<6xf32>
    %166 = vector.multi_reduction <add>, %165, %cst_38 [1] : vector<6x8xf32> to vector<6xf32>
    %167 = vector.shape_cast %166 : vector<6xf32> to vector<6x1xf32>
    %cst_39 = arith.constant 8.000000e+00 : f32
    %168 = vector.broadcast %cst_39 : f32 to vector<6x1xf32>
    %169 = arith.divf %167, %168 : vector<6x1xf32>
    %170 = vector.broadcast %169 : vector<6x1xf32> to vector<6x8xf32>
    %171 = arith.subf %165, %170 : vector<6x8xf32>
    %172 = arith.mulf %171, %171 : vector<6x8xf32>
    %cst_40 = arith.constant dense<0.000000e+00> : vector<6xf32>
    %173 = vector.multi_reduction <add>, %172, %cst_40 [1] : vector<6x8xf32> to vector<6xf32>
    %174 = vector.shape_cast %173 : vector<6xf32> to vector<6x1xf32>
    %cst_41 = arith.constant 8.000000e+00 : f32
    %175 = vector.broadcast %cst_41 : f32 to vector<6x1xf32>
    %176 = arith.divf %174, %175 : vector<6x1xf32>
    %177 = vector.broadcast %169 : vector<6x1xf32> to vector<6x8xf32>
    %178 = arith.subf %165, %177 : vector<6x8xf32>
    %cst_42 = arith.constant 9.99999974E-6 : f32
    %179 = vector.broadcast %cst_42 : f32 to vector<6x1xf32>
    %180 = arith.addf %176, %179 : vector<6x1xf32>
    %181 = math.rsqrt %180 : vector<6x1xf32>
    %182 = vector.broadcast %181 : vector<6x1xf32> to vector<6x8xf32>
    %183 = arith.mulf %178, %182 : vector<6x8xf32>
    %184 = vector.broadcast %142 : vector<1x8xf32> to vector<6x8xf32>
    %185 = arith.mulf %183, %184 : vector<6x8xf32>
    %186 = vector.broadcast %143 : vector<1x8xf32> to vector<6x8xf32>
    %187 = arith.addf %185, %186 : vector<6x8xf32>
    %c0_43 = arith.constant 0 : index
    %c0_44 = arith.constant 0 : index
    %c0_45 = arith.constant 0 : index
    %188 = vector.load %arg6[%c0_43, %c0_44, %c0_45] : memref<2x6x8xf32, #tpu.memory_space<vmem>>, vector<1x6x8xf32>
    %189 = vector.shape_cast %188 : vector<1x6x8xf32> to vector<6x8xf32>
    %190 = vector.shape_cast %187 : vector<6x8xf32> to vector<1x6x8xf32>
    tpu.vector_store %arg6[%c0_43, %c0_44, %c0_45], %190 {strides = array<i32>} : memref<2x6x8xf32, #tpu.memory_space<vmem>>, vector<1x6x8xf32>,
    %cst_46 = arith.constant 0.000000e+00 : f32
    %191 = vector.broadcast %cst_46 : f32 to vector<6x8xf32>
    %192 = vector.extract_strided_slice %70 {offsets = [1, 0, 0], sizes = [1, 6, 4], strides = [1, 1, 1]} : vector<2x6x4xf32> to vector<1x6x4xf32>
    %193 = vector.shape_cast %192 : vector<1x6x4xf32> to vector<6x4xf32>
    %194 = arith.truncf %193 : vector<6x4xf32> to vector<6x4xbf16>
    %c0_47 = arith.constant 0 : index
    %c0_48 = arith.constant 0 : index
    %c0_49 = arith.constant 0 : index
    %195 = vector.load %arg3[%c0_47, %c0_48, %c0_49] : memref<2x4x8xbf16, #tpu.memory_space<vmem>>, vector<1x4x8xbf16>
    %196 = vector.shape_cast %195 : vector<1x4x8xbf16> to vector<4x8xbf16>
    %cst_50 = arith.constant dense<0.000000e+00> : vector<6x8xf32>
    %197 = tpu.matmul %194, %196, %cst_50 {dimension_numbers = #tpu.dot_dimension_numbers<[1], [0], [0], [1], [0, 0, 1, 1], [], []>} : vector<6x4xbf16>, vector<4x8xbf16>, vector<6x8xf32> -> vector<6x8xf32>
    %198 = arith.addf %191, %197 : vector<6x8xf32>
    %199 = vector.extract_strided_slice %140 {offsets = [1, 0, 0], sizes = [1, 6, 4], strides = [1, 1, 1]} : vector<2x6x4xf32> to vector<1x6x4xf32>
    %200 = vector.shape_cast %199 : vector<1x6x4xf32> to vector<6x4xf32>
    %201 = arith.truncf %200 : vector<6x4xf32> to vector<6x4xbf16>
    %c1_51 = arith.constant 1 : index
    %c0_52 = arith.constant 0 : index
    %c0_53 = arith.constant 0 : index
    %202 = vector.load %arg3[%c1_51, %c0_52, %c0_53] : memref<2x4x8xbf16, #tpu.memory_space<vmem>>, vector<1x4x8xbf16>
    %203 = vector.shape_cast %202 : vector<1x4x8xbf16> to vector<4x8xbf16>
    %cst_54 = arith.constant dense<0.000000e+00> : vector<6x8xf32>
    %204 = tpu.matmul %201, %203, %cst_54 {dimension_numbers = #tpu.dot_dimension_numbers<[1], [0], [0], [1], [0, 0, 1, 1], [], []>} : vector<6x4xbf16>, vector<4x8xbf16>, vector<6x8xf32> -> vector<6x8xf32>
    %205 = arith.addf %198, %204 : vector<6x8xf32>
    %cst_55 = arith.constant 5.000000e-01 : f32
    %206 = vector.broadcast %cst_55 : f32 to vector<6x8xf32>
    %207 = arith.mulf %206, %205 : vector<6x8xf32>
    %208 = vector.extract_strided_slice %141 {offsets = [1, 0, 0], sizes = [1, 6, 8], strides = [1, 1, 1]} : vector<2x6x8xf32> to vector<1x6x8xf32>
    %209 = vector.shape_cast %208 : vector<1x6x8xf32> to vector<6x8xf32>
    %cst_56 = arith.constant 5.000000e-01 : f32
    %210 = vector.broadcast %cst_56 : f32 to vector<6x8xf32>
    %211 = arith.mulf %210, %209 : vector<6x8xf32>
    %212 = arith.addf %207, %211 : vector<6x8xf32>
    %cst_57 = arith.constant dense<0.000000e+00> : vector<6xf32>
    %213 = vector.multi_reduction <add>, %212, %cst_57 [1] : vector<6x8xf32> to vector<6xf32>
    %214 = vector.shape_cast %213 : vector<6xf32> to vector<6x1xf32>
    %cst_58 = arith.constant 8.000000e+00 : f32
    %215 = vector.broadcast %cst_58 : f32 to vector<6x1xf32>
    %216 = arith.divf %214, %215 : vector<6x1xf32>
    %217 = vector.broadcast %216 : vector<6x1xf32> to vector<6x8xf32>
    %218 = arith.subf %212, %217 : vector<6x8xf32>
    %219 = arith.mulf %218, %218 : vector<6x8xf32>
    %cst_59 = arith.constant dense<0.000000e+00> : vector<6xf32>
    %220 = vector.multi_reduction <add>, %219, %cst_59 [1] : vector<6x8xf32> to vector<6xf32>
    %221 = vector.shape_cast %220 : vector<6xf32> to vector<6x1xf32>
    %cst_60 = arith.constant 8.000000e+00 : f32
    %222 = vector.broadcast %cst_60 : f32 to vector<6x1xf32>
    %223 = arith.divf %221, %222 : vector<6x1xf32>
    %224 = vector.broadcast %216 : vector<6x1xf32> to vector<6x8xf32>
    %225 = arith.subf %212, %224 : vector<6x8xf32>
    %cst_61 = arith.constant 9.99999974E-6 : f32
    %226 = vector.broadcast %cst_61 : f32 to vector<6x1xf32>
    %227 = arith.addf %223, %226 : vector<6x1xf32>
    %228 = math.rsqrt %227 : vector<6x1xf32>
    %229 = vector.broadcast %228 : vector<6x1xf32> to vector<6x8xf32>
    %230 = arith.mulf %225, %229 : vector<6x8xf32>
    %231 = vector.broadcast %142 : vector<1x8xf32> to vector<6x8xf32>
    %232 = arith.mulf %230, %231 : vector<6x8xf32>
    %233 = vector.broadcast %143 : vector<1x8xf32> to vector<6x8xf32>
    %234 = arith.addf %232, %233 : vector<6x8xf32>
    %c1_62 = arith.constant 1 : index
    %c0_63 = arith.constant 0 : index
    %c0_64 = arith.constant 0 : index
    %235 = vector.load %arg6[%c1_62, %c0_63, %c0_64] : memref<2x6x8xf32, #tpu.memory_space<vmem>>, vector<1x6x8xf32>
    %236 = vector.shape_cast %235 : vector<1x6x8xf32> to vector<6x8xf32>
    %237 = vector.shape_cast %234 : vector<6x8xf32> to vector<1x6x8xf32>
    tpu.vector_store %arg6[%c1_62, %c0_63, %c0_64], %237 {strides = array<i32>} : memref<2x6x8xf32, #tpu.memory_space<vmem>>, vector<1x6x8xf32>,
    return
  }
  func.func @transform_0(%arg0: i32) -> (i32, i32, i32) {
    %c0_i32 = arith.constant 0 : i32
    %c0_i32_0 = arith.constant 0 : i32
    %c0_i32_1 = arith.constant 0 : i32
    return %c0_i32, %arg0, %c0_i32_0 : i32, i32, i32
  }
  func.func @transform_1(%arg0: i32) -> (i32, i32, i32) {
    %c0_i32 = arith.constant 0 : i32
    %c0_i32_0 = arith.constant 0 : i32
    %c0_i32_1 = arith.constant 0 : i32
    return %c0_i32, %arg0, %c0_i32_0 : i32, i32, i32
  }
  func.func @transform_2(%arg0: i32) -> (i32, i32, i32) {
    %c0_i32 = arith.constant 0 : i32
    %c0_i32_0 = arith.constant 0 : i32
    %c0_i32_1 = arith.constant 0 : i32
    %c0_i32_2 = arith.constant 0 : i32
    return %c0_i32, %c0_i32_0, %c0_i32_1 : i32, i32, i32
  }
  func.func @transform_3(%arg0: i32) -> (i32, i32) {
    %c0_i32 = arith.constant 0 : i32
    %c0_i32_0 = arith.constant 0 : i32
    %c0_i32_1 = arith.constant 0 : i32
    return %c0_i32, %c0_i32_0 : i32, i32
  }
  func.func @transform_4(%arg0: i32) -> (i32, i32) {
    %c0_i32 = arith.constant 0 : i32
    %c0_i32_0 = arith.constant 0 : i32
    %c0_i32_1 = arith.constant 0 : i32
    return %c0_i32, %c0_i32_0 : i32, i32
  }
  func.func @transform_5(%arg0: i32) -> (i32, i32, i32) {
    %c0_i32 = arith.constant 0 : i32
    %c0_i32_0 = arith.constant 0 : i32
    %c0_i32_1 = arith.constant 0 : i32
    return %c0_i32, %arg0, %c0_i32_0 : i32, i32, i32
  }
}

module attributes {stable_mosaic.version = 11 : i64} {
  func.func @_linear_kernel(%arg0: i32, %arg1: i32, %arg2: i32, %arg3: memref<2x48xbf16, #tpu.memory_space<vmem>>, %arg4: memref<48x128xbf16, #tpu.memory_space<vmem>>, %arg5: memref<1x128xf32, #tpu.memory_space<vmem>>, %arg6: memref<2x128xf32, #tpu.memory_space<vmem>>, %arg7: memref<2x128xf32, #tpu.memory_space<vmem>>) attributes {dimension_semantics = [#tpu.dimension_semantics<parallel>, #tpu.dimension_semantics<parallel>, #tpu.dimension_semantics<arbitrary>], iteration_bounds = array<i64: 1, 1, 1>, scalar_prefetch = 0 : i64, scratch_operands = 1 : i64, tpu.core_type = #tpu.core_type<tc>, window_params = [{transform_indices = @transform_0, window_bounds = array<i64: 2, 48>}, {transform_indices = @transform_1, window_bounds = array<i64: 48, 128>}, {transform_indices = @transform_2, window_bounds = array<i64: 1, 128>}, {transform_indices = @transform_3, window_bounds = array<i64: 2, 128>}]} {
    %c0_i32 = arith.constant 0 : i32
    %0 = arith.cmpi eq, %arg2, %c0_i32 : i32
    %1 = arith.extui %0 : i1 to i32
    %c0_i32_0 = arith.constant 0 : i32
    %2 = arith.cmpi ne, %1, %c0_i32_0 : i32
    scf.if %2 {
      %cst_10 = arith.constant 0.000000e+00 : f32
      %12 = vector.broadcast %cst_10 : f32 to vector<2x128xf32>
      %c0_11 = arith.constant 0 : index
      %c0_12 = arith.constant 0 : index
      %13 = vector.load %arg7[%c0_11, %c0_12] : memref<2x128xf32, #tpu.memory_space<vmem>>, vector<2x128xf32>
      tpu.vector_store %arg7[%c0_11, %c0_12], %12 {strides = array<i32>} : memref<2x128xf32, #tpu.memory_space<vmem>>, vector<2x128xf32>,
    } else {
    }
    %c0 = arith.constant 0 : index
    %c0_1 = arith.constant 0 : index
    %3 = vector.load %arg7[%c0, %c0_1] : memref<2x128xf32, #tpu.memory_space<vmem>>, vector<2x128xf32>
    %c0_2 = arith.constant 0 : index
    %c0_3 = arith.constant 0 : index
    %4 = vector.load %arg3[%c0_2, %c0_3] : memref<2x48xbf16, #tpu.memory_space<vmem>>, vector<2x48xbf16>
    %c0_4 = arith.constant 0 : index
    %c0_5 = arith.constant 0 : index
    %5 = vector.load %arg4[%c0_4, %c0_5] : memref<48x128xbf16, #tpu.memory_space<vmem>>, vector<48x128xbf16>
    %cst = arith.constant dense<0.000000e+00> : vector<2x128xf32>
    %6 = tpu.matmul %4, %5, %cst {dimension_numbers = #tpu.dot_dimension_numbers<[1], [0], [0], [1], [0, 0, 1, 1], [], []>} : vector<2x48xbf16>, vector<48x128xbf16>, vector<2x128xf32> -> vector<2x128xf32>
    %7 = arith.addf %3, %6 : vector<2x128xf32>
    %c0_6 = arith.constant 0 : index
    %c0_7 = arith.constant 0 : index
    %8 = vector.load %arg7[%c0_6, %c0_7] : memref<2x128xf32, #tpu.memory_space<vmem>>, vector<2x128xf32>
    tpu.vector_store %arg7[%c0_6, %c0_7], %7 {strides = array<i32>} : memref<2x128xf32, #tpu.memory_space<vmem>>, vector<2x128xf32>,
    %c0_i32_8 = arith.constant 0 : i32
    %9 = arith.cmpi eq, %arg2, %c0_i32_8 : i32
    %10 = arith.extui %9 : i1 to i32
    %c0_i32_9 = arith.constant 0 : i32
    %11 = arith.cmpi ne, %10, %c0_i32_9 : i32
    scf.if %11 {
      %c0_10 = arith.constant 0 : index
      %c0_11 = arith.constant 0 : index
      %12 = vector.load %arg7[%c0_10, %c0_11] : memref<2x128xf32, #tpu.memory_space<vmem>>, vector<2x128xf32>
      %c0_12 = arith.constant 0 : index
      %c0_13 = arith.constant 0 : index
      %13 = vector.load %arg5[%c0_12, %c0_13] : memref<1x128xf32, #tpu.memory_space<vmem>>, vector<1x128xf32>
      %14 = vector.broadcast %13 : vector<1x128xf32> to vector<2x128xf32>
      %15 = arith.addf %12, %14 : vector<2x128xf32>
      %c0_14 = arith.constant 0 : index
      %c0_15 = arith.constant 0 : index
      %16 = vector.load %arg6[%c0_14, %c0_15] : memref<2x128xf32, #tpu.memory_space<vmem>>, vector<2x128xf32>
      tpu.vector_store %arg6[%c0_14, %c0_15], %15 {strides = array<i32>} : memref<2x128xf32, #tpu.memory_space<vmem>>, vector<2x128xf32>,
    } else {
    }
    return
  }
  func.func @transform_0(%arg0: i32, %arg1: i32, %arg2: i32) -> (i32, i32) {
    %c0_i32 = arith.constant 0 : i32
    return %arg0, %arg2 : i32, i32
  }
  func.func @transform_1(%arg0: i32, %arg1: i32, %arg2: i32) -> (i32, i32) {
    %c0_i32 = arith.constant 0 : i32
    return %arg2, %arg1 : i32, i32
  }
  func.func @transform_2(%arg0: i32, %arg1: i32, %arg2: i32) -> (i32, i32) {
    %c0_i32 = arith.constant 0 : i32
    %c0_i32_0 = arith.constant 0 : i32
    return %c0_i32, %arg1 : i32, i32
  }
  func.func @transform_3(%arg0: i32, %arg1: i32, %arg2: i32) -> (i32, i32) {
    %c0_i32 = arith.constant 0 : i32
    return %arg0, %arg1 : i32, i32
  }
}

module attributes {stable_mosaic.version = 11 : i64} {
  func.func @_linear_kernel(%arg0: i32, %arg1: i32, %arg2: i32, %arg3: memref<2x128xbf16, #tpu.memory_space<vmem>>, %arg4: memref<128x2xbf16, #tpu.memory_space<vmem>>, %arg5: memref<1x2xf32, #tpu.memory_space<vmem>>, %arg6: memref<2x2xf32, #tpu.memory_space<vmem>>, %arg7: memref<2x2xf32, #tpu.memory_space<vmem>>) attributes {dimension_semantics = [#tpu.dimension_semantics<parallel>, #tpu.dimension_semantics<parallel>, #tpu.dimension_semantics<arbitrary>], iteration_bounds = array<i64: 1, 1, 1>, scalar_prefetch = 0 : i64, scratch_operands = 1 : i64, tpu.core_type = #tpu.core_type<tc>, window_params = [{transform_indices = @transform_0, window_bounds = array<i64: 2, 128>}, {transform_indices = @transform_1, window_bounds = array<i64: 128, 2>}, {transform_indices = @transform_2, window_bounds = array<i64: 1, 2>}, {transform_indices = @transform_3, window_bounds = array<i64: 2, 2>}]} {
    %c0_i32 = arith.constant 0 : i32
    %0 = arith.cmpi eq, %arg2, %c0_i32 : i32
    %1 = arith.extui %0 : i1 to i32
    %c0_i32_0 = arith.constant 0 : i32
    %2 = arith.cmpi ne, %1, %c0_i32_0 : i32
    scf.if %2 {
      %cst_10 = arith.constant 0.000000e+00 : f32
      %12 = vector.broadcast %cst_10 : f32 to vector<2x2xf32>
      %c0_11 = arith.constant 0 : index
      %c0_12 = arith.constant 0 : index
      %13 = vector.load %arg7[%c0_11, %c0_12] : memref<2x2xf32, #tpu.memory_space<vmem>>, vector<2x2xf32>
      tpu.vector_store %arg7[%c0_11, %c0_12], %12 {strides = array<i32>} : memref<2x2xf32, #tpu.memory_space<vmem>>, vector<2x2xf32>,
    } else {
    }
    %c0 = arith.constant 0 : index
    %c0_1 = arith.constant 0 : index
    %3 = vector.load %arg7[%c0, %c0_1] : memref<2x2xf32, #tpu.memory_space<vmem>>, vector<2x2xf32>
    %c0_2 = arith.constant 0 : index
    %c0_3 = arith.constant 0 : index
    %4 = vector.load %arg3[%c0_2, %c0_3] : memref<2x128xbf16, #tpu.memory_space<vmem>>, vector<2x128xbf16>
    %c0_4 = arith.constant 0 : index
    %c0_5 = arith.constant 0 : index
    %5 = vector.load %arg4[%c0_4, %c0_5] : memref<128x2xbf16, #tpu.memory_space<vmem>>, vector<128x2xbf16>
    %cst = arith.constant dense<0.000000e+00> : vector<2x2xf32>
    %6 = tpu.matmul %4, %5, %cst {dimension_numbers = #tpu.dot_dimension_numbers<[1], [0], [0], [1], [0, 0, 1, 1], [], []>} : vector<2x128xbf16>, vector<128x2xbf16>, vector<2x2xf32> -> vector<2x2xf32>
    %7 = arith.addf %3, %6 : vector<2x2xf32>
    %c0_6 = arith.constant 0 : index
    %c0_7 = arith.constant 0 : index
    %8 = vector.load %arg7[%c0_6, %c0_7] : memref<2x2xf32, #tpu.memory_space<vmem>>, vector<2x2xf32>
    tpu.vector_store %arg7[%c0_6, %c0_7], %7 {strides = array<i32>} : memref<2x2xf32, #tpu.memory_space<vmem>>, vector<2x2xf32>,
    %c0_i32_8 = arith.constant 0 : i32
    %9 = arith.cmpi eq, %arg2, %c0_i32_8 : i32
    %10 = arith.extui %9 : i1 to i32
    %c0_i32_9 = arith.constant 0 : i32
    %11 = arith.cmpi ne, %10, %c0_i32_9 : i32
    scf.if %11 {
      %c0_10 = arith.constant 0 : index
      %c0_11 = arith.constant 0 : index
      %12 = vector.load %arg7[%c0_10, %c0_11] : memref<2x2xf32, #tpu.memory_space<vmem>>, vector<2x2xf32>
      %c0_12 = arith.constant 0 : index
      %c0_13 = arith.constant 0 : index
      %13 = vector.load %arg5[%c0_12, %c0_13] : memref<1x2xf32, #tpu.memory_space<vmem>>, vector<1x2xf32>
      %14 = vector.broadcast %13 : vector<1x2xf32> to vector<2x2xf32>
      %15 = arith.addf %12, %14 : vector<2x2xf32>
      %c0_14 = arith.constant 0 : index
      %c0_15 = arith.constant 0 : index
      %16 = vector.load %arg6[%c0_14, %c0_15] : memref<2x2xf32, #tpu.memory_space<vmem>>, vector<2x2xf32>
      tpu.vector_store %arg6[%c0_14, %c0_15], %15 {strides = array<i32>} : memref<2x2xf32, #tpu.memory_space<vmem>>, vector<2x2xf32>,
    } else {
    }
    return
  }
  func.func @transform_0(%arg0: i32, %arg1: i32, %arg2: i32) -> (i32, i32) {
    %c0_i32 = arith.constant 0 : i32
    return %arg0, %arg2 : i32, i32
  }
  func.func @transform_1(%arg0: i32, %arg1: i32, %arg2: i32) -> (i32, i32) {
    %c0_i32 = arith.constant 0 : i32
    return %arg2, %arg1 : i32, i32
  }
  func.func @transform_2(%arg0: i32, %arg1: i32, %arg2: i32) -> (i32, i32) {
    %c0_i32 = arith.constant 0 : i32
    %c0_i32_0 = arith.constant 0 : i32
    return %c0_i32, %arg1 : i32, i32
  }
  func.func @transform_3(%arg0: i32, %arg1: i32, %arg2: i32) -> (i32, i32) {
    %c0_i32 = arith.constant 0 : i32
    return %arg0, %arg1 : i32, i32
  }
}

</mosaic_0001>

<bundles_post_ra>
// kernel: forward.19
= control target key start
LH: loop header
LB: loop body
LE: loop exit
PB: predicated region body
PF: predicated region fallthrough
CT: control target
= control target key end

     0   :  { %s550_s12 = smov 0   ;;  %s552_s13 = smov 0   ;;  %s595_s0 = inlined_call_operand.vmem [shape: bf16[32,4], index: 0, kind: input, shape index: {}]   ;;  %s596_s1 = inlined_call_operand.vmem [shape: bf16[4,8], index: 1, kind: input, shape index: {}]   ;;  %s597_s2 = inlined_call_operand.vmem [shape: f32[1,8], index: 2, kind: input, shape index: {}]   ;;  %s598_s3 = inlined_call_operand.vmem [shape: f32[32,8], index: 3, kind: output, shape index: {}]  }
   0x1   :  { %s554_s14 = smov 0  }
   0x2 LB: > { %s32_s15 = sadd.s32 1, %s522_s13  ;;  %p459_p0 = scmp.ge.s32.totalorder %s526_s14, 1  ;;  %s526_s14 = sphi %s554_s14, %s13_s14   ;;  %s522_s13 = sphi %s552_s13, %s600_s13   ;;  %s518_s12 = sphi %s550_s12, %s599_s12  }
   0x3   : > { %p34_p1 = scmp.ge.s32.totalorder %s32_s15, 2  ;;  %p186_p2 = scmp.lt.s32.totalorder %s526_s14, 3 }
   0x5   : > { %s602_s15 = smov (%p34_p1, %s32_s15), 0  ;;  %p187_p3 = pnand %p459_p0, %p186_p2 }
   0x6   : > { %vm259_vm0 = vcmask (!%p187_p3), 64512   ;;  %v266_v0 = vld [vmem:[%s596_s1] sm:$0x3] (!%p187_p3)  ;;  %vm276_vm1 = vcmask (!%p187_p3), 1041408   ;;  %v528_v1 = vmov (!%p187_p3), 0.0   ;;  %vm529_vm2 = vmmov (!%p187_p3), 0  }
   0x7   : > { %190 = sbr.rel (%p187_p3) target bundleno = 245 (0xf5), region = 32  ;;  %260 = vst.msk [vmem:[#allocation2] sm:$0xff] (!%p187_p3), %vm259_vm0, %v528_v1  ;;  %261 = vst.msk [vmem:[#allocation2 + $0x8] sm:$0xff] (!%p187_p3), %vm259_vm0, %v528_v1  ;;  %471 = vmatprep.subr.bf16.mxu0 (!%p187_p3), %v528_v1  ;;  %v278_v2 = vsel (!%p187_p3), %vm276_vm1, %v266_v0, 0  ;;  %473 = vmatprep.mubr.msk.bf16.mxu0 (!%p187_p3), %vm529_vm2, %v528_v1  ;;  %s460_s18 = sshll.u32 (!%p187_p3), %s518_s12, 1  ;;  %vm272_vm3 = vcmask (!%p187_p3), 31744  }
   0x8   : > { %472 = vmatpush3.bf16.msra.mxu0 (!%p187_p3), %v278_v2  ;;  %p227_p4 = scmp.lt.s32.totalorder (!%p187_p3), %s460_s18, 3  ;;  %v466_v12 = vld [vmem:[%s597_s2] ss:$0 sm:$0xff] (!%p187_p3) }
   0xe   : > { %s604_s18 = smov (!%p227_p4, %s460_s18), 3  ;;  %v262_v4 = vld [vmem:[#allocation2] sm:$0xff]  ;;  %v263_v6 = vld [vmem:[#allocation2 + $0x8] sm:$0xff] }
   0xf   : > { %s461_s19 = sshll.u32 %s604_s18, 2  ;;  %s463_s23 = sshll.u32 %s604_s18, 3 }
  0x10   : > { %s233_s22 = scalar_lea.vmem %s595_s0, %s461_s19  ;;  %s252_s28 = scalar_lea.vmem %s598_s3, %s463_s23 }
  0x11   : > { %v503_v3 = vld [vmem:[%s233_s22] sm:$0xff]  }
  0x12   : > { %474 = vmatmul.mubr.msk.bf16.vlgmr.msra.gmra.mrb[0].mxu0 %vm272_vm3, %v503_v3 }
  0xe5   : > { %v314_v5 = vpop.f32.mrb[0].mxu0 }
  0xe6   : > { %v321_v7 = vadd.f32 %v314_v5, %v262_v4  ;;  %v475_v8 = vpop.f32.mrb[1].mxu0 }
  0xe7   : > { %v317_v9 = vpop.f32.mrb[2].mxu0 }
  0xe8   : > { %324 = vst.msk [vmem:[#allocation2] sm:$0xff] %vm259_vm0, %v321_v7  ;;  %v322_v10 = vadd.f32 %v317_v9, %v263_v6  ;;  %v476_v11 = vpop.f32.mrb[3].mxu0 }
  0xea   : > { %325 = vst.msk [vmem:[#allocation2 + $0x8] sm:$0xff] %vm259_vm0, %v322_v10 }
  0xef   : > { %v329_v13 = vld [vmem:[#allocation2] sm:$0xff] }
  0xf0   : > { %v338_v14 = vadd.f32 %v466_v12, %v329_v13 }
  0xf1   : > { %v330_v15 = vld [vmem:[#allocation2 + $0x8] sm:$0xff] }
  0xf2   : > { %340 = vst.msk [vmem:[%s252_s28] sm:$0xff] %vm259_vm0, %v338_v14  ;;  %v339_v16 = vadd.f32 %v466_v12, %v330_v15 }
  0xf4   : > { %341 = vst.msk [vmem:[%s252_s28 + $0x8] sm:$0xff] %vm259_vm0, %v339_v16 }
  0xf5 PF: > { %s13_s14 = sadd.s32 1, %s526_s14   ;;  %s599_s12 = smov %s522_s13 }
  0xf6   : > { %p10_p5 = scmp.ge.s32.totalorder %s13_s14, 4   ;;  %s600_s13 = smov %s602_s15 }
  0xf8   :  { %12 = sbr.rel (!%p10_p5) target bundleno = 2 (0x2), region = 76 }

// kernel: forward.22
= control target key start
LH: loop header
LB: loop body
LE: loop exit
PB: predicated region body
PF: predicated region fallthrough
CT: control target
= control target key end

     0   :  { %s704_s24 = smov 0   ;;  %s779_s0 = inlined_call_operand.vmem [shape: f32[2,16,8], index: 0, kind: input, shape index: {}]   ;;  %s780_s1 = inlined_call_operand.vmem [shape: f32[1,8], index: 1, kind: input, shape index: {}]   ;;  %s781_s2 = inlined_call_operand.vmem [shape: f32[1,8], index: 2, kind: input, shape index: {}]   ;;  %s782_s3 = inlined_call_operand.vmem [shape: bf16[32,16], index: 3, kind: input, shape index: {}]   ;;  %s783_s4 = inlined_call_operand.vmem [shape: f32[32,1], index: 4, kind: input, shape index: {}]   ;;  %s784_s5 = inlined_call_operand.vmem [shape: bf16[16,32], index: 5, kind: input, shape index: {}]   ;;  %s785_s6 = inlined_call_operand.vmem [shape: f32[16,1], index: 6, kind: input, shape index: {}]   ;;  %s786_s7 = inlined_call_operand.vmem [shape: f32[2,16,8], index: 7, kind: output, shape index: {}]  }
   0x1 LB: > { %s584_s25 = sadd.s32 4294967295, %s659_s24   ;;  %p588_p0 = scmp.ge.s32.totalorder %s659_s24, 1  ;;  %s659_s24 = sphi %s704_s24, %s17_s24  }
   0x2   : > { %p237_p1 = scmp.lt.s32.totalorder %s659_s24, 3 }
   0x4   : > { %p238_p2 = pnand %p588_p0, %p237_p1 }
   0x5   : > { %p269_p3 = scmp.lt.s32.totalorder (!%p238_p2), %s584_s25, 1  ;;  %vm284_vm0 = vcmask (!%p238_p2), 64512   ;;  %v638_v14 = vld [vmem:[%s782_s3] sm:$0xff] (!%p238_p2)   ;;  %vm367_vm1 = vcmask (!%p238_p2), 130048   ;;  %v334_v15 = vld [vmem:[%s783_s4 + $0x8] sm:$0xff] (!%p238_p2)  ;;  %v661_v16 = vmov (!%p238_p2), 0  }
   0x6   : > { %241 = sbr.rel (%p238_p2) target bundleno = 810 (0x32a), region = 48  ;;  %613 = vmatprep.mubr.msk.bf16.mxu0 (!%p238_p2), %vm367_vm1, %v638_v14  ;;  %637 = vset.pattern.permute.xlu1 (!%p238_p2), %v661_v16  ;;  %v333_v17 = vld [vmem:[%s783_s4] sm:$0xff] (!%p238_p2)  ;;  %v335_v18 = vld [vmem:[%s783_s4 + $0x10] sm:$0xff] (!%p238_p2)  ;;  %v336_v19 = vld [vmem:[%s783_s4 + $0x18] sm:$0xff] (!%p238_p2)  ;;  %v662_v40 = vmov (!%p238_p2), 0.0   ;;  %vm663_vm2 = vmmov (!%p238_p2), 0  }
   0x7   : > { %636 = vset.pattern.permute.xlu0 (!%p238_p2), %v661_v16  ;;  %v463_v20 = vld [vmem:[%s785_s6] sm:$0xff] (!%p238_p2)  ;;  %v464_v21 = vld [vmem:[%s785_s6 + $0x8] sm:$0xff] (!%p238_p2)  ;;  %617 = vmatprep.subr.bf16.mxu1 (!%p238_p2), %v662_v40  ;;  %vm480_vm3 = vcmask (!%p238_p2), 261120  }
   0x8   : > { %v593_v30 = vld [vmem:[%s780_s1] ss:$0 sm:$0xff] (!%p238_p2)  ;;  %v639_v39 = vld [vmem:[%s782_s3 + $0x8] sm:$0xff] (!%p238_p2)   ;;  %621 = vmatprep.mubr.msk.bf16.mxu1 (!%p238_p2), %vm663_vm2, %v662_v40 }
   0x9   : > { %v594_v34 = vld [vmem:[%s781_s2] ss:$0 sm:$0xff] (!%p238_p2) }
   0xd   : > { %s788_s25 = smov (!%p269_p3, %s584_s25), 1 }
   0xe   : > { %s603_s26 = sshll.u32 %s788_s25, 4 }
   0xf   : > { %s273_s29 = scalar_lea.vmem %s779_s0, %s603_s26  ;;  %s278_s11 = scalar_lea.vmem %s786_s7, %s603_s26 }
  0x10   : > { %v720_v0 = vld [vmem:[%s273_s29] sm:$0xff]  ;;  %v722_v1 = vld [vmem:[%s273_s29 + $0x8] sm:$0xff] }
  0x11   : > { %v285_v2 = vsel %vm284_vm0, %v720_v0, 0.0  ;;  %v288_v3 = vsel %vm284_vm0, %v722_v1, 0.0 }
  0x12   : > { %286 = vadd.xlane.f32.xlu0 %v285_v2 }
  0x16   : > { %289 = vadd.xlane.f32.xlu0 %v288_v3 }
  0x2c   : > { %339 = vperm.xlu0 %636, %v333_v17  }
  0x9f   : > { %v287_v4 = vpop.xlane.xlu0 %286 }
  0xa0   : > { %v292_v5 = vmul.f32 0.125, %v287_v4 }
  0xa2   : > { %v294_v6 = vsub.f32 %v720_v0, %v292_v5 }
  0xa3   : > { %v290_v7 = vpop.xlane.xlu0 %289 }
  0xa4   : > { %v293_v8 = vmul.f32 0.125, %v290_v7  ;;  %v296_v9 = vmul.f32 %v294_v6, %v294_v6 }
  0xa6   : > { %v295_v10 = vsub.f32 %v722_v1, %v293_v8  ;;  %v298_v11 = vsel %vm284_vm0, %v296_v9, 0.0 }
  0xa7   : > { %299 = vadd.xlane.f32.xlu1 %v298_v11 }
  0xa8   : > { %v297_v12 = vmul.f32 %v295_v10, %v295_v10 }
  0xaa   : > { %v301_v13 = vsel %vm284_vm0, %v297_v12, 0.0 }
  0xab   : > { %302 = vadd.xlane.f32.xlu1 %v301_v13  ;;  %v340_v43 = vpop.permute.xlu0 %339 }
  0xbc   : > { %344 = vperm.xlu1 %637, %v334_v15  }
  0xc0   : > { %349 = vperm.xlu1 %637, %v335_v18  }
  0xc4   : > { %354 = vperm.xlu1 %637, %v336_v19  }
  0xc8   : > { %467 = vperm.xlu1 %637, %v463_v20  }
  0xcc   : > { %472 = vperm.xlu1 %637, %v464_v21  }
 0x134   : > { %v300_v22 = vpop.xlane.xlu1 %299 }
 0x135   : > { %v304_v23 = vmul.f32 0.125, %v300_v22 }
 0x137   : > { %v306_v24 = vadd.f32 1e-05, %v304_v23 }
 0x138   : > { %v303_v25 = vpop.xlane.xlu1 %302 }
 0x139   : > { %641 = vrsqrt.f32 %v306_v24  ;;  %v305_v26 = vmul.f32 0.125, %v303_v25 }
 0x13b   : > { %v307_v27 = vadd.f32 1e-05, %v305_v26 }
 0x13c   : > { %v345_v41 = vpop.permute.xlu1 %344 }
 0x13d   : > { %643 = vrsqrt.f32 %v307_v27 }
 0x140   : > { %v350_v42 = vpop.permute.xlu1 %349 }
 0x143   : > { %v642_v28 = vpop.eup %641 }
 0x144   : > { %v310_v29 = vmul.f32 %v642_v28, %v294_v6  ;;  %v355_v47 = vpop.permute.xlu1 %354 }
 0x146   : > { %v318_v33 = vmul.f32 %v593_v30, %v310_v29  ;;  %v640_v29 = vld [vmem:[%s784_s5] sm:$0xff]  }
 0x147   : > { %v644_v31 = vpop.eup %643 }
 0x148   : > { %v311_v32 = vmul.f32 %v644_v31, %v295_v10  ;;  %v326_v36 = vadd.f32 %v594_v34, %v318_v33 }
 0x14a   : > { %v319_v35 = vmul.f32 %v593_v30, %v311_v32  ;;  %v468_v30 = vpop.permute.xlu1 %467 }
 0x14c   : > { %v327_v37 = vadd.f32 %v594_v34, %v319_v35 }
 0x14e   : > { %v328_v38 = vpack.c.bf16 %v327_v37, %v326_v36  ;;  %v473_v34 = vpop.permute.xlu1 %472 }
 0x150   : > { %611 = vmatprep.subr.bf16.mxu0 %v328_v38 }
 0x151   : > { %612 = vmatpush3.bf16.msra.mxu0 %v328_v38 }
 0x154   : > { %614 = vmatmul.mubr.msk.bf16.vlgmr.msra.gmra.mrb[0].mxu0 %vm367_vm1, %v639_v39 }
 0x227   : > { %v615_v44 = vpop.f32.mrb[0].mxu0 }
 0x228   : > { %v417_v45 = vadd.f32 %v615_v44, %v350_v42  ;;  %v408_v46 = vpop.f32.mrb[1].mxu0 }
 0x229   : > { %v409_v48 = vadd.f32 %v408_v46, %v340_v43  ;;  %v616_v49 = vpop.f32.mrb[2].mxu0 }
 0x22a   : > { %v429_v50 = vmul.f32 0.044715, %v417_v45  ;;  %v420_v51 = vadd.f32 %v616_v49, %v355_v47  ;;  %v411_v52 = vpop.f32.mrb[3].mxu0  ;;  %v425_v17 = vmul.f32 0.5, %v417_v45 }
 0x22b   : > { %v427_v53 = vmul.f32 0.044715, %v409_v48  ;;  %v412_v54 = vadd.f32 %v411_v52, %v345_v41  ;;  %v423_v20 = vmul.f32 0.5, %v409_v48 }
 0x22c   : > { %v433_v55 = vmul.f32 %v429_v50, %v417_v45  ;;  %v430_v56 = vmul.f32 0.044715, %v420_v51  ;;  %v426_v18 = vmul.f32 0.5, %v420_v51 }
 0x22d   : > { %v431_v57 = vmul.f32 %v427_v53, %v409_v48  ;;  %v428_v58 = vmul.f32 0.044715, %v412_v54  ;;  %v424_v21 = vmul.f32 0.5, %v412_v54 }
 0x22e   : > { %v437_v59 = vmul.f32 %v433_v55, %v417_v45  ;;  %v434_v60 = vmul.f32 %v430_v56, %v420_v51 }
 0x22f   : > { %v432_v61 = vmul.f32 %v428_v58, %v412_v54  ;;  %v435_v62 = vmul.f32 %v431_v57, %v409_v48 }
 0x230   : > { %v438_v63 = vmul.f32 %v434_v60, %v420_v51  ;;  %v441_v2 = vadd.f32 %v437_v59, %v417_v45 }
 0x231   : > { %v436_v3 = vmul.f32 %v432_v61, %v412_v54  ;;  %v439_v4 = vadd.f32 %v435_v62, %v409_v48 }
 0x232   : > { %v442_v5 = vadd.f32 %v438_v63, %v420_v51  ;;  %v445_v6 = vmul.f32 0.7978846, %v441_v2 }
 0x233   : > { %v440_v7 = vadd.f32 %v436_v3, %v412_v54  ;;  %v443_v8 = vmul.f32 0.7978846, %v439_v4 }
 0x234   : > { %v446_v9 = vmul.f32 0.7978846, %v442_v5  ;;  %645 = vtanh.f32 %v445_v6 }
 0x235   : > { %v444_v10 = vmul.f32 0.7978846, %v440_v7  ;;  %647 = vtanh.f32 %v443_v8 }
 0x236   : > { %649 = vtanh.f32 %v446_v9 }
 0x237   : > { %651 = vtanh.f32 %v444_v10 }
 0x23e   : > { %v646_v11 = vpop.eup %645 }
 0x23f   : > { %v648_v12 = vpop.eup %647  ;;  %v453_v13 = vadd.f32 1.0, %v646_v11 }
 0x240   : > { %v650_v14 = vpop.eup %649  ;;  %v451_v15 = vadd.f32 1.0, %v648_v12 }
 0x241   : > { %v652_v16 = vpop.eup %651  ;;  %v454_v19 = vadd.f32 1.0, %v650_v14  ;;  %v457_v23 = vmul.f32 %v453_v13, %v425_v17 }
 0x242   : > { %v452_v22 = vadd.f32 1.0, %v652_v16  ;;  %v455_v25 = vmul.f32 %v451_v15, %v423_v20 }
 0x243   : > { %v458_v24 = vmul.f32 %v454_v19, %v426_v18 }
 0x244   : > { %v456_v26 = vmul.f32 %v452_v22, %v424_v21 }
 0x245   : > { %v460_v27 = vpack.c.bf16 %v458_v24, %v457_v23 }
 0x246   : > { %v459_v28 = vpack.c.bf16 %v456_v26, %v455_v25 }
 0x248   : > { %618 = vmatpush3.bf16.msra.mxu1 %v459_v28 }
 0x249   : > { %619 = vmatprep.subr.bf16.mxu1 %v662_v40 }
 0x24c   : > { %620 = vmatpush3.bf16.msra.mxu1 %v460_v27 }
 0x24f   : > { %622 = vmatmul.mubr.msk.bf16.vlgmr.msra.gmra.mrb[0].mxu1 %vm480_vm3, %v640_v29 }
 0x322   : > { %v518_v31 = vpop.f32.mrb[0].mxu1 }
 0x323   : > { %v519_v32 = vadd.f32 %v518_v31, %v468_v30  ;;  %v623_v33 = vpop.f32.mrb[1].mxu1 }
 0x324   : > { %v521_v35 = vpop.f32.mrb[2].mxu1 }
 0x325   : > { %v525_v36 = vadd.f32 %v519_v32, %v720_v0  ;;  %v522_v37 = vadd.f32 %v521_v35, %v473_v34  ;;  %v624_v38 = vpop.f32.mrb[3].mxu1 }
 0x327   : > { %527 = vst.msk [vmem:[%s278_s11] sm:$0xff] %vm284_vm0, %v525_v36  ;;  %v526_v39 = vadd.f32 %v522_v37, %v722_v1 }
 0x329   : > { %528 = vst.msk [vmem:[%s278_s11 + $0x8] sm:$0xff] %vm284_vm0, %v526_v39 }
 0x32a PF: > { %s17_s24 = sadd.s32 1, %s659_s24  }
 0x32b   : > { %p14_p4 = scmp.ge.s32.totalorder %s17_s24, 4  }
 0x32d   :  { %16 = sbr.rel (!%p14_p4) target bundleno = 1 (0x1), region = 78 }

// kernel: forward.23
= control target key start
LH: loop header
LB: loop body
LE: loop exit
PB: predicated region body
PF: predicated region fallthrough
CT: control target
= control target key end

     0   :  { %s632_s24 = smov 0   ;;  %s691_s0 = inlined_call_operand.vmem [shape: f32[32,8], index: 0, kind: input, shape index: {}]   ;;  %s692_s1 = inlined_call_operand.vmem [shape: f32[1,8], index: 1, kind: input, shape index: {}]   ;;  %s693_s2 = inlined_call_operand.vmem [shape: f32[1,8], index: 2, kind: input, shape index: {}]   ;;  %s694_s3 = inlined_call_operand.vmem [shape: bf16[8,16], index: 3, kind: input, shape index: {}]   ;;  %s695_s4 = inlined_call_operand.vmem [shape: f32[1,16], index: 4, kind: input, shape index: {}]   ;;  %s696_s5 = inlined_call_operand.vmem [shape: bf16[16,8], index: 5, kind: input, shape index: {}]   ;;  %s697_s6 = inlined_call_operand.vmem [shape: f32[1,8], index: 6, kind: input, shape index: {}]   ;;  %s698_s7 = inlined_call_operand.vmem [shape: f32[32,8], index: 7, kind: output, shape index: {}]  }
   0x1 LB: > { %s529_s25 = sadd.s32 4294967295, %s588_s24   ;;  %p533_p0 = scmp.ge.s32.totalorder %s588_s24, 1  ;;  %s588_s24 = sphi %s632_s24, %s17_s24  }
   0x2   : > { %p238_p1 = scmp.lt.s32.totalorder %s588_s24, 3 }
   0x4   : > { %p239_p2 = pnand %p533_p0, %p238_p1 }
   0x5   : > { %s534_s26 = sshll.u32 (!%p239_p2), %s529_s25, 1  ;;  %vm287_vm0 = vcmask (!%p239_p2), 64512   ;;  %v332_v14 = vld [vmem:[%s694_s3] sm:$0xf] (!%p239_p2)  ;;  %vm343_vm1 = vcmask (!%p239_p2), 1043456   ;;  %v590_v15 = vmov (!%p239_p2), 0.0  }
   0x6   : > { %242 = sbr.rel (%p239_p2) target bundleno = 798 (0x31e), region = 48  ;;  %p271_p3 = scmp.lt.s32.totalorder (!%p239_p2), %s534_s26, 3  ;;  %551 = vmatprep.subr.bf16.mxu0 (!%p239_p2), %v590_v15  ;;  %v345_v16 = vsel (!%p239_p2), %vm343_vm1, %v332_v14, 0  ;;  %vm591_vm2 = vmmov (!%p239_p2), 0   ;;  %557 = vmatprep.subr.bf16.mxu1 (!%p239_p2), %v590_v15  ;;  %v538_v25 = vld [vmem:[%s692_s1] ss:$0 sm:$0xff] (!%p239_p2) }
   0x7   : > { %553 = vmatprep.mubr.msk.bf16.mxu0 (!%p239_p2), %vm591_vm2, %v590_v15  ;;  %552 = vmatpush3.bf16.msra.mxu0 (!%p239_p2), %v345_v16  ;;  %v539_v29 = vld [vmem:[%s693_s2] ss:$0 sm:$0xff] (!%p239_p2)  ;;  %vm415_vm3 = vcmask (!%p239_p2), 130048  }
   0x8   : > { %559 = vmatprep.mubr.msk.bf16.mxu1 (!%p239_p2), %vm591_vm2, %v590_v15  ;;  %v573_v34 = vld [vmem:[%s696_s5] sm:$0xff] (!%p239_p2)  }
   0x9   : > { %558 = vmatpush3.bf16.msra.mxu1 (!%p239_p2), %v573_v34  ;;  %v540_v35 = vld [vmem:[%s695_s4] ss:$0 sm:$0xff] (!%p239_p2) }
   0xa   : > { %v544_v62 = vld [vmem:[%s697_s6] ss:$0 sm:$0xff] (!%p239_p2) }
   0xd   : > { %s700_s26 = smov (!%p271_p3, %s534_s26), 3 }
   0xe   : > { %s535_s27 = sshll.u32 %s700_s26, 3 }
   0xf   : > { %s274_s30 = scalar_lea.vmem %s691_s0, %s535_s27  ;;  %s280_s22 = scalar_lea.vmem %s698_s7, %s535_s27 }
  0x10   : > { %v648_v0 = vld [vmem:[%s274_s30] sm:$0xff]  ;;  %v650_v1 = vld [vmem:[%s274_s30 + $0x8] sm:$0xff] }
  0x11   : > { %v288_v2 = vsel %vm287_vm0, %v648_v0, 0.0  ;;  %v291_v3 = vsel %vm287_vm0, %v650_v1, 0.0 }
  0x12   : > { %289 = vadd.xlane.f32.xlu0 %v288_v2 }
  0x16   : > { %292 = vadd.xlane.f32.xlu0 %v291_v3 }
  0x9f   : > { %v290_v4 = vpop.xlane.xlu0 %289 }
  0xa0   : > { %v295_v5 = vmul.f32 0.125, %v290_v4 }
  0xa2   : > { %v297_v6 = vsub.f32 %v648_v0, %v295_v5 }
  0xa3   : > { %v293_v7 = vpop.xlane.xlu0 %292 }
  0xa4   : > { %v296_v8 = vmul.f32 0.125, %v293_v7  ;;  %v299_v9 = vmul.f32 %v297_v6, %v297_v6 }
  0xa6   : > { %v298_v10 = vsub.f32 %v650_v1, %v296_v8  ;;  %v301_v11 = vsel %vm287_vm0, %v299_v9, 0.0 }
  0xa7   : > { %302 = vadd.xlane.f32.xlu1 %v301_v11 }
  0xa8   : > { %v300_v12 = vmul.f32 %v298_v10, %v298_v10 }
  0xaa   : > { %v304_v13 = vsel %vm287_vm0, %v300_v12, 0.0 }
  0xab   : > { %305 = vadd.xlane.f32.xlu1 %v304_v13 }
 0x134   : > { %v303_v17 = vpop.xlane.xlu1 %302 }
 0x135   : > { %v307_v18 = vmul.f32 0.125, %v303_v17 }
 0x137   : > { %v309_v19 = vadd.f32 1e-05, %v307_v18 }
 0x138   : > { %v306_v20 = vpop.xlane.xlu1 %305 }
 0x139   : > { %574 = vrsqrt.f32 %v309_v19  ;;  %v308_v21 = vmul.f32 0.125, %v306_v20 }
 0x13b   : > { %v310_v22 = vadd.f32 1e-05, %v308_v21 }
 0x13d   : > { %576 = vrsqrt.f32 %v310_v22 }
 0x143   : > { %v575_v23 = vpop.eup %574 }
 0x144   : > { %v313_v24 = vmul.f32 %v575_v23, %v297_v6 }
 0x146   : > { %v321_v28 = vmul.f32 %v538_v25, %v313_v24 }
 0x147   : > { %v577_v26 = vpop.eup %576 }
 0x148   : > { %v314_v27 = vmul.f32 %v577_v26, %v298_v10  ;;  %v329_v31 = vadd.f32 %v539_v29, %v321_v28 }
 0x14a   : > { %v322_v30 = vmul.f32 %v538_v25, %v314_v27 }
 0x14c   : > { %v330_v32 = vadd.f32 %v539_v29, %v322_v30 }
 0x14e   : > { %v331_v33 = vpack.c.bf16 %v330_v32, %v329_v31 }
 0x150   : > { %554 = vmatmul.mubr.msk.bf16.vlgmr.msra.gmra.mrb[0].mxu0 %vm287_vm0, %v331_v33 }
 0x223   : > { %v381_v36 = vpop.f32.mrb[0].mxu0 }
 0x224   : > { %v382_v37 = vadd.f32 %v540_v35, %v381_v36  ;;  %v555_v38 = vpop.f32.mrb[1].mxu0 }
 0x225   : > { %v384_v39 = vpop.f32.mrb[2].mxu0 }
 0x226   : > { %v390_v40 = vmul.f32 0.044715, %v382_v37  ;;  %v385_v41 = vadd.f32 %v540_v35, %v384_v39  ;;  %v556_v42 = vpop.f32.mrb[3].mxu0  ;;  %v388_v55 = vmul.f32 0.5, %v382_v37 }
 0x228   : > { %v392_v43 = vmul.f32 %v390_v40, %v382_v37  ;;  %v391_v44 = vmul.f32 0.044715, %v385_v41  ;;  %v389_v56 = vmul.f32 0.5, %v385_v41 }
 0x22a   : > { %v394_v45 = vmul.f32 %v392_v43, %v382_v37  ;;  %v393_v46 = vmul.f32 %v391_v44, %v385_v41 }
 0x22c   : > { %v396_v47 = vadd.f32 %v394_v45, %v382_v37  ;;  %v395_v48 = vmul.f32 %v393_v46, %v385_v41 }
 0x22e   : > { %v398_v49 = vmul.f32 0.7978846, %v396_v47  ;;  %v397_v50 = vadd.f32 %v395_v48, %v385_v41 }
 0x230   : > { %578 = vtanh.f32 %v398_v49  ;;  %v399_v51 = vmul.f32 0.7978846, %v397_v50 }
 0x232   : > { %580 = vtanh.f32 %v399_v51 }
 0x23a   : > { %v579_v52 = vpop.eup %578 }
 0x23b   : > { %v402_v53 = vadd.f32 1.0, %v579_v52 }
 0x23c   : > { %v581_v54 = vpop.eup %580 }
 0x23d   : > { %v403_v57 = vadd.f32 1.0, %v581_v54  ;;  %v404_v58 = vmul.f32 %v402_v53, %v388_v55 }
 0x23f   : > { %v405_v59 = vmul.f32 %v403_v57, %v389_v56 }
 0x241   : > { %v406_v60 = vpack.c.bf16 %v405_v59, %v404_v58 }
 0x243   : > { %560 = vmatmul.mubr.msk.bf16.vlgmr.msra.gmra.mrb[0].mxu1 %vm415_vm3, %v406_v60 }
 0x316   : > { %v453_v61 = vpop.f32.mrb[0].mxu1 }
 0x317   : > { %v460_v63 = vadd.f32 %v453_v61, %v648_v0  ;;  %v561_v2 = vpop.f32.mrb[1].mxu1 }
 0x318   : > { %v456_v3 = vpop.f32.mrb[2].mxu1 }
 0x319   : > { %v469_v4 = vadd.f32 %v544_v62, %v460_v63  ;;  %v461_v5 = vadd.f32 %v456_v3, %v650_v1  ;;  %v562_v6 = vpop.f32.mrb[3].mxu1 }
 0x31b   : > { %471 = vst.msk [vmem:[%s280_s22] sm:$0xff] %vm287_vm0, %v469_v4  ;;  %v470_v7 = vadd.f32 %v544_v62, %v461_v5 }
 0x31d   : > { %472 = vst.msk [vmem:[%s280_s22 + $0x8] sm:$0xff] %vm287_vm0, %v470_v7 }
 0x31e PF: > { %s17_s24 = sadd.s32 1, %s588_s24  }
 0x31f   : > { %p14_p4 = scmp.ge.s32.totalorder %s17_s24, 4  }
 0x321   :  { %16 = sbr.rel (!%p14_p4) target bundleno = 1 (0x1), region = 78 }

// kernel: forward.28
= control target key start
LH: loop header
LB: loop body
LE: loop exit
PB: predicated region body
PF: predicated region fallthrough
CT: control target
= control target key end

     0   :  { %s550_s12 = smov 0   ;;  %s552_s13 = smov 0   ;;  %s595_s0 = inlined_call_operand.vmem [shape: bf16[32,8], index: 0, kind: input, shape index: {}]   ;;  %s596_s1 = inlined_call_operand.vmem [shape: bf16[8,24], index: 1, kind: input, shape index: {}]   ;;  %s597_s2 = inlined_call_operand.vmem [shape: f32[1,24], index: 2, kind: input, shape index: {}]   ;;  %s598_s3 = inlined_call_operand.vmem [shape: f32[32,24], index: 3, kind: output, shape index: {}]  }
   0x1   :  { %s554_s14 = smov 0  }
   0x2 LB: > { %s32_s15 = sadd.s32 1, %s522_s13  ;;  %p459_p0 = scmp.ge.s32.totalorder %s526_s14, 1  ;;  %s526_s14 = sphi %s554_s14, %s13_s14   ;;  %s522_s13 = sphi %s552_s13, %s600_s13   ;;  %s518_s12 = sphi %s550_s12, %s599_s12  }
   0x3   : > { %p34_p1 = scmp.ge.s32.totalorder %s32_s15, 2  ;;  %p186_p2 = scmp.lt.s32.totalorder %s526_s14, 3 }
   0x5   : > { %s602_s15 = smov (%p34_p1, %s32_s15), 0  ;;  %p187_p3 = pnand %p459_p0, %p186_p2 }
   0x6   : > { %vm259_vm0 = vcmask (!%p187_p3), 195584   ;;  %v266_v0 = vld [vmem:[%s596_s1] sm:$0xf] (!%p187_p3)  ;;  %vm276_vm1 = vcmask (!%p187_p3), 1043456   ;;  %v528_v1 = vmov (!%p187_p3), 0.0   ;;  %vm529_vm2 = vmmov (!%p187_p3), 0  }
   0x7   : > { %190 = sbr.rel (%p187_p3) target bundleno = 245 (0xf5), region = 32  ;;  %260 = vst.msk [vmem:[#allocation2] sm:$0xff] (!%p187_p3), %vm259_vm0, %v528_v1  ;;  %261 = vst.msk [vmem:[#allocation2 + $0x8] sm:$0xff] (!%p187_p3), %vm259_vm0, %v528_v1  ;;  %471 = vmatprep.subr.bf16.mxu0 (!%p187_p3), %v528_v1  ;;  %v278_v2 = vsel (!%p187_p3), %vm276_vm1, %v266_v0, 0  ;;  %473 = vmatprep.mubr.msk.bf16.mxu0 (!%p187_p3), %vm529_vm2, %v528_v1  ;;  %s460_s18 = sshll.u32 (!%p187_p3), %s518_s12, 1  ;;  %vm272_vm3 = vcmask (!%p187_p3), 64512  }
   0x8   : > { %472 = vmatpush3.bf16.msra.mxu0 (!%p187_p3), %v278_v2  ;;  %p227_p4 = scmp.lt.s32.totalorder (!%p187_p3), %s460_s18, 3  ;;  %v466_v12 = vld [vmem:[%s597_s2] ss:$0 sm:$0xff] (!%p187_p3) }
   0xe   : > { %s604_s18 = smov (!%p227_p4, %s460_s18), 3  ;;  %v262_v4 = vld [vmem:[#allocation2] sm:$0xff]  ;;  %v263_v6 = vld [vmem:[#allocation2 + $0x8] sm:$0xff] }
   0xf   : > { %s461_s19 = sshll.u32 %s604_s18, 2  ;;  %s463_s23 = sshll.u32 %s604_s18, 3 }
  0x10   : > { %s233_s22 = scalar_lea.vmem %s595_s0, %s461_s19  ;;  %s252_s28 = scalar_lea.vmem %s598_s3, %s463_s23 }
  0x11   : > { %v503_v3 = vld [vmem:[%s233_s22] sm:$0xff]  }
  0x12   : > { %474 = vmatmul.mubr.msk.bf16.vlgmr.msra.gmra.mrb[0].mxu0 %vm272_vm3, %v503_v3 }
  0xe5   : > { %v314_v5 = vpop.f32.mrb[0].mxu0 }
  0xe6   : > { %v321_v7 = vadd.f32 %v314_v5, %v262_v4  ;;  %v475_v8 = vpop.f32.mrb[1].mxu0 }
  0xe7   : > { %v317_v9 = vpop.f32.mrb[2].mxu0 }
  0xe8   : > { %324 = vst.msk [vmem:[#allocation2] sm:$0xff] %vm259_vm0, %v321_v7  ;;  %v322_v10 = vadd.f32 %v317_v9, %v263_v6  ;;  %v476_v11 = vpop.f32.mrb[3].mxu0 }
  0xea   : > { %325 = vst.msk [vmem:[#allocation2 + $0x8] sm:$0xff] %vm259_vm0, %v322_v10 }
  0xef   : > { %v329_v13 = vld [vmem:[#allocation2] sm:$0xff] }
  0xf0   : > { %v338_v14 = vadd.f32 %v466_v12, %v329_v13 }
  0xf1   : > { %v330_v15 = vld [vmem:[#allocation2 + $0x8] sm:$0xff] }
  0xf2   : > { %340 = vst.msk [vmem:[%s252_s28] sm:$0xff] %vm259_vm0, %v338_v14  ;;  %v339_v16 = vadd.f32 %v466_v12, %v330_v15 }
  0xf4   : > { %341 = vst.msk [vmem:[%s252_s28 + $0x8] sm:$0xff] %vm259_vm0, %v339_v16 }
  0xf5 PF: > { %s13_s14 = sadd.s32 1, %s526_s14   ;;  %s599_s12 = smov %s522_s13 }
  0xf6   : > { %p10_p5 = scmp.ge.s32.totalorder %s13_s14, 4   ;;  %s600_s13 = smov %s602_s15 }
  0xf8   :  { %12 = sbr.rel (!%p10_p5) target bundleno = 2 (0x2), region = 76 }

// kernel: forward.34
= control target key start
LH: loop header
LB: loop body
LE: loop exit
PB: predicated region body
PF: predicated region fallthrough
CT: control target
= control target key end

     0   :  { %v193_v0 = vmov 0.0   ;;  %vm194_vm0 = vmmov 0   ;;  %s248_s1 = inlined_call_operand.vmem [shape: bf16[128,128], index: 1, kind: input, shape index: {}]   ;;  %s249_s0 = inlined_call_operand.vmem [shape: bf16[2,128], index: 0, kind: input, shape index: {}]   ;;  %s250_s2 = inlined_call_operand.vmem [shape: f32[1,128], index: 2, kind: input, shape index: {}]   ;;  %s251_s3 = inlined_call_operand.vmem [shape: f32[2,128], index: 3, kind: output, shape index: {}]  }
   0x1   :  { %163 = vmatprep.subr.bf16.mxu0 %v193_v0  ;;  %19 = vst [vmem:[#allocation2] sm:$0x3] %v193_v0  ;;  %v185_v1 = vld [vmem:[%s248_s1] sm:$0xff]   ;;  %179 = vmatprep.mubr.msk.bf16.mxu0 %vm194_vm0, %v193_v0  ;;  %v186_v2 = vld [vmem:[%s248_s1 + $0x8] sm:$0xff]   ;;  %v187_v3 = vld [vmem:[%s248_s1 + $0x10] sm:$0xff]  }
   0x2   :  { %164 = vmatpush3.bf16.msra.mxu0 %v185_v1  ;;  %v188_v4 = vld [vmem:[%s248_s1 + $0x18] sm:$0xff]   ;;  %v189_v5 = vld [vmem:[%s248_s1 + $0x20] sm:$0xff]   ;;  %v190_v6 = vld [vmem:[%s248_s1 + $0x28] sm:$0xff]  }
   0x3   :  { %165 = vmatprep.subr.bf16.mxu0 %v193_v0  ;;  %v191_v7 = vld [vmem:[%s248_s1 + $0x30] sm:$0xff]   ;;  %v192_v8 = vld [vmem:[%s248_s1 + $0x38] sm:$0xff]   ;;  %v21_v9 = vld [vmem:[%s249_s0] sm:$0x1] }
   0x4   :  { %v153_v16 = vld [vmem:[%s250_s2] ss:$0 sm:$0xff] }
   0x6   :  { %166 = vmatpush3.bf16.msra.mxu0 %v186_v2 }
   0x7   :  { %167 = vmatprep.subr.bf16.mxu0 %v193_v0 }
   0x8   :  { %v20_v10 = vld [vmem:[#allocation2] sm:$0x3] }
   0xa   :  { %168 = vmatpush3.bf16.msra.mxu0 %v187_v3 }
   0xb   :  { %169 = vmatprep.subr.bf16.mxu0 %v193_v0 }
   0xe   :  { %170 = vmatpush3.bf16.msra.mxu0 %v188_v4 }
   0xf   :  { %171 = vmatprep.subr.bf16.mxu0 %v193_v0 }
  0x12   :  { %172 = vmatpush3.bf16.msra.mxu0 %v189_v5 }
  0x13   :  { %173 = vmatprep.subr.bf16.mxu0 %v193_v0 }
  0x16   :  { %174 = vmatpush3.bf16.msra.mxu0 %v190_v6 }
  0x17   :  { %175 = vmatprep.subr.bf16.mxu0 %v193_v0 }
  0x1a   :  { %176 = vmatpush3.bf16.msra.mxu0 %v191_v7 }
  0x1b   :  { %177 = vmatprep.subr.bf16.mxu0 %v193_v0 }
  0x1e   :  { %178 = vmatpush3.bf16.msra.mxu0 %v192_v8 }
  0x21   :  { %180 = vmatmul.mubr.bf16.vlgmr.msra.gmra.mrb[0].mxu0 %v21_v9 }
  0xf4   :  { %v120_v11 = vpop.f32.mrb[0].mxu0 }
  0xf5   :  { %v126_v12 = vadd.f32 %v120_v11, %v20_v10  ;;  %v181_v13 = vpop.f32.mrb[1].mxu0 }
  0xf6   :  { %v123_v14 = vpop.f32.mrb[2].mxu0 }
  0xf7   :  { %127 = vst [vmem:[#allocation2] sm:$0x3] %v126_v12  ;;  %v182_v15 = vpop.f32.mrb[3].mxu0 }
  0xfe   :  { %v131_v17 = vld [vmem:[#allocation2] sm:$0x3] }
  0xff   :  { %v139_v18 = vadd.f32 %v153_v16, %v131_v17 }
 0x101   :  { %140 = vst [vmem:[%s251_s3] sm:$0x3] %v139_v18 }

// kernel: forward.29
= control target key start
LH: loop header
LB: loop body
LE: loop exit
PB: predicated region body
PF: predicated region fallthrough
CT: control target
= control target key end

     0   :  { %s1244_s18 = smov 0   ;;  %s1246_s19 = smov 0   ;;  %s1450_s0 = inlined_call_operand.vmem [shape: f32[2,16,24], index: 0, kind: input, shape index: {}]   ;;  %s1451_s1 = inlined_call_operand.vmem [shape: f32[2,16,8], index: 1, kind: input, shape index: {}]   ;;  %s1452_s2 = inlined_call_operand.vmem [shape: bf16[2,4,8], index: 2, kind: input, shape index: {}]   ;;  %s1453_s3 = inlined_call_operand.vmem [shape: f32[1,8], index: 3, kind: input, shape index: {}]   ;;  %s1454_s4 = inlined_call_operand.vmem [shape: f32[1,8], index: 4, kind: input, shape index: {}]   ;;  %s1455_s5 = inlined_call_operand.vmem [shape: f32[2,16,8], index: 5, kind: output, shape index: {}]  }
   0x1   :  { %s1248_s20 = smov 0  }
   0x2 LB: > { %s997_s21 = sadd.s32 4294967295, %s1206_s20   ;;  %s1261_s22 = sadd.s32 1, %s1206_s20   ;;  %s1206_s20 = sphi %s1248_s20, %s1460_s20   ;;  %s1202_s19 = sphi %s1246_s19, %s1459_s19   ;;  %s1198_s18 = sphi %s1244_s18, %s1458_s18  }
   0x3   : > { %s19_s23 = ssub.s32 %s1206_s20, %s1261_s22  ;;  %s22_s24 = sadd.s32 1, %s1202_s19 }
   0x4   : > { %p20_p0 = scmp.eq.s32.totalorder %s19_s23, 0  ;;  %p29_p1 = scmp.ne.s32.totalorder %s1202_s19, %s1198_s18 }
   0x5   : > { %p30_p2 = scmp.eq.s32.totalorder %s1206_s20, 0  ;;  %p148_p3 = scmp.eq.s32.totalorder %s997_s21, 1 }
   0x6   : > { %s1272_s25 = scalar_select %p20_p0, %s1202_s19, %s22_s24  }
   0x7   : > { %p1274_p4 = por %p30_p2, %p29_p1  ;;  %p1278_p5 = por %p148_p3, %p29_p1 }
   0x8   : > { %p1000_p6 = scmp.ge.s32.totalorder %s1206_s20, 2 }
   0xa   : > { %179 = sbr.rel (%p1000_p6) target bundleno = 31 (0x1f), region = 28 }
  0x11   : > { %182 = sbr.rel (!%p1274_p4) target bundleno = 24 (0x18), region = 32  ;;  %s184_s28 = sand.u32 (%p1274_p4), 1, %s1202_s19  }
  0x12   : > { %s1002_s29 = sshll.u32 (%p1274_p4), %s1206_s20, 3  ;;  %s1001_s30 = sshll.u32 (%p1274_p4), %s184_s28, 4 }
  0x13   : > { %s188_s8 = scalar_lea.vmem (%p1274_p4), %s1450_s0, %s1002_s29  ;;  %s186_s9 = scalar_lea.vmem (%p1274_p4), [#allocation2], %s1001_s30 }
  0x14   : > { %v218_v0 = vld [vmem:[%s188_s8] sm:$0xff] (%p1274_p4)  ;;  %v220_v1 = vld [vmem:[%s188_s8 + $0x10] sm:$0xff] (%p1274_p4) }
  0x15   : > { %219 = vst [vmem:[%s186_s9] sm:$0xff] (%p1274_p4), %v218_v0  ;;  %221 = vst [vmem:[%s186_s9 + $0x8] sm:$0xff] (%p1274_p4), %v220_v1 }
  0x18 PF: > { %227 = sbr.rel (!%p1274_p4) target bundleno = 31 (0x1f), region = 70  ;;  %s229_s10 = sand.u32 (%p1274_p4), 1, %s1202_s19  }
  0x19   : > { %s1004_s11 = sshll.u32 (%p1274_p4), %s1206_s20, 3  ;;  %s1003_s12 = sshll.u32 (%p1274_p4), %s229_s10, 4 }
  0x1a   : > { %s233_s15 = scalar_lea.vmem (%p1274_p4), %s1451_s1, %s1004_s11  ;;  %s231_s16 = scalar_lea.vmem (%p1274_p4), [#allocation3], %s1003_s12 }
  0x1b   : > { %v263_v2 = vld [vmem:[%s233_s15] sm:$0xff] (%p1274_p4)  ;;  %v265_v3 = vld [vmem:[%s233_s15 + $0x10] sm:$0xff] (%p1274_p4) }
  0x1c   : > { %264 = vst [vmem:[%s231_s16] sm:$0xff] (%p1274_p4), %v263_v2  ;;  %266 = vst [vmem:[%s231_s16 + $0x8] sm:$0xff] (%p1274_p4), %v265_v3 }
  0x1f PF: > { %p1005_p7 = scmp.ge.s32.totalorder %s1206_s20, 1  ;;  %p271_p8 = scmp.lt.s32.totalorder %s1206_s20, 3 }
  0x21   : > { %p272_p9 = pnand %p1005_p7, %p271_p8 }
  0x22   : > { %s278_s17 = sand.u32 (!%p272_p9), 1, %s1198_s18   ;;  %s1208_s26 = smov (!%p272_p9), 120   ;;  %vm324_vm0 = vcmask (!%p272_p9), 31744   ;;  %vm630_vm1 = vcmask (!%p272_p9), 1041408   ;;  %vm1212_vm2 = vmmov (!%p272_p9), 0   ;;  %vm726_vm3 = vcmask (!%p272_p9), 64512  }
  0x23   : > { %275 = sbr.rel (%p272_p9) target bundleno = 1236 (0x4d4), region = 108  ;;  %s1300_s23 = sshll.u32 (!%p272_p9), %s278_s17, 4 }
  0x24   : > { %s280_s24 = scalar_lea.vmem (!%p272_p9), [#allocation2], %s1300_s23  ;;  %s1209_s28 = smov (!%p272_p9), 124  }
  0x25   : > { %v1303_v4 = vld [vmem:[%s280_s24] sm:$0xff] (!%p272_p9)  ;;  %v1308_v5 = vld [vmem:[%s280_s24 + $0x8] sm:$0xff] (!%p272_p9)  ;;  %s1210_s18 = smov (!%p272_p9), 116   ;;  %s1213_s8 = smov (!%p272_p9), 112  }
  0x26   : > { %319 = vrot.lane.b32.xlu0 (!%p272_p9), %v1303_v4, %s1208_s26  ;;  %457 = vrot.lane.b32.xlu1 (!%p272_p9), %v1303_v4, %s1209_s28  ;;  %s287_s13 = scalar_lea.vmem (!%p272_p9), [#allocation3], %s1300_s23  ;;  %s314_s24 = scalar_lea.vmem (!%p272_p9), [#allocation4], %s1300_s23 }
  0x2a   : > { %387 = vrot.lane.b32.xlu0 %v1308_v5, %s1208_s26  ;;  %534 = vrot.lane.b32.xlu1 %v1308_v5, %s1209_s28  ;;  %s1035_s26 = sshll.u32 (%p1278_p5), %s997_s21, 3 }
  0x2b   : > { %s886_s29 = scalar_lea.vmem (%p1278_p5), %s1455_s5, %s1035_s26 }
  0x98   : > { %v320_v6 = vpop.permute.xlu0 %319  ;;  %v458_v12 = vpop.permute.xlu1 %457 }
  0x99   : > { %v322_v7 = vmul.f32 %v320_v6, %v1303_v4  ;;  %v323_v8 = vmul.f32 %v320_v6, %v1308_v5  ;;  %v460_v13 = vmul.f32 %v458_v12, %v1303_v4  ;;  %v461_v14 = vmul.f32 %v458_v12, %v1308_v5 }
  0x9b   : > { %498 = vrot.lane.b32.xlu1 %v323_v8, %s1209_s28  ;;  %496 = vrot.lane.b32.xlu0 %v322_v7, %s1209_s28  ;;  %v325_v44 = vsel %vm324_vm0, %v322_v7, 0.0  ;;  %v328_v45 = vsel %vm324_vm0, %v323_v8, 0.0 }
  0x9c   : > { %v388_v9 = vpop.permute.xlu0 %387  ;;  %v535_v15 = vpop.permute.xlu1 %534 }
  0x9d   : > { %v390_v10 = vmul.f32 %v388_v9, %v1303_v4  ;;  %v391_v11 = vmul.f32 %v388_v9, %v1308_v5  ;;  %v537_v16 = vmul.f32 %v535_v15, %v1303_v4  ;;  %v538_v17 = vmul.f32 %v535_v15, %v1308_v5 }
  0x9f   : > { %575 = vrot.lane.b32.xlu1 %v391_v11, %s1209_s28  ;;  %573 = vrot.lane.b32.xlu0 %v390_v10, %s1209_s28  ;;  %v392_v46 = vsel %vm324_vm0, %v390_v10, 0.0  ;;  %v395_v47 = vsel %vm324_vm0, %v391_v11, 0.0 }
  0xa3   : > { %349 = vrot.lane.b32.xlu0 %v1303_v4, %s1210_s18  ;;  %416 = vrot.lane.b32.xlu1 %v1308_v5, %s1210_s18 }
  0xa7   : > { %464 = vrot.lane.b32.xlu0 %v460_v13, %s1209_s28  ;;  %466 = vrot.lane.b32.xlu1 %v461_v14, %s1209_s28 }
  0xab   : > { %541 = vrot.lane.b32.xlu0 %v537_v16, %s1209_s28  ;;  %543 = vrot.lane.b32.xlu1 %v538_v17, %s1209_s28 }
 0x10d   : > { %v499_v18 = vpop.permute.xlu1 %498  ;;  %v497_v19 = vpop.permute.xlu0 %496 }
 0x10e   : > { %v505_v20 = vsel %vm324_vm0, %v499_v18, 0.0  ;;  %v502_v21 = vsel %vm324_vm0, %v497_v19, 0.0 }
 0x10f   : > { %506 = vadd.xlane.f32.xlu1 %v505_v20  ;;  %503 = vadd.xlane.f32.xlu0 %v502_v21 }
 0x111   : > { %v576_v22 = vpop.permute.xlu1 %575  ;;  %v574_v23 = vpop.permute.xlu0 %573 }
 0x112   : > { %v579_v24 = vsel %vm324_vm0, %v574_v23, 0.0  ;;  %v582_v29 = vsel %vm324_vm0, %v576_v22, 0.0 }
 0x113   : > { %580 = vadd.xlane.f32.xlu0 %v579_v24 }
 0x115   : > { %v350_v25 = vpop.permute.xlu0 %349  ;;  %v417_v26 = vpop.permute.xlu1 %416 }
 0x116   : > { %v352_v27 = vmul.f32 %v350_v25, %v1303_v4  ;;  %v353_v28 = vmul.f32 %v350_v25, %v1308_v5  ;;  %v419_v30 = vmul.f32 %v417_v26, %v1303_v4  ;;  %v420_v31 = vmul.f32 %v417_v26, %v1308_v5 }
 0x117   : > { %583 = vadd.xlane.f32.xlu0 %v582_v29 }
 0x118   : > { %v354_v32 = vsel %vm324_vm0, %v352_v27, 0.0  ;;  %v357_v33 = vsel %vm324_vm0, %v353_v28, 0.0  ;;  %v421_v35 = vsel %vm324_vm0, %v419_v30, 0.0  ;;  %v424_v37 = vsel %vm324_vm0, %v420_v31, 0.0 }
 0x119   : > { %355 = vadd.xlane.f32.xlu1 %v354_v32  ;;  %v465_v34 = vpop.permute.xlu0 %464  ;;  %v467_v36 = vpop.permute.xlu1 %466 }
 0x11a   : > { %v470_v38 = vsel %vm324_vm0, %v465_v34, 0.0  ;;  %v473_v40 = vsel %vm324_vm0, %v467_v36, 0.0 }
 0x11b   : > { %358 = vadd.xlane.f32.xlu0 %v357_v33 }
 0x11d   : > { %422 = vadd.xlane.f32.xlu1 %v421_v35  ;;  %v542_v39 = vpop.permute.xlu0 %541  ;;  %v544_v41 = vpop.permute.xlu1 %543 }
 0x11e   : > { %v547_v42 = vsel %vm324_vm0, %v542_v39, 0.0  ;;  %v550_v43 = vsel %vm324_vm0, %v544_v41, 0.0 }
 0x11f   : > { %425 = vadd.xlane.f32.xlu0 %v424_v37 }
 0x121   : > { %471 = vadd.xlane.f32.xlu1 %v470_v38 }
 0x123   : > { %474 = vadd.xlane.f32.xlu0 %v473_v40 }
 0x125   : > { %548 = vadd.xlane.f32.xlu1 %v547_v42 }
 0x127   : > { %551 = vadd.xlane.f32.xlu0 %v550_v43 }
 0x129   : > { %326 = vadd.xlane.f32.xlu1 %v325_v44 }
 0x12b   : > { %329 = vadd.xlane.f32.xlu0 %v328_v45 }
 0x12d   : > { %393 = vadd.xlane.f32.xlu1 %v392_v46 }
 0x12f   : > { %396 = vadd.xlane.f32.xlu0 %v395_v47 }
 0x19c   : > { %v507_v48 = vpop.xlane.xlu1 %506  ;;  %v504_v49 = vpop.xlane.xlu0 %503 }
 0x19d   : > { %v1020_v50 = vmul.f32 -1.442695, %v507_v48  ;;  %v1019_v51 = vmul.f32 -1.442695, %v504_v49 }
 0x19f   : > { %1108 = vpow2.f32 %v1020_v50 }
 0x1a0   : > { %1110 = vpow2.f32 %v1019_v51  ;;  %v581_v52 = vpop.xlane.xlu0 %580 }
 0x1a1   : > { %v1023_v53 = vmul.f32 -1.442695, %v581_v52 }
 0x1a3   : > { %1112 = vpow2.f32 %v1023_v53 }
 0x1a4   : > { %v584_v54 = vpop.xlane.xlu0 %583 }
 0x1a5   : > { %v1024_v55 = vmul.f32 -1.442695, %v584_v54 }
 0x1a6   : > { %v356_v56 = vpop.xlane.xlu1 %355 }
 0x1a7   : > { %1114 = vpow2.f32 %v1024_v55  ;;  %v1011_v57 = vmul.f32 -1.442695, %v356_v56  ;;  %v1025_v55 = vld [vmem:[%s1452_s2 + $0x2] sm:$0x3] }
 0x1a8   : > { %v359_v58 = vpop.xlane.xlu0 %358 }
 0x1a9   : > { %v1109_v59 = vpop.eup %1108  ;;  %1116 = vpow2.f32 %v1011_v57  ;;  %v1012_v60 = vmul.f32 -1.442695, %v359_v58  ;;  %v1211_v57 = vmov 0.0   ;;  %v632_v58 = vsel %vm630_vm1, %v1025_v55, 0 }
 0x1aa   : > { %v1111_v61 = vpop.eup %1110  ;;  %v515_v62 = vadd.f32 1.0, %v1109_v59  ;;  %v423_v63 = vpop.xlane.xlu1 %422  ;;  %1046 = vmatprep.subr.bf16.mxu0 %v1211_v57  ;;  %1048 = vmatprep.mubr.msk.bf16.mxu0 %vm1212_vm2, %v1211_v57 }
 0x1ab   : > { %v514_v0 = vadd.f32 1.0, %v1111_v61  ;;  %1118 = vpow2.f32 %v1012_v60  ;;  %v1015_v1 = vmul.f32 -1.442695, %v423_v63  ;;  %1047 = vmatpush3.bf16.msra.mxu0 %v632_v58  ;;  %1058 = vmatprep.subr.bf16.mxu1 %v1211_v57 }
 0x1ac   : > { %1120 = vrcp.f32 %v515_v62  ;;  %v426_v2 = vpop.xlane.xlu0 %425  ;;  %1052 = vmatprep.subr.bf16.mxu0 %v1211_v57  ;;  %1060 = vmatprep.mubr.msk.bf16.mxu1 %vm1212_vm2, %v1211_v57 }
 0x1ad   : > { %v1113_v3 = vpop.eup %1112  ;;  %1122 = vrcp.f32 %v514_v0  ;;  %v1016_v6 = vmul.f32 -1.442695, %v426_v2 }
 0x1ae   : > { %v591_v7 = vadd.f32 1.0, %v1113_v3  ;;  %1124 = vpow2.f32 %v1015_v1  ;;  %v472_v8 = vpop.xlane.xlu1 %471 }
 0x1af   : > { %1126 = vpow2.f32 %v1016_v6  ;;  %v1017_v9 = vmul.f32 -1.442695, %v472_v8 }
 0x1b0   : > { %1128 = vrcp.f32 %v591_v7  ;;  %v475_v10 = vpop.xlane.xlu0 %474 }
 0x1b1   : > { %v1115_v11 = vpop.eup %1114  ;;  %1130 = vpow2.f32 %v1017_v9  ;;  %v1018_v12 = vmul.f32 -1.442695, %v475_v10 }
 0x1b2   : > { %v592_v13 = vadd.f32 1.0, %v1115_v11  ;;  %v549_v14 = vpop.xlane.xlu1 %548 }
 0x1b3   : > { %v1117_v15 = vpop.eup %1116  ;;  %1132 = vpow2.f32 %v1018_v12  ;;  %v1021_v16 = vmul.f32 -1.442695, %v549_v14 }
 0x1b4   : > { %1134 = vrcp.f32 %v592_v13  ;;  %v366_v17 = vadd.f32 1.0, %v1117_v15  ;;  %v552_v18 = vpop.xlane.xlu0 %551 }
 0x1b5   : > { %v1119_v19 = vpop.eup %1118  ;;  %1136 = vpow2.f32 %v1021_v16  ;;  %v1022_v20 = vmul.f32 -1.442695, %v552_v18 }
 0x1b6   : > { %v1351_v21 = vpop.eup %1120  ;;  %1138 = vrcp.f32 %v366_v17  ;;  %v367_v22 = vadd.f32 1.0, %v1119_v19  ;;  %v327_v23 = vpop.xlane.xlu1 %326 }
 0x1b7   : > { %v1353_v24 = vpop.eup %1122  ;;  %1140 = vpow2.f32 %v1022_v20  ;;  %v1009_v25 = vmul.f32 -1.442695, %v327_v23  ;;  %v523_v26 = vmul.f32 %v1351_v21, %v1303_v4 }
 0x1b8   : > { %v1125_v27 = vpop.eup %1124  ;;  %1142 = vrcp.f32 %v367_v22  ;;  %v330_v28 = vpop.xlane.xlu0 %329  ;;  %v522_v29 = vmul.f32 %v1353_v24, %v1303_v4 }
 0x1b9   : > { %v1127_v30 = vpop.eup %1126  ;;  %v433_v31 = vadd.f32 1.0, %v1125_v27  ;;  %1144 = vpow2.f32 %v1009_v25  ;;  %v1010_v32 = vmul.f32 -1.442695, %v330_v28  ;;  %528 = vrot.lane.b32.xlu0 %v523_v26, %s1209_s28 }
 0x1ba   : > { %v1360_v33 = vpop.eup %1128  ;;  %v434_v34 = vadd.f32 1.0, %v1127_v30  ;;  %526 = vrot.lane.b32.xlu1 %v522_v29, %s1209_s28  ;;  %v394_v35 = vpop.xlane.xlu1 %393 }
 0x1bb   : > { %v1131_v36 = vpop.eup %1130  ;;  %1146 = vrcp.f32 %v433_v31  ;;  %v1013_v37 = vmul.f32 -1.442695, %v394_v35  ;;  %v599_v38 = vmul.f32 %v1360_v33, %v1308_v5 }
 0x1bc   : > { %1148 = vrcp.f32 %v434_v34  ;;  %v482_v39 = vadd.f32 1.0, %v1131_v36  ;;  %v397_v40 = vpop.xlane.xlu0 %396 }
 0x1bd   : > { %v1133_v41 = vpop.eup %1132  ;;  %1150 = vpow2.f32 %v1010_v32  ;;  %v1014_v42 = vmul.f32 -1.442695, %v397_v40 }
 0x1be   : > { %v1135_v43 = vpop.eup %1134  ;;  %1152 = vrcp.f32 %v482_v39  ;;  %v483_v44 = vadd.f32 1.0, %v1133_v41  ;;  %603 = vrot.lane.b32.xlu1 %v599_v38, %s1209_s28 }
 0x1bf   : > { %v1137_v45 = vpop.eup %1136  ;;  %1154 = vpow2.f32 %v1013_v37  ;;  %v600_v46 = vmul.f32 %v1135_v43, %v1308_v5 }
 0x1c0   : > { %v1139_v47 = vpop.eup %1138  ;;  %1156 = vrcp.f32 %v483_v44  ;;  %v559_v48 = vadd.f32 1.0, %v1137_v45 }
 0x1c1   : > { %v1141_v49 = vpop.eup %1140  ;;  %1158 = vpow2.f32 %v1014_v42  ;;  %v374_v50 = vmul.f32 %v1139_v47, %v1303_v4 }
 0x1c2   : > { %v1143_v51 = vpop.eup %1142  ;;  %1160 = vrcp.f32 %v559_v48  ;;  %v560_v52 = vadd.f32 1.0, %v1141_v49  ;;  %605 = vrot.lane.b32.xlu1 %v600_v46, %s1209_s28 }
 0x1c3   : > { %v1145_v53 = vpop.eup %1144  ;;  %378 = vrot.lane.b32.xlu0 %v374_v50, %s1209_s28  ;;  %v375_v54 = vmul.f32 %v1143_v51, %v1303_v4 }
 0x1c4   : > { %1162 = vrcp.f32 %v560_v52  ;;  %v337_v56 = vadd.f32 1.0, %v1145_v53 }
 0x1c5   : > { %v1147_v59 = vpop.eup %1146 }
 0x1c6   : > { %v1149_v60 = vpop.eup %1148  ;;  %380 = vrot.lane.b32.xlu1 %v375_v54, %s1209_s28  ;;  %v441_v61 = vmul.f32 %v1147_v59, %v1308_v5  ;;  %1164 = vrcp.f32 %v337_v56 }
 0x1c7   : > { %v1151_v62 = vpop.eup %1150  ;;  %v442_v63 = vmul.f32 %v1149_v60, %v1308_v5 }
 0x1c8   : > { %v1153_v0 = vpop.eup %1152  ;;  %v338_v1 = vadd.f32 1.0, %v1151_v62  ;;  %445 = vrot.lane.b32.xlu0 %v441_v61, %s1209_s28 }
 0x1c9   : > { %v1155_v2 = vpop.eup %1154  ;;  %v520_v8 = vadd.f32 %v1153_v0, %v1353_v24  ;;  %v490_v28 = vmul.f32 %v1153_v0, %v1303_v4 }
 0x1ca   : > { %v1157_v3 = vpop.eup %1156  ;;  %1166 = vrcp.f32 %v338_v1  ;;  %v404_v6 = vadd.f32 1.0, %v1155_v2  ;;  %447 = vrot.lane.b32.xlu1 %v442_v63, %s1209_s28 }
 0x1cb   : > { %v1159_v7 = vpop.eup %1158  ;;  %v521_v11 = vadd.f32 %v1157_v3, %v1351_v21  ;;  %v1030_v21 = vld [vmem:[%s1452_s2 + $0x2] sm:$0x3] }
 0x1cc   : > { %v1161_v9 = vpop.eup %1160  ;;  %1168 = vrcp.f32 %v404_v6  ;;  %v405_v10 = vadd.f32 1.0, %v1159_v7  ;;  %v767_v29 = vsel %vm630_vm1, %v1030_v21, 0 }
 0x1cd   : > { %v565_v12 = vadd.f32 %v1161_v9, %v520_v8  ;;  %1059 = vmatpush3.bf16.msra.mxu1 %v767_v29  ;;  %v567_v34 = vmul.f32 %v1161_v9, %v1308_v5  ;;  %v757_v9 = vld [vmem:[%s1452_s2] sm:$0x3] }
 0x1ce   : > { %v1163_v13 = vpop.eup %1162  ;;  %1170 = vrcp.f32 %v405_v10  ;;  %1064 = vmatprep.subr.bf16.mxu1 %v1211_v57  ;;  %v816_v10 = vsel %vm630_vm1, %v757_v9, 0 }
 0x1cf   : > { %v566_v14 = vadd.f32 %v1163_v13, %v521_v11  ;;  %v597_v15 = vadd.f32 %v1360_v33, %v565_v12  ;;  %v491_v33 = vmul.f32 %v1157_v3, %v1303_v4  ;;  %v568_v39 = vmul.f32 %v1163_v13, %v1308_v5 }
 0x1d0   : > { %v1165_v17 = vpop.eup %1164 }
 0x1d1   : > { %v598_v16 = vadd.f32 %v1135_v43, %v566_v14  ;;  %v372_v19 = vadd.f32 %v1165_v17, %v1139_v47  ;;  %1172 = vrcp.f32 %v597_v15  ;;  %v345_v44 = vmul.f32 %v1165_v17, %v1303_v4  ;;  %v615_v14 = vld [vmem:[%s287_s13] sm:$0xff]  ;;  %v616_v17 = vld [vmem:[%s287_s13 + $0x8] sm:$0xff] }
 0x1d2   : > { %v724_v15 = vmul.f32 0.5, %v615_v14 }
 0x1d3   : > { %1174 = vrcp.f32 %v598_v16 }
 0x1d4   : > { %v1167_v18 = vpop.eup %1166 }
 0x1d5   : > { %v373_v22 = vadd.f32 %v1167_v18, %v1143_v51  ;;  %v346_v52 = vmul.f32 %v1167_v18, %v1303_v4  ;;  %v620_v4 = vld [vmem:[%s1452_s2] sm:$0x3] }
 0x1d6   : > { %v1169_v20 = vpop.eup %1168 }
 0x1d7   : > { %v410_v23 = vadd.f32 %v1169_v20, %v372_v19  ;;  %v412_v50 = vmul.f32 %v1169_v20, %v1308_v5 }
 0x1d8   : > { %v1171_v25 = vpop.eup %1170 }
 0x1d9   : > { %v411_v24 = vadd.f32 %v1171_v25, %v373_v22  ;;  %v439_v26 = vadd.f32 %v1147_v59, %v410_v23  ;;  %v413_v58 = vmul.f32 %v1171_v25, %v1308_v5  ;;  %v681_v5 = vsel %vm630_vm1, %v620_v4, 0 }
 0x1da   : > { %v859_v25 = vmul.f32 0.5, %v616_v17 }
 0x1db   : > { %v440_v27 = vadd.f32 %v1149_v60, %v411_v24  ;;  %v1173_v40 = vpop.eup %1172  ;;  %1176 = vrcp.f32 %v439_v26 }
 0x1dd   : > { %1178 = vrcp.f32 %v440_v27  ;;  %v1175_v48 = vpop.eup %1174 }
 0x1e5   : > { %v1177_v62 = vpop.eup %1176 }
 0x1e7   : > { %v1179_v2 = vpop.eup %1178 }
 0x22b   : > { %v529_v31 = vpop.permute.xlu0 %528 }
 0x22c   : > { %v527_v30 = vpop.permute.xlu1 %526  ;;  %v533_v35 = vadd.f32 %v529_v31, %v491_v33 }
 0x22d   : > { %v532_v32 = vadd.f32 %v527_v30, %v490_v28 }
 0x22e   : > { %v570_v42 = vadd.f32 %v568_v39, %v533_v35 }
 0x22f   : > { %v569_v36 = vadd.f32 %v567_v34, %v532_v32 }
 0x230   : > { %v604_v37 = vpop.permute.xlu1 %603 }
 0x231   : > { %v609_v38 = vadd.f32 %v604_v37, %v569_v36 }
 0x233   : > { %v613_v41 = vmul.f32 %v1173_v40, %v609_v38 }
 0x234   : > { %v606_v43 = vpop.permute.xlu1 %605 }
 0x235   : > { %v621_v45 = vpack.c.bf16 %v613_v41, %v613_v41  ;;  %v610_v46 = vadd.f32 %v606_v43, %v570_v42  ;;  %v379_v47 = vpop.permute.xlu0 %378 }
 0x236   : > { %v384_v49 = vadd.f32 %v379_v47, %v345_v44 }
 0x237   : > { %v614_v51 = vmul.f32 %v1175_v48, %v610_v46  ;;  %625 = vrot.lane.b32.xlu0 %v621_v45, %s1213_s8  ;;  %v1028_v48 = vld [vmem:[%s1453_s3] ss:$0 sm:$0xff] }
 0x238   : > { %v381_v53 = vpop.permute.xlu1 %380  ;;  %v414_v54 = vadd.f32 %v412_v50, %v384_v49  ;;  %v1029_v50 = vld [vmem:[%s1454_s4] ss:$0 sm:$0xff] }
 0x239   : > { %v758_v55 = vpack.c.bf16 %v614_v51, %v614_v51  ;;  %v385_v56 = vadd.f32 %v381_v53, %v346_v52 }
 0x23a   : > { %v446_v59 = vpop.permute.xlu0 %445 }
 0x23b   : > { %v451_v60 = vadd.f32 %v446_v59, %v414_v54  ;;  %761 = vrot.lane.b32.xlu1 %v758_v55, %s1213_s8  ;;  %v415_v61 = vadd.f32 %v413_v58, %v385_v56 }
 0x23c   : > { %v448_v63 = vpop.permute.xlu1 %447 }
 0x23d   : > { %v455_v0 = vmul.f32 %v1177_v62, %v451_v60  ;;  %v452_v1 = vadd.f32 %v448_v63, %v415_v61 }
 0x23f   : > { %v619_v3 = vpack.c.bf16 %v455_v0, %v455_v0  ;;  %v456_v6 = vmul.f32 %v1179_v2, %v452_v1 }
 0x241   : > { %v756_v7 = vpack.c.bf16 %v456_v6, %v456_v6  ;;  %675 = vrot.lane.b32.xlu0 %v619_v3, %s1213_s8 }
 0x243   : > { %810 = vrot.lane.b32.xlu1 %v756_v7, %s1213_s8 }
 0x2a9   : > { %v626_v8 = vpop.permute.xlu0 %625 }
 0x2aa   : > { %1049 = vmatmul.mubr.msk.bf16.vlgmr.msra.gmra.mrb[0].mxu0 %vm324_vm0, %v626_v8 }
 0x2ab   : > { %1053 = vmatpush3.bf16.msra.mxu0 %v681_v5  ;;  %1054 = vmatprep.mubr.msk.bf16.mxu0 %vm1212_vm2, %v1211_v57 }
 0x2ad   : > { %v762_v11 = vpop.permute.xlu1 %761 }
 0x2ae   : > { %1061 = vmatmul.mubr.msk.bf16.vlgmr.msra.gmra.mrb[0].mxu1 %vm324_vm0, %v762_v11 }
 0x2af   : > { %1065 = vmatpush3.bf16.msra.mxu1 %v816_v10  ;;  %1066 = vmatprep.mubr.msk.bf16.mxu1 %vm1212_vm2, %v1211_v57 }
 0x2b3   : > { %v676_v12 = vpop.permute.xlu0 %675 }
 0x2b5   : > { %v811_v13 = vpop.permute.xlu1 %810 }
 0x2b6   : > { %1055 = vmatmul.mubr.msk.bf16.vlgmr.msra.gmra.mrb[0].mxu0 %vm324_vm0, %v676_v12 }
 0x2ba   : > { %1067 = vmatmul.mubr.msk.bf16.vlgmr.msra.gmra.mrb[0].mxu1 %vm324_vm0, %v811_v13 }
 0x389   : > { %v717_v16 = vpop.f32.mrb[0].mxu0 }
 0x38a   : > { %v723_v18 = vmul.f32 0.5, %v717_v16  ;;  %v1056_v19 = vpop.f32.mrb[1].mxu0 }
 0x38b   : > { %v720_v20 = vpop.f32.mrb[2].mxu0 }
 0x38c   : > { %v1057_v22 = vpop.f32.mrb[3].mxu0  ;;  %v725_v23 = vadd.f32 %v724_v15, %v723_v18 }
 0x38d   : > { %v852_v24 = vpop.f32.mrb[0].mxu1 }
 0x38e   : > { %v858_v57 = vmul.f32 0.5, %v852_v24  ;;  %v1068_v26 = vpop.f32.mrb[1].mxu1  ;;  %v727_v27 = vsel %vm726_vm3, %v725_v23, 0.0 }
 0x38f   : > { %v855_v21 = vpop.f32.mrb[2].mxu1  ;;  %728 = vadd.xlane.f32.xlu0 %v727_v27 }
 0x390   : > { %v1069_v28 = vpop.f32.mrb[3].mxu1  ;;  %v860_v29 = vadd.f32 %v859_v25, %v858_v57 }
 0x392   : > { %v861_v30 = vsel %vm726_vm3, %v860_v29, 0.0 }
 0x393   : > { %862 = vadd.xlane.f32.xlu0 %v861_v30 }
 0x41c   : > { %v729_v31 = vpop.xlane.xlu0 %728 }
 0x41d   : > { %v731_v32 = vmul.f32 0.125, %v729_v31 }
 0x41f   : > { %v732_v33 = vsub.f32 %v725_v23, %v731_v32 }
 0x420   : > { %v863_v34 = vpop.xlane.xlu0 %862 }
 0x421   : > { %v864_v35 = vmul.f32 0.125, %v863_v34  ;;  %v733_v36 = vmul.f32 %v732_v33, %v732_v33 }
 0x423   : > { %v865_v37 = vsub.f32 %v860_v29, %v864_v35  ;;  %v734_v38 = vsel %vm726_vm3, %v733_v36, 0.0 }
 0x424   : > { %735 = vadd.xlane.f32.xlu1 %v734_v38 }
 0x425   : > { %v866_v39 = vmul.f32 %v865_v37, %v865_v37 }
 0x427   : > { %v867_v40 = vsel %vm726_vm3, %v866_v39, 0.0 }
 0x428   : > { %868 = vadd.xlane.f32.xlu0 %v867_v40 }
 0x4b1   : > { %v736_v41 = vpop.xlane.xlu1 %735 }
 0x4b2   : > { %v737_v42 = vmul.f32 0.125, %v736_v41 }
 0x4b4   : > { %v738_v43 = vadd.f32 1e-05, %v737_v42 }
 0x4b5   : > { %v869_v44 = vpop.xlane.xlu0 %868 }
 0x4b6   : > { %1180 = vrsqrt.f32 %v738_v43  ;;  %v870_v45 = vmul.f32 0.125, %v869_v44 }
 0x4b8   : > { %v871_v46 = vadd.f32 1e-05, %v870_v45 }
 0x4ba   : > { %1182 = vrsqrt.f32 %v871_v46 }
 0x4c0   : > { %v1181_v47 = vpop.eup %1180 }
 0x4c1   : > { %v740_v49 = vmul.f32 %v1181_v47, %v732_v33 }
 0x4c3   : > { %v747_v51 = vmul.f32 %v1028_v48, %v740_v49 }
 0x4c4   : > { %v1183_v52 = vpop.eup %1182 }
 0x4c5   : > { %v754_v53 = vadd.f32 %v1029_v50, %v747_v51  ;;  %v873_v54 = vmul.f32 %v1183_v52, %v865_v37  ;;  %884 = sbr.rel (!%p1278_p5) target bundleno = 1236 (0x4d4), region = 120 }
 0x4c7   : > { %755 = vst.msk [vmem:[%s314_s24] sm:$0xff] %vm726_vm3, %v754_v53  ;;  %v874_v55 = vmul.f32 %v1028_v48, %v873_v54 }
 0x4c9   : > { %v875_v56 = vadd.f32 %v1029_v50, %v874_v55 }
 0x4cb   : > { %1033 = vst.msk [vmem:[%s314_s24 + $0x8] sm:$0xff] %vm726_vm3, %v875_v56 }
 0x4ce   : > { %v916_v58 = vld [vmem:[%s314_s24] sm:$0xff] }
 0x4cf   : > { %917 = vst [vmem:[%s886_s29] sm:$0xff] %v916_v58 }
 0x4d2   : > { %v918_v59 = vld [vmem:[%s314_s24 + $0x8] sm:$0xff] }
 0x4d3   : > { %919 = vst [vmem:[%s886_s29 + $0x10] sm:$0xff] %v918_v59 }
 0x4d4 PF: > { %p12_p10 = scmp.ge.s32.totalorder %s1261_s22, 4   ;;  %s1458_s18 = smov %s1202_s19 }
 0x4d5   : > { %s1459_s19 = smov %s1272_s25  ;;  %s1460_s20 = smov %s1261_s22 }
 0x4d6   :  { %14 = sbr.rel (!%p12_p10) target bundleno = 2 (0x2), region = 199 }

// kernel: forward.20
= control target key start
LH: loop header
LB: loop body
LE: loop exit
PB: predicated region body
PF: predicated region fallthrough
CT: control target
= control target key end

     0   :  { %s534_s12 = smov 0   ;;  %s536_s13 = smov 0   ;;  %s576_s0 = inlined_call_operand.vmem [shape: bf16[16,12], index: 0, kind: input, shape index: {}]   ;;  %s577_s1 = inlined_call_operand.vmem [shape: bf16[12,8], index: 1, kind: input, shape index: {}]   ;;  %s578_s2 = inlined_call_operand.vmem [shape: f32[1,8], index: 2, kind: input, shape index: {}]   ;;  %s579_s3 = inlined_call_operand.vmem [shape: f32[16,8], index: 3, kind: output, shape index: {}]  }
   0x1   :  { %s538_s14 = smov 0  }
   0x2 LB: > { %s32_s15 = sadd.s32 1, %s506_s13  ;;  %p445_p0 = scmp.ge.s32.totalorder %s510_s14, 1  ;;  %s510_s14 = sphi %s538_s14, %s13_s14   ;;  %s506_s13 = sphi %s536_s13, %s581_s13   ;;  %s502_s12 = sphi %s534_s12, %s580_s12  }
   0x3   : > { %p34_p1 = scmp.ge.s32.totalorder %s32_s15, 2  ;;  %p186_p2 = scmp.lt.s32.totalorder %s510_s14, 3 }
   0x5   : > { %s583_s15 = smov (%p34_p1, %s32_s15), 0  ;;  %p187_p3 = pnand %p445_p0, %p186_p2 }
   0x6   : > { %vm256_vm0 = vcmask (!%p187_p3), 64512   ;;  %v512_v0 = vmov (!%p187_p3), 0.0   ;;  %v487_v1 = vld [vmem:[%s577_s1] sm:$0x3f] (!%p187_p3)   ;;  %vm271_vm1 = vcmask (!%p187_p3), 1045504   ;;  %p225_p4 = scmp.lt.s32.totalorder (!%p187_p3), %s502_s12, 1 }
   0x7   : > { %190 = sbr.rel (%p187_p3) target bundleno = 243 (0xf3), region = 32  ;;  %257 = vst.msk [vmem:[#allocation2] sm:$0xff] (!%p187_p3), %vm256_vm0, %v512_v0  ;;  %455 = vmatprep.subr.bf16.mxu0 (!%p187_p3), %v512_v0  ;;  %vm513_vm2 = vmmov (!%p187_p3), 0   ;;  %v273_v2 = vsel (!%p187_p3), %vm271_vm1, %v487_v1, 0  ;;  %vm267_vm3 = vcmask (!%p187_p3), 97280  }
   0x8   : > { %457 = vmatprep.mubr.msk.bf16.mxu0 (!%p187_p3), %vm513_vm2, %v512_v0  ;;  %456 = vmatpush3.bf16.msra.mxu0 (!%p187_p3), %v273_v2  ;;  %v450_v10 = vld [vmem:[%s578_s2] ss:$0 sm:$0xff] (!%p187_p3) }
   0xe   : > { %s585_s12 = smov (!%p225_p4, %s502_s12), 1  ;;  %v258_v4 = vld [vmem:[#allocation2] sm:$0xff] }
   0xf   : > { %s446_s18 = sshll.u32 %s585_s12, 2  ;;  %s447_s22 = sshll.u32 %s585_s12, 3 }
  0x10   : > { %s231_s21 = scalar_lea.vmem %s576_s0, %s446_s18  ;;  %s250_s27 = scalar_lea.vmem %s579_s3, %s447_s22 }
  0x11   : > { %v259_v3 = vld [vmem:[%s231_s21] sm:$0xf] }
  0x12   : > { %458 = vmatmul.mubr.msk.bf16.vlgmr.msra.gmra.mrb[0].mxu0 %vm267_vm3, %v259_v3 }
  0xe5   : > { %v309_v5 = vpop.f32.mrb[0].mxu0 }
  0xe6   : > { %v315_v6 = vadd.f32 %v309_v5, %v258_v4  ;;  %v459_v7 = vpop.f32.mrb[1].mxu0 }
  0xe7   : > { %v312_v8 = vpop.f32.mrb[2].mxu0 }
  0xe8   : > { %317 = vst.msk [vmem:[#allocation2] sm:$0xff] %vm256_vm0, %v315_v6  ;;  %v460_v9 = vpop.f32.mrb[3].mxu0 }
  0xef   : > { %v321_v11 = vld [vmem:[#allocation2] sm:$0xff] }
  0xf0   : > { %v329_v12 = vadd.f32 %v450_v10, %v321_v11 }
  0xf2   : > { %330 = vst.msk [vmem:[%s250_s27] sm:$0xff] %vm256_vm0, %v329_v12 }
  0xf3 PF: > { %s13_s14 = sadd.s32 1, %s510_s14   ;;  %s580_s12 = smov %s506_s13 }
  0xf4   : > { %p10_p5 = scmp.ge.s32.totalorder %s13_s14, 4   ;;  %s581_s13 = smov %s583_s15 }
  0xf6   :  { %12 = sbr.rel (!%p10_p5) target bundleno = 2 (0x2), region = 76 }

// kernel: forward.24
= control target key start
LH: loop header
LB: loop body
LE: loop exit
PB: predicated region body
PF: predicated region fallthrough
CT: control target
= control target key end

     0   :  { %s601_s24 = smov 0   ;;  %s655_s0 = inlined_call_operand.vmem [shape: f32[2,8,8], index: 0, kind: input, shape index: {}]   ;;  %s656_s1 = inlined_call_operand.vmem [shape: f32[1,8], index: 1, kind: input, shape index: {}]   ;;  %s657_s2 = inlined_call_operand.vmem [shape: f32[1,8], index: 2, kind: input, shape index: {}]   ;;  %s658_s3 = inlined_call_operand.vmem [shape: bf16[16,8], index: 3, kind: input, shape index: {}]   ;;  %s659_s4 = inlined_call_operand.vmem [shape: f32[16,1], index: 4, kind: input, shape index: {}]   ;;  %s660_s5 = inlined_call_operand.vmem [shape: bf16[8,16], index: 5, kind: input, shape index: {}]   ;;  %s661_s6 = inlined_call_operand.vmem [shape: f32[8,1], index: 6, kind: input, shape index: {}]   ;;  %s662_s7 = inlined_call_operand.vmem [shape: f32[2,8,8], index: 7, kind: output, shape index: {}]  }
   0x1 LB: > { %s500_s25 = sadd.s32 4294967295, %s556_s24   ;;  %p504_p0 = scmp.ge.s32.totalorder %s556_s24, 1  ;;  %s556_s24 = sphi %s601_s24, %s17_s24  }
   0x2   : > { %p236_p1 = scmp.lt.s32.totalorder %s556_s24, 3 }
   0x4   : > { %p237_p2 = pnand %p504_p0, %p236_p1 }
   0x5   : > { %p266_p3 = scmp.lt.s32.totalorder (!%p237_p2), %s500_s25, 1  ;;  %vm278_vm0 = vcmask (!%p237_p2), 64512   ;;  %v558_v7 = vmov (!%p237_p2), 0.0   ;;  %vm559_vm1 = vmmov (!%p237_p2), 0   ;;  %v310_v8 = vld [vmem:[%s659_s4] sm:$0xff] (!%p237_p2)  ;;  %v560_v9 = vmov (!%p237_p2), 0  }
   0x6   : > { %240 = sbr.rel (%p237_p2) target bundleno = 799 (0x31f), region = 48  ;;  %518 = vmatprep.subr.bf16.mxu0 (!%p237_p2), %v558_v7  ;;  %524 = vmatprep.subr.bf16.mxu1 (!%p237_p2), %v558_v7  ;;  %v311_v10 = vld [vmem:[%s659_s4 + $0x8] sm:$0xff] (!%p237_p2)  ;;  %v507_v15 = vld [vmem:[%s656_s1] ss:$0 sm:$0xff] (!%p237_p2)  ;;  %vm330_vm2 = vcmask (!%p237_p2), 1043456   ;;  %vm401_vm3 = vcmask (!%p237_p2), 130048  }
   0x7   : > { %520 = vmatprep.mubr.msk.bf16.mxu0 (!%p237_p2), %vm559_vm1, %v558_v7  ;;  %526 = vmatprep.mubr.msk.bf16.mxu1 (!%p237_p2), %vm559_vm1, %v558_v7  ;;  %v508_v17 = vld [vmem:[%s657_s2] ss:$0 sm:$0xff] (!%p237_p2) }
   0x8   : > { %541 = vset.pattern.permute.xlu1 (!%p237_p2), %v560_v9  ;;  %542 = vset.pattern.permute.xlu0 (!%p237_p2), %v560_v9  ;;  %v543_v22 = vld [vmem:[%s658_s3] sm:$0xff] (!%p237_p2)  }
   0x9   : > { %314 = vperm.xlu1 (!%p237_p2), %541, %v310_v8   ;;  %v395_v23 = vld [vmem:[%s661_s6] sm:$0xff] (!%p237_p2) }
   0xa   : > { %v394_v51 = vld [vmem:[%s660_s5] sm:$0xf] (!%p237_p2) }
   0xd   : > { %s664_s25 = smov (!%p266_p3, %s500_s25), 1  ;;  %319 = vperm.xlu1 %541, %v311_v10  }
   0xe   : > { %s505_s26 = sshll.u32 %s664_s25, 3 }
   0xf   : > { %s269_s29 = scalar_lea.vmem %s655_s0, %s505_s26  ;;  %s273_s23 = scalar_lea.vmem %s662_s7, %s505_s26 }
  0x10   : > { %v617_v0 = vld [vmem:[%s269_s29] sm:$0xff] }
  0x11   : > { %v279_v1 = vsel %vm278_vm0, %v617_v0, 0.0 }
  0x12   : > { %280 = vadd.xlane.f32.xlu0 %v279_v1 }
  0x88   : > { %v315_v24 = vpop.permute.xlu1 %314 }
  0x8c   : > { %v320_v28 = vpop.permute.xlu1 %319 }
  0x9f   : > { %v281_v2 = vpop.xlane.xlu0 %280 }
  0xa0   : > { %v283_v3 = vmul.f32 0.125, %v281_v2 }
  0xa2   : > { %v284_v4 = vsub.f32 %v617_v0, %v283_v3 }
  0xa4   : > { %v285_v5 = vmul.f32 %v284_v4, %v284_v4 }
  0xa6   : > { %v286_v6 = vsel %vm278_vm0, %v285_v5, 0.0 }
  0xa7   : > { %287 = vadd.xlane.f32.xlu0 %v286_v6 }
  0xbd   : > { %398 = vperm.xlu0 %542, %v395_v23  }
 0x134   : > { %v288_v11 = vpop.xlane.xlu0 %287 }
 0x135   : > { %v289_v12 = vmul.f32 0.125, %v288_v11 }
 0x137   : > { %v290_v13 = vadd.f32 1e-05, %v289_v12 }
 0x139   : > { %544 = vrsqrt.f32 %v290_v13 }
 0x13c   : > { %v399_v52 = vpop.permute.xlu0 %398 }
 0x143   : > { %v545_v14 = vpop.eup %544 }
 0x144   : > { %v292_v16 = vmul.f32 %v545_v14, %v284_v4 }
 0x146   : > { %v299_v18 = vmul.f32 %v507_v15, %v292_v16 }
 0x148   : > { %v306_v19 = vadd.f32 %v508_v17, %v299_v18 }
 0x14a   : > { %v307_v20 = vpack.c.bf16 %v306_v19, %v306_v19 }
 0x14c   : > { %v332_v21 = vsel %vm330_vm2, %v307_v20, 0 }
 0x14d   : > { %519 = vmatpush3.bf16.msra.mxu0 %v332_v21 }
 0x150   : > { %521 = vmatmul.mubr.msk.bf16.vlgmr.msra.gmra.mrb[0].mxu0 %vm278_vm0, %v543_v22 }
 0x223   : > { %v368_v25 = vpop.f32.mrb[0].mxu0 }
 0x224   : > { %v369_v26 = vadd.f32 %v368_v25, %v315_v24  ;;  %v522_v27 = vpop.f32.mrb[1].mxu0 }
 0x225   : > { %v371_v29 = vpop.f32.mrb[2].mxu0 }
 0x226   : > { %v377_v30 = vmul.f32 0.044715, %v369_v26  ;;  %v372_v31 = vadd.f32 %v371_v29, %v320_v28  ;;  %v523_v32 = vpop.f32.mrb[3].mxu0  ;;  %v375_v45 = vmul.f32 0.5, %v369_v26 }
 0x228   : > { %v379_v33 = vmul.f32 %v377_v30, %v369_v26  ;;  %v378_v34 = vmul.f32 0.044715, %v372_v31  ;;  %v376_v46 = vmul.f32 0.5, %v372_v31 }
 0x22a   : > { %v380_v35 = vmul.f32 %v378_v34, %v372_v31  ;;  %v381_v36 = vmul.f32 %v379_v33, %v369_v26 }
 0x22c   : > { %v382_v37 = vmul.f32 %v380_v35, %v372_v31  ;;  %v383_v38 = vadd.f32 %v381_v36, %v369_v26 }
 0x22e   : > { %v384_v39 = vadd.f32 %v382_v37, %v372_v31  ;;  %v385_v40 = vmul.f32 0.7978846, %v383_v38 }
 0x230   : > { %v386_v41 = vmul.f32 0.7978846, %v384_v39  ;;  %546 = vtanh.f32 %v385_v40 }
 0x232   : > { %548 = vtanh.f32 %v386_v41 }
 0x23a   : > { %v547_v42 = vpop.eup %546 }
 0x23b   : > { %v389_v43 = vadd.f32 1.0, %v547_v42 }
 0x23c   : > { %v549_v44 = vpop.eup %548 }
 0x23d   : > { %v390_v47 = vadd.f32 1.0, %v549_v44  ;;  %v391_v48 = vmul.f32 %v389_v43, %v375_v45 }
 0x23f   : > { %v392_v49 = vmul.f32 %v390_v47, %v376_v46 }
 0x241   : > { %v393_v50 = vpack.c.bf16 %v392_v49, %v391_v48 }
 0x243   : > { %525 = vmatpush3.bf16.msra.mxu1 %v393_v50 }
 0x246   : > { %527 = vmatmul.mubr.msk.bf16.vlgmr.msra.gmra.mrb[0].mxu1 %vm401_vm3, %v394_v51 }
 0x319   : > { %v439_v53 = vpop.f32.mrb[0].mxu1 }
 0x31a   : > { %v440_v54 = vadd.f32 %v439_v53, %v399_v52  ;;  %v528_v55 = vpop.f32.mrb[1].mxu1 }
 0x31b   : > { %v442_v56 = vpop.f32.mrb[2].mxu1 }
 0x31c   : > { %v445_v57 = vadd.f32 %v440_v54, %v617_v0  ;;  %v529_v58 = vpop.f32.mrb[3].mxu1 }
 0x31e   : > { %446 = vst.msk [vmem:[%s273_s23] sm:$0xff] %vm278_vm0, %v445_v57 }
 0x31f PF: > { %s17_s24 = sadd.s32 1, %s556_s24  }
 0x320   : > { %p14_p4 = scmp.ge.s32.totalorder %s17_s24, 4  }
 0x322   :  { %16 = sbr.rel (!%p14_p4) target bundleno = 1 (0x1), region = 78 }

// kernel: forward.25
= control target key start
LH: loop header
LB: loop body
LE: loop exit
PB: predicated region body
PF: predicated region fallthrough
CT: control target
= control target key end

     0   :  { %s585_s24 = smov 0   ;;  %s631_s0 = inlined_call_operand.vmem [shape: f32[16,8], index: 0, kind: input, shape index: {}]   ;;  %s632_s1 = inlined_call_operand.vmem [shape: f32[1,8], index: 1, kind: input, shape index: {}]   ;;  %s633_s2 = inlined_call_operand.vmem [shape: f32[1,8], index: 2, kind: input, shape index: {}]   ;;  %s634_s3 = inlined_call_operand.vmem [shape: bf16[8,16], index: 3, kind: input, shape index: {}]   ;;  %s635_s4 = inlined_call_operand.vmem [shape: f32[1,16], index: 4, kind: input, shape index: {}]   ;;  %s636_s5 = inlined_call_operand.vmem [shape: bf16[16,8], index: 5, kind: input, shape index: {}]   ;;  %s637_s6 = inlined_call_operand.vmem [shape: f32[1,8], index: 6, kind: input, shape index: {}]   ;;  %s638_s7 = inlined_call_operand.vmem [shape: f32[16,8], index: 7, kind: output, shape index: {}]  }
   0x1 LB: > { %s488_s25 = sadd.s32 4294967295, %s541_s24   ;;  %p492_p0 = scmp.ge.s32.totalorder %s541_s24, 1  ;;  %s541_s24 = sphi %s585_s24, %s17_s24  }
   0x2   : > { %p236_p1 = scmp.lt.s32.totalorder %s541_s24, 3 }
   0x4   : > { %p237_p2 = pnand %p492_p0, %p236_p1 }
   0x5   : > { %p266_p3 = scmp.lt.s32.totalorder (!%p237_p2), %s488_s25, 1  ;;  %vm278_vm0 = vcmask (!%p237_p2), 64512   ;;  %v308_v7 = vld [vmem:[%s634_s3] sm:$0xf] (!%p237_p2)  ;;  %vm319_vm1 = vcmask (!%p237_p2), 1043456   ;;  %v543_v8 = vmov (!%p237_p2), 0.0  }
   0x6   : > { %240 = sbr.rel (%p237_p2) target bundleno = 790 (0x316), region = 48  ;;  %508 = vmatprep.subr.bf16.mxu0 (!%p237_p2), %v543_v8  ;;  %v321_v9 = vsel (!%p237_p2), %vm319_vm1, %v308_v7, 0  ;;  %vm544_vm2 = vmmov (!%p237_p2), 0   ;;  %514 = vmatprep.subr.bf16.mxu1 (!%p237_p2), %v543_v8  ;;  %v495_v14 = vld [vmem:[%s632_s1] ss:$0 sm:$0xff] (!%p237_p2)  ;;  %vm381_vm3 = vcmask (!%p237_p2), 130048  }
   0x7   : > { %510 = vmatprep.mubr.msk.bf16.mxu0 (!%p237_p2), %vm544_vm2, %v543_v8  ;;  %509 = vmatpush3.bf16.msra.mxu0 (!%p237_p2), %v321_v9  ;;  %v496_v16 = vld [vmem:[%s633_s2] ss:$0 sm:$0xff] (!%p237_p2) }
   0x8   : > { %516 = vmatprep.mubr.msk.bf16.mxu1 (!%p237_p2), %vm544_vm2, %v543_v8  ;;  %v530_v20 = vld [vmem:[%s636_s5] sm:$0xff] (!%p237_p2)  }
   0x9   : > { %515 = vmatpush3.bf16.msra.mxu1 (!%p237_p2), %v530_v20  ;;  %v497_v21 = vld [vmem:[%s635_s4] ss:$0 sm:$0xff] (!%p237_p2) }
   0xa   : > { %v501_v38 = vld [vmem:[%s637_s6] ss:$0 sm:$0xff] (!%p237_p2) }
   0xd   : > { %s640_s25 = smov (!%p266_p3, %s488_s25), 1 }
   0xe   : > { %s493_s26 = sshll.u32 %s640_s25, 3 }
   0xf   : > { %s269_s29 = scalar_lea.vmem %s631_s0, %s493_s26  ;;  %s273_s21 = scalar_lea.vmem %s638_s7, %s493_s26 }
  0x10   : > { %v275_v0 = vld [vmem:[%s269_s29] sm:$0xff] }
  0x11   : > { %v279_v1 = vsel %vm278_vm0, %v275_v0, 0.0 }
  0x12   : > { %280 = vadd.xlane.f32.xlu0 %v279_v1 }
  0x9f   : > { %v281_v2 = vpop.xlane.xlu0 %280 }
  0xa0   : > { %v283_v3 = vmul.f32 0.125, %v281_v2 }
  0xa2   : > { %v284_v4 = vsub.f32 %v275_v0, %v283_v3 }
  0xa4   : > { %v285_v5 = vmul.f32 %v284_v4, %v284_v4 }
  0xa6   : > { %v286_v6 = vsel %vm278_vm0, %v285_v5, 0.0 }
  0xa7   : > { %287 = vadd.xlane.f32.xlu0 %v286_v6 }
 0x134   : > { %v288_v10 = vpop.xlane.xlu0 %287 }
 0x135   : > { %v289_v11 = vmul.f32 0.125, %v288_v10 }
 0x137   : > { %v290_v12 = vadd.f32 1e-05, %v289_v11 }
 0x139   : > { %531 = vrsqrt.f32 %v290_v12 }
 0x143   : > { %v532_v13 = vpop.eup %531 }
 0x144   : > { %v292_v15 = vmul.f32 %v532_v13, %v284_v4 }
 0x146   : > { %v299_v17 = vmul.f32 %v495_v14, %v292_v15 }
 0x148   : > { %v306_v18 = vadd.f32 %v496_v16, %v299_v17 }
 0x14a   : > { %v307_v19 = vpack.c.bf16 %v306_v18, %v306_v18 }
 0x14c   : > { %511 = vmatmul.mubr.msk.bf16.vlgmr.msra.gmra.mrb[0].mxu0 %vm278_vm0, %v307_v19 }
 0x21f   : > { %v357_v22 = vpop.f32.mrb[0].mxu0 }
 0x220   : > { %v358_v23 = vadd.f32 %v497_v21, %v357_v22  ;;  %v512_v24 = vpop.f32.mrb[1].mxu0 }
 0x221   : > { %v360_v25 = vpop.f32.mrb[2].mxu0 }
 0x222   : > { %v364_v26 = vmul.f32 0.044715, %v358_v23  ;;  %v513_v27 = vpop.f32.mrb[3].mxu0  ;;  %v363_v33 = vmul.f32 0.5, %v358_v23 }
 0x224   : > { %v365_v28 = vmul.f32 %v364_v26, %v358_v23 }
 0x226   : > { %v366_v29 = vmul.f32 %v365_v28, %v358_v23 }
 0x228   : > { %v367_v30 = vadd.f32 %v366_v29, %v358_v23 }
 0x22a   : > { %v368_v31 = vmul.f32 0.7978846, %v367_v30 }
 0x22c   : > { %533 = vtanh.f32 %v368_v31 }
 0x236   : > { %v534_v32 = vpop.eup %533 }
 0x237   : > { %v370_v34 = vadd.f32 1.0, %v534_v32 }
 0x239   : > { %v371_v35 = vmul.f32 %v370_v34, %v363_v33 }
 0x23b   : > { %v372_v36 = vpack.c.bf16 %v371_v35, %v371_v35 }
 0x23d   : > { %517 = vmatmul.mubr.msk.bf16.vlgmr.msra.gmra.mrb[0].mxu1 %vm381_vm3, %v372_v36 }
 0x310   : > { %v419_v37 = vpop.f32.mrb[0].mxu1 }
 0x311   : > { %v425_v39 = vadd.f32 %v419_v37, %v275_v0  ;;  %v518_v40 = vpop.f32.mrb[1].mxu1 }
 0x312   : > { %v422_v41 = vpop.f32.mrb[2].mxu1 }
 0x313   : > { %v433_v42 = vadd.f32 %v501_v38, %v425_v39  ;;  %v519_v43 = vpop.f32.mrb[3].mxu1 }
 0x315   : > { %434 = vst.msk [vmem:[%s273_s21] sm:$0xff] %vm278_vm0, %v433_v42 }
 0x316 PF: > { %s17_s24 = sadd.s32 1, %s541_s24  }
 0x317   : > { %p14_p4 = scmp.ge.s32.totalorder %s17_s24, 4  }
 0x319   :  { %16 = sbr.rel (!%p14_p4) target bundleno = 1 (0x1), region = 78 }

// kernel: forward.30
= control target key start
LH: loop header
LB: loop body
LE: loop exit
PB: predicated region body
PF: predicated region fallthrough
CT: control target
= control target key end

     0   :  { %s521_s12 = smov 0   ;;  %s523_s13 = smov 0   ;;  %s563_s0 = inlined_call_operand.vmem [shape: bf16[16,8], index: 0, kind: input, shape index: {}]   ;;  %s564_s1 = inlined_call_operand.vmem [shape: bf16[8,24], index: 1, kind: input, shape index: {}]   ;;  %s565_s2 = inlined_call_operand.vmem [shape: f32[1,24], index: 2, kind: input, shape index: {}]   ;;  %s566_s3 = inlined_call_operand.vmem [shape: f32[16,24], index: 3, kind: output, shape index: {}]  }
   0x1   :  { %s525_s14 = smov 0  }
   0x2 LB: > { %s32_s15 = sadd.s32 1, %s493_s13  ;;  %p434_p0 = scmp.ge.s32.totalorder %s497_s14, 1  ;;  %s497_s14 = sphi %s525_s14, %s13_s14   ;;  %s493_s13 = sphi %s523_s13, %s568_s13   ;;  %s489_s12 = sphi %s521_s12, %s567_s12  }
   0x3   : > { %p34_p1 = scmp.ge.s32.totalorder %s32_s15, 2  ;;  %p184_p2 = scmp.lt.s32.totalorder %s497_s14, 3 }
   0x5   : > { %s570_s15 = smov (%p34_p1, %s32_s15), 0  ;;  %p185_p3 = pnand %p434_p0, %p184_p2 }
   0x6   : > { %vm251_vm0 = vcmask (!%p185_p3), 195584   ;;  %v255_v0 = vld [vmem:[%s564_s1] sm:$0xf] (!%p185_p3)  ;;  %vm260_vm1 = vcmask (!%p185_p3), 1043456   ;;  %v499_v1 = vmov (!%p185_p3), 0.0   ;;  %vm500_vm2 = vmmov (!%p185_p3), 0  }
   0x7   : > { %188 = sbr.rel (%p185_p3) target bundleno = 243 (0xf3), region = 32  ;;  %252 = vst.msk [vmem:[#allocation2] sm:$0xff] (!%p185_p3), %vm251_vm0, %v499_v1  ;;  %443 = vmatprep.subr.bf16.mxu0 (!%p185_p3), %v499_v1  ;;  %v262_v2 = vsel (!%p185_p3), %vm260_vm1, %v255_v0, 0  ;;  %445 = vmatprep.mubr.msk.bf16.mxu0 (!%p185_p3), %vm500_vm2, %v499_v1  ;;  %p222_p4 = scmp.lt.s32.totalorder (!%p185_p3), %s489_s12, 1  ;;  %vm256_vm3 = vcmask (!%p185_p3), 64512  }
   0x8   : > { %444 = vmatpush3.bf16.msra.mxu0 (!%p185_p3), %v262_v2  ;;  %v438_v10 = vld [vmem:[%s565_s2] ss:$0 sm:$0xff] (!%p185_p3) }
   0xe   : > { %s572_s12 = smov (!%p222_p4, %s489_s12), 1  ;;  %v253_v4 = vld [vmem:[#allocation2] sm:$0xff] }
   0xf   : > { %s435_s18 = sshll.u32 %s572_s12, 2  ;;  %s436_s22 = sshll.u32 %s572_s12, 3 }
  0x10   : > { %s228_s21 = scalar_lea.vmem %s563_s0, %s435_s18  ;;  %s245_s27 = scalar_lea.vmem %s566_s3, %s436_s22 }
  0x11   : > { %v254_v3 = vld [vmem:[%s228_s21] sm:$0xf] }
  0x12   : > { %446 = vmatmul.mubr.msk.bf16.vlgmr.msra.gmra.mrb[0].mxu0 %vm256_vm3, %v254_v3 }
  0xe5   : > { %v298_v5 = vpop.f32.mrb[0].mxu0 }
  0xe6   : > { %v304_v6 = vadd.f32 %v298_v5, %v253_v4  ;;  %v447_v7 = vpop.f32.mrb[1].mxu0 }
  0xe7   : > { %v301_v8 = vpop.f32.mrb[2].mxu0 }
  0xe8   : > { %306 = vst.msk [vmem:[#allocation2] sm:$0xff] %vm251_vm0, %v304_v6  ;;  %v448_v9 = vpop.f32.mrb[3].mxu0 }
  0xef   : > { %v310_v11 = vld [vmem:[#allocation2] sm:$0xff] }
  0xf0   : > { %v318_v12 = vadd.f32 %v438_v10, %v310_v11 }
  0xf2   : > { %319 = vst.msk [vmem:[%s245_s27] sm:$0xff] %vm251_vm0, %v318_v12 }
  0xf3 PF: > { %s13_s14 = sadd.s32 1, %s497_s14   ;;  %s567_s12 = smov %s493_s13 }
  0xf4   : > { %p10_p5 = scmp.ge.s32.totalorder %s13_s14, 4   ;;  %s568_s13 = smov %s570_s15 }
  0xf6   :  { %12 = sbr.rel (!%p10_p5) target bundleno = 2 (0x2), region = 76 }

// kernel: forward.31
= control target key start
LH: loop header
LB: loop body
LE: loop exit
PB: predicated region body
PF: predicated region fallthrough
CT: control target
= control target key end

     0   :  { %s734_s20 = smov 120   ;;  %s735_s21 = smov 124   ;;  %vm29_vm0 = vcmask 31744   ;;  %vm335_vm1 = vcmask 1041408   ;;  %vm738_vm2 = vmmov 0   ;;  %vm431_vm3 = vcmask 64512   ;;  %s916_s0 = inlined_call_operand.vmem [shape: f32[2,8,24], index: 0, kind: input, shape index: {}]   ;;  %s917_s2 = inlined_call_operand.vmem [shape: bf16[2,4,8], index: 2, kind: input, shape index: {}]   ;;  %s918_s1 = inlined_call_operand.vmem [shape: f32[2,8,8], index: 1, kind: input, shape index: {}]   ;;  %s919_s3 = inlined_call_operand.vmem [shape: f32[1,8], index: 3, kind: input, shape index: {}]   ;;  %s920_s4 = inlined_call_operand.vmem [shape: f32[1,8], index: 4, kind: input, shape index: {}]   ;;  %s921_s5 = inlined_call_operand.vmem [shape: f32[2,8,8], index: 5, kind: output, shape index: {}]  }
   0x1   :  { %v773_v0 = vld [vmem:[%s916_s0] sm:$0xff]  ;;  %v781_v1 = vld [vmem:[%s916_s0 + $0x8] sm:$0xff]  ;;  %s736_s0 = smov 116   ;;  %s739_s28 = smov 112  }
   0x2   :  { %24 = vrot.lane.b32.xlu0 %v773_v0, %s734_s20  ;;  %162 = vrot.lane.b32.xlu1 %v773_v0, %s735_s21 }
   0x6   :  { %92 = vrot.lane.b32.xlu0 %v781_v1, %s734_s20  ;;  %239 = vrot.lane.b32.xlu1 %v781_v1, %s735_s21 }
  0x74   :  { %v25_v2 = vpop.permute.xlu0 %24  ;;  %v163_v8 = vpop.permute.xlu1 %162 }
  0x75   :  { %v27_v3 = vmul.f32 %v25_v2, %v773_v0  ;;  %v28_v4 = vmul.f32 %v25_v2, %v781_v1  ;;  %v165_v9 = vmul.f32 %v163_v8, %v773_v0  ;;  %v166_v10 = vmul.f32 %v163_v8, %v781_v1 }
  0x77   :  { %203 = vrot.lane.b32.xlu1 %v28_v4, %s735_s21  ;;  %201 = vrot.lane.b32.xlu0 %v27_v3, %s735_s21  ;;  %v30_v40 = vsel %vm29_vm0, %v27_v3, 0.0  ;;  %v33_v41 = vsel %vm29_vm0, %v28_v4, 0.0 }
  0x78   :  { %v93_v5 = vpop.permute.xlu0 %92  ;;  %v240_v11 = vpop.permute.xlu1 %239 }
  0x79   :  { %v95_v6 = vmul.f32 %v93_v5, %v773_v0  ;;  %v96_v7 = vmul.f32 %v93_v5, %v781_v1  ;;  %v242_v12 = vmul.f32 %v240_v11, %v773_v0  ;;  %v243_v13 = vmul.f32 %v240_v11, %v781_v1 }
  0x7b   :  { %280 = vrot.lane.b32.xlu1 %v96_v7, %s735_s21  ;;  %278 = vrot.lane.b32.xlu0 %v95_v6, %s735_s21  ;;  %v97_v42 = vsel %vm29_vm0, %v95_v6, 0.0  ;;  %v100_v43 = vsel %vm29_vm0, %v96_v7, 0.0 }
  0x7f   :  { %54 = vrot.lane.b32.xlu0 %v773_v0, %s736_s0  ;;  %121 = vrot.lane.b32.xlu1 %v781_v1, %s736_s0 }
  0x83   :  { %169 = vrot.lane.b32.xlu0 %v165_v9, %s735_s21  ;;  %171 = vrot.lane.b32.xlu1 %v166_v10, %s735_s21 }
  0x87   :  { %246 = vrot.lane.b32.xlu0 %v242_v12, %s735_s21  ;;  %248 = vrot.lane.b32.xlu1 %v243_v13, %s735_s21 }
  0xe9   :  { %v204_v14 = vpop.permute.xlu1 %203  ;;  %v202_v15 = vpop.permute.xlu0 %201 }
  0xea   :  { %v210_v16 = vsel %vm29_vm0, %v204_v14, 0.0  ;;  %v207_v17 = vsel %vm29_vm0, %v202_v15, 0.0 }
  0xeb   :  { %211 = vadd.xlane.f32.xlu1 %v210_v16  ;;  %208 = vadd.xlane.f32.xlu0 %v207_v17 }
  0xed   :  { %v281_v18 = vpop.permute.xlu1 %280  ;;  %v279_v19 = vpop.permute.xlu0 %278 }
  0xee   :  { %v284_v20 = vsel %vm29_vm0, %v279_v19, 0.0  ;;  %v287_v25 = vsel %vm29_vm0, %v281_v18, 0.0 }
  0xef   :  { %285 = vadd.xlane.f32.xlu0 %v284_v20 }
  0xf1   :  { %v55_v21 = vpop.permute.xlu0 %54  ;;  %v122_v22 = vpop.permute.xlu1 %121 }
  0xf2   :  { %v57_v23 = vmul.f32 %v55_v21, %v773_v0  ;;  %v58_v24 = vmul.f32 %v55_v21, %v781_v1  ;;  %v124_v26 = vmul.f32 %v122_v22, %v773_v0  ;;  %v125_v27 = vmul.f32 %v122_v22, %v781_v1 }
  0xf3   :  { %288 = vadd.xlane.f32.xlu0 %v287_v25 }
  0xf4   :  { %v59_v28 = vsel %vm29_vm0, %v57_v23, 0.0  ;;  %v62_v29 = vsel %vm29_vm0, %v58_v24, 0.0  ;;  %v126_v31 = vsel %vm29_vm0, %v124_v26, 0.0  ;;  %v129_v33 = vsel %vm29_vm0, %v125_v27, 0.0 }
  0xf5   :  { %60 = vadd.xlane.f32.xlu1 %v59_v28  ;;  %v170_v30 = vpop.permute.xlu0 %169  ;;  %v172_v32 = vpop.permute.xlu1 %171 }
  0xf6   :  { %v175_v34 = vsel %vm29_vm0, %v170_v30, 0.0  ;;  %v178_v36 = vsel %vm29_vm0, %v172_v32, 0.0 }
  0xf7   :  { %63 = vadd.xlane.f32.xlu0 %v62_v29 }
  0xf9   :  { %127 = vadd.xlane.f32.xlu1 %v126_v31  ;;  %v247_v35 = vpop.permute.xlu0 %246  ;;  %v249_v37 = vpop.permute.xlu1 %248 }
  0xfa   :  { %v252_v38 = vsel %vm29_vm0, %v247_v35, 0.0  ;;  %v255_v39 = vsel %vm29_vm0, %v249_v37, 0.0 }
  0xfb   :  { %130 = vadd.xlane.f32.xlu0 %v129_v33 }
  0xfd   :  { %176 = vadd.xlane.f32.xlu1 %v175_v34 }
  0xff   :  { %179 = vadd.xlane.f32.xlu0 %v178_v36 }
 0x101   :  { %253 = vadd.xlane.f32.xlu1 %v252_v38 }
 0x103   :  { %256 = vadd.xlane.f32.xlu0 %v255_v39 }
 0x105   :  { %31 = vadd.xlane.f32.xlu1 %v30_v40 }
 0x107   :  { %34 = vadd.xlane.f32.xlu0 %v33_v41 }
 0x109   :  { %98 = vadd.xlane.f32.xlu1 %v97_v42 }
 0x10b   :  { %101 = vadd.xlane.f32.xlu0 %v100_v43 }
 0x178   :  { %v212_v44 = vpop.xlane.xlu1 %211  ;;  %v209_v45 = vpop.xlane.xlu0 %208 }
 0x179   :  { %v598_v46 = vmul.f32 -1.442695, %v212_v44  ;;  %v597_v47 = vmul.f32 -1.442695, %v209_v45 }
 0x17b   :  { %658 = vpow2.f32 %v598_v46 }
 0x17c   :  { %660 = vpow2.f32 %v597_v47  ;;  %v286_v48 = vpop.xlane.xlu0 %285 }
 0x17d   :  { %v601_v49 = vmul.f32 -1.442695, %v286_v48 }
 0x17f   :  { %662 = vpow2.f32 %v601_v49 }
 0x180   :  { %v289_v50 = vpop.xlane.xlu0 %288 }
 0x181   :  { %v602_v51 = vmul.f32 -1.442695, %v289_v50 }
 0x182   :  { %v61_v52 = vpop.xlane.xlu1 %60 }
 0x183   :  { %664 = vpow2.f32 %v602_v51  ;;  %v589_v53 = vmul.f32 -1.442695, %v61_v52  ;;  %v737_v52 = vmov 0.0  }
 0x184   :  { %v64_v54 = vpop.xlane.xlu0 %63  ;;  %620 = vmatprep.subr.bf16.mxu0 %v737_v52  ;;  %622 = vmatprep.mubr.msk.bf16.mxu0 %vm738_vm2, %v737_v52 }
 0x185   :  { %v659_v55 = vpop.eup %658  ;;  %666 = vpow2.f32 %v589_v53  ;;  %v590_v56 = vmul.f32 -1.442695, %v64_v54  ;;  %v603_v53 = vld [vmem:[%s917_s2 + $0x2] sm:$0x3]  ;;  %632 = vmatprep.subr.bf16.mxu1 %v737_v52  ;;  %634 = vmatprep.mubr.msk.bf16.mxu1 %vm738_vm2, %v737_v52 }
 0x186   :  { %v661_v57 = vpop.eup %660  ;;  %v220_v58 = vadd.f32 1.0, %v659_v55  ;;  %v128_v59 = vpop.xlane.xlu1 %127  ;;  %v337_v55 = vsel %vm335_vm1, %v603_v53, 0 }
 0x187   :  { %v219_v60 = vadd.f32 1.0, %v661_v57  ;;  %668 = vpow2.f32 %v590_v56  ;;  %v593_v61 = vmul.f32 -1.442695, %v128_v59  ;;  %621 = vmatpush3.bf16.msra.mxu0 %v337_v55 }
 0x188   :  { %670 = vrcp.f32 %v220_v58  ;;  %v131_v62 = vpop.xlane.xlu0 %130  ;;  %626 = vmatprep.subr.bf16.mxu0 %v737_v52 }
 0x189   :  { %v663_v63 = vpop.eup %662  ;;  %672 = vrcp.f32 %v219_v60  ;;  %v594_v2 = vmul.f32 -1.442695, %v131_v62 }
 0x18a   :  { %v296_v3 = vadd.f32 1.0, %v663_v63  ;;  %674 = vpow2.f32 %v593_v61  ;;  %v177_v4 = vpop.xlane.xlu1 %176 }
 0x18b   :  { %676 = vpow2.f32 %v594_v2  ;;  %v595_v5 = vmul.f32 -1.442695, %v177_v4 }
 0x18c   :  { %678 = vrcp.f32 %v296_v3  ;;  %v180_v6 = vpop.xlane.xlu0 %179 }
 0x18d   :  { %v665_v7 = vpop.eup %664  ;;  %680 = vpow2.f32 %v595_v5  ;;  %v596_v8 = vmul.f32 -1.442695, %v180_v6 }
 0x18e   :  { %v297_v9 = vadd.f32 1.0, %v665_v7  ;;  %v254_v10 = vpop.xlane.xlu1 %253 }
 0x18f   :  { %v667_v11 = vpop.eup %666  ;;  %682 = vpow2.f32 %v596_v8  ;;  %v599_v12 = vmul.f32 -1.442695, %v254_v10 }
 0x190   :  { %684 = vrcp.f32 %v297_v9  ;;  %v71_v13 = vadd.f32 1.0, %v667_v11  ;;  %v257_v14 = vpop.xlane.xlu0 %256 }
 0x191   :  { %v669_v15 = vpop.eup %668  ;;  %686 = vpow2.f32 %v599_v12  ;;  %v600_v16 = vmul.f32 -1.442695, %v257_v14 }
 0x192   :  { %v824_v17 = vpop.eup %670  ;;  %688 = vrcp.f32 %v71_v13  ;;  %v72_v18 = vadd.f32 1.0, %v669_v15  ;;  %v32_v19 = vpop.xlane.xlu1 %31 }
 0x193   :  { %v826_v20 = vpop.eup %672  ;;  %690 = vpow2.f32 %v600_v16  ;;  %v587_v21 = vmul.f32 -1.442695, %v32_v19  ;;  %v228_v22 = vmul.f32 %v824_v17, %v773_v0 }
 0x194   :  { %v675_v23 = vpop.eup %674  ;;  %692 = vrcp.f32 %v72_v18  ;;  %v35_v24 = vpop.xlane.xlu0 %34  ;;  %v227_v25 = vmul.f32 %v826_v20, %v773_v0 }
 0x195   :  { %v677_v26 = vpop.eup %676  ;;  %v138_v27 = vadd.f32 1.0, %v675_v23  ;;  %694 = vpow2.f32 %v587_v21  ;;  %v588_v28 = vmul.f32 -1.442695, %v35_v24  ;;  %233 = vrot.lane.b32.xlu0 %v228_v22, %s735_s21 }
 0x196   :  { %v833_v29 = vpop.eup %678  ;;  %v139_v30 = vadd.f32 1.0, %v677_v26  ;;  %231 = vrot.lane.b32.xlu1 %v227_v25, %s735_s21  ;;  %v99_v31 = vpop.xlane.xlu1 %98 }
 0x197   :  { %v681_v32 = vpop.eup %680  ;;  %696 = vrcp.f32 %v138_v27  ;;  %v591_v33 = vmul.f32 -1.442695, %v99_v31  ;;  %v304_v34 = vmul.f32 %v833_v29, %v781_v1 }
 0x198   :  { %698 = vrcp.f32 %v139_v30  ;;  %v187_v35 = vadd.f32 1.0, %v681_v32  ;;  %v102_v36 = vpop.xlane.xlu0 %101 }
 0x199   :  { %v683_v37 = vpop.eup %682  ;;  %700 = vpow2.f32 %v588_v28  ;;  %v592_v38 = vmul.f32 -1.442695, %v102_v36 }
 0x19a   :  { %v685_v39 = vpop.eup %684  ;;  %702 = vrcp.f32 %v187_v35  ;;  %v188_v40 = vadd.f32 1.0, %v683_v37  ;;  %308 = vrot.lane.b32.xlu1 %v304_v34, %s735_s21 }
 0x19b   :  { %v687_v41 = vpop.eup %686  ;;  %704 = vpow2.f32 %v591_v33  ;;  %v305_v42 = vmul.f32 %v685_v39, %v781_v1 }
 0x19c   :  { %v689_v43 = vpop.eup %688  ;;  %706 = vrcp.f32 %v188_v40  ;;  %v264_v44 = vadd.f32 1.0, %v687_v41 }
 0x19d   :  { %v691_v45 = vpop.eup %690  ;;  %708 = vpow2.f32 %v592_v38  ;;  %v79_v46 = vmul.f32 %v689_v43, %v773_v0 }
 0x19e   :  { %v693_v47 = vpop.eup %692  ;;  %710 = vrcp.f32 %v264_v44  ;;  %v265_v48 = vadd.f32 1.0, %v691_v45  ;;  %310 = vrot.lane.b32.xlu1 %v305_v42, %s735_s21 }
 0x19f   :  { %v695_v49 = vpop.eup %694  ;;  %83 = vrot.lane.b32.xlu0 %v79_v46, %s735_s21  ;;  %v80_v50 = vmul.f32 %v693_v47, %v773_v0 }
 0x1a0   :  { %712 = vrcp.f32 %v265_v48  ;;  %v42_v51 = vadd.f32 1.0, %v695_v49 }
 0x1a1   :  { %v697_v54 = vpop.eup %696 }
 0x1a2   :  { %v699_v56 = vpop.eup %698  ;;  %85 = vrot.lane.b32.xlu1 %v80_v50, %s735_s21  ;;  %v146_v57 = vmul.f32 %v697_v54, %v781_v1  ;;  %714 = vrcp.f32 %v42_v51 }
 0x1a3   :  { %v701_v58 = vpop.eup %700  ;;  %v147_v59 = vmul.f32 %v699_v56, %v781_v1 }
 0x1a4   :  { %v703_v60 = vpop.eup %702  ;;  %v43_v61 = vadd.f32 1.0, %v701_v58  ;;  %150 = vrot.lane.b32.xlu0 %v146_v57, %s735_s21 }
 0x1a5   :  { %v705_v62 = vpop.eup %704  ;;  %v225_v4 = vadd.f32 %v703_v60, %v826_v20  ;;  %v195_v24 = vmul.f32 %v703_v60, %v773_v0 }
 0x1a6   :  { %v707_v63 = vpop.eup %706  ;;  %716 = vrcp.f32 %v43_v61  ;;  %v109_v2 = vadd.f32 1.0, %v705_v62  ;;  %152 = vrot.lane.b32.xlu1 %v147_v59, %s735_s21 }
 0x1a7   :  { %v709_v3 = vpop.eup %708  ;;  %v226_v7 = vadd.f32 %v707_v63, %v824_v17  ;;  %v608_v17 = vld [vmem:[%s917_s2 + $0x2] sm:$0x3] }
 0x1a8   :  { %v711_v5 = vpop.eup %710  ;;  %718 = vrcp.f32 %v109_v2  ;;  %v110_v6 = vadd.f32 1.0, %v709_v3  ;;  %v472_v25 = vsel %vm335_vm1, %v608_v17, 0 }
 0x1a9   :  { %v270_v8 = vadd.f32 %v711_v5, %v225_v4  ;;  %633 = vmatpush3.bf16.msra.mxu1 %v472_v25  ;;  %v272_v30 = vmul.f32 %v711_v5, %v781_v1  ;;  %v462_v5 = vld [vmem:[%s917_s2] sm:$0x3] }
 0x1aa   :  { %v713_v9 = vpop.eup %712  ;;  %720 = vrcp.f32 %v110_v6  ;;  %638 = vmatprep.subr.bf16.mxu1 %v737_v52  ;;  %v521_v6 = vsel %vm335_vm1, %v462_v5, 0 }
 0x1ab   :  { %v271_v10 = vadd.f32 %v713_v9, %v226_v7  ;;  %v302_v11 = vadd.f32 %v833_v29, %v270_v8  ;;  %v196_v29 = vmul.f32 %v707_v63, %v773_v0  ;;  %v273_v35 = vmul.f32 %v713_v9, %v781_v1 }
 0x1ac   :  { %v715_v13 = vpop.eup %714 }
 0x1ad   :  { %v303_v12 = vadd.f32 %v685_v39, %v271_v10  ;;  %v77_v15 = vadd.f32 %v715_v13, %v689_v43  ;;  %722 = vrcp.f32 %v302_v11  ;;  %v50_v40 = vmul.f32 %v715_v13, %v773_v0  ;;  %v320_v10 = vld [vmem:[%s918_s1] sm:$0xff]  ;;  %v321_v13 = vld [vmem:[%s918_s1 + $0x8] sm:$0xff] }
 0x1ae   :  { %v429_v11 = vmul.f32 0.5, %v320_v10 }
 0x1af   :  { %724 = vrcp.f32 %v303_v12 }
 0x1b0   :  { %v717_v14 = vpop.eup %716 }
 0x1b1   :  { %v78_v18 = vadd.f32 %v717_v14, %v693_v47  ;;  %v51_v48 = vmul.f32 %v717_v14, %v773_v0  ;;  %v325_v0 = vld [vmem:[%s917_s2] sm:$0x3] }
 0x1b2   :  { %v719_v16 = vpop.eup %718 }
 0x1b3   :  { %v115_v19 = vadd.f32 %v719_v16, %v77_v15  ;;  %v117_v46 = vmul.f32 %v719_v16, %v781_v1 }
 0x1b4   :  { %v721_v21 = vpop.eup %720 }
 0x1b5   :  { %v116_v20 = vadd.f32 %v721_v21, %v78_v18  ;;  %v144_v22 = vadd.f32 %v697_v54, %v115_v19  ;;  %v118_v54 = vmul.f32 %v721_v21, %v781_v1  ;;  %v386_v1 = vsel %vm335_vm1, %v325_v0, 0 }
 0x1b6   :  { %v564_v19 = vmul.f32 0.5, %v321_v13 }
 0x1b7   :  { %v145_v23 = vadd.f32 %v699_v56, %v116_v20  ;;  %v723_v36 = vpop.eup %722  ;;  %726 = vrcp.f32 %v144_v22 }
 0x1b9   :  { %728 = vrcp.f32 %v145_v23  ;;  %v725_v44 = vpop.eup %724 }
 0x1c1   :  { %v727_v58 = vpop.eup %726 }
 0x1c3   :  { %v729_v62 = vpop.eup %728 }
 0x207   :  { %v234_v27 = vpop.permute.xlu0 %233 }
 0x208   :  { %v232_v26 = vpop.permute.xlu1 %231  ;;  %v238_v31 = vadd.f32 %v234_v27, %v196_v29 }
 0x209   :  { %v237_v28 = vadd.f32 %v232_v26, %v195_v24 }
 0x20a   :  { %v275_v38 = vadd.f32 %v273_v35, %v238_v31 }
 0x20b   :  { %v274_v32 = vadd.f32 %v272_v30, %v237_v28 }
 0x20c   :  { %v309_v33 = vpop.permute.xlu1 %308 }
 0x20d   :  { %v314_v34 = vadd.f32 %v309_v33, %v274_v32 }
 0x20f   :  { %v318_v37 = vmul.f32 %v723_v36, %v314_v34 }
 0x210   :  { %v311_v39 = vpop.permute.xlu1 %310 }
 0x211   :  { %v326_v41 = vpack.c.bf16 %v318_v37, %v318_v37  ;;  %v315_v42 = vadd.f32 %v311_v39, %v275_v38  ;;  %v84_v43 = vpop.permute.xlu0 %83 }
 0x212   :  { %v89_v45 = vadd.f32 %v84_v43, %v50_v40 }
 0x213   :  { %v319_v47 = vmul.f32 %v725_v44, %v315_v42  ;;  %330 = vrot.lane.b32.xlu0 %v326_v41, %s739_s28  ;;  %v606_v44 = vld [vmem:[%s919_s3] ss:$0 sm:$0xff] }
 0x214   :  { %v86_v49 = vpop.permute.xlu1 %85  ;;  %v119_v50 = vadd.f32 %v117_v46, %v89_v45  ;;  %v607_v46 = vld [vmem:[%s920_s4] ss:$0 sm:$0xff] }
 0x215   :  { %v463_v51 = vpack.c.bf16 %v319_v47, %v319_v47  ;;  %v90_v53 = vadd.f32 %v86_v49, %v51_v48 }
 0x216   :  { %v151_v55 = vpop.permute.xlu0 %150 }
 0x217   :  { %v156_v56 = vadd.f32 %v151_v55, %v119_v50  ;;  %466 = vrot.lane.b32.xlu1 %v463_v51, %s739_s28  ;;  %v120_v57 = vadd.f32 %v118_v54, %v90_v53 }
 0x218   :  { %v153_v59 = vpop.permute.xlu1 %152 }
 0x219   :  { %v160_v60 = vmul.f32 %v727_v58, %v156_v56  ;;  %v157_v61 = vadd.f32 %v153_v59, %v120_v57 }
 0x21b   :  { %v324_v63 = vpack.c.bf16 %v160_v60, %v160_v60  ;;  %v161_v2 = vmul.f32 %v729_v62, %v157_v61 }
 0x21d   :  { %v461_v3 = vpack.c.bf16 %v161_v2, %v161_v2  ;;  %380 = vrot.lane.b32.xlu0 %v324_v63, %s739_s28 }
 0x21f   :  { %515 = vrot.lane.b32.xlu1 %v461_v3, %s739_s28 }
 0x285   :  { %v331_v4 = vpop.permute.xlu0 %330 }
 0x286   :  { %623 = vmatmul.mubr.msk.bf16.vlgmr.msra.gmra.mrb[0].mxu0 %vm29_vm0, %v331_v4 }
 0x287   :  { %627 = vmatpush3.bf16.msra.mxu0 %v386_v1  ;;  %628 = vmatprep.mubr.msk.bf16.mxu0 %vm738_vm2, %v737_v52 }
 0x289   :  { %v467_v7 = vpop.permute.xlu1 %466 }
 0x28a   :  { %635 = vmatmul.mubr.msk.bf16.vlgmr.msra.gmra.mrb[0].mxu1 %vm29_vm0, %v467_v7 }
 0x28b   :  { %639 = vmatpush3.bf16.msra.mxu1 %v521_v6  ;;  %640 = vmatprep.mubr.msk.bf16.mxu1 %vm738_vm2, %v737_v52 }
 0x28f   :  { %v381_v8 = vpop.permute.xlu0 %380 }
 0x291   :  { %v516_v9 = vpop.permute.xlu1 %515 }
 0x292   :  { %629 = vmatmul.mubr.msk.bf16.vlgmr.msra.gmra.mrb[0].mxu0 %vm29_vm0, %v381_v8 }
 0x296   :  { %641 = vmatmul.mubr.msk.bf16.vlgmr.msra.gmra.mrb[0].mxu1 %vm29_vm0, %v516_v9 }
 0x365   :  { %v422_v12 = vpop.f32.mrb[0].mxu0 }
 0x366   :  { %v428_v14 = vmul.f32 0.5, %v422_v12  ;;  %v630_v15 = vpop.f32.mrb[1].mxu0 }
 0x367   :  { %v425_v16 = vpop.f32.mrb[2].mxu0 }
 0x368   :  { %v631_v52 = vpop.f32.mrb[3].mxu0  ;;  %v430_v18 = vadd.f32 %v429_v11, %v428_v14 }
 0x369   :  { %v557_v21 = vpop.f32.mrb[0].mxu1 }
 0x36a   :  { %v563_v20 = vmul.f32 0.5, %v557_v21  ;;  %v642_v22 = vpop.f32.mrb[1].mxu1  ;;  %v432_v23 = vsel %vm431_vm3, %v430_v18, 0.0 }
 0x36b   :  { %v560_v17 = vpop.f32.mrb[2].mxu1  ;;  %433 = vadd.xlane.f32.xlu0 %v432_v23 }
 0x36c   :  { %v643_v24 = vpop.f32.mrb[3].mxu1  ;;  %v565_v25 = vadd.f32 %v564_v19, %v563_v20 }
 0x36e   :  { %v566_v26 = vsel %vm431_vm3, %v565_v25, 0.0 }
 0x36f   :  { %567 = vadd.xlane.f32.xlu0 %v566_v26 }
 0x3f8   :  { %v434_v27 = vpop.xlane.xlu0 %433 }
 0x3f9   :  { %v436_v28 = vmul.f32 0.125, %v434_v27 }
 0x3fb   :  { %v437_v29 = vsub.f32 %v430_v18, %v436_v28 }
 0x3fc   :  { %v568_v30 = vpop.xlane.xlu0 %567 }
 0x3fd   :  { %v569_v31 = vmul.f32 0.125, %v568_v30  ;;  %v438_v32 = vmul.f32 %v437_v29, %v437_v29 }
 0x3ff   :  { %v570_v33 = vsub.f32 %v565_v25, %v569_v31  ;;  %v439_v34 = vsel %vm431_vm3, %v438_v32, 0.0 }
 0x400   :  { %440 = vadd.xlane.f32.xlu1 %v439_v34 }
 0x401   :  { %v571_v35 = vmul.f32 %v570_v33, %v570_v33 }
 0x403   :  { %v572_v36 = vsel %vm431_vm3, %v571_v35, 0.0 }
 0x404   :  { %573 = vadd.xlane.f32.xlu0 %v572_v36 }
 0x48d   :  { %v441_v37 = vpop.xlane.xlu1 %440 }
 0x48e   :  { %v442_v38 = vmul.f32 0.125, %v441_v37 }
 0x490   :  { %v443_v39 = vadd.f32 1e-05, %v442_v38 }
 0x491   :  { %v574_v40 = vpop.xlane.xlu0 %573 }
 0x492   :  { %730 = vrsqrt.f32 %v443_v39  ;;  %v575_v41 = vmul.f32 0.125, %v574_v40 }
 0x494   :  { %v576_v42 = vadd.f32 1e-05, %v575_v41 }
 0x496   :  { %732 = vrsqrt.f32 %v576_v42 }
 0x49c   :  { %v731_v43 = vpop.eup %730 }
 0x49d   :  { %v445_v45 = vmul.f32 %v731_v43, %v437_v29 }
 0x49f   :  { %v452_v47 = vmul.f32 %v606_v44, %v445_v45 }
 0x4a0   :  { %v733_v48 = vpop.eup %732 }
 0x4a1   :  { %v459_v49 = vadd.f32 %v607_v46, %v452_v47  ;;  %v578_v50 = vmul.f32 %v733_v48, %v570_v33 }
 0x4a3   :  { %460 = vst.msk [vmem:[%s921_s5] sm:$0xff] %vm431_vm3, %v459_v49  ;;  %v579_v51 = vmul.f32 %v606_v44, %v578_v50 }
 0x4a5   :  { %v580_v53 = vadd.f32 %v607_v46, %v579_v51 }
 0x4a7   :  { %611 = vst.msk [vmem:[%s921_s5 + $0x8] sm:$0xff] %vm431_vm3, %v580_v53 }

// kernel: forward.35
= control target key start
LH: loop header
LB: loop body
LE: loop exit
PB: predicated region body
PF: predicated region fallthrough
CT: control target
= control target key end

     0   :  { %v146_v0 = vmov 0.0   ;;  %vm147_vm0 = vmmov 0   ;;  %vm54_vm1 = vcmask 523264   ;;  %s189_s1 = inlined_call_operand.vmem [shape: bf16[64,128], index: 1, kind: input, shape index: {}]   ;;  %s190_s0 = inlined_call_operand.vmem [shape: bf16[2,64], index: 0, kind: input, shape index: {}]   ;;  %s191_s2 = inlined_call_operand.vmem [shape: f32[1,128], index: 2, kind: input, shape index: {}]   ;;  %s192_s3 = inlined_call_operand.vmem [shape: f32[2,128], index: 3, kind: output, shape index: {}]  }
   0x1   :  { %128 = vmatprep.subr.bf16.mxu0 %v146_v0  ;;  %19 = vst [vmem:[#allocation2] sm:$0x3] %v146_v0  ;;  %v142_v1 = vld [vmem:[%s189_s1] sm:$0xff]   ;;  %136 = vmatprep.mubr.msk.bf16.mxu0 %vm147_vm0, %v146_v0  ;;  %v143_v2 = vld [vmem:[%s189_s1 + $0x8] sm:$0xff]   ;;  %v144_v3 = vld [vmem:[%s189_s1 + $0x10] sm:$0xff]  }
   0x2   :  { %129 = vmatpush3.bf16.msra.mxu0 %v142_v1  ;;  %v145_v4 = vld [vmem:[%s189_s1 + $0x18] sm:$0xff]   ;;  %v21_v5 = vld [vmem:[%s190_s0] sm:$0x1] }
   0x3   :  { %130 = vmatprep.subr.bf16.mxu0 %v146_v0  ;;  %v122_v12 = vld [vmem:[%s191_s2] ss:$0 sm:$0xff] }
   0x6   :  { %131 = vmatpush3.bf16.msra.mxu0 %v143_v2 }
   0x7   :  { %132 = vmatprep.subr.bf16.mxu0 %v146_v0 }
   0x8   :  { %v20_v6 = vld [vmem:[#allocation2] sm:$0x3] }
   0xa   :  { %133 = vmatpush3.bf16.msra.mxu0 %v144_v3 }
   0xb   :  { %134 = vmatprep.subr.bf16.mxu0 %v146_v0 }
   0xe   :  { %135 = vmatpush3.bf16.msra.mxu0 %v145_v4 }
  0x11   :  { %137 = vmatmul.mubr.msk.bf16.vlgmr.msra.gmra.mrb[0].mxu0 %vm54_vm1, %v21_v5 }
  0xe4   :  { %v92_v7 = vpop.f32.mrb[0].mxu0 }
  0xe5   :  { %v98_v8 = vadd.f32 %v92_v7, %v20_v6  ;;  %v138_v9 = vpop.f32.mrb[1].mxu0 }
  0xe6   :  { %v95_v10 = vpop.f32.mrb[2].mxu0 }
  0xe7   :  { %99 = vst [vmem:[#allocation2] sm:$0x3] %v98_v8  ;;  %v139_v11 = vpop.f32.mrb[3].mxu0 }
  0xee   :  { %v103_v13 = vld [vmem:[#allocation2] sm:$0x3] }
  0xef   :  { %v111_v14 = vadd.f32 %v122_v12, %v103_v13 }
  0xf1   :  { %112 = vst [vmem:[%s192_s3] sm:$0x3] %v111_v14 }

// kernel: forward.21
= control target key start
LH: loop header
LB: loop body
LE: loop exit
PB: predicated region body
PF: predicated region fallthrough
CT: control target
= control target key end

     0   :  { %vm48_vm0 = vcmask 1041408   ;;  %v140_v0 = vmov 0.0   ;;  %vm141_vm1 = vmmov 0   ;;  %vm19_vm2 = vcmask 64512   ;;  %s186_s1 = inlined_call_operand.vmem [shape: bf16[20,8], index: 1, kind: input, shape index: {}]   ;;  %s187_s0 = inlined_call_operand.vmem [shape: bf16[12,20], index: 0, kind: input, shape index: {}]   ;;  %s188_s2 = inlined_call_operand.vmem [shape: f32[1,8], index: 2, kind: input, shape index: {}]   ;;  %s189_s3 = inlined_call_operand.vmem [shape: f32[12,8], index: 3, kind: output, shape index: {}]  }
   0x1   :  { %127 = vmatprep.subr.bf16.mxu0 %v140_v0  ;;  %v137_v1 = vld [vmem:[%s186_s1] sm:$0xff]   ;;  %131 = vmatprep.mubr.msk.bf16.mxu0 %vm141_vm1, %v140_v0  ;;  %v138_v2 = vld [vmem:[%s186_s1 + $0x8] ss:$0 sps:$4 sm:$0x33]   ;;  %20 = vst.msk [vmem:[#allocation2] sm:$0xff] %vm19_vm2, %v140_v0  ;;  %vm44_vm3 = vcmask 162816  }
   0x2   :  { %128 = vmatpush3.bf16.msra.mxu0 %v137_v1  ;;  %v50_v3 = vsel %vm48_vm0, %v138_v2, 0  ;;  %v139_v4 = vld [vmem:[%s187_s0] sm:$0x3f]   ;;  %vm21_vm4 = vcmask 60416  }
   0x3   :  { %129 = vmatprep.subr.bf16.mxu0 %v140_v0  ;;  %22 = vst.msk [vmem:[#allocation2 + $0x8] sm:$0xf] %vm21_vm4, %v140_v0  ;;  %v123_v13 = vld [vmem:[%s188_s2] ss:$0 sm:$0xff] }
   0x6   :  { %130 = vmatpush3.bf16.msra.mxu0 %v50_v3 }
   0x8   :  { %v23_v5 = vld [vmem:[#allocation2] sm:$0xff] }
   0x9   :  { %132 = vmatmul.mubr.msk.bf16.vlgmr.msra.gmra.mrb[0].mxu0 %vm44_vm3, %v139_v4 }
   0xa   :  { %v24_v7 = vld [vmem:[#allocation2 + $0x8] sm:$0xf] }
  0xdc   :  { %v86_v6 = vpop.f32.mrb[0].mxu0 }
  0xdd   :  { %v93_v8 = vadd.f32 %v86_v6, %v23_v5  ;;  %v133_v9 = vpop.f32.mrb[1].mxu0 }
  0xde   :  { %v89_v10 = vpop.f32.mrb[2].mxu0 }
  0xdf   :  { %96 = vst.msk [vmem:[#allocation2] sm:$0xff] %vm19_vm2, %v93_v8  ;;  %v94_v11 = vadd.f32 %v89_v10, %v24_v7  ;;  %v134_v12 = vpop.f32.mrb[3].mxu0 }
  0xe1   :  { %98 = vst.msk [vmem:[#allocation2 + $0x8] sm:$0xf] %vm21_vm4, %v94_v11 }
  0xe6   :  { %v102_v14 = vld [vmem:[#allocation2] sm:$0xff] }
  0xe7   :  { %v111_v15 = vadd.f32 %v123_v13, %v102_v14 }
  0xe8   :  { %v103_v16 = vld [vmem:[#allocation2 + $0x8] sm:$0xf] }
  0xe9   :  { %113 = vst.msk [vmem:[%s189_s3] sm:$0xff] %vm19_vm2, %v111_v15  ;;  %v112_v17 = vadd.f32 %v123_v13, %v103_v16 }
  0xeb   :  { %114 = vst.msk [vmem:[%s189_s3 + $0x8] sm:$0xf] %vm21_vm4, %v112_v17 }

// kernel: forward.26
= control target key start
LH: loop header
LB: loop body
LE: loop exit
PB: predicated region body
PF: predicated region fallthrough
CT: control target
= control target key end

     0   :  { %s606_s24 = smov 0   ;;  %s659_s0 = inlined_call_operand.vmem [shape: f32[2,6,8], index: 0, kind: input, shape index: {}]   ;;  %s660_s1 = inlined_call_operand.vmem [shape: f32[1,8], index: 1, kind: input, shape index: {}]   ;;  %s661_s2 = inlined_call_operand.vmem [shape: f32[1,8], index: 2, kind: input, shape index: {}]   ;;  %s662_s3 = inlined_call_operand.vmem [shape: bf16[12,6], index: 3, kind: input, shape index: {}]   ;;  %s663_s4 = inlined_call_operand.vmem [shape: f32[12,1], index: 4, kind: input, shape index: {}]   ;;  %s664_s5 = inlined_call_operand.vmem [shape: bf16[6,12], index: 5, kind: input, shape index: {}]   ;;  %s665_s6 = inlined_call_operand.vmem [shape: f32[6,1], index: 6, kind: input, shape index: {}]   ;;  %s666_s7 = inlined_call_operand.vmem [shape: f32[2,6,8], index: 7, kind: output, shape index: {}]  }
   0x1 LB: > { %s505_s25 = sadd.s32 4294967295, %s561_s24   ;;  %p509_p0 = scmp.ge.s32.totalorder %s561_s24, 1  ;;  %s561_s24 = sphi %s606_s24, %s17_s24  }
   0x2   : > { %p236_p1 = scmp.lt.s32.totalorder %s561_s24, 3 }
   0x4   : > { %p237_p2 = pnand %p509_p0, %p236_p1 }
   0x5   : > { %p266_p3 = scmp.lt.s32.totalorder (!%p237_p2), %s505_s25, 1  ;;  %vm278_vm0 = vcmask (!%p237_p2), 62464   ;;  %v563_v7 = vmov (!%p237_p2), 0.0   ;;  %vm564_vm1 = vmmov (!%p237_p2), 0   ;;  %v310_v8 = vld [vmem:[%s663_s4] sm:$0xff] (!%p237_p2)  ;;  %v565_v9 = vmov (!%p237_p2), 0  }
   0x6   : > { %240 = sbr.rel (%p237_p2) target bundleno = 800 (0x320), region = 48  ;;  %523 = vmatprep.subr.bf16.mxu0 (!%p237_p2), %v563_v7  ;;  %529 = vmatprep.subr.bf16.mxu1 (!%p237_p2), %v563_v7  ;;  %v311_v10 = vld [vmem:[%s663_s4 + $0x8] sm:$0xf] (!%p237_p2)  ;;  %v512_v15 = vld [vmem:[%s660_s1] ss:$0 sm:$0xff] (!%p237_p2)  ;;  %vm331_vm2 = vcmask (!%p237_p2), 1042432  }
   0x7   : > { %525 = vmatprep.mubr.msk.bf16.mxu0 (!%p237_p2), %vm564_vm1, %v563_v7  ;;  %531 = vmatprep.mubr.msk.bf16.mxu1 (!%p237_p2), %vm564_vm1, %v563_v7  ;;  %v513_v17 = vld [vmem:[%s661_s2] ss:$0 sm:$0xff] (!%p237_p2)  ;;  %vm327_vm3 = vcmask (!%p237_p2), 48128   ;;  %vm406_vm4 = vcmask (!%p237_p2), 1045504   ;;  %vm402_vm5 = vcmask (!%p237_p2), 97280  }
   0x8   : > { %546 = vset.pattern.permute.xlu1 (!%p237_p2), %v565_v9  ;;  %547 = vset.pattern.permute.xlu0 (!%p237_p2), %v565_v9  ;;  %v548_v22 = vld [vmem:[%s662_s3] sm:$0x3f] (!%p237_p2)  }
   0x9   : > { %314 = vperm.xlu1 (!%p237_p2), %546, %v310_v8   ;;  %v396_v23 = vld [vmem:[%s665_s6] sm:$0x3f] (!%p237_p2) }
   0xa   : > { %v395_v52 = vld [vmem:[%s664_s5] sm:$0x7] (!%p237_p2) }
   0xd   : > { %s668_s25 = smov (!%p266_p3, %s505_s25), 1  ;;  %319 = vperm.xlu1 %546, %v311_v10  }
   0xe   : > { %s510_s26 = sshll.u32 %s668_s25, 3 }
   0xf   : > { %s269_s29 = scalar_lea.vmem %s659_s0, %s510_s26  ;;  %s273_s23 = scalar_lea.vmem %s666_s7, %s510_s26 }
  0x10   : > { %v622_v0 = vld [vmem:[%s269_s29] sm:$0x3f] }
  0x11   : > { %v279_v1 = vsel %vm278_vm0, %v622_v0, 0.0 }
  0x12   : > { %280 = vadd.xlane.f32.xlu0 %v279_v1 }
  0x88   : > { %v315_v24 = vpop.permute.xlu1 %314 }
  0x8c   : > { %v320_v28 = vpop.permute.xlu1 %319 }
  0x9f   : > { %v281_v2 = vpop.xlane.xlu0 %280 }
  0xa0   : > { %v283_v3 = vmul.f32 0.125, %v281_v2 }
  0xa2   : > { %v284_v4 = vsub.f32 %v622_v0, %v283_v3 }
  0xa4   : > { %v285_v5 = vmul.f32 %v284_v4, %v284_v4 }
  0xa6   : > { %v286_v6 = vsel %vm278_vm0, %v285_v5, 0.0 }
  0xa7   : > { %287 = vadd.xlane.f32.xlu0 %v286_v6 }
  0xbd   : > { %399 = vperm.xlu0 %547, %v396_v23  }
 0x134   : > { %v288_v11 = vpop.xlane.xlu0 %287 }
 0x135   : > { %v289_v12 = vmul.f32 0.125, %v288_v11 }
 0x137   : > { %v290_v13 = vadd.f32 1e-05, %v289_v12 }
 0x139   : > { %549 = vrsqrt.f32 %v290_v13 }
 0x13c   : > { %v400_v53 = vpop.permute.xlu0 %399 }
 0x143   : > { %v550_v14 = vpop.eup %549 }
 0x144   : > { %v292_v16 = vmul.f32 %v550_v14, %v284_v4 }
 0x146   : > { %v299_v18 = vmul.f32 %v512_v15, %v292_v16 }
 0x148   : > { %v306_v19 = vadd.f32 %v513_v17, %v299_v18 }
 0x14a   : > { %v307_v20 = vpack.c.bf16 %v306_v19, %v306_v19 }
 0x14c   : > { %v333_v21 = vsel %vm331_vm2, %v307_v20, 0 }
 0x14d   : > { %524 = vmatpush3.bf16.msra.mxu0 %v333_v21 }
 0x150   : > { %526 = vmatmul.mubr.msk.bf16.vlgmr.msra.gmra.mrb[0].mxu0 %vm327_vm3, %v548_v22 }
 0x223   : > { %v369_v25 = vpop.f32.mrb[0].mxu0 }
 0x224   : > { %v370_v26 = vadd.f32 %v369_v25, %v315_v24  ;;  %v527_v27 = vpop.f32.mrb[1].mxu0 }
 0x225   : > { %v372_v29 = vpop.f32.mrb[2].mxu0 }
 0x226   : > { %v378_v30 = vmul.f32 0.044715, %v370_v26  ;;  %v373_v31 = vadd.f32 %v372_v29, %v320_v28  ;;  %v528_v32 = vpop.f32.mrb[3].mxu0  ;;  %v376_v45 = vmul.f32 0.5, %v370_v26 }
 0x228   : > { %v380_v33 = vmul.f32 %v378_v30, %v370_v26  ;;  %v379_v34 = vmul.f32 0.044715, %v373_v31  ;;  %v377_v46 = vmul.f32 0.5, %v373_v31 }
 0x22a   : > { %v381_v35 = vmul.f32 %v379_v34, %v373_v31  ;;  %v382_v36 = vmul.f32 %v380_v33, %v370_v26 }
 0x22c   : > { %v383_v37 = vmul.f32 %v381_v35, %v373_v31  ;;  %v384_v38 = vadd.f32 %v382_v36, %v370_v26 }
 0x22e   : > { %v385_v39 = vadd.f32 %v383_v37, %v373_v31  ;;  %v386_v40 = vmul.f32 0.7978846, %v384_v38 }
 0x230   : > { %v387_v41 = vmul.f32 0.7978846, %v385_v39  ;;  %551 = vtanh.f32 %v386_v40 }
 0x232   : > { %553 = vtanh.f32 %v387_v41 }
 0x23a   : > { %v552_v42 = vpop.eup %551 }
 0x23b   : > { %v390_v43 = vadd.f32 1.0, %v552_v42 }
 0x23c   : > { %v554_v44 = vpop.eup %553 }
 0x23d   : > { %v391_v47 = vadd.f32 1.0, %v554_v44  ;;  %v392_v48 = vmul.f32 %v390_v43, %v376_v45 }
 0x23f   : > { %v393_v49 = vmul.f32 %v391_v47, %v377_v46 }
 0x241   : > { %v394_v50 = vpack.c.bf16 %v393_v49, %v392_v48 }
 0x243   : > { %v408_v51 = vsel %vm406_vm4, %v394_v50, 0 }
 0x244   : > { %530 = vmatpush3.bf16.msra.mxu1 %v408_v51 }
 0x247   : > { %532 = vmatmul.mubr.msk.bf16.vlgmr.msra.gmra.mrb[0].mxu1 %vm402_vm5, %v395_v52 }
 0x31a   : > { %v444_v54 = vpop.f32.mrb[0].mxu1 }
 0x31b   : > { %v445_v55 = vadd.f32 %v444_v54, %v400_v53  ;;  %v533_v56 = vpop.f32.mrb[1].mxu1 }
 0x31c   : > { %v447_v57 = vpop.f32.mrb[2].mxu1 }
 0x31d   : > { %v450_v58 = vadd.f32 %v445_v55, %v622_v0  ;;  %v534_v59 = vpop.f32.mrb[3].mxu1 }
 0x31f   : > { %451 = vst.msk [vmem:[%s273_s23] sm:$0x3f] %vm278_vm0, %v450_v58 }
 0x320 PF: > { %s17_s24 = sadd.s32 1, %s561_s24  }
 0x321   : > { %p14_p4 = scmp.ge.s32.totalorder %s17_s24, 4  }
 0x323   :  { %16 = sbr.rel (!%p14_p4) target bundleno = 1 (0x1), region = 78 }

// kernel: forward.32
= control target key start
LH: loop header
LB: loop body
LE: loop exit
PB: predicated region body
PF: predicated region fallthrough
CT: control target
= control target key end

     0   :  { %vm19_vm0 = vcmask 195584   ;;  %vm21_vm1 = vcmask 191488   ;;  %vm37_vm2 = vcmask 1043456   ;;  %v122_v0 = vmov 0.0   ;;  %s165_s1 = inlined_call_operand.vmem [shape: bf16[8,24], index: 1, kind: input, shape index: {}]   ;;  %s166_s0 = inlined_call_operand.vmem [shape: bf16[12,8], index: 0, kind: input, shape index: {}]   ;;  %s167_s2 = inlined_call_operand.vmem [shape: f32[1,24], index: 2, kind: input, shape index: {}]   ;;  %s168_s3 = inlined_call_operand.vmem [shape: f32[12,24], index: 3, kind: output, shape index: {}]  }
   0x1   :  { %20 = vst.msk [vmem:[#allocation2] sm:$0xff] %vm19_vm0, %v122_v0  ;;  %113 = vmatprep.subr.bf16.mxu0 %v122_v0  ;;  %v27_v1 = vld [vmem:[%s165_s1] sm:$0xf]  ;;  %vm123_vm3 = vmmov 0   ;;  %vm33_vm4 = vcmask 64512  }
   0x2   :  { %22 = vst.msk [vmem:[#allocation2 + $0x8] sm:$0xf] %vm21_vm1, %v122_v0  ;;  %v39_v2 = vsel %vm37_vm2, %v27_v1, 0  ;;  %115 = vmatprep.mubr.msk.bf16.mxu0 %vm123_vm3, %v122_v0  ;;  %v121_v3 = vld [vmem:[%s166_s0] sm:$0x3f]  }
   0x3   :  { %114 = vmatpush3.bf16.msra.mxu0 %v39_v2  ;;  %v110_v12 = vld [vmem:[%s167_s2] ss:$0 sm:$0xff] }
   0x6   :  { %116 = vmatmul.mubr.msk.bf16.vlgmr.msra.gmra.mrb[0].mxu0 %vm33_vm4, %v121_v3 }
   0x8   :  { %v23_v4 = vld [vmem:[#allocation2] sm:$0xff] }
   0x9   :  { %v24_v6 = vld [vmem:[#allocation2 + $0x8] sm:$0xf] }
  0xd9   :  { %v75_v5 = vpop.f32.mrb[0].mxu0 }
  0xda   :  { %v82_v7 = vadd.f32 %v75_v5, %v23_v4  ;;  %v117_v8 = vpop.f32.mrb[1].mxu0 }
  0xdb   :  { %v78_v9 = vpop.f32.mrb[2].mxu0 }
  0xdc   :  { %85 = vst.msk [vmem:[#allocation2] sm:$0xff] %vm19_vm0, %v82_v7  ;;  %v83_v10 = vadd.f32 %v78_v9, %v24_v6  ;;  %v118_v11 = vpop.f32.mrb[3].mxu0 }
  0xde   :  { %87 = vst.msk [vmem:[#allocation2 + $0x8] sm:$0xf] %vm21_vm1, %v83_v10 }
  0xe3   :  { %v91_v13 = vld [vmem:[#allocation2] sm:$0xff] }
  0xe4   :  { %v100_v14 = vadd.f32 %v110_v12, %v91_v13 }
  0xe5   :  { %v92_v15 = vld [vmem:[#allocation2 + $0x8] sm:$0xf] }
  0xe6   :  { %102 = vst.msk [vmem:[%s168_s3] sm:$0xff] %vm19_vm0, %v100_v14  ;;  %v101_v16 = vadd.f32 %v110_v12, %v92_v15 }
  0xe8   :  { %103 = vst.msk [vmem:[%s168_s3 + $0x8] sm:$0xf] %vm21_vm1, %v101_v16 }

// kernel: forward.27
= control target key start
LH: loop header
LB: loop body
LE: loop exit
PB: predicated region body
PF: predicated region fallthrough
CT: control target
= control target key end

     0   :  { %vm31_vm0 = vcmask 64512   ;;  %vm35_vm1 = vcmask 60416   ;;  %vm88_vm2 = vcmask 1043456   ;;  %v256_v14 = vmov 0.0   ;;  %s345_s0 = inlined_call_operand.vmem [shape: f32[12,8], index: 0, kind: input, shape index: {}]   ;;  %s346_s3 = inlined_call_operand.vmem [shape: bf16[8,16], index: 3, kind: input, shape index: {}]   ;;  %s347_s1 = inlined_call_operand.vmem [shape: f32[1,8], index: 1, kind: input, shape index: {}]   ;;  %s348_s2 = inlined_call_operand.vmem [shape: f32[1,8], index: 2, kind: input, shape index: {}]   ;;  %s349_s5 = inlined_call_operand.vmem [shape: bf16[16,8], index: 5, kind: input, shape index: {}]   ;;  %s350_s4 = inlined_call_operand.vmem [shape: f32[1,16], index: 4, kind: input, shape index: {}]   ;;  %s351_s6 = inlined_call_operand.vmem [shape: f32[1,8], index: 6, kind: input, shape index: {}]   ;;  %s352_s7 = inlined_call_operand.vmem [shape: f32[12,8], index: 7, kind: output, shape index: {}]  }
   0x1   :  { %v301_v0 = vld [vmem:[%s345_s0] sm:$0xff]  ;;  %v306_v1 = vld [vmem:[%s345_s0 + $0x8] sm:$0xf]  ;;  %233 = vmatprep.subr.bf16.mxu0 %v256_v14  ;;  %vm257_vm3 = vmmov 0   ;;  %239 = vmatprep.subr.bf16.mxu1 %v256_v14  ;;  %vm160_vm4 = vcmask 130048  }
   0x2   :  { %v32_v2 = vsel %vm31_vm0, %v301_v0, 0.0  ;;  %v36_v3 = vsel %vm35_vm1, %v306_v1, 0.0  ;;  %v77_v15 = vld [vmem:[%s346_s3] sm:$0xf]  ;;  %235 = vmatprep.mubr.msk.bf16.mxu0 %vm257_vm3, %v256_v14  ;;  %241 = vmatprep.mubr.msk.bf16.mxu1 %vm257_vm3, %v256_v14 }
   0x3   :  { %33 = vadd.xlane.f32.xlu0 %v32_v2  ;;  %v90_v16 = vsel %vm88_vm2, %v77_v15, 0  ;;  %v222_v25 = vld [vmem:[%s347_s1] ss:$0 sm:$0xff] }
   0x4   :  { %234 = vmatpush3.bf16.msra.mxu0 %v90_v16  ;;  %v223_v29 = vld [vmem:[%s348_s2] ss:$0 sm:$0xff] }
   0x5   :  { %v247_v34 = vld [vmem:[%s349_s5] sm:$0xff]  }
   0x6   :  { %240 = vmatpush3.bf16.msra.mxu1 %v247_v34  ;;  %v224_v35 = vld [vmem:[%s350_s4] ss:$0 sm:$0xff] }
   0x7   :  { %37 = vadd.xlane.f32.xlu0 %v36_v3  ;;  %v228_v62 = vld [vmem:[%s351_s6] ss:$0 sm:$0xff] }
  0x90   :  { %v34_v4 = vpop.xlane.xlu0 %33 }
  0x91   :  { %v40_v5 = vmul.f32 0.125, %v34_v4 }
  0x93   :  { %v42_v6 = vsub.f32 %v301_v0, %v40_v5 }
  0x94   :  { %v38_v7 = vpop.xlane.xlu0 %37 }
  0x95   :  { %v41_v8 = vmul.f32 0.125, %v38_v7  ;;  %v44_v9 = vmul.f32 %v42_v6, %v42_v6 }
  0x97   :  { %v43_v10 = vsub.f32 %v306_v1, %v41_v8  ;;  %v46_v11 = vsel %vm31_vm0, %v44_v9, 0.0 }
  0x98   :  { %47 = vadd.xlane.f32.xlu1 %v46_v11 }
  0x99   :  { %v45_v12 = vmul.f32 %v43_v10, %v43_v10 }
  0x9b   :  { %v49_v13 = vsel %vm35_vm1, %v45_v12, 0.0 }
  0x9c   :  { %50 = vadd.xlane.f32.xlu1 %v49_v13 }
 0x125   :  { %v48_v17 = vpop.xlane.xlu1 %47 }
 0x126   :  { %v52_v18 = vmul.f32 0.125, %v48_v17 }
 0x128   :  { %v54_v19 = vadd.f32 1e-05, %v52_v18 }
 0x129   :  { %v51_v20 = vpop.xlane.xlu1 %50 }
 0x12a   :  { %248 = vrsqrt.f32 %v54_v19  ;;  %v53_v21 = vmul.f32 0.125, %v51_v20 }
 0x12c   :  { %v55_v22 = vadd.f32 1e-05, %v53_v21 }
 0x12e   :  { %250 = vrsqrt.f32 %v55_v22 }
 0x134   :  { %v249_v23 = vpop.eup %248 }
 0x135   :  { %v58_v24 = vmul.f32 %v249_v23, %v42_v6 }
 0x137   :  { %v66_v28 = vmul.f32 %v222_v25, %v58_v24 }
 0x138   :  { %v251_v26 = vpop.eup %250 }
 0x139   :  { %v59_v27 = vmul.f32 %v251_v26, %v43_v10  ;;  %v74_v31 = vadd.f32 %v223_v29, %v66_v28 }
 0x13b   :  { %v67_v30 = vmul.f32 %v222_v25, %v59_v27 }
 0x13d   :  { %v75_v32 = vadd.f32 %v223_v29, %v67_v30 }
 0x13f   :  { %v76_v33 = vpack.c.bf16 %v75_v32, %v74_v31 }
 0x141   :  { %236 = vmatmul.mubr.msk.bf16.vlgmr.msra.gmra.mrb[0].mxu0 %vm31_vm0, %v76_v33 }
 0x214   :  { %v126_v36 = vpop.f32.mrb[0].mxu0 }
 0x215   :  { %v127_v37 = vadd.f32 %v224_v35, %v126_v36  ;;  %v237_v38 = vpop.f32.mrb[1].mxu0 }
 0x216   :  { %v129_v39 = vpop.f32.mrb[2].mxu0 }
 0x217   :  { %v135_v40 = vmul.f32 0.044715, %v127_v37  ;;  %v130_v41 = vadd.f32 %v224_v35, %v129_v39  ;;  %v238_v42 = vpop.f32.mrb[3].mxu0  ;;  %v133_v55 = vmul.f32 0.5, %v127_v37 }
 0x219   :  { %v137_v43 = vmul.f32 %v135_v40, %v127_v37  ;;  %v136_v44 = vmul.f32 0.044715, %v130_v41  ;;  %v134_v56 = vmul.f32 0.5, %v130_v41 }
 0x21b   :  { %v139_v45 = vmul.f32 %v137_v43, %v127_v37  ;;  %v138_v46 = vmul.f32 %v136_v44, %v130_v41 }
 0x21d   :  { %v141_v47 = vadd.f32 %v139_v45, %v127_v37  ;;  %v140_v48 = vmul.f32 %v138_v46, %v130_v41 }
 0x21f   :  { %v143_v49 = vmul.f32 0.7978846, %v141_v47  ;;  %v142_v50 = vadd.f32 %v140_v48, %v130_v41 }
 0x221   :  { %252 = vtanh.f32 %v143_v49  ;;  %v144_v51 = vmul.f32 0.7978846, %v142_v50 }
 0x223   :  { %254 = vtanh.f32 %v144_v51 }
 0x22b   :  { %v253_v52 = vpop.eup %252 }
 0x22c   :  { %v147_v53 = vadd.f32 1.0, %v253_v52 }
 0x22d   :  { %v255_v54 = vpop.eup %254 }
 0x22e   :  { %v148_v57 = vadd.f32 1.0, %v255_v54  ;;  %v149_v58 = vmul.f32 %v147_v53, %v133_v55 }
 0x230   :  { %v150_v59 = vmul.f32 %v148_v57, %v134_v56 }
 0x232   :  { %v151_v60 = vpack.c.bf16 %v150_v59, %v149_v58 }
 0x234   :  { %242 = vmatmul.mubr.msk.bf16.vlgmr.msra.gmra.mrb[0].mxu1 %vm160_vm4, %v151_v60 }
 0x307   :  { %v198_v61 = vpop.f32.mrb[0].mxu1 }
 0x308   :  { %v205_v63 = vadd.f32 %v198_v61, %v301_v0  ;;  %v243_v2 = vpop.f32.mrb[1].mxu1 }
 0x309   :  { %v201_v3 = vpop.f32.mrb[2].mxu1 }
 0x30a   :  { %v214_v4 = vadd.f32 %v228_v62, %v205_v63  ;;  %v206_v5 = vadd.f32 %v201_v3, %v306_v1  ;;  %v244_v6 = vpop.f32.mrb[3].mxu1 }
 0x30c   :  { %216 = vst.msk [vmem:[%s352_s7] sm:$0xff] %vm31_vm0, %v214_v4  ;;  %v215_v7 = vadd.f32 %v228_v62, %v206_v5 }
 0x30e   :  { %217 = vst.msk [vmem:[%s352_s7 + $0x8] sm:$0xf] %vm35_vm1, %v215_v7 }

// kernel: forward.33
= control target key start
LH: loop header
LB: loop body
LE: loop exit
PB: predicated region body
PF: predicated region fallthrough
CT: control target
= control target key end

     0   :  { %s735_s20 = smov 120   ;;  %s736_s21 = smov 124   ;;  %vm29_vm0 = vcmask 29696   ;;  %vm336_vm1 = vcmask 1041408   ;;  %vm739_vm2 = vmmov 0   ;;  %vm332_vm3 = vcmask 31744   ;;  %s913_s0 = inlined_call_operand.vmem [shape: f32[2,6,24], index: 0, kind: input, shape index: {}]   ;;  %s914_s2 = inlined_call_operand.vmem [shape: bf16[2,4,8], index: 2, kind: input, shape index: {}]   ;;  %s915_s1 = inlined_call_operand.vmem [shape: f32[2,6,8], index: 1, kind: input, shape index: {}]   ;;  %s916_s3 = inlined_call_operand.vmem [shape: f32[1,8], index: 3, kind: input, shape index: {}]   ;;  %s917_s4 = inlined_call_operand.vmem [shape: f32[1,8], index: 4, kind: input, shape index: {}]   ;;  %s918_s5 = inlined_call_operand.vmem [shape: f32[2,6,8], index: 5, kind: output, shape index: {}]  }
   0x1   :  { %v774_v0 = vld [vmem:[%s913_s0] sm:$0x3f]  ;;  %v782_v1 = vld [vmem:[%s913_s0 + $0x8] sm:$0x3f]  ;;  %s737_s0 = smov 116   ;;  %s740_s28 = smov 112  }
   0x2   :  { %24 = vrot.lane.b32.xlu0 %v774_v0, %s735_s20  ;;  %162 = vrot.lane.b32.xlu1 %v774_v0, %s736_s21  ;;  %vm432_vm4 = vcmask 62464  }
   0x6   :  { %92 = vrot.lane.b32.xlu0 %v782_v1, %s735_s20  ;;  %239 = vrot.lane.b32.xlu1 %v782_v1, %s736_s21 }
  0x74   :  { %v25_v2 = vpop.permute.xlu0 %24  ;;  %v163_v8 = vpop.permute.xlu1 %162 }
  0x75   :  { %v27_v3 = vmul.f32 %v25_v2, %v774_v0  ;;  %v28_v4 = vmul.f32 %v25_v2, %v782_v1  ;;  %v165_v9 = vmul.f32 %v163_v8, %v774_v0  ;;  %v166_v10 = vmul.f32 %v163_v8, %v782_v1 }
  0x77   :  { %203 = vrot.lane.b32.xlu1 %v28_v4, %s736_s21  ;;  %201 = vrot.lane.b32.xlu0 %v27_v3, %s736_s21  ;;  %v30_v40 = vsel %vm29_vm0, %v27_v3, 0.0  ;;  %v33_v41 = vsel %vm29_vm0, %v28_v4, 0.0 }
  0x78   :  { %v93_v5 = vpop.permute.xlu0 %92  ;;  %v240_v11 = vpop.permute.xlu1 %239 }
  0x79   :  { %v95_v6 = vmul.f32 %v93_v5, %v774_v0  ;;  %v96_v7 = vmul.f32 %v93_v5, %v782_v1  ;;  %v242_v12 = vmul.f32 %v240_v11, %v774_v0  ;;  %v243_v13 = vmul.f32 %v240_v11, %v782_v1 }
  0x7b   :  { %280 = vrot.lane.b32.xlu1 %v96_v7, %s736_s21  ;;  %278 = vrot.lane.b32.xlu0 %v95_v6, %s736_s21  ;;  %v97_v42 = vsel %vm29_vm0, %v95_v6, 0.0  ;;  %v100_v43 = vsel %vm29_vm0, %v96_v7, 0.0 }
  0x7f   :  { %54 = vrot.lane.b32.xlu0 %v774_v0, %s737_s0  ;;  %121 = vrot.lane.b32.xlu1 %v782_v1, %s737_s0 }
  0x83   :  { %169 = vrot.lane.b32.xlu0 %v165_v9, %s736_s21  ;;  %171 = vrot.lane.b32.xlu1 %v166_v10, %s736_s21 }
  0x87   :  { %246 = vrot.lane.b32.xlu0 %v242_v12, %s736_s21  ;;  %248 = vrot.lane.b32.xlu1 %v243_v13, %s736_s21 }
  0xe9   :  { %v204_v14 = vpop.permute.xlu1 %203  ;;  %v202_v15 = vpop.permute.xlu0 %201 }
  0xea   :  { %v210_v16 = vsel %vm29_vm0, %v204_v14, 0.0  ;;  %v207_v17 = vsel %vm29_vm0, %v202_v15, 0.0 }
  0xeb   :  { %211 = vadd.xlane.f32.xlu1 %v210_v16  ;;  %208 = vadd.xlane.f32.xlu0 %v207_v17 }
  0xed   :  { %v281_v18 = vpop.permute.xlu1 %280  ;;  %v279_v19 = vpop.permute.xlu0 %278 }
  0xee   :  { %v284_v20 = vsel %vm29_vm0, %v279_v19, 0.0  ;;  %v287_v25 = vsel %vm29_vm0, %v281_v18, 0.0 }
  0xef   :  { %285 = vadd.xlane.f32.xlu0 %v284_v20 }
  0xf1   :  { %v55_v21 = vpop.permute.xlu0 %54  ;;  %v122_v22 = vpop.permute.xlu1 %121 }
  0xf2   :  { %v57_v23 = vmul.f32 %v55_v21, %v774_v0  ;;  %v58_v24 = vmul.f32 %v55_v21, %v782_v1  ;;  %v124_v26 = vmul.f32 %v122_v22, %v774_v0  ;;  %v125_v27 = vmul.f32 %v122_v22, %v782_v1 }
  0xf3   :  { %288 = vadd.xlane.f32.xlu0 %v287_v25 }
  0xf4   :  { %v59_v28 = vsel %vm29_vm0, %v57_v23, 0.0  ;;  %v62_v29 = vsel %vm29_vm0, %v58_v24, 0.0  ;;  %v126_v31 = vsel %vm29_vm0, %v124_v26, 0.0  ;;  %v129_v33 = vsel %vm29_vm0, %v125_v27, 0.0 }
  0xf5   :  { %60 = vadd.xlane.f32.xlu1 %v59_v28  ;;  %v170_v30 = vpop.permute.xlu0 %169  ;;  %v172_v32 = vpop.permute.xlu1 %171 }
  0xf6   :  { %v175_v34 = vsel %vm29_vm0, %v170_v30, 0.0  ;;  %v178_v36 = vsel %vm29_vm0, %v172_v32, 0.0 }
  0xf7   :  { %63 = vadd.xlane.f32.xlu0 %v62_v29 }
  0xf9   :  { %127 = vadd.xlane.f32.xlu1 %v126_v31  ;;  %v247_v35 = vpop.permute.xlu0 %246  ;;  %v249_v37 = vpop.permute.xlu1 %248 }
  0xfa   :  { %v252_v38 = vsel %vm29_vm0, %v247_v35, 0.0  ;;  %v255_v39 = vsel %vm29_vm0, %v249_v37, 0.0 }
  0xfb   :  { %130 = vadd.xlane.f32.xlu0 %v129_v33 }
  0xfd   :  { %176 = vadd.xlane.f32.xlu1 %v175_v34 }
  0xff   :  { %179 = vadd.xlane.f32.xlu0 %v178_v36 }
 0x101   :  { %253 = vadd.xlane.f32.xlu1 %v252_v38 }
 0x103   :  { %256 = vadd.xlane.f32.xlu0 %v255_v39 }
 0x105   :  { %31 = vadd.xlane.f32.xlu1 %v30_v40 }
 0x107   :  { %34 = vadd.xlane.f32.xlu0 %v33_v41 }
 0x109   :  { %98 = vadd.xlane.f32.xlu1 %v97_v42 }
 0x10b   :  { %101 = vadd.xlane.f32.xlu0 %v100_v43 }
 0x178   :  { %v212_v44 = vpop.xlane.xlu1 %211  ;;  %v209_v45 = vpop.xlane.xlu0 %208 }
 0x179   :  { %v599_v46 = vmul.f32 -1.442695, %v212_v44  ;;  %v598_v47 = vmul.f32 -1.442695, %v209_v45 }
 0x17b   :  { %659 = vpow2.f32 %v599_v46 }
 0x17c   :  { %661 = vpow2.f32 %v598_v47  ;;  %v286_v48 = vpop.xlane.xlu0 %285 }
 0x17d   :  { %v602_v49 = vmul.f32 -1.442695, %v286_v48 }
 0x17f   :  { %663 = vpow2.f32 %v602_v49 }
 0x180   :  { %v289_v50 = vpop.xlane.xlu0 %288 }
 0x181   :  { %v603_v51 = vmul.f32 -1.442695, %v289_v50 }
 0x182   :  { %v61_v52 = vpop.xlane.xlu1 %60 }
 0x183   :  { %665 = vpow2.f32 %v603_v51  ;;  %v590_v53 = vmul.f32 -1.442695, %v61_v52  ;;  %v738_v52 = vmov 0.0  }
 0x184   :  { %v64_v54 = vpop.xlane.xlu0 %63  ;;  %621 = vmatprep.subr.bf16.mxu0 %v738_v52  ;;  %623 = vmatprep.mubr.msk.bf16.mxu0 %vm739_vm2, %v738_v52 }
 0x185   :  { %v660_v55 = vpop.eup %659  ;;  %667 = vpow2.f32 %v590_v53  ;;  %v591_v56 = vmul.f32 -1.442695, %v64_v54  ;;  %v604_v53 = vld [vmem:[%s914_s2 + $0x2] sm:$0x3]  ;;  %633 = vmatprep.subr.bf16.mxu1 %v738_v52  ;;  %635 = vmatprep.mubr.msk.bf16.mxu1 %vm739_vm2, %v738_v52 }
 0x186   :  { %v662_v57 = vpop.eup %661  ;;  %v220_v58 = vadd.f32 1.0, %v660_v55  ;;  %v128_v59 = vpop.xlane.xlu1 %127  ;;  %v338_v55 = vsel %vm336_vm1, %v604_v53, 0 }
 0x187   :  { %v219_v60 = vadd.f32 1.0, %v662_v57  ;;  %669 = vpow2.f32 %v591_v56  ;;  %v594_v61 = vmul.f32 -1.442695, %v128_v59  ;;  %622 = vmatpush3.bf16.msra.mxu0 %v338_v55 }
 0x188   :  { %671 = vrcp.f32 %v220_v58  ;;  %v131_v62 = vpop.xlane.xlu0 %130  ;;  %627 = vmatprep.subr.bf16.mxu0 %v738_v52 }
 0x189   :  { %v664_v63 = vpop.eup %663  ;;  %673 = vrcp.f32 %v219_v60  ;;  %v595_v2 = vmul.f32 -1.442695, %v131_v62 }
 0x18a   :  { %v296_v3 = vadd.f32 1.0, %v664_v63  ;;  %675 = vpow2.f32 %v594_v61  ;;  %v177_v4 = vpop.xlane.xlu1 %176 }
 0x18b   :  { %677 = vpow2.f32 %v595_v2  ;;  %v596_v5 = vmul.f32 -1.442695, %v177_v4 }
 0x18c   :  { %679 = vrcp.f32 %v296_v3  ;;  %v180_v6 = vpop.xlane.xlu0 %179 }
 0x18d   :  { %v666_v7 = vpop.eup %665  ;;  %681 = vpow2.f32 %v596_v5  ;;  %v597_v8 = vmul.f32 -1.442695, %v180_v6 }
 0x18e   :  { %v297_v9 = vadd.f32 1.0, %v666_v7  ;;  %v254_v10 = vpop.xlane.xlu1 %253 }
 0x18f   :  { %v668_v11 = vpop.eup %667  ;;  %683 = vpow2.f32 %v597_v8  ;;  %v600_v12 = vmul.f32 -1.442695, %v254_v10 }
 0x190   :  { %685 = vrcp.f32 %v297_v9  ;;  %v71_v13 = vadd.f32 1.0, %v668_v11  ;;  %v257_v14 = vpop.xlane.xlu0 %256 }
 0x191   :  { %v670_v15 = vpop.eup %669  ;;  %687 = vpow2.f32 %v600_v12  ;;  %v601_v16 = vmul.f32 -1.442695, %v257_v14 }
 0x192   :  { %v825_v17 = vpop.eup %671  ;;  %689 = vrcp.f32 %v71_v13  ;;  %v72_v18 = vadd.f32 1.0, %v670_v15  ;;  %v32_v19 = vpop.xlane.xlu1 %31 }
 0x193   :  { %v827_v20 = vpop.eup %673  ;;  %691 = vpow2.f32 %v601_v16  ;;  %v588_v21 = vmul.f32 -1.442695, %v32_v19  ;;  %v228_v22 = vmul.f32 %v825_v17, %v774_v0 }
 0x194   :  { %v676_v23 = vpop.eup %675  ;;  %693 = vrcp.f32 %v72_v18  ;;  %v35_v24 = vpop.xlane.xlu0 %34  ;;  %v227_v25 = vmul.f32 %v827_v20, %v774_v0 }
 0x195   :  { %v678_v26 = vpop.eup %677  ;;  %v138_v27 = vadd.f32 1.0, %v676_v23  ;;  %695 = vpow2.f32 %v588_v21  ;;  %v589_v28 = vmul.f32 -1.442695, %v35_v24  ;;  %233 = vrot.lane.b32.xlu0 %v228_v22, %s736_s21 }
 0x196   :  { %v834_v29 = vpop.eup %679  ;;  %v139_v30 = vadd.f32 1.0, %v678_v26  ;;  %231 = vrot.lane.b32.xlu1 %v227_v25, %s736_s21  ;;  %v99_v31 = vpop.xlane.xlu1 %98 }
 0x197   :  { %v682_v32 = vpop.eup %681  ;;  %697 = vrcp.f32 %v138_v27  ;;  %v592_v33 = vmul.f32 -1.442695, %v99_v31  ;;  %v304_v34 = vmul.f32 %v834_v29, %v782_v1 }
 0x198   :  { %699 = vrcp.f32 %v139_v30  ;;  %v187_v35 = vadd.f32 1.0, %v682_v32  ;;  %v102_v36 = vpop.xlane.xlu0 %101 }
 0x199   :  { %v684_v37 = vpop.eup %683  ;;  %701 = vpow2.f32 %v589_v28  ;;  %v593_v38 = vmul.f32 -1.442695, %v102_v36 }
 0x19a   :  { %v686_v39 = vpop.eup %685  ;;  %703 = vrcp.f32 %v187_v35  ;;  %v188_v40 = vadd.f32 1.0, %v684_v37  ;;  %308 = vrot.lane.b32.xlu1 %v304_v34, %s736_s21 }
 0x19b   :  { %v688_v41 = vpop.eup %687  ;;  %705 = vpow2.f32 %v592_v33  ;;  %v305_v42 = vmul.f32 %v686_v39, %v782_v1 }
 0x19c   :  { %v690_v43 = vpop.eup %689  ;;  %707 = vrcp.f32 %v188_v40  ;;  %v264_v44 = vadd.f32 1.0, %v688_v41 }
 0x19d   :  { %v692_v45 = vpop.eup %691  ;;  %709 = vpow2.f32 %v593_v38  ;;  %v79_v46 = vmul.f32 %v690_v43, %v774_v0 }
 0x19e   :  { %v694_v47 = vpop.eup %693  ;;  %711 = vrcp.f32 %v264_v44  ;;  %v265_v48 = vadd.f32 1.0, %v692_v45  ;;  %310 = vrot.lane.b32.xlu1 %v305_v42, %s736_s21 }
 0x19f   :  { %v696_v49 = vpop.eup %695  ;;  %83 = vrot.lane.b32.xlu0 %v79_v46, %s736_s21  ;;  %v80_v50 = vmul.f32 %v694_v47, %v774_v0 }
 0x1a0   :  { %713 = vrcp.f32 %v265_v48  ;;  %v42_v51 = vadd.f32 1.0, %v696_v49 }
 0x1a1   :  { %v698_v54 = vpop.eup %697 }
 0x1a2   :  { %v700_v56 = vpop.eup %699  ;;  %85 = vrot.lane.b32.xlu1 %v80_v50, %s736_s21  ;;  %v146_v57 = vmul.f32 %v698_v54, %v782_v1  ;;  %715 = vrcp.f32 %v42_v51 }
 0x1a3   :  { %v702_v58 = vpop.eup %701  ;;  %v147_v59 = vmul.f32 %v700_v56, %v782_v1 }
 0x1a4   :  { %v704_v60 = vpop.eup %703  ;;  %v43_v61 = vadd.f32 1.0, %v702_v58  ;;  %150 = vrot.lane.b32.xlu0 %v146_v57, %s736_s21 }
 0x1a5   :  { %v706_v62 = vpop.eup %705  ;;  %v225_v4 = vadd.f32 %v704_v60, %v827_v20  ;;  %v195_v24 = vmul.f32 %v704_v60, %v774_v0 }
 0x1a6   :  { %v708_v63 = vpop.eup %707  ;;  %717 = vrcp.f32 %v43_v61  ;;  %v109_v2 = vadd.f32 1.0, %v706_v62  ;;  %152 = vrot.lane.b32.xlu1 %v147_v59, %s736_s21 }
 0x1a7   :  { %v710_v3 = vpop.eup %709  ;;  %v226_v7 = vadd.f32 %v708_v63, %v825_v17  ;;  %v609_v17 = vld [vmem:[%s914_s2 + $0x2] sm:$0x3] }
 0x1a8   :  { %v712_v5 = vpop.eup %711  ;;  %719 = vrcp.f32 %v109_v2  ;;  %v110_v6 = vadd.f32 1.0, %v710_v3  ;;  %v473_v25 = vsel %vm336_vm1, %v609_v17, 0 }
 0x1a9   :  { %v270_v8 = vadd.f32 %v712_v5, %v225_v4  ;;  %634 = vmatpush3.bf16.msra.mxu1 %v473_v25  ;;  %v272_v30 = vmul.f32 %v712_v5, %v782_v1  ;;  %v463_v5 = vld [vmem:[%s914_s2] sm:$0x3] }
 0x1aa   :  { %v714_v9 = vpop.eup %713  ;;  %721 = vrcp.f32 %v110_v6  ;;  %639 = vmatprep.subr.bf16.mxu1 %v738_v52  ;;  %v522_v6 = vsel %vm336_vm1, %v463_v5, 0 }
 0x1ab   :  { %v271_v10 = vadd.f32 %v714_v9, %v226_v7  ;;  %v302_v11 = vadd.f32 %v834_v29, %v270_v8  ;;  %v196_v29 = vmul.f32 %v708_v63, %v774_v0  ;;  %v273_v35 = vmul.f32 %v714_v9, %v782_v1 }
 0x1ac   :  { %v716_v13 = vpop.eup %715 }
 0x1ad   :  { %v303_v12 = vadd.f32 %v686_v39, %v271_v10  ;;  %v77_v15 = vadd.f32 %v716_v13, %v690_v43  ;;  %723 = vrcp.f32 %v302_v11  ;;  %v50_v40 = vmul.f32 %v716_v13, %v774_v0  ;;  %v320_v10 = vld [vmem:[%s915_s1] sm:$0x3f]  ;;  %v321_v13 = vld [vmem:[%s915_s1 + $0x8] sm:$0x3f] }
 0x1ae   :  { %v430_v11 = vmul.f32 0.5, %v320_v10 }
 0x1af   :  { %725 = vrcp.f32 %v303_v12 }
 0x1b0   :  { %v718_v14 = vpop.eup %717 }
 0x1b1   :  { %v78_v18 = vadd.f32 %v718_v14, %v694_v47  ;;  %v51_v48 = vmul.f32 %v718_v14, %v774_v0  ;;  %v325_v0 = vld [vmem:[%s914_s2] sm:$0x3] }
 0x1b2   :  { %v720_v16 = vpop.eup %719 }
 0x1b3   :  { %v115_v19 = vadd.f32 %v720_v16, %v77_v15  ;;  %v117_v46 = vmul.f32 %v720_v16, %v782_v1 }
 0x1b4   :  { %v722_v21 = vpop.eup %721 }
 0x1b5   :  { %v116_v20 = vadd.f32 %v722_v21, %v78_v18  ;;  %v144_v22 = vadd.f32 %v698_v54, %v115_v19  ;;  %v118_v54 = vmul.f32 %v722_v21, %v782_v1  ;;  %v387_v1 = vsel %vm336_vm1, %v325_v0, 0 }
 0x1b6   :  { %v565_v19 = vmul.f32 0.5, %v321_v13 }
 0x1b7   :  { %v145_v23 = vadd.f32 %v700_v56, %v116_v20  ;;  %v724_v36 = vpop.eup %723  ;;  %727 = vrcp.f32 %v144_v22 }
 0x1b9   :  { %729 = vrcp.f32 %v145_v23  ;;  %v726_v44 = vpop.eup %725 }
 0x1c1   :  { %v728_v58 = vpop.eup %727 }
 0x1c3   :  { %v730_v62 = vpop.eup %729 }
 0x207   :  { %v234_v27 = vpop.permute.xlu0 %233 }
 0x208   :  { %v232_v26 = vpop.permute.xlu1 %231  ;;  %v238_v31 = vadd.f32 %v234_v27, %v196_v29 }
 0x209   :  { %v237_v28 = vadd.f32 %v232_v26, %v195_v24 }
 0x20a   :  { %v275_v38 = vadd.f32 %v273_v35, %v238_v31 }
 0x20b   :  { %v274_v32 = vadd.f32 %v272_v30, %v237_v28 }
 0x20c   :  { %v309_v33 = vpop.permute.xlu1 %308 }
 0x20d   :  { %v314_v34 = vadd.f32 %v309_v33, %v274_v32 }
 0x20f   :  { %v318_v37 = vmul.f32 %v724_v36, %v314_v34 }
 0x210   :  { %v311_v39 = vpop.permute.xlu1 %310 }
 0x211   :  { %v326_v41 = vpack.c.bf16 %v318_v37, %v318_v37  ;;  %v315_v42 = vadd.f32 %v311_v39, %v275_v38  ;;  %v84_v43 = vpop.permute.xlu0 %83 }
 0x212   :  { %v89_v45 = vadd.f32 %v84_v43, %v50_v40 }
 0x213   :  { %v319_v47 = vmul.f32 %v726_v44, %v315_v42  ;;  %330 = vrot.lane.b32.xlu0 %v326_v41, %s740_s28  ;;  %v607_v44 = vld [vmem:[%s916_s3] ss:$0 sm:$0xff] }
 0x214   :  { %v86_v49 = vpop.permute.xlu1 %85  ;;  %v119_v50 = vadd.f32 %v117_v46, %v89_v45  ;;  %v608_v46 = vld [vmem:[%s917_s4] ss:$0 sm:$0xff] }
 0x215   :  { %v464_v51 = vpack.c.bf16 %v319_v47, %v319_v47  ;;  %v90_v53 = vadd.f32 %v86_v49, %v51_v48 }
 0x216   :  { %v151_v55 = vpop.permute.xlu0 %150 }
 0x217   :  { %v156_v56 = vadd.f32 %v151_v55, %v119_v50  ;;  %467 = vrot.lane.b32.xlu1 %v464_v51, %s740_s28  ;;  %v120_v57 = vadd.f32 %v118_v54, %v90_v53 }
 0x218   :  { %v153_v59 = vpop.permute.xlu1 %152 }
 0x219   :  { %v160_v60 = vmul.f32 %v728_v58, %v156_v56  ;;  %v157_v61 = vadd.f32 %v153_v59, %v120_v57 }
 0x21b   :  { %v324_v63 = vpack.c.bf16 %v160_v60, %v160_v60  ;;  %v161_v2 = vmul.f32 %v730_v62, %v157_v61 }
 0x21d   :  { %v462_v3 = vpack.c.bf16 %v161_v2, %v161_v2  ;;  %381 = vrot.lane.b32.xlu0 %v324_v63, %s740_s28 }
 0x21f   :  { %516 = vrot.lane.b32.xlu1 %v462_v3, %s740_s28 }
 0x285   :  { %v331_v4 = vpop.permute.xlu0 %330 }
 0x286   :  { %624 = vmatmul.mubr.msk.bf16.vlgmr.msra.gmra.mrb[0].mxu0 %vm332_vm3, %v331_v4 }
 0x287   :  { %628 = vmatpush3.bf16.msra.mxu0 %v387_v1  ;;  %629 = vmatprep.mubr.msk.bf16.mxu0 %vm739_vm2, %v738_v52 }
 0x289   :  { %v468_v7 = vpop.permute.xlu1 %467 }
 0x28a   :  { %636 = vmatmul.mubr.msk.bf16.vlgmr.msra.gmra.mrb[0].mxu1 %vm332_vm3, %v468_v7 }
 0x28b   :  { %640 = vmatpush3.bf16.msra.mxu1 %v522_v6  ;;  %641 = vmatprep.mubr.msk.bf16.mxu1 %vm739_vm2, %v738_v52 }
 0x28f   :  { %v382_v8 = vpop.permute.xlu0 %381 }
 0x291   :  { %v517_v9 = vpop.permute.xlu1 %516 }
 0x292   :  { %630 = vmatmul.mubr.msk.bf16.vlgmr.msra.gmra.mrb[0].mxu0 %vm332_vm3, %v382_v8 }
 0x296   :  { %642 = vmatmul.mubr.msk.bf16.vlgmr.msra.gmra.mrb[0].mxu1 %vm332_vm3, %v517_v9 }
 0x365   :  { %v423_v12 = vpop.f32.mrb[0].mxu0 }
 0x366   :  { %v429_v14 = vmul.f32 0.5, %v423_v12  ;;  %v631_v15 = vpop.f32.mrb[1].mxu0 }
 0x367   :  { %v426_v16 = vpop.f32.mrb[2].mxu0 }
 0x368   :  { %v632_v18 = vpop.f32.mrb[3].mxu0  ;;  %v431_v52 = vadd.f32 %v430_v11, %v429_v14 }
 0x369   :  { %v558_v21 = vpop.f32.mrb[0].mxu1 }
 0x36a   :  { %v564_v20 = vmul.f32 0.5, %v558_v21  ;;  %v643_v22 = vpop.f32.mrb[1].mxu1  ;;  %v433_v23 = vsel %vm432_vm4, %v431_v52, 0.0 }
 0x36b   :  { %v561_v17 = vpop.f32.mrb[2].mxu1  ;;  %434 = vadd.xlane.f32.xlu0 %v433_v23 }
 0x36c   :  { %v644_v24 = vpop.f32.mrb[3].mxu1  ;;  %v566_v25 = vadd.f32 %v565_v19, %v564_v20 }
 0x36e   :  { %v567_v26 = vsel %vm432_vm4, %v566_v25, 0.0 }
 0x36f   :  { %568 = vadd.xlane.f32.xlu0 %v567_v26 }
 0x3f8   :  { %v435_v27 = vpop.xlane.xlu0 %434 }
 0x3f9   :  { %v437_v28 = vmul.f32 0.125, %v435_v27 }
 0x3fb   :  { %v438_v29 = vsub.f32 %v431_v52, %v437_v28 }
 0x3fc   :  { %v569_v30 = vpop.xlane.xlu0 %568 }
 0x3fd   :  { %v570_v31 = vmul.f32 0.125, %v569_v30  ;;  %v439_v32 = vmul.f32 %v438_v29, %v438_v29 }
 0x3ff   :  { %v571_v33 = vsub.f32 %v566_v25, %v570_v31  ;;  %v440_v34 = vsel %vm432_vm4, %v439_v32, 0.0 }
 0x400   :  { %441 = vadd.xlane.f32.xlu1 %v440_v34 }
 0x401   :  { %v572_v35 = vmul.f32 %v571_v33, %v571_v33 }
 0x403   :  { %v573_v36 = vsel %vm432_vm4, %v572_v35, 0.0 }
 0x404   :  { %574 = vadd.xlane.f32.xlu0 %v573_v36 }
 0x48d   :  { %v442_v37 = vpop.xlane.xlu1 %441 }
 0x48e   :  { %v443_v38 = vmul.f32 0.125, %v442_v37 }
 0x490   :  { %v444_v39 = vadd.f32 1e-05, %v443_v38 }
 0x491   :  { %v575_v40 = vpop.xlane.xlu0 %574 }
 0x492   :  { %731 = vrsqrt.f32 %v444_v39  ;;  %v576_v41 = vmul.f32 0.125, %v575_v40 }
 0x494   :  { %v577_v42 = vadd.f32 1e-05, %v576_v41 }
 0x496   :  { %733 = vrsqrt.f32 %v577_v42 }
 0x49c   :  { %v732_v43 = vpop.eup %731 }
 0x49d   :  { %v446_v45 = vmul.f32 %v732_v43, %v438_v29 }
 0x49f   :  { %v453_v47 = vmul.f32 %v607_v44, %v446_v45 }
 0x4a0   :  { %v734_v48 = vpop.eup %733 }
 0x4a1   :  { %v460_v49 = vadd.f32 %v608_v46, %v453_v47  ;;  %v579_v50 = vmul.f32 %v734_v48, %v571_v33 }
 0x4a3   :  { %461 = vst.msk [vmem:[%s918_s5] sm:$0x3f] %vm432_vm4, %v460_v49  ;;  %v580_v51 = vmul.f32 %v607_v44, %v579_v50 }
 0x4a5   :  { %v581_v53 = vadd.f32 %v608_v46, %v580_v51 }
 0x4a7   :  { %612 = vst.msk [vmem:[%s918_s5 + $0x8] sm:$0x3f] %vm432_vm4, %v581_v53 }

// kernel: forward.36
= control target key start
LH: loop header
LB: loop body
LE: loop exit
PB: predicated region body
PF: predicated region fallthrough
CT: control target
= control target key end

     0   :  { %v133_v0 = vmov 0.0   ;;  %vm134_vm0 = vmmov 0   ;;  %vm46_vm1 = vcmask 392192   ;;  %s173_s1 = inlined_call_operand.vmem [shape: bf16[48,128], index: 1, kind: input, shape index: {}]   ;;  %s174_s0 = inlined_call_operand.vmem [shape: bf16[2,48], index: 0, kind: input, shape index: {}]   ;;  %s175_s2 = inlined_call_operand.vmem [shape: f32[1,128], index: 2, kind: input, shape index: {}]   ;;  %s176_s3 = inlined_call_operand.vmem [shape: f32[2,128], index: 3, kind: output, shape index: {}]  }
   0x1   :  { %118 = vmatprep.subr.bf16.mxu0 %v133_v0  ;;  %19 = vst [vmem:[#allocation2] sm:$0x3] %v133_v0  ;;  %v130_v1 = vld [vmem:[%s173_s1] sm:$0xff]   ;;  %124 = vmatprep.mubr.msk.bf16.mxu0 %vm134_vm0, %v133_v0  ;;  %v131_v2 = vld [vmem:[%s173_s1 + $0x8] sm:$0xff]   ;;  %v132_v3 = vld [vmem:[%s173_s1 + $0x10] sm:$0xff]  }
   0x2   :  { %119 = vmatpush3.bf16.msra.mxu0 %v130_v1  ;;  %v21_v4 = vld [vmem:[%s174_s0] sm:$0x1] }
   0x3   :  { %120 = vmatprep.subr.bf16.mxu0 %v133_v0  ;;  %v113_v11 = vld [vmem:[%s175_s2] ss:$0 sm:$0xff] }
   0x6   :  { %121 = vmatpush3.bf16.msra.mxu0 %v131_v2 }
   0x7   :  { %122 = vmatprep.subr.bf16.mxu0 %v133_v0 }
   0x8   :  { %v20_v5 = vld [vmem:[#allocation2] sm:$0x3] }
   0xa   :  { %123 = vmatpush3.bf16.msra.mxu0 %v132_v3 }
   0xd   :  { %125 = vmatmul.mubr.msk.bf16.vlgmr.msra.gmra.mrb[0].mxu0 %vm46_vm1, %v21_v4 }
  0xe0   :  { %v84_v6 = vpop.f32.mrb[0].mxu0 }
  0xe1   :  { %v90_v7 = vadd.f32 %v84_v6, %v20_v5  ;;  %v126_v8 = vpop.f32.mrb[1].mxu0 }
  0xe2   :  { %v87_v9 = vpop.f32.mrb[2].mxu0 }
  0xe3   :  { %91 = vst [vmem:[#allocation2] sm:$0x3] %v90_v7  ;;  %v127_v10 = vpop.f32.mrb[3].mxu0 }
  0xea   :  { %v95_v12 = vld [vmem:[#allocation2] sm:$0x3] }
  0xeb   :  { %v103_v13 = vadd.f32 %v113_v11, %v95_v12 }
  0xed   :  { %104 = vst [vmem:[%s176_s3] sm:$0x3] %v103_v13 }

// kernel: forward.37
= control target key start
LH: loop header
LB: loop body
LE: loop exit
PB: predicated region body
PF: predicated region fallthrough
CT: control target
= control target key end

     0   :  { %v231_v1 = vmov 0.0   ;;  %vm232_vm0 = vmmov 0   ;;  %vm20_vm1 = vcmask 9216   ;;  %s299_s0 = inlined_call_operand.vmem [shape: bf16[2,128], index: 0, kind: input, shape index: {}]   ;;  %s300_s1 = inlined_call_operand.vmem [shape: bf16[128,2], index: 1, kind: input, shape index: {}]   ;;  %s301_s2 = inlined_call_operand.vmem [shape: f32[1,2], index: 2, kind: input, shape index: {}]   ;;  %s302_s3 = inlined_call_operand.hbm [shape: f32[2,2], index: 3, kind: output, shape index: {}]  }
   0x1   :  { %v199_v0 = vld [vmem:[%s300_s1] sm:$0xff]   ;;  %176 = vmatprep.subr.bf16.mxu0 %v231_v1  ;;  %v200_v2 = vld [vmem:[%s300_s1 + $0x8] sm:$0xff]   ;;  %192 = vmatprep.mubr.msk.bf16.mxu0 %vm232_vm0, %v231_v1  ;;  %21 = vst.msk [vmem:[#allocation2] sm:$0x3] %vm20_vm1, %v231_v1  ;;  %v201_v3 = vld [vmem:[%s300_s1 + $0x10] sm:$0xff]  }
   0x2   :  { %177 = vmatpush3.bf16.msra.mxu0 %v199_v0 }
   0x3   :  { %178 = vmatprep.subr.bf16.mxu0 %v231_v1 }
   0x6   :  { %179 = vmatpush3.bf16.msra.mxu0 %v200_v2 }
   0x7   :  { %180 = vmatprep.subr.bf16.mxu0 %v231_v1 }
   0x8   :  { %8 = vsyncpa [#allocation4], 0  ;;  %v202_v4 = vld [vmem:[%s300_s1 + $0x18] sm:$0xff]   ;;  %v203_v5 = vld [vmem:[%s300_s1 + $0x20] sm:$0xff]  }
   0x9   :  { %v204_v6 = vld [vmem:[%s300_s1 + $0x28] sm:$0xff]   ;;  %v205_v7 = vld [vmem:[%s300_s1 + $0x30] sm:$0xff]   ;;  %v206_v8 = vld [vmem:[%s300_s1 + $0x38] sm:$0xff]   ;;  %s233_s1 = smov [#allocation3]  }
   0xa   :  { %181 = vmatpush3.bf16.msra.mxu0 %v201_v3  ;;  %v23_v9 = vld [vmem:[%s299_s0] sm:$0x1]  ;;  %s150_s5 = sshll.u32 %s233_s1, 4  ;;  %s151_s5 = int_to_ptr.vmem [resolvable:$true] %s150_s5 }
   0xb   :  { %182 = vmatprep.subr.bf16.mxu0 %v231_v1  ;;  %v22_v10 = vld [vmem:[#allocation2] sm:$0x3]  ;;  %s207_s0 = scalar_lea.vmem %s151_s5, 32  ;;  %p212_p1 = scmp.lt.s32.totalorder %s151_s5, %s151_s5 }
   0xc   :  { %v166_v16 = vld [vmem:[%s301_s2] ss:$0 sm:$0xff]  ;;  %p208_p0 = scmp.ne.s32.totalorder %s151_s5, %s207_s0  ;;  %p213_p2 = scmp.lt.s32.totalorder %s207_s0, %s207_s0 }
   0xe   :  { %183 = vmatpush3.bf16.msra.mxu0 %v202_v4  ;;  %p214_p3 = por %p213_p2, %p212_p1 }
   0xf   :  { %184 = vmatprep.subr.bf16.mxu0 %v231_v1 }
  0x10   :  { %p215_p4 = pnand %p214_p3, %p208_p0 }
  0x12   :  { %185 = vmatpush3.bf16.msra.mxu0 %v203_v5 }
  0x13   :  { %186 = vmatprep.subr.bf16.mxu0 %v231_v1 }
  0x16   :  { %187 = vmatpush3.bf16.msra.mxu0 %v204_v6 }
  0x17   :  { %188 = vmatprep.subr.bf16.mxu0 %v231_v1 }
  0x1a   :  { %189 = vmatpush3.bf16.msra.mxu0 %v205_v7 }
  0x1b   :  { %190 = vmatprep.subr.bf16.mxu0 %v231_v1 }
  0x1e   :  { %191 = vmatpush3.bf16.msra.mxu0 %v206_v8 }
  0x21   :  { %193 = vmatmul.mubr.bf16.vlgmr.msra.gmra.mrb[0].mxu0 %v23_v9 }
  0xf4   :  { %v122_v11 = vpop.f32.mrb[0].mxu0 }
  0xf5   :  { %v128_v12 = vadd.f32 %v122_v11, %v22_v10  ;;  %v194_v13 = vpop.f32.mrb[1].mxu0 }
  0xf6   :  { %v125_v14 = vpop.f32.mrb[2].mxu0 }
  0xf7   :  { %130 = vst.msk [vmem:[#allocation2] sm:$0x3] %vm20_vm1, %v128_v12  ;;  %v195_v15 = vpop.f32.mrb[3].mxu0 }
  0xfe   :  { %v134_v17 = vld [vmem:[#allocation2] sm:$0x3] }
  0xff   :  { %v142_v18 = vadd.f32 %v166_v16, %v134_v17 }
 0x101   :  { %143 = vst.msk [vmem:[#allocation3] sm:$0x3] %vm20_vm1, %v142_v18 }
 0x102   :  { %218 = shalt.err (!%p215_p4)
}
 0x103   :  { %s219_s8 = scalar_lea.hbm %s302_s3, 32 }
 0x104   :  { %p220_p5 = scmp.ne.s32.totalorder %s302_s3, %s219_s8  ;;  %p223_p6 = scmp.lt.u32.totalorder %s219_s8, %s302_s3 }
 0x106   :  { %p225_p7 = pnand %p223_p6, %p220_p5 }
 0x108   :  { %228 = shalt.err (!%p225_p7)
}
 0x109   :  { %153 = dma.vmem_to_hbm [thread:$0]  %s151_s5, 32, %s302_s3, [#allocation4]  }
 0x10a   :  { %229 = dma.done.wait [#allocation4], 32  }
 0x10b   :  { %230 = vsyncadd [#allocation4], 4294967264 }
 0x10c   :  { %157 = vsyncpa [#allocation4], 1 }

</bundles_post_ra>
